<compile_context>
chip_gen: v5e
topology: v5e:2x2
jax: 0.10.0
libtpu: 0.0.40
codegen_flags: <defaults>
</compile_context>

<pallas_src>
import jax
import jax.numpy as jnp
import numpy as np
from jax.experimental import pallas as pl
from jax.experimental.pallas import tpu as pltpu

GEM_EPS = 1e-6   # GeneralizedMeanPoolingP eps (clamp min)
BN_EPS = 1e-5    # nn.BatchNorm1d default eps


def _make_kernel(*, B, HW, C, hw_chunk, p_static):
    n_full = HW // hw_chunk
    rem = HW - n_full * hw_chunk
    inv_hw = 1.0 / float(HW)
    use_int_pow = (p_static is not None
                   and float(p_static) == round(float(p_static))
                   and 1.0 <= float(p_static) <= 8.0)

    def _body(x_ref, gamma_ref, beta_ref, mean_ref, var_ref, w_ref,
              bn_out_ref, cls_out_ref, bn_scratch, p_val):
        j = pl.program_id(0)

        # GeM pooling + BatchNorm only on the first weight tile; result is
        # kept in a VMEM scratch and reused by every tile's matmul.
        @pl.when(j == 0)
        def _():
            def powp(xc):
                if use_int_pow:
                    # integer power on the VPU -> no EUP transcendentals
                    out = xc
                    for _ in range(int(round(float(p_static))) - 1):
                        out = out * xc
                    return out
                return jnp.exp(p_val * jnp.log(xc))   # dynamic learnable p

            def chunk_sum(start, size):
                xb = x_ref[:, pl.ds(start, size), :].astype(jnp.float32)
                xc = jnp.maximum(xb, GEM_EPS)
                return jnp.sum(powp(xc), axis=1)       # (B, C) f32 partial sum

            def loop_body(i, acc):
                start = pl.multiple_of(i * hw_chunk, hw_chunk)
                return acc + chunk_sum(start, hw_chunk)

            acc = jax.lax.fori_loop(0, n_full, loop_body,
                                    jnp.zeros((B, C), jnp.float32),
                                    unroll=True)
            if rem:
                acc = acc + chunk_sum(n_full * hw_chunk, rem)

            pooled = acc * inv_hw                       # spatial mean (f32)
            pooled = jnp.exp(jnp.log(pooled) * (1.0 / p_val))   # pooled^(1/p)

            # BatchNorm1d, eval mode (running statistics).
            # TODO(synk): training-mode batch statistics are not implemented.
            inv_std = jax.lax.rsqrt(var_ref[...] + BN_EPS)
            bn = ((pooled - mean_ref[...]) * inv_std * gamma_ref[...]
                  + beta_ref[...])
            bn_scratch[...] = bn
            bn_out_ref[...] = bn.astype(bn_out_ref.dtype)

        # Linear(2048 -> pid_num, bias=False), one lane-dense N tile per step.
        cls_out_ref[...] = jnp.dot(
            bn_scratch[...].astype(w_ref.dtype), w_ref[...],
            preferred_element_type=jnp.float32).astype(cls_out_ref.dtype)

    if p_static is None:
        def kernel(p_ref, x_ref, gamma_ref, beta_ref, mean_ref, var_ref,
                   w_ref, bn_out_ref, cls_out_ref, bn_scratch):
            _body(x_ref, gamma_ref, beta_ref, mean_ref, var_ref, w_ref,
                  bn_out_ref, cls_out_ref, bn_scratch, p_ref[0])
    else:
        p_const = float(p_static)

        def kernel(x_ref, gamma_ref, beta_ref, mean_ref, var_ref,
                   w_ref, bn_out_ref, cls_out_ref, bn_scratch):
            _body(x_ref, gamma_ref, beta_ref, mean_ref, var_ref, w_ref,
                  bn_out_ref, cls_out_ref, bn_scratch, p_const)
    return kernel


def classifier2_forward_nhwc(features_map_nhwc, p, gamma, beta,
                             run_mean, run_var, w, *,
                             tile_n=256, hw_chunk=8,
                             feature_dtype=jnp.bfloat16):
    """features_map_nhwc: (B, H, W, C) channels-last feature map.
       p: Python float (static fast path) or jnp array shape (1,) (learnable).
       w: classifier weight (pid_num, C) like nn.Linear."""
    B, H, W_sp, C = features_map_nhwc.shape
    HW = H * W_sp
    pid_num = w.shape[0]

    # channels-last, lane-dense C; reshape only (no transpose), bf16 over HBM.
    x = features_map_nhwc.reshape(B, HW, C).astype(feature_dtype)

    # pad pid_num to a multiple of tile_n so every output tile is lane-dense
    n_pad = ((pid_num + tile_n - 1) // tile_n) * tile_n
    w_pad = jnp.pad(w, ((0, n_pad - pid_num), (0, 0)))
    w_t = jnp.transpose(w_pad).astype(jnp.bfloat16)          # (C, n_pad)

    gamma2 = gamma.reshape(1, C).astype(jnp.float32)
    beta2 = beta.reshape(1, C).astype(jnp.float32)
    mean2 = run_mean.reshape(1, C).astype(jnp.float32)
    var2 = run_var.reshape(1, C).astype(jnp.float32)

    p_static = float(p) if isinstance(p, (int, float)) else None
    kernel = _make_kernel(B=B, HW=HW, C=C,
                          hw_chunk=min(hw_chunk, HW), p_static=p_static)

    num_tiles = n_pad // tile_n

    x_spec = pl.BlockSpec((B, HW, C), lambda j: (0, 0, 0))   # resident
    vec_spec = pl.BlockSpec((1, C), lambda j: (0, 0))
    w_spec = pl.BlockSpec((C, tile_n), lambda j: (0, j))     # streamed tiles

    in_specs = [x_spec, vec_spec, vec_spec, vec_spec, vec_spec, w_spec]
    args = [x, gamma2, beta2, mean2, var2, w_t]
    if p_static is None:
        in_specs = [pl.BlockSpec(memory_space=pltpu.SMEM)] + in_specs
        args = [jnp.asarray(p, jnp.float32).reshape(1)] + args

    # rough VMEM budget: double-buffered inputs/outputs + f32 scratch + margin
    est = (2 * x.size * x.dtype.itemsize      # feature block
           + 2 * C * tile_n * 2               # bf16 weight tile (dbl-buffered)
           + 2 * B * tile_n * 4               # logits tile
           + 2 * B * C * 4                    # bn output block
           + 8 * C * 4                        # BN params / stats
           + B * C * 4)                       # bn scratch
    vmem_limit = int(max(est + (4 << 20), 16 << 20))

    bn_features, cls_padded = pl.pallas_call(
        kernel,
        out_shape=(
            jax.ShapeDtypeStruct((B, C), jnp.float32),
            jax.ShapeDtypeStruct((B, n_pad), jnp.float32),
        ),
        grid=(num_tiles,),
        in_specs=in_specs,
        out_specs=(
            pl.BlockSpec((B, C), lambda j: (0, 0)),
            pl.BlockSpec((B, tile_n), lambda j: (0, j)),
        ),
        scratch_shapes=[pltpu.VMEM((B, C), jnp.float32)],
        compiler_params=pltpu.CompilerParams(
            # N axis must be "arbitrary": tile 0 computes GeM+BN into scratch
            # that the later tiles consume.
            # TODO(synk): add a parallel batch/HW grid axis for v7x megacore.
            dimension_semantics=("arbitrary",),
            vmem_limit_bytes=vmem_limit,
        ),
    )(*args)

    return bn_features, cls_padded[:, :pid_num]


def classifier2_forward(features_map_nchw, p, gamma, beta, run_mean,
                        run_var, w, **kw):
    """NCHW adapter matching the PyTorch module's input layout.  Prefer a
    channels-last backbone + classifier2_forward_nhwc to avoid this extra
    HBM round-trip transpose."""
    x_nhwc = jnp.transpose(features_map_nchw, (0, 2, 3, 1))
    return classifier2_forward_nhwc(x_nhwc, p, gamma, beta, run_mean,
                                    run_var, w, **kw)


if __name__ == "__main__":
    key = jax.random.PRNGKey(0)
    B, C, H, W = 2, 2048, 8, 8          # backbone feature map (C fixed by BN(2048))
    pid_num = 384                       # -> padded to 512, two 256-wide weight tiles

    k_x, k_w = jax.random.split(key)
    # channels-last feature map straight from the backbone
    features_nhwc = jax.random.uniform(k_x, (B, H, W, C), jnp.float32)

    # deterministic params mirroring the module's __init__:
    p = 3.0                                              # GeneralizedMeanPoolingP p=3
    gamma = jnp.ones((C,), jnp.float32)                  # weights_init_kaiming: BN weight=1
    beta = jnp.zeros((C,), jnp.float32)                  # BN bias=0
    run_mean = jnp.zeros((C,), jnp.float32)
    run_var = jnp.ones((C,), jnp.float32)
    w = jax.random.normal(k_w, (pid_num, C), jnp.float32) * 1e-3  # weights_init_classifier

    # static-p fast path (integer power on the VPU)
    bn_features, cls_score = classifier2_forward_nhwc(
        features_nhwc, p, gamma, beta, run_mean, run_var, w)
    # dynamic (learnable) p path
    bn_d, cls_d = classifier2_forward_nhwc(
        features_nhwc, jnp.full((1,), p, jnp.float32), gamma, beta,
        run_mean, run_var, w)
    jax.block_until_ready((bn_features, cls_score, bn_d, cls_d))

    assert bn_features.shape == (B, C)
    assert cls_score.shape == (B, pid_num)

    # reference (uses the same bf16 feature / weight quantization as the kernel)
    xq = features_nhwc.astype(jnp.bfloat16).astype(jnp.float32)
    pooled = jnp.mean(jnp.maximum(xq, GEM_EPS) ** p, axis=(1, 2)) ** (1.0 / p)
    bn_ref = (pooled - run_mean) * jax.lax.rsqrt(run_var + BN_EPS) * gamma + beta
    cls_ref = jnp.dot(bn_ref.astype(jnp.bfloat16), w.T.astype(jnp.bfloat16),
                      preferred_element_type=jnp.float32)

    np.testing.assert_allclose(np.asarray(bn_features), np.asarray(bn_ref),
                               rtol=1e-2, atol=1e-3)
    np.testing.assert_allclose(np.asarray(cls_score), np.asarray(cls_ref),
                               rtol=5e-2, atol=1e-3)
    np.testing.assert_allclose(np.asarray(bn_d), np.asarray(bn_features),
                               rtol=1e-2, atol=1e-3)
    print("KERNEL_OK")
</pallas_src>

<mosaic_0001>
module attributes {stable_mosaic.version = 11 : i64} {
  func.func @kernel(%arg0: i32, %arg1: memref<2x64x2048xbf16, #tpu.memory_space<vmem>>, %arg2: memref<1x2048xf32, #tpu.memory_space<vmem>>, %arg3: memref<1x2048xf32, #tpu.memory_space<vmem>>, %arg4: memref<1x2048xf32, #tpu.memory_space<vmem>>, %arg5: memref<1x2048xf32, #tpu.memory_space<vmem>>, %arg6: memref<2048x256xbf16, #tpu.memory_space<vmem>>, %arg7: memref<2x2048xf32, #tpu.memory_space<vmem>>, %arg8: memref<2x256xf32, #tpu.memory_space<vmem>>, %arg9: memref<2x2048xf32, #tpu.memory_space<vmem>>) attributes {dimension_semantics = [#tpu.dimension_semantics<arbitrary>], iteration_bounds = array<i64: 2>, scalar_prefetch = 0 : i64, scratch_operands = 1 : i64, tpu.core_type = #tpu.core_type<tc>, window_params = [{pipeline_mode = #tpu.pipeline_mode<synchronous>, transform_indices = @transform_0, window_bounds = array<i64: 2, 64, 2048>}, {pipeline_mode = #tpu.pipeline_mode<synchronous>, transform_indices = @transform_1, window_bounds = array<i64: 1, 2048>}, {pipeline_mode = #tpu.pipeline_mode<synchronous>, transform_indices = @transform_2, window_bounds = array<i64: 1, 2048>}, {pipeline_mode = #tpu.pipeline_mode<synchronous>, transform_indices = @transform_3, window_bounds = array<i64: 1, 2048>}, {pipeline_mode = #tpu.pipeline_mode<synchronous>, transform_indices = @transform_4, window_bounds = array<i64: 1, 2048>}, {transform_indices = @transform_5, window_bounds = array<i64: 2048, 256>}, {pipeline_mode = #tpu.pipeline_mode<synchronous>, transform_indices = @transform_6, window_bounds = array<i64: 2, 2048>}, {transform_indices = @transform_7, window_bounds = array<i64: 2, 256>}]} {
    %c0_i32 = arith.constant 0 : i32
    %0 = arith.cmpi eq, %arg0, %c0_i32 : i32
    %1 = arith.extui %0 : i1 to i32
    %c0_i32_0 = arith.constant 0 : i32
    %2 = arith.cmpi ne, %1, %c0_i32_0 : i32
    scf.if %2 {
      %cst_6 = arith.constant 0.000000e+00 : f32
      %8 = vector.broadcast %cst_6 : f32 to vector<2x2048xf32>
      %c0_i32_7 = arith.constant 0 : i32
      %c8_i32 = arith.constant 8 : i32
      %9 = arith.muli %c0_i32_7, %c8_i32 : i32
      %10 = tpu.assume_multiple %9, 8 : i32
      %c0_8 = arith.constant 0 : index
      %11 = arith.index_cast %10 : i32 to index
      %c0_9 = arith.constant 0 : index
      %12 = vector.load %arg1[%c0_8, %11, %c0_9] : memref<2x64x2048xbf16, #tpu.memory_space<vmem>>, vector<2x8x2048xbf16>
      %13 = arith.extf %12 : vector<2x8x2048xbf16> to vector<2x8x2048xf32>
      %cst_10 = arith.constant 9.99999997E-7 : f32
      %14 = vector.broadcast %cst_10 : f32 to vector<2x8x2048xf32>
      %15 = arith.maximumf %13, %14 : vector<2x8x2048xf32>
      %16 = arith.mulf %15, %15 : vector<2x8x2048xf32>
      %17 = arith.mulf %16, %15 : vector<2x8x2048xf32>
      %cst_11 = arith.constant dense<0.000000e+00> : vector<2x2048xf32>
      %18 = vector.multi_reduction <add>, %17, %cst_11 [1] : vector<2x8x2048xf32> to vector<2x2048xf32>
      %19 = arith.addf %8, %18 : vector<2x2048xf32>
      %c1_i32 = arith.constant 1 : i32
      %c8_i32_12 = arith.constant 8 : i32
      %20 = arith.muli %c1_i32, %c8_i32_12 : i32
      %21 = tpu.assume_multiple %20, 8 : i32
      %c0_13 = arith.constant 0 : index
      %22 = arith.index_cast %21 : i32 to index
      %c0_14 = arith.constant 0 : index
      %23 = vector.load %arg1[%c0_13, %22, %c0_14] : memref<2x64x2048xbf16, #tpu.memory_space<vmem>>, vector<2x8x2048xbf16>
      %24 = arith.extf %23 : vector<2x8x2048xbf16> to vector<2x8x2048xf32>
      %cst_15 = arith.constant 9.99999997E-7 : f32
      %25 = vector.broadcast %cst_15 : f32 to vector<2x8x2048xf32>
      %26 = arith.maximumf %24, %25 : vector<2x8x2048xf32>
      %27 = arith.mulf %26, %26 : vector<2x8x2048xf32>
      %28 = arith.mulf %27, %26 : vector<2x8x2048xf32>
      %cst_16 = arith.constant dense<0.000000e+00> : vector<2x2048xf32>
      %29 = vector.multi_reduction <add>, %28, %cst_16 [1] : vector<2x8x2048xf32> to vector<2x2048xf32>
      %30 = arith.addf %19, %29 : vector<2x2048xf32>
      %c2_i32 = arith.constant 2 : i32
      %c8_i32_17 = arith.constant 8 : i32
      %31 = arith.muli %c2_i32, %c8_i32_17 : i32
      %32 = tpu.assume_multiple %31, 8 : i32
      %c0_18 = arith.constant 0 : index
      %33 = arith.index_cast %32 : i32 to index
      %c0_19 = arith.constant 0 : index
      %34 = vector.load %arg1[%c0_18, %33, %c0_19] : memref<2x64x2048xbf16, #tpu.memory_space<vmem>>, vector<2x8x2048xbf16>
      %35 = arith.extf %34 : vector<2x8x2048xbf16> to vector<2x8x2048xf32>
      %cst_20 = arith.constant 9.99999997E-7 : f32
      %36 = vector.broadcast %cst_20 : f32 to vector<2x8x2048xf32>
      %37 = arith.maximumf %35, %36 : vector<2x8x2048xf32>
      %38 = arith.mulf %37, %37 : vector<2x8x2048xf32>
      %39 = arith.mulf %38, %37 : vector<2x8x2048xf32>
      %cst_21 = arith.constant dense<0.000000e+00> : vector<2x2048xf32>
      %40 = vector.multi_reduction <add>, %39, %cst_21 [1] : vector<2x8x2048xf32> to vector<2x2048xf32>
      %41 = arith.addf %30, %40 : vector<2x2048xf32>
      %c3_i32 = arith.constant 3 : i32
      %c8_i32_22 = arith.constant 8 : i32
      %42 = arith.muli %c3_i32, %c8_i32_22 : i32
      %43 = tpu.assume_multiple %42, 8 : i32
      %c0_23 = arith.constant 0 : index
      %44 = arith.index_cast %43 : i32 to index
      %c0_24 = arith.constant 0 : index
      %45 = vector.load %arg1[%c0_23, %44, %c0_24] : memref<2x64x2048xbf16, #tpu.memory_space<vmem>>, vector<2x8x2048xbf16>
      %46 = arith.extf %45 : vector<2x8x2048xbf16> to vector<2x8x2048xf32>
      %cst_25 = arith.constant 9.99999997E-7 : f32
      %47 = vector.broadcast %cst_25 : f32 to vector<2x8x2048xf32>
      %48 = arith.maximumf %46, %47 : vector<2x8x2048xf32>
      %49 = arith.mulf %48, %48 : vector<2x8x2048xf32>
      %50 = arith.mulf %49, %48 : vector<2x8x2048xf32>
      %cst_26 = arith.constant dense<0.000000e+00> : vector<2x2048xf32>
      %51 = vector.multi_reduction <add>, %50, %cst_26 [1] : vector<2x8x2048xf32> to vector<2x2048xf32>
      %52 = arith.addf %41, %51 : vector<2x2048xf32>
      %c4_i32 = arith.constant 4 : i32
      %c8_i32_27 = arith.constant 8 : i32
      %53 = arith.muli %c4_i32, %c8_i32_27 : i32
      %54 = tpu.assume_multiple %53, 8 : i32
      %c0_28 = arith.constant 0 : index
      %55 = arith.index_cast %54 : i32 to index
      %c0_29 = arith.constant 0 : index
      %56 = vector.load %arg1[%c0_28, %55, %c0_29] : memref<2x64x2048xbf16, #tpu.memory_space<vmem>>, vector<2x8x2048xbf16>
      %57 = arith.extf %56 : vector<2x8x2048xbf16> to vector<2x8x2048xf32>
      %cst_30 = arith.constant 9.99999997E-7 : f32
      %58 = vector.broadcast %cst_30 : f32 to vector<2x8x2048xf32>
      %59 = arith.maximumf %57, %58 : vector<2x8x2048xf32>
      %60 = arith.mulf %59, %59 : vector<2x8x2048xf32>
      %61 = arith.mulf %60, %59 : vector<2x8x2048xf32>
      %cst_31 = arith.constant dense<0.000000e+00> : vector<2x2048xf32>
      %62 = vector.multi_reduction <add>, %61, %cst_31 [1] : vector<2x8x2048xf32> to vector<2x2048xf32>
      %63 = arith.addf %52, %62 : vector<2x2048xf32>
      %c5_i32 = arith.constant 5 : i32
      %c8_i32_32 = arith.constant 8 : i32
      %64 = arith.muli %c5_i32, %c8_i32_32 : i32
      %65 = tpu.assume_multiple %64, 8 : i32
      %c0_33 = arith.constant 0 : index
      %66 = arith.index_cast %65 : i32 to index
      %c0_34 = arith.constant 0 : index
      %67 = vector.load %arg1[%c0_33, %66, %c0_34] : memref<2x64x2048xbf16, #tpu.memory_space<vmem>>, vector<2x8x2048xbf16>
      %68 = arith.extf %67 : vector<2x8x2048xbf16> to vector<2x8x2048xf32>
      %cst_35 = arith.constant 9.99999997E-7 : f32
      %69 = vector.broadcast %cst_35 : f32 to vector<2x8x2048xf32>
      %70 = arith.maximumf %68, %69 : vector<2x8x2048xf32>
      %71 = arith.mulf %70, %70 : vector<2x8x2048xf32>
      %72 = arith.mulf %71, %70 : vector<2x8x2048xf32>
      %cst_36 = arith.constant dense<0.000000e+00> : vector<2x2048xf32>
      %73 = vector.multi_reduction <add>, %72, %cst_36 [1] : vector<2x8x2048xf32> to vector<2x2048xf32>
      %74 = arith.addf %63, %73 : vector<2x2048xf32>
      %c6_i32 = arith.constant 6 : i32
      %c8_i32_37 = arith.constant 8 : i32
      %75 = arith.muli %c6_i32, %c8_i32_37 : i32
      %76 = tpu.assume_multiple %75, 8 : i32
      %c0_38 = arith.constant 0 : index
      %77 = arith.index_cast %76 : i32 to index
      %c0_39 = arith.constant 0 : index
      %78 = vector.load %arg1[%c0_38, %77, %c0_39] : memref<2x64x2048xbf16, #tpu.memory_space<vmem>>, vector<2x8x2048xbf16>
      %79 = arith.extf %78 : vector<2x8x2048xbf16> to vector<2x8x2048xf32>
      %cst_40 = arith.constant 9.99999997E-7 : f32
      %80 = vector.broadcast %cst_40 : f32 to vector<2x8x2048xf32>
      %81 = arith.maximumf %79, %80 : vector<2x8x2048xf32>
      %82 = arith.mulf %81, %81 : vector<2x8x2048xf32>
      %83 = arith.mulf %82, %81 : vector<2x8x2048xf32>
      %cst_41 = arith.constant dense<0.000000e+00> : vector<2x2048xf32>
      %84 = vector.multi_reduction <add>, %83, %cst_41 [1] : vector<2x8x2048xf32> to vector<2x2048xf32>
      %85 = arith.addf %74, %84 : vector<2x2048xf32>
      %c7_i32 = arith.constant 7 : i32
      %c8_i32_42 = arith.constant 8 : i32
      %86 = arith.muli %c7_i32, %c8_i32_42 : i32
      %87 = tpu.assume_multiple %86, 8 : i32
      %c0_43 = arith.constant 0 : index
      %88 = arith.index_cast %87 : i32 to index
      %c0_44 = arith.constant 0 : index
      %89 = vector.load %arg1[%c0_43, %88, %c0_44] : memref<2x64x2048xbf16, #tpu.memory_space<vmem>>, vector<2x8x2048xbf16>
      %90 = arith.extf %89 : vector<2x8x2048xbf16> to vector<2x8x2048xf32>
      %cst_45 = arith.constant 9.99999997E-7 : f32
      %91 = vector.broadcast %cst_45 : f32 to vector<2x8x2048xf32>
      %92 = arith.maximumf %90, %91 : vector<2x8x2048xf32>
      %93 = arith.mulf %92, %92 : vector<2x8x2048xf32>
      %94 = arith.mulf %93, %92 : vector<2x8x2048xf32>
      %cst_46 = arith.constant dense<0.000000e+00> : vector<2x2048xf32>
      %95 = vector.multi_reduction <add>, %94, %cst_46 [1] : vector<2x8x2048xf32> to vector<2x2048xf32>
      %96 = arith.addf %85, %95 : vector<2x2048xf32>
      %c8_i32_47 = arith.constant 8 : i32
      %cst_48 = arith.constant 1.562500e-02 : f32
      %97 = vector.broadcast %cst_48 : f32 to vector<2x2048xf32>
      %98 = arith.mulf %96, %97 : vector<2x2048xf32>
      %99 = math.log %98 : vector<2x2048xf32>
      %cst_49 = arith.constant 0.333333343 : f32
      %100 = vector.broadcast %cst_49 : f32 to vector<2x2048xf32>
      %101 = arith.mulf %99, %100 : vector<2x2048xf32>
      %102 = math.exp %101 : vector<2x2048xf32>
      %c0_50 = arith.constant 0 : index
      %c0_51 = arith.constant 0 : index
      %103 = vector.load %arg5[%c0_50, %c0_51] : memref<1x2048xf32, #tpu.memory_space<vmem>>, vector<1x2048xf32>
      %cst_52 = arith.constant 9.99999974E-6 : f32
      %104 = vector.broadcast %cst_52 : f32 to vector<1x2048xf32>
      %105 = arith.addf %103, %104 : vector<1x2048xf32>
      %106 = math.rsqrt %105 : vector<1x2048xf32>
      %c0_53 = arith.constant 0 : index
      %c0_54 = arith.constant 0 : index
      %107 = vector.load %arg4[%c0_53, %c0_54] : memref<1x2048xf32, #tpu.memory_space<vmem>>, vector<1x2048xf32>
      %108 = vector.broadcast %107 : vector<1x2048xf32> to vector<2x2048xf32>
      %109 = arith.subf %102, %108 : vector<2x2048xf32>
      %110 = vector.broadcast %106 : vector<1x2048xf32> to vector<2x2048xf32>
      %111 = arith.mulf %109, %110 : vector<2x2048xf32>
      %c0_55 = arith.constant 0 : index
      %c0_56 = arith.constant 0 : index
      %112 = vector.load %arg2[%c0_55, %c0_56] : memref<1x2048xf32, #tpu.memory_space<vmem>>, vector<1x2048xf32>
      %113 = vector.broadcast %112 : vector<1x2048xf32> to vector<2x2048xf32>
      %114 = arith.mulf %111, %113 : vector<2x2048xf32>
      %c0_57 = arith.constant 0 : index
      %c0_58 = arith.constant 0 : index
      %115 = vector.load %arg3[%c0_57, %c0_58] : memref<1x2048xf32, #tpu.memory_space<vmem>>, vector<1x2048xf32>
      %116 = vector.broadcast %115 : vector<1x2048xf32> to vector<2x2048xf32>
      %117 = arith.addf %114, %116 : vector<2x2048xf32>
      %c0_59 = arith.constant 0 : index
      %c0_60 = arith.constant 0 : index
      %118 = vector.load %arg9[%c0_59, %c0_60] : memref<2x2048xf32, #tpu.memory_space<vmem>>, vector<2x2048xf32>
      tpu.vector_store %arg9[%c0_59, %c0_60], %117 {strides = array<i32>} : memref<2x2048xf32, #tpu.memory_space<vmem>>, vector<2x2048xf32>,
      %c0_61 = arith.constant 0 : index
      %c0_62 = arith.constant 0 : index
      %119 = vector.load %arg7[%c0_61, %c0_62] : memref<2x2048xf32, #tpu.memory_space<vmem>>, vector<2x2048xf32>
      tpu.vector_store %arg7[%c0_61, %c0_62], %117 {strides = array<i32>} : memref<2x2048xf32, #tpu.memory_space<vmem>>, vector<2x2048xf32>,
    } else {
    }
    %c0 = arith.constant 0 : index
    %c0_1 = arith.constant 0 : index
    %3 = vector.load %arg9[%c0, %c0_1] : memref<2x2048xf32, #tpu.memory_space<vmem>>, vector<2x2048xf32>
    %4 = arith.truncf %3 : vector<2x2048xf32> to vector<2x2048xbf16>
    %c0_2 = arith.constant 0 : index
    %c0_3 = arith.constant 0 : index
    %5 = vector.load %arg6[%c0_2, %c0_3] : memref<2048x256xbf16, #tpu.memory_space<vmem>>, vector<2048x256xbf16>
    %cst = arith.constant dense<0.000000e+00> : vector<2x256xf32>
    %6 = tpu.matmul %4, %5, %cst {dimension_numbers = #tpu.dot_dimension_numbers<[1], [0], [0], [1], [0, 0, 1, 1], [], []>} : vector<2x2048xbf16>, vector<2048x256xbf16>, vector<2x256xf32> -> vector<2x256xf32>
    %c0_4 = arith.constant 0 : index
    %c0_5 = arith.constant 0 : index
    %7 = vector.load %arg8[%c0_4, %c0_5] : memref<2x256xf32, #tpu.memory_space<vmem>>, vector<2x256xf32>
    tpu.vector_store %arg8[%c0_4, %c0_5], %6 {strides = array<i32>} : memref<2x256xf32, #tpu.memory_space<vmem>>, vector<2x256xf32>,
    return
  }
  func.func @transform_0(%arg0: i32) -> (i32, i32, i32) {
    %c0_i32 = arith.constant 0 : i32
    %c0_i32_0 = arith.constant 0 : i32
    %c0_i32_1 = arith.constant 0 : i32
    %c0_i32_2 = arith.constant 0 : i32
    return %c0_i32, %c0_i32_0, %c0_i32_1 : i32, i32, i32
  }
  func.func @transform_1(%arg0: i32) -> (i32, i32) {
    %c0_i32 = arith.constant 0 : i32
    %c0_i32_0 = arith.constant 0 : i32
    %c0_i32_1 = arith.constant 0 : i32
    return %c0_i32, %c0_i32_0 : i32, i32
  }
  func.func @transform_2(%arg0: i32) -> (i32, i32) {
    %c0_i32 = arith.constant 0 : i32
    %c0_i32_0 = arith.constant 0 : i32
    %c0_i32_1 = arith.constant 0 : i32
    return %c0_i32, %c0_i32_0 : i32, i32
  }
  func.func @transform_3(%arg0: i32) -> (i32, i32) {
    %c0_i32 = arith.constant 0 : i32
    %c0_i32_0 = arith.constant 0 : i32
    %c0_i32_1 = arith.constant 0 : i32
    return %c0_i32, %c0_i32_0 : i32, i32
  }
  func.func @transform_4(%arg0: i32) -> (i32, i32) {
    %c0_i32 = arith.constant 0 : i32
    %c0_i32_0 = arith.constant 0 : i32
    %c0_i32_1 = arith.constant 0 : i32
    return %c0_i32, %c0_i32_0 : i32, i32
  }
  func.func @transform_5(%arg0: i32) -> (i32, i32) {
    %c0_i32 = arith.constant 0 : i32
    %c0_i32_0 = arith.constant 0 : i32
    return %c0_i32, %arg0 : i32, i32
  }
  func.func @transform_6(%arg0: i32) -> (i32, i32) {
    %c0_i32 = arith.constant 0 : i32
    %c0_i32_0 = arith.constant 0 : i32
    %c0_i32_1 = arith.constant 0 : i32
    return %c0_i32, %c0_i32_0 : i32, i32
  }
  func.func @transform_7(%arg0: i32) -> (i32, i32) {
    %c0_i32 = arith.constant 0 : i32
    %c0_i32_0 = arith.constant 0 : i32
    return %c0_i32, %arg0 : i32, i32
  }
}

</mosaic_0001>

<bundles_post_ra>
// kernel: tpu_custom_call.1
= control target key start
LH: loop header
LB: loop body
LE: loop exit
PB: predicated region body
PF: predicated region fallthrough
CT: control target
= control target key end

     0   :  { %s11395_s0 = inlined_call_operand.hbm [shape: bf16[2,64,2048], index: 0, kind: input, shape index: {}]   ;;  %s11396_s1 = inlined_call_operand.hbm [shape: f32[1,2048], index: 1, kind: input, shape index: {}]   ;;  %s11397_s2 = inlined_call_operand.hbm [shape: f32[1,2048], index: 2, kind: input, shape index: {}]   ;;  %s11398_s3 = inlined_call_operand.hbm [shape: f32[1,2048], index: 3, kind: input, shape index: {}]   ;;  %s11399_s4 = inlined_call_operand.hbm [shape: f32[1,2048], index: 4, kind: input, shape index: {}]   ;;  %s11400_s5 = inlined_call_operand.hbm [shape: bf16[2048,512], index: 5, kind: input, shape index: {}]   ;;  %s11401_s6 = inlined_call_operand.hbm [shape: f32[2,2048], index: 6, kind: output, shape index: {0}]   ;;  %s11402_s7 = inlined_call_operand.hbm [shape: f32[2,512], index: 7, kind: output, shape index: {1}]  }
   0x1   :  { %11474 = sst [smem:[#allocation62_spill]] %s11395_s0 }
   0x2   :  { %11475 = sst [smem:[#allocation63_spill]] %s11396_s1 }
   0x3   :  { %13 = vsyncpa [#allocation4], 0 }
   0x4   :  { %14 = vsyncpa [#allocation7], 0 }
   0x5   :  { %15 = vsyncpa [#allocation10], 0 }
   0x6   :  { %16 = vsyncpa [#allocation13], 0 }
   0x7   :  { %18 = vsyncpa [#allocation13 + $0x1], 0 }
   0x8   :  { %19 = vsyncpa [#allocation5], 0 }
   0x9   :  { %20 = vsyncpa [#allocation16], 0 }
   0xa   :  { %22 = vsyncpa [#allocation16 + $0x1], 0  ;;  %s8045_s24 = smov 0   ;;  %s8047_s25 = smov 0  }
   0xb   :  { %s8049_s26 = smov 0   ;;  %s8051_s27 = smov 0  }
   0xc LB: > { %s8066_s28 = sadd.s32 4294967295, %s7992_s27   ;;  %s6152_s29 = sadd.s32 4294967294, %s7992_s27   ;;  %s7992_s27 = sphi %s8051_s27, %s12176_s27   ;;  %s7988_s26 = sphi %s8049_s26, %s12175_s26   ;;  %s7984_s25 = sphi %s8047_s25, %s12174_s25   ;;  %s7980_s24 = sphi %s8045_s24, %s12173_s24  }
   0xd   : > { %p153_p0 = scmp.ne.s32.totalorder %s7984_s25, %s7980_s24  ;;  %p154_p1 = scmp.eq.s32.totalorder %s8066_s28, 0 }
   0xe   : > { %p11403_p2 = scmp.eq.s32.totalorder %s8066_s28, 1  ;;  %p204_p3 = scmp.eq.s32.totalorder %s6152_s29, 1 }
   0xf   : > { %p8075_p4 = por %p154_p1, %p153_p0  ;;  %p6153_p5 = scmp.ge.s32.totalorder %s7992_s27, 1 }
  0x10   : > { %p8080_p6 = por %p204_p3, %p153_p0  ;;  %p211_p7 = scmp.lt.s32.totalorder %s7992_s27, 3 }
  0x11   : > { %s11478_s1 = sld [smem:[#allocation63_spill]]  ;;  %s7994_s13 = smov [#allocation6]  }
  0x12   : > { %p8089_p9 = pnand %p6153_p5, %p211_p7  ;;  %s239_s14 = sshll.u32 %s7994_s13, 4  ;;  %s240_s14 = int_to_ptr.vmem [resolvable:$true] %s239_s14 }
  0x13   : > { %s261_s17 = sshll.u32 %s11398_s3, 4  ;;  %s11481_s0 = sld [smem:[#allocation62_spill]]  ;;  %s262_s17 = int_to_ptr.hbm [resolvable:$true] %s261_s17 }
  0x14   : > { %p7489_p11 = pneg %p8089_p9  ;;  %s7995_s22 = smov [#allocation9]  }
  0x15   : > { %s263_s23 = sshll.u32 %s7995_s22, 4  ;;  %s7996_s29 = smov [#allocation3]   ;;  %s264_s23 = int_to_ptr.vmem [resolvable:$true] %s263_s23 }
  0x16   : > { %p8101_p12 = pnand %p7489_p11, %p154_p1  ;;  %s224_s9 = sshll.u32 %s7996_s29, 4  ;;  %s225_s9 = int_to_ptr.vmem [resolvable:$true] %s224_s9 }
  0x17   : > { %s237_s11 = sshll.u32 %s11478_s1, 4  ;;  %s249_s15 = sshll.u32 %s11397_s2, 4  ;;  %s238_s11 = int_to_ptr.hbm [resolvable:$true] %s237_s11  ;;  %s250_s15 = int_to_ptr.hbm [resolvable:$true] %s249_s15 }
  0x18   : > { %7495 = dma.hbm_to_vmem [thread:$0]  (!%p8101_p12), %s238_s11, 256, %s240_s14, [#allocation7]  }
  0x19   : > { %s222_s21 = sshll.u32 %s11481_s0, 4  ;;  %s7997_s16 = smov 1024   ;;  %s223_s21 = int_to_ptr.hbm [resolvable:$true] %s222_s21 }
  0x1a   : > { %7501 = dma.hbm_to_vmem [thread:$0]  (!%p8101_p12), %s262_s17, 256, %s264_s23, [#allocation10]  }
  0x1b   : > { %s7998_s19 = smov 64   ;;  %s7999_s11 = smov [#allocation8]  }
  0x1c   : > { %7492 = dma.hbm_to_vmem [thread:$0]  (!%p8101_p12), %s223_s21, 16384, %s225_s9, [#allocation4], %s7997_s16, %s7997_s16, %s7998_s19  }
  0x1d   : > { %s251_s14 = sshll.u32 %s7999_s11, 4  ;;  %s273_s22 = sshll.u32 %s11399_s4, 4  ;;  %s252_s14 = int_to_ptr.vmem [resolvable:$true] %s251_s14  ;;  %s274_s22 = int_to_ptr.hbm [resolvable:$true] %s273_s22 }
  0x1e   : > { %7498 = dma.hbm_to_vmem [thread:$0]  (!%p8101_p12), %s250_s15, 256, %s252_s14, [#allocation7]  }
  0x1f   : > { %s8000_s21 = smov [#allocation11]   ;;  %s8123_s29 = sadd.s32 1, %s7992_s27  }
  0x20   : > { %s275_s23 = sshll.u32 %s8000_s21, 4  ;;  %s137_s9 = ssub.s32 %s7992_s27, %s8123_s29  ;;  %s276_s23 = int_to_ptr.vmem [resolvable:$true] %s275_s23 }
  0x21   : > { %7504 = dma.hbm_to_vmem [thread:$0]  (!%p8101_p12), %s274_s22, 256, %s276_s23, [#allocation10]  }
  0x22   : > { %s140_s10 = sadd.s32 1, %s7988_s26  ;;  %p138_p13 = scmp.eq.s32.totalorder %s137_s9, 0 }
  0x23   : > { %p147_p0 = scmp.ne.s32.totalorder %s7988_s26, %s7984_s25  ;;  %p148_p3 = scmp.eq.s32.totalorder %s7992_s27, 0 }
  0x24   : > { %p7518_p5 = scmp.lt.s32.totalorder %s7992_s27, 2  ;;  %s286_s16 = sand.u32 1, %s7988_s26  }
  0x25   : > { %s8135_s13 = scalar_select %p138_p13, %s7988_s26, %s140_s10  }
  0x26   : > { %p149_p7 = por %p148_p3, %p147_p0  ;;  %p8139_p11 = por %p11403_p2, %p147_p0 }
  0x27   : > { %s7203_s19 = sshll.u32 %s7992_s27, 3  ;;  %s6160_s18 = sshll.u32 %s286_s16, 11 }
  0x28   : > { %s295_s17 = scalar_lea.hbm %s11400_s5, %s7203_s19  ;;  %s290_s22 = scalar_lea.vmem [#allocation12], %s6160_s18 }
  0x29   : > { %s296_s20 = sshll.u32 %s295_s17, 4  ;;  %s298_s21 = sshll.u32 %s290_s22, 4  ;;  %s297_s20 = int_to_ptr.hbm [resolvable:$true] %s296_s20  ;;  %s299_s21 = int_to_ptr.vmem [resolvable:$true] %s298_s21 }
  0x2a   : > { %p8150_p12 = pnand %p7518_p5, %p149_p7  ;;  %s287_s9 = scalar_lea.sflag [#allocation13], %s286_s16 }
  0x2b   : > { %s7852_s10 = sshra.s32 %s297_s20, 4  ;;  %s7859_s11 = scalar_lea.hbm %s11400_s5, 4096  ;;  %s7853_s10 = int_to_ptr.hbm [resolvable:$true] %s7852_s10 }
  0x2c   : > { %s7854_s0 = scalar_lea.hbm %s7853_s10, 2048  ;;  %p7856_p0 = pneg %p8150_p12 }
  0x2d   : > { %p7855_p13 = scmp.ne.s32.totalorder %s7853_s10, %s7854_s0  ;;  %p7860_p5 = scmp.lt.s32.totalorder %s7853_s10, %s11400_s5 }
  0x2e   : > { %p7861_p7 = scmp.lt.s32.totalorder %s7859_s11, %s7854_s0 }
  0x2f   : > { %p7857_p3 = pnand %p7856_p0, %p7855_p13 }
  0x30   : > { %p7862_p2 = por %p7861_p7, %p7860_p5 }
  0x31   : > { %p7858_p10 = pneg %p7857_p3 }
  0x33   : > { %p7863_p8 = pnand %p7862_p2, %p7858_p10 }
  0x35   : > { %7866 = shalt.err (!%p7863_p8)
}
  0x36   : > { %s8001_s16 = smov 256   ;;  %s8002_s22 = smov 128  }
  0x37   : > { %s8003_s1 = smov 8   ;;  %310 = sbr.rel (%p8089_p9) target bundleno = 1373 (0x55d), region = 44 }
  0x38   : > { %7508 = dma.hbm_to_vmem [thread:$0]  (!%p8150_p12), %s297_s20, 32768, %s299_s21, %s287_s9, %s8001_s16, %s8002_s22, %s8003_s1  }
  0x3c   : > { %7955 = dma.done.wait (%p154_p1), [#allocation4], 16384  }
  0x3d   : > { %7957 = vsyncadd (%p154_p1), [#allocation4], 4294950912 }
  0x3e   : > { %7959 = dma.done.wait (%p154_p1), [#allocation7], 512  }
  0x3f   : > { %7961 = vsyncadd (%p154_p1), [#allocation7], 4294966784 }
  0x40   : > { %7963 = dma.done.wait (%p154_p1), [#allocation10], 512  }
  0x41   : > { %7965 = vsyncadd (%p154_p1), [#allocation10], 4294966784  ;;  %s8179_s0 = sand.u32 1, %s7984_s25  }
  0x42   : > { %s6169_s1 = sshll.u32 %s8179_s0, 11  ;;  %s338_s12 = scalar_lea.sflag [#allocation13], %s8179_s0 }
  0x43   : > { %s8183_s20 = scalar_lea.vmem [#allocation12], %s6169_s1 }
  0x44   : > { %7967 = dma.done.wait (%p8075_p4), %s338_s12, 32768  }
  0x45   : > { %7969 = vsyncadd (%p8075_p4), %s338_s12, 4294934528  ;;  %s6170_s21 = sshll.u32 %s8179_s0, 2  ;;  %p11484_p1 = scmp.ne.s32.totalorder %s8066_s28, 0 }
  0x46   : > { %s8190_s23 = scalar_lea.vmem [#allocation15], %s6170_s21 }
  0x47   : > { %378 = sbr.rel (%p11484_p1) target bundleno = 966 (0x3c6), region = 72 }
  0x4c   : > { %v382_v0 = vld [vmem:[#allocation3] sm:$0xff]  ;;  %v383_v1 = vld [vmem:[#allocation3 + $0x8] sm:$0xff]  ;;  %v384_v2 = vld [vmem:[#allocation3 + $0x10] sm:$0xff]  ;;  %vm3889_vm6 = vcmask 1041408   ;;  %vm3891_vm7 = vcmask 1045508   ;;  %vm3893_vm8 = vcmask 1043456  }
  0x4d   : > { %v385_v3 = vld [vmem:[#allocation3 + $0x18] sm:$0xff]  ;;  %v386_v4 = vld [vmem:[#allocation3 + $0x20] sm:$0xff]  ;;  %v387_v5 = vld [vmem:[#allocation3 + $0x28] sm:$0xff]  ;;  %v398_v8 = vunpack.c.l.bf16 %v382_v0  ;;  %v399_v9 = vunpack.c.h.bf16 %v382_v0  ;;  %v400_v10 = vunpack.c.l.bf16 %v383_v1  ;;  %v401_v13 = vunpack.c.h.bf16 %v383_v1 }
  0x4e   : > { %v388_v6 = vld [vmem:[#allocation3 + $0x30] sm:$0xff]  ;;  %v389_v7 = vld [vmem:[#allocation3 + $0x38] sm:$0xff]  ;;  %v390_v11 = vld [vmem:[#allocation3 + $0x200] sm:$0xff]  ;;  %v402_v14 = vunpack.c.l.bf16 %v384_v2  ;;  %v403_v15 = vunpack.c.h.bf16 %v384_v2  ;;  %v404_v16 = vunpack.c.l.bf16 %v385_v3  ;;  %v405_v19 = vunpack.c.h.bf16 %v385_v3 }
  0x4f   : > { %v391_v12 = vld [vmem:[#allocation3 + $0x208] sm:$0xff]  ;;  %v392_v17 = vld [vmem:[#allocation3 + $0x210] sm:$0xff]  ;;  %v393_v18 = vld [vmem:[#allocation3 + $0x218] sm:$0xff]  ;;  %v406_v20 = vunpack.c.l.bf16 %v386_v4  ;;  %v407_v21 = vunpack.c.h.bf16 %v386_v4  ;;  %v408_v22 = vunpack.c.l.bf16 %v387_v5  ;;  %v409_v24 = vunpack.c.h.bf16 %v387_v5 }
  0x50   : > { %v394_v23 = vld [vmem:[#allocation3 + $0x220] sm:$0xff]  ;;  %v410_v25 = vunpack.c.l.bf16 %v388_v6  ;;  %v411_v26 = vunpack.c.h.bf16 %v388_v6  ;;  %v412_v27 = vunpack.c.l.bf16 %v389_v7  ;;  %v395_v28 = vld [vmem:[#allocation3 + $0x228] sm:$0xff]  ;;  %v413_v29 = vunpack.c.h.bf16 %v389_v7  ;;  %v396_v33 = vld [vmem:[#allocation3 + $0x230] sm:$0xff] }
  0x51   : > { %v414_v30 = vunpack.c.l.bf16 %v390_v11  ;;  %v415_v31 = vunpack.c.h.bf16 %v390_v11  ;;  %v416_v32 = vunpack.c.l.bf16 %v391_v12  ;;  %v397_v34 = vld [vmem:[#allocation3 + $0x238] sm:$0xff]  ;;  %v417_v35 = vunpack.c.h.bf16 %v391_v12 }
  0x52   : > { %v418_v36 = vunpack.c.l.bf16 %v392_v17  ;;  %v419_v37 = vunpack.c.h.bf16 %v392_v17  ;;  %v420_v38 = vunpack.c.l.bf16 %v393_v18  ;;  %v421_v39 = vunpack.c.h.bf16 %v393_v18 }
  0x53   : > { %v422_v40 = vunpack.c.l.bf16 %v394_v23  ;;  %v423_v41 = vunpack.c.h.bf16 %v394_v23  ;;  %v8194_v42 = vmax.f32 %v398_v8, 1e-06  ;;  %v424_v43 = vunpack.c.l.bf16 %v395_v28 }
  0x54   : > { %v425_v44 = vunpack.c.h.bf16 %v395_v28  ;;  %v426_v45 = vunpack.c.l.bf16 %v396_v33  ;;  %v8196_v46 = vmax.f32 %v399_v9, 1e-06  ;;  %v427_v47 = vunpack.c.h.bf16 %v396_v33 }
  0x55   : > { %v428_v48 = vunpack.c.l.bf16 %v397_v34  ;;  %v8198_v49 = vmax.f32 %v400_v10, 1e-06  ;;  %v8200_v50 = vmax.f32 %v401_v13, 1e-06  ;;  %v429_v51 = vunpack.c.h.bf16 %v397_v34 }
  0x56   : > { %v8202_v52 = vmax.f32 %v402_v14, 1e-06  ;;  %v8204_v53 = vmax.f32 %v403_v15, 1e-06  ;;  %v8206_v54 = vmax.f32 %v404_v16, 1e-06  ;;  %v462_v58 = vmul.f32 %v8194_v42, %v8194_v42 }
  0x57   : > { %v8208_v55 = vmax.f32 %v405_v19, 1e-06  ;;  %v8210_v56 = vmax.f32 %v406_v20, 1e-06  ;;  %v8212_v57 = vmax.f32 %v407_v21, 1e-06  ;;  %v463_v62 = vmul.f32 %v8196_v46, %v8196_v46 }
  0x58   : > { %v8216_v59 = vmax.f32 %v408_v22, 1e-06  ;;  %v8218_v60 = vmax.f32 %v409_v24, 1e-06  ;;  %v8220_v61 = vmax.f32 %v410_v25, 1e-06  ;;  %v464_v2 = vmul.f32 %v8198_v49, %v8198_v49 }
  0x59   : > { %11485 = vst [vmem:[#allocation23_spill] sm:$0xff] %v8208_v55  ;;  %v443_v63 = vmax.f32 %v411_v26, 1e-06  ;;  %v444_v0 = vmax.f32 %v412_v27, 1e-06  ;;  %v465_v6 = vmul.f32 %v8200_v50, %v8200_v50  ;;  %v466_v10 = vmul.f32 %v8202_v52, %v8202_v52 }
  0x5a   : > { %11486 = vst [vmem:[#allocation24_spill] sm:$0xff] %v8210_v56  ;;  %v445_v1 = vmax.f32 %v413_v29, 1e-06  ;;  %v446_v3 = vmax.f32 %v414_v30, 1e-06  ;;  %v467_v14 = vmul.f32 %v8204_v53, %v8204_v53  ;;  %v468_v18 = vmul.f32 %v8206_v54, %v8206_v54 }
  0x5b   : > { %11487 = vst [vmem:[#allocation25_spill] sm:$0xff] %v8212_v57  ;;  %v447_v4 = vmax.f32 %v415_v31, 1e-06  ;;  %v448_v5 = vmax.f32 %v416_v32, 1e-06  ;;  %v469_v22 = vmul.f32 %v8208_v55, %v8208_v55  ;;  %v470_v24 = vmul.f32 %v8210_v56, %v8210_v56 }
  0x5c   : > { %11488 = vst [vmem:[#allocation26_spill] sm:$0xff] %v8216_v59  ;;  %v449_v7 = vmax.f32 %v417_v35, 1e-06  ;;  %v450_v8 = vmax.f32 %v418_v36, 1e-06  ;;  %v471_v25 = vmul.f32 %v8212_v57, %v8212_v57  ;;  %v472_v26 = vmul.f32 %v8216_v59, %v8216_v59 }
  0x5d   : > { %11489 = vst [vmem:[#allocation27_spill] sm:$0xff] %v8218_v60  ;;  %v451_v9 = vmax.f32 %v419_v37, 1e-06  ;;  %v452_v11 = vmax.f32 %v420_v38, 1e-06  ;;  %v473_v27 = vmul.f32 %v8218_v60, %v8218_v60  ;;  %v474_v28 = vmul.f32 %v8220_v61, %v8220_v61 }
  0x5e   : > { %11490 = vst [vmem:[#allocation28_spill] sm:$0xff] %v8220_v61  ;;  %v453_v12 = vmax.f32 %v421_v39, 1e-06  ;;  %v454_v13 = vmax.f32 %v422_v40, 1e-06  ;;  %v475_v29 = vmul.f32 %v443_v63, %v443_v63  ;;  %v476_v30 = vmul.f32 %v444_v0, %v444_v0 }
  0x5f   : > { %v455_v15 = vmax.f32 %v423_v41, 1e-06  ;;  %v456_v16 = vmax.f32 %v424_v43, 1e-06  ;;  %v457_v17 = vmax.f32 %v425_v44, 1e-06  ;;  %v477_v31 = vmul.f32 %v445_v1, %v445_v1 }
  0x60   : > { %v458_v19 = vmax.f32 %v426_v45, 1e-06  ;;  %v459_v20 = vmax.f32 %v427_v47, 1e-06  ;;  %v460_v21 = vmax.f32 %v428_v48, 1e-06  ;;  %v478_v32 = vmul.f32 %v446_v3, %v446_v3 }
  0x61   : > { %v461_v23 = vmax.f32 %v429_v51, 1e-06  ;;  %v479_v33 = vmul.f32 %v447_v4, %v447_v4  ;;  %v480_v34 = vmul.f32 %v448_v5, %v448_v5  ;;  %v481_v35 = vmul.f32 %v449_v7, %v449_v7 }
  0x62   : > { %v482_v36 = vmul.f32 %v450_v8, %v450_v8  ;;  %v483_v37 = vmul.f32 %v451_v9, %v451_v9  ;;  %v484_v38 = vmul.f32 %v452_v11, %v452_v11  ;;  %v485_v39 = vmul.f32 %v453_v12, %v453_v12 }
  0x63   : > { %v486_v40 = vmul.f32 %v454_v13, %v454_v13  ;;  %v487_v41 = vmul.f32 %v455_v15, %v455_v15  ;;  %v488_v43 = vmul.f32 %v456_v16, %v456_v16  ;;  %v489_v44 = vmul.f32 %v457_v17, %v457_v17 }
  0x64   : > { %v490_v45 = vmul.f32 %v458_v19, %v458_v19  ;;  %v491_v47 = vmul.f32 %v459_v20, %v459_v20  ;;  %v492_v48 = vmul.f32 %v460_v21, %v460_v21  ;;  %v493_v51 = vmul.f32 %v461_v23, %v461_v23 }
  0x65   : > { %v494_v61 = vmul.f32 %v462_v58, %v8194_v42  ;;  %v495_v60 = vmul.f32 %v463_v62, %v8196_v46  ;;  %v496_v59 = vmul.f32 %v464_v2, %v8198_v49  ;;  %v497_v57 = vmul.f32 %v465_v6, %v8200_v50  ;;  %v11491_v58 = vld [vmem:[#allocation23_spill] sm:$0xff]  ;;  %v11492_v62 = vld [vmem:[#allocation24_spill] sm:$0xff]  ;;  %v11493_v49 = vld [vmem:[#allocation25_spill] sm:$0xff] }
  0x66   : > { %v498_v56 = vmul.f32 %v466_v10, %v8202_v52  ;;  %v499_v55 = vmul.f32 %v467_v14, %v8204_v53  ;;  %v500_v42 = vmul.f32 %v468_v18, %v8206_v54  ;;  %v501_v46 = vmul.f32 %v469_v22, %v11491_v58  ;;  %v11494_v50 = vld [vmem:[#allocation26_spill] sm:$0xff]  ;;  %v11495_v52 = vld [vmem:[#allocation27_spill] sm:$0xff]  ;;  %v11496_v53 = vld [vmem:[#allocation28_spill] sm:$0xff] }
  0x67   : > { %v502_v2 = vmul.f32 %v470_v24, %v11492_v62  ;;  %v503_v6 = vmul.f32 %v471_v25, %v11493_v49  ;;  %v504_v10 = vmul.f32 %v472_v26, %v11494_v50  ;;  %v505_v14 = vmul.f32 %v473_v27, %v11495_v52 }
  0x68   : > { %v506_v18 = vmul.f32 %v474_v28, %v11496_v53  ;;  %v507_v54 = vmul.f32 %v475_v29, %v443_v63  ;;  %v508_v22 = vmul.f32 %v476_v30, %v444_v0  ;;  %v509_v58 = vmul.f32 %v477_v31, %v445_v1 }
  0x69   : > { %v8259_v24 = vmul.f32 %v478_v32, %v446_v3  ;;  %v8261_v62 = vmul.f32 %v479_v33, %v447_v4  ;;  %v8263_v25 = vmul.f32 %v480_v34, %v448_v5  ;;  %v8265_v49 = vmul.f32 %v481_v35, %v449_v7 }
  0x6a   : > { %v8267_v26 = vmul.f32 %v482_v36, %v450_v8  ;;  %v8269_v50 = vmul.f32 %v483_v37, %v451_v9  ;;  %v8271_v27 = vmul.f32 %v484_v38, %v452_v11  ;;  %v8273_v52 = vmul.f32 %v485_v39, %v453_v12 }
  0x6b   : > { %v8275_v28 = vmul.f32 %v486_v40, %v454_v13  ;;  %v8277_v63 = vmul.f32 %v487_v41, %v455_v15  ;;  %v8279_v0 = vmul.f32 %v488_v43, %v456_v16  ;;  %v8281_v1 = vmul.f32 %v489_v44, %v457_v17 }
  0x6c   : > { %v8283_v3 = vmul.f32 %v490_v45, %v458_v19  ;;  %v8285_v4 = vmul.f32 %v491_v47, %v459_v20  ;;  %v8287_v5 = vmul.f32 %v492_v48, %v460_v21  ;;  %v8289_v7 = vmul.f32 %v493_v51, %v461_v23 }
  0x6d   : > { %v526_v8 = vrot.slane %v494_v61, 4  ;;  %v532_v9 = vrot.slane %v495_v60, 4  ;;  %v538_v11 = vrot.slane %v496_v59, 4  ;;  %v544_v12 = vrot.slane %v497_v57, 4 }
  0x6e   : > { %11497 = vst [vmem:[#allocation23_spill] sm:$0xff] %v8285_v4  ;;  %v550_v13 = vrot.slane %v498_v56, 4  ;;  %v556_v29 = vrot.slane %v499_v55, 4  ;;  %v562_v15 = vrot.slane %v500_v42, 4  ;;  %v568_v30 = vrot.slane %v501_v46, 4 }
  0x6f   : > { %11498 = vst [vmem:[#allocation24_spill] sm:$0xff] %v8287_v5  ;;  %v574_v16 = vrot.slane %v502_v2, 4  ;;  %v580_v31 = vrot.slane %v503_v6, 4  ;;  %v586_v17 = vrot.slane %v504_v10, 4  ;;  %v592_v32 = vrot.slane %v505_v14, 4 }
  0x70   : > { %11499 = vst [vmem:[#allocation25_spill] sm:$0xff] %v8289_v7  ;;  %v598_v19 = vrot.slane %v506_v18, 4  ;;  %v604_v33 = vrot.slane %v507_v54, 4  ;;  %v610_v20 = vrot.slane %v508_v22, 4  ;;  %v527_v34 = vadd.f32 %v526_v8, %v494_v61 }
  0x71   : > { %v533_v21 = vadd.f32 %v532_v9, %v495_v60  ;;  %v539_v35 = vadd.f32 %v538_v11, %v496_v59  ;;  %v616_v23 = vrot.slane %v509_v58, 4  ;;  %v545_v36 = vadd.f32 %v544_v12, %v497_v57 }
  0x72   : > { %v551_v37 = vadd.f32 %v550_v13, %v498_v56  ;;  %v557_v38 = vadd.f32 %v556_v29, %v499_v55  ;;  %v563_v39 = vadd.f32 %v562_v15, %v500_v42  ;;  %v569_v40 = vadd.f32 %v568_v30, %v501_v46 }
  0x73   : > { %v575_v41 = vadd.f32 %v574_v16, %v502_v2  ;;  %v581_v43 = vadd.f32 %v580_v31, %v503_v6  ;;  %v587_v44 = vadd.f32 %v586_v17, %v504_v10  ;;  %v593_v45 = vadd.f32 %v592_v32, %v505_v14 }
  0x74   : > { %v599_v47 = vadd.f32 %v598_v19, %v506_v18  ;;  %v605_v48 = vadd.f32 %v604_v33, %v507_v54  ;;  %v611_v51 = vadd.f32 %v610_v20, %v508_v22  ;;  %v528_v53 = vrot.slane %v527_v34, 2 }
  0x75   : > { %v534_v7 = vrot.slane %v533_v21, 2  ;;  %v540_v5 = vrot.slane %v539_v35, 2  ;;  %v617_v4 = vadd.f32 %v616_v23, %v509_v58  ;;  %v546_v61 = vrot.slane %v545_v36, 2 }
  0x76   : > { %v552_v60 = vrot.slane %v551_v37, 2  ;;  %v558_v59 = vrot.slane %v557_v38, 2  ;;  %v564_v8 = vrot.slane %v563_v39, 2  ;;  %v570_v57 = vrot.slane %v569_v40, 2 }
  0x77   : > { %v576_v56 = vrot.slane %v575_v41, 2  ;;  %v582_v55 = vrot.slane %v581_v43, 2  ;;  %v588_v42 = vrot.slane %v587_v44, 2  ;;  %v594_v46 = vrot.slane %v593_v45, 2 }
  0x78   : > { %v600_v2 = vrot.slane %v599_v47, 2  ;;  %v606_v6 = vrot.slane %v605_v48, 2  ;;  %v612_v10 = vrot.slane %v611_v51, 2  ;;  %v529_v14 = vadd.f32 %v528_v53, %v527_v34 }
  0x79   : > { %v535_v18 = vadd.f32 %v534_v7, %v533_v21  ;;  %v541_v54 = vadd.f32 %v540_v5, %v539_v35  ;;  %v618_v22 = vrot.slane %v617_v4, 2  ;;  %v547_v9 = vadd.f32 %v546_v61, %v545_v36 }
  0x7a   : > { %v553_v11 = vadd.f32 %v552_v60, %v551_v37  ;;  %v559_v12 = vadd.f32 %v558_v59, %v557_v38  ;;  %v565_v58 = vadd.f32 %v564_v8, %v563_v39  ;;  %v571_v13 = vadd.f32 %v570_v57, %v569_v40 }
  0x7b   : > { %v577_v29 = vadd.f32 %v576_v56, %v575_v41  ;;  %v583_v15 = vadd.f32 %v582_v55, %v581_v43  ;;  %v589_v30 = vadd.f32 %v588_v42, %v587_v44  ;;  %v595_v16 = vadd.f32 %v594_v46, %v593_v45 }
  0x7c   : > { %v601_v31 = vadd.f32 %v600_v2, %v599_v47  ;;  %v607_v17 = vadd.f32 %v606_v6, %v605_v48  ;;  %v613_v32 = vadd.f32 %v612_v10, %v611_v51  ;;  %v530_v19 = vrot.slane %v529_v14, 1 }
  0x7d   : > { %v536_v33 = vrot.slane %v535_v18, 1  ;;  %v542_v20 = vrot.slane %v541_v54, 1  ;;  %v619_v23 = vadd.f32 %v618_v22, %v617_v4  ;;  %v548_v34 = vrot.slane %v547_v9, 1 }
  0x7e   : > { %v554_v7 = vrot.slane %v553_v11, 1  ;;  %v560_v5 = vrot.slane %v559_v12, 1  ;;  %v566_v21 = vrot.slane %v565_v58, 1  ;;  %v572_v35 = vrot.slane %v571_v13, 1 }
  0x7f   : > { %v578_v36 = vrot.slane %v577_v29, 1  ;;  %v584_v37 = vrot.slane %v583_v15, 1  ;;  %v590_v38 = vrot.slane %v589_v30, 1  ;;  %v596_v39 = vrot.slane %v595_v16, 1 }
  0x80   : > { %v602_v40 = vrot.slane %v601_v31, 1  ;;  %v608_v41 = vrot.slane %v607_v17, 1  ;;  %v614_v43 = vrot.slane %v613_v32, 1  ;;  %v8291_v44 = vadd.f32 %v530_v19, %v529_v14 }
  0x81   : > { %v8293_v45 = vadd.f32 %v536_v33, %v535_v18  ;;  %v8295_v47 = vadd.f32 %v542_v20, %v541_v54  ;;  %v620_v48 = vrot.slane %v619_v23, 1  ;;  %v8297_v4 = vadd.f32 %v548_v34, %v547_v9  ;;  %v11518_v20 = vld [vmem:[#allocation25_spill] sm:$0xff] }
  0x82   : > { %11500 = vst [vmem:[#allocation26_spill] sm:$0xff] %v8291_v44  ;;  %v8299_v51 = vadd.f32 %v554_v7, %v553_v11  ;;  %v8301_v53 = vadd.f32 %v560_v5, %v559_v12  ;;  %v8303_v61 = vadd.f32 %v566_v21, %v565_v58  ;;  %v8305_v60 = vadd.f32 %v572_v35, %v571_v13 }
  0x83   : > { %11501 = vst [vmem:[#allocation27_spill] sm:$0xff] %v8293_v45  ;;  %v8307_v59 = vadd.f32 %v578_v36, %v577_v29  ;;  %v8309_v8 = vadd.f32 %v584_v37, %v583_v15  ;;  %v8311_v57 = vadd.f32 %v590_v38, %v589_v30  ;;  %v8313_v56 = vadd.f32 %v596_v39, %v595_v16  ;;  %v11516_v30 = vld [vmem:[#allocation23_spill] sm:$0xff] }
  0x84   : > { %11502 = vst [vmem:[#allocation28_spill] sm:$0xff] %v8295_v47  ;;  %v8315_v55 = vadd.f32 %v602_v40, %v601_v31  ;;  %v8317_v42 = vadd.f32 %v608_v41, %v607_v17  ;;  %v8319_v46 = vadd.f32 %v614_v43, %v613_v32  ;;  %v8321_v2 = vadd.f32 %v620_v48, %v619_v23  ;;  %v11517_v31 = vld [vmem:[#allocation24_spill] sm:$0xff] }
  0x85   : > { %11503 = vst [vmem:[#allocation29_spill] sm:$0xff] %v8297_v4  ;;  %v622_v6 = vrot.slane %v8259_v24, 4  ;;  %v628_v10 = vrot.slane %v8261_v62, 4  ;;  %v634_v14 = vrot.slane %v8263_v25, 4  ;;  %v640_v18 = vrot.slane %v8265_v49, 4 }
  0x86   : > { %11504 = vst [vmem:[#allocation30_spill] sm:$0xff] %v8299_v51  ;;  %v646_v54 = vrot.slane %v8267_v26, 4  ;;  %v652_v22 = vrot.slane %v8269_v50, 4  ;;  %v658_v9 = vrot.slane %v8271_v27, 4  ;;  %v664_v11 = vrot.slane %v8273_v52, 4 }
  0x87   : > { %11505 = vst [vmem:[#allocation31_spill] sm:$0xff] %v8301_v53  ;;  %v670_v12 = vrot.slane %v8275_v28, 4  ;;  %v676_v58 = vrot.slane %v8277_v63, 4  ;;  %v682_v13 = vrot.slane %v8279_v0, 4  ;;  %v688_v29 = vrot.slane %v8281_v1, 4 }
  0x88   : > { %11506 = vst [vmem:[#allocation32_spill] sm:$0xff] %v8303_v61  ;;  %v694_v15 = vrot.slane %v8283_v3, 4  ;;  %v700_v16 = vrot.slane %v11516_v30, 4  ;;  %v706_v17 = vrot.slane %v11517_v31, 4  ;;  %v623_v32 = vadd.f32 %v622_v6, %v8259_v24 }
  0x89   : > { %11507 = vst [vmem:[#allocation33_spill] sm:$0xff] %v8305_v60  ;;  %v629_v19 = vadd.f32 %v628_v10, %v8261_v62  ;;  %v635_v33 = vadd.f32 %v634_v14, %v8263_v25  ;;  %v712_v23 = vrot.slane %v11518_v20, 4  ;;  %v641_v34 = vadd.f32 %v640_v18, %v8265_v49 }
  0x8a   : > { %11508 = vst [vmem:[#allocation34_spill] sm:$0xff] %v8307_v59  ;;  %v647_v7 = vadd.f32 %v646_v54, %v8267_v26  ;;  %v653_v5 = vadd.f32 %v652_v22, %v8269_v50  ;;  %v659_v21 = vadd.f32 %v658_v9, %v8271_v27  ;;  %v665_v35 = vadd.f32 %v664_v11, %v8273_v52 }
  0x8b   : > { %11509 = vst [vmem:[#allocation35_spill] sm:$0xff] %v8309_v8  ;;  %v671_v36 = vadd.f32 %v670_v12, %v8275_v28  ;;  %v677_v24 = vadd.f32 %v676_v58, %v8277_v63  ;;  %v683_v62 = vadd.f32 %v682_v13, %v8279_v0  ;;  %v689_v25 = vadd.f32 %v688_v29, %v8281_v1 }
  0x8c   : > { %11510 = vst [vmem:[#allocation36_spill] sm:$0xff] %v8311_v57  ;;  %v695_v37 = vadd.f32 %v694_v15, %v8283_v3  ;;  %v701_v49 = vadd.f32 %v700_v16, %v11516_v30  ;;  %v707_v26 = vadd.f32 %v706_v17, %v11517_v31  ;;  %v624_v38 = vrot.slane %v623_v32, 2 }
  0x8d   : > { %11511 = vst [vmem:[#allocation37_spill] sm:$0xff] %v8313_v56  ;;  %v630_v50 = vrot.slane %v629_v19, 2  ;;  %v636_v39 = vrot.slane %v635_v33, 2  ;;  %v713_v27 = vadd.f32 %v712_v23, %v11518_v20  ;;  %v642_v52 = vrot.slane %v641_v34, 2 }
  0x8e   : > { %11512 = vst [vmem:[#allocation38_spill] sm:$0xff] %v8315_v55  ;;  %v648_v40 = vrot.slane %v647_v7, 2  ;;  %v654_v28 = vrot.slane %v653_v5, 2  ;;  %v660_v41 = vrot.slane %v659_v21, 2  ;;  %v666_v63 = vrot.slane %v665_v35, 2 }
  0x8f   : > { %11513 = vst [vmem:[#allocation39_spill] sm:$0xff] %v8317_v42  ;;  %v672_v43 = vrot.slane %v671_v36, 2  ;;  %v678_v0 = vrot.slane %v677_v24, 2  ;;  %v684_v48 = vrot.slane %v683_v62, 2  ;;  %v690_v1 = vrot.slane %v689_v25, 2 }
  0x90   : > { %11514 = vst [vmem:[#allocation40_spill] sm:$0xff] %v8319_v46  ;;  %v696_v6 = vrot.slane %v695_v37, 2  ;;  %v702_v3 = vrot.slane %v701_v49, 2  ;;  %v708_v10 = vrot.slane %v707_v26, 2  ;;  %v625_v14 = vadd.f32 %v624_v38, %v623_v32 }
  0x91   : > { %11515 = vst [vmem:[#allocation41_spill] sm:$0xff] %v8321_v2  ;;  %v631_v18 = vadd.f32 %v630_v50, %v629_v19  ;;  %v637_v54 = vadd.f32 %v636_v39, %v635_v33  ;;  %v714_v22 = vrot.slane %v713_v27, 2  ;;  %v643_v9 = vadd.f32 %v642_v52, %v641_v34 }
  0x92   : > { %v649_v11 = vadd.f32 %v648_v40, %v647_v7  ;;  %v655_v12 = vadd.f32 %v654_v28, %v653_v5  ;;  %v661_v58 = vadd.f32 %v660_v41, %v659_v21  ;;  %v667_v13 = vadd.f32 %v666_v63, %v665_v35  ;;  %v753_v40 = vld [vmem:[#allocation3 + $0x40] sm:$0xff]  ;;  %v754_v28 = vld [vmem:[#allocation3 + $0x48] sm:$0xff] }
  0x93   : > { %v673_v29 = vadd.f32 %v672_v43, %v671_v36  ;;  %v679_v15 = vadd.f32 %v678_v0, %v677_v24  ;;  %v685_v30 = vadd.f32 %v684_v48, %v683_v62  ;;  %v691_v16 = vadd.f32 %v690_v1, %v689_v25  ;;  %v756_v0 = vld [vmem:[#allocation3 + $0x58] sm:$0xff] }
  0x94   : > { %v697_v31 = vadd.f32 %v696_v6, %v695_v37  ;;  %v703_v17 = vadd.f32 %v702_v3, %v701_v49  ;;  %v709_v20 = vadd.f32 %v708_v10, %v707_v26  ;;  %v626_v23 = vrot.slane %v625_v14, 1  ;;  %v757_v10 = vld [vmem:[#allocation3 + $0x60] sm:$0xff] }
  0x95   : > { %v632_v2 = vrot.slane %v631_v18, 1  ;;  %v638_v46 = vrot.slane %v637_v54, 1  ;;  %v715_v42 = vadd.f32 %v714_v22, %v713_v27  ;;  %v644_v32 = vrot.slane %v643_v9, 1  ;;  %v760_v22 = vld [vmem:[#allocation3 + $0x78] sm:$0xff] }
  0x96   : > { %v650_v19 = vrot.slane %v649_v11, 1  ;;  %v656_v33 = vrot.slane %v655_v12, 1  ;;  %v662_v38 = vrot.slane %v661_v58, 1  ;;  %v668_v34 = vrot.slane %v667_v13, 1 }
  0x97   : > { %v674_v7 = vrot.slane %v673_v29, 1  ;;  %v680_v5 = vrot.slane %v679_v15, 1  ;;  %v686_v21 = vrot.slane %v685_v30, 1  ;;  %v692_v35 = vrot.slane %v691_v16, 1 }
  0x98   : > { %v698_v36 = vrot.slane %v697_v31, 1  ;;  %v704_v24 = vrot.slane %v703_v17, 1  ;;  %v710_v62 = vrot.slane %v709_v20, 1  ;;  %v8355_v25 = vadd.f32 %v626_v23, %v625_v14  ;;  %v758_v14 = vld [vmem:[#allocation3 + $0x68] sm:$0xff] }
  0x99   : > { %v8357_v37 = vadd.f32 %v632_v2, %v631_v18  ;;  %v8359_v49 = vadd.f32 %v638_v46, %v637_v54  ;;  %v716_v26 = vrot.slane %v715_v42, 1  ;;  %v8361_v50 = vadd.f32 %v644_v32, %v643_v9  ;;  %v755_v46 = vld [vmem:[#allocation3 + $0x50] sm:$0xff] }
  0x9a   : > { %11519 = vst [vmem:[#allocation23_spill] sm:$0xff] %v8355_v25  ;;  %v8363_v39 = vadd.f32 %v650_v19, %v649_v11  ;;  %v8365_v27 = vadd.f32 %v656_v33, %v655_v12  ;;  %v8367_v52 = vadd.f32 %v662_v38, %v661_v58  ;;  %v8369_v41 = vadd.f32 %v668_v34, %v667_v13  ;;  %v759_v54 = vld [vmem:[#allocation3 + $0x70] sm:$0xff]  ;;  %v761_v58 = vld [vmem:[#allocation3 + $0x240] sm:$0xff]  ;;  %v762_v13 = vld [vmem:[#allocation3 + $0x248] sm:$0xff] }
  0x9b   : > { %11520 = vst [vmem:[#allocation24_spill] sm:$0xff] %v8357_v37  ;;  %v8371_v63 = vadd.f32 %v674_v7, %v673_v29  ;;  %v8373_v43 = vadd.f32 %v680_v5, %v679_v15  ;;  %v8375_v2 = vadd.f32 %v686_v21, %v685_v30  ;;  %v8377_v48 = vadd.f32 %v692_v35, %v691_v16  ;;  %v765_v33 = vld [vmem:[#allocation3 + $0x260] sm:$0xff]  ;;  %v766_v5 = vld [vmem:[#allocation3 + $0x268] sm:$0xff] }
  0x9c   : > { %11521 = vst [vmem:[#allocation25_spill] sm:$0xff] %v8359_v49  ;;  %v8379_v1 = vadd.f32 %v698_v36, %v697_v31  ;;  %v8381_v6 = vadd.f32 %v704_v24, %v703_v17  ;;  %v8383_v3 = vadd.f32 %v710_v62, %v709_v20  ;;  %v8385_v18 = vadd.f32 %v716_v26, %v715_v42  ;;  %v763_v31 = vld [vmem:[#allocation3 + $0x250] sm:$0xff]  ;;  %v764_v17 = vld [vmem:[#allocation3 + $0x258] sm:$0xff] }
  0x9d   : > { %11522 = vst [vmem:[#allocation42_spill] sm:$0xff] %v8361_v50  ;;  %v769_v9 = vunpack.c.l.bf16 %v753_v40  ;;  %v770_v11 = vunpack.c.h.bf16 %v753_v40  ;;  %v771_v12 = vunpack.c.l.bf16 %v754_v28  ;;  %v772_v29 = vunpack.c.h.bf16 %v754_v28  ;;  %v767_v62 = vld [vmem:[#allocation3 + $0x270] sm:$0xff]  ;;  %v768_v26 = vld [vmem:[#allocation3 + $0x278] sm:$0xff] }
  0x9e   : > { %11523 = vst [vmem:[#allocation43_spill] sm:$0xff] %v8363_v39  ;;  %v773_v15 = vunpack.c.l.bf16 %v755_v46  ;;  %v774_v30 = vunpack.c.h.bf16 %v755_v46  ;;  %v775_v16 = vunpack.c.l.bf16 %v756_v0  ;;  %v776_v23 = vunpack.c.h.bf16 %v756_v0 }
  0x9f   : > { %11524 = vst [vmem:[#allocation44_spill] sm:$0xff] %v8365_v27  ;;  %v777_v20 = vunpack.c.l.bf16 %v757_v10  ;;  %v778_v32 = vunpack.c.h.bf16 %v757_v10  ;;  %v779_v19 = vunpack.c.l.bf16 %v758_v14  ;;  %v780_v42 = vunpack.c.h.bf16 %v758_v14 }
  0xa0   : > { %11525 = vst [vmem:[#allocation45_spill] sm:$0xff] %v8367_v52  ;;  %v781_v38 = vunpack.c.l.bf16 %v759_v54  ;;  %v782_v34 = vunpack.c.h.bf16 %v759_v54  ;;  %v783_v7 = vunpack.c.l.bf16 %v760_v22  ;;  %v784_v21 = vunpack.c.h.bf16 %v760_v22 }
  0xa1   : > { %11526 = vst [vmem:[#allocation46_spill] sm:$0xff] %v8369_v41  ;;  %v785_v35 = vunpack.c.l.bf16 %v761_v58  ;;  %v786_v36 = vunpack.c.h.bf16 %v761_v58  ;;  %v787_v24 = vunpack.c.l.bf16 %v762_v13  ;;  %v788_v40 = vunpack.c.h.bf16 %v762_v13 }
  0xa2   : > { %11527 = vst [vmem:[#allocation47_spill] sm:$0xff] %v8371_v63  ;;  %v789_v28 = vunpack.c.l.bf16 %v763_v31  ;;  %v790_v46 = vunpack.c.h.bf16 %v763_v31  ;;  %v792_v0 = vunpack.c.h.bf16 %v764_v17  ;;  %v794_v10 = vunpack.c.h.bf16 %v765_v33 }
  0xa3   : > { %11528 = vst [vmem:[#allocation48_spill] sm:$0xff] %v8373_v43  ;;  %v795_v14 = vunpack.c.l.bf16 %v766_v5  ;;  %v797_v54 = vunpack.c.l.bf16 %v767_v62  ;;  %v798_v22 = vunpack.c.h.bf16 %v767_v62  ;;  %v8391_v58 = vmax.f32 %v771_v12, 1e-06 }
  0xa4   : > { %11529 = vst [vmem:[#allocation49_spill] sm:$0xff] %v8375_v2  ;;  %v799_v2 = vunpack.c.l.bf16 %v768_v26  ;;  %v8393_v43 = vmax.f32 %v772_v29, 1e-06  ;;  %v800_v13 = vunpack.c.h.bf16 %v768_v26  ;;  %v8395_v63 = vmax.f32 %v773_v15, 1e-06 }
  0xa5   : > { %11530 = vst [vmem:[#allocation50_spill] sm:$0xff] %v8377_v48  ;;  %v8389_v48 = vmax.f32 %v770_v11, 1e-06  ;;  %v8397_v31 = vmax.f32 %v774_v30, 1e-06  ;;  %vm3921_vm9 = vcmask 1041409  }
  0xa6   : > { %11531 = vst [vmem:[#allocation51_spill] sm:$0xff] %v8379_v1  ;;  %v796_v1 = vunpack.c.h.bf16 %v766_v5  ;;  %v8405_v5 = vmax.f32 %v778_v32, 1e-06  ;;  %v8409_v12 = vmax.f32 %v779_v19, 1e-06  ;;  %v836_v19 = vmul.f32 %v8393_v43, %v8393_v43 }
  0xa7   : > { %11532 = vst [vmem:[#allocation52_spill] sm:$0xff] %v8381_v6  ;;  %v8387_v6 = vmax.f32 %v769_v9, 1e-06  ;;  %v8401_v9 = vmax.f32 %v776_v23, 1e-06  ;;  %v834_v15 = vmul.f32 %v8389_v48, %v8389_v48  ;;  %vm3923_vm10 = vcmask 1043459  }
  0xa8   : > { %11533 = vst [vmem:[#allocation53_spill] sm:$0xff] %v8383_v3  ;;  %v793_v3 = vunpack.c.l.bf16 %v765_v33  ;;  %v8403_v33 = vmax.f32 %v777_v20, 1e-06  ;;  %v8411_v29 = vmax.f32 %v780_v42, 1e-06  ;;  %v835_v20 = vmul.f32 %v8391_v58, %v8391_v58 }
  0xa9   : > { %11534 = vst [vmem:[#allocation54_spill] sm:$0xff] %v8385_v18  ;;  %v791_v18 = vunpack.c.l.bf16 %v764_v17  ;;  %v8399_v17 = vmax.f32 %v775_v16, 1e-06  ;;  %v833_v11 = vmul.f32 %v8387_v6, %v8387_v6  ;;  %v8413_v62 = vmax.f32 %v781_v38, 1e-06 }
  0xaa   : > { %11535 = vst [vmem:[#allocation55_spill] sm:$0xff] %v8401_v9  ;;  %v814_v30 = vmax.f32 %v782_v34, 1e-06  ;;  %v815_v16 = vmax.f32 %v783_v7, 1e-06  ;;  %v837_v38 = vmul.f32 %v8395_v63, %v8395_v63  ;;  %v838_v7 = vmul.f32 %v8397_v31, %v8397_v31 }
  0xab   : > { %11536 = vst [vmem:[#allocation56_spill] sm:$0xff] %v8403_v33  ;;  %v816_v23 = vmax.f32 %v784_v21, 1e-06  ;;  %v817_v32 = vmax.f32 %v785_v35, 1e-06  ;;  %vm3925_vm11 = vcmask 1045509  }
  0xac   : > { %11537 = vst [vmem:[#allocation57_spill] sm:$0xff] %v8405_v5  ;;  %v818_v26 = vmax.f32 %v786_v36, 1e-06  ;;  %v819_v41 = vmax.f32 %v787_v24, 1e-06  ;;  %v839_v36 = vmul.f32 %v8399_v17, %v8399_v17  ;;  %vm3927_vm12 = vcmask 1047559  }
  0xad   : > { %11538 = vst [vmem:[#allocation58_spill] sm:$0xff] %v8409_v12  ;;  %v820_v52 = vmax.f32 %v788_v40, 1e-06  ;;  %v821_v42 = vmax.f32 %v789_v28, 1e-06  ;;  %v840_v28 = vmul.f32 %v8401_v9, %v8401_v9  ;;  %v870_v9 = vmul.f32 %v838_v7, %v8397_v31 }
  0xae   : > { %11539 = vst [vmem:[#allocation59_spill] sm:$0xff] %v8411_v29  ;;  %v822_v27 = vmax.f32 %v790_v46, 1e-06  ;;  %v823_v39 = vmax.f32 %v791_v18, 1e-06  ;;  %v841_v18 = vmul.f32 %v8403_v33, %v8403_v33  ;;  %v851_v25 = vmul.f32 %v819_v41, %v819_v41 }
  0xaf   : > { %11540 = vst [vmem:[#allocation60_spill] sm:$0xff] %v8413_v62  ;;  %v824_v50 = vmax.f32 %v792_v0, 1e-06  ;;  %v825_v34 = vmax.f32 %v793_v3, 1e-06  ;;  %v842_v3 = vmul.f32 %v8405_v5, %v8405_v5  ;;  %v843_v0 = vmul.f32 %v8409_v12, %v8409_v12 }
  0xb0   : > { %v826_v21 = vmax.f32 %v794_v10, 1e-06  ;;  %v827_v49 = vmax.f32 %v795_v14, 1e-06  ;;  %v828_v35 = vmax.f32 %v796_v1, 1e-06  ;;  %v844_v1 = vmul.f32 %v8411_v29, %v8411_v29 }
  0xb1   : > { %v829_v24 = vmax.f32 %v797_v54, 1e-06  ;;  %v830_v37 = vmax.f32 %v798_v22, 1e-06  ;;  %v831_v40 = vmax.f32 %v799_v2, 1e-06  ;;  %v845_v10 = vmul.f32 %v8413_v62, %v8413_v62 }
  0xb2   : > { %v832_v46 = vmax.f32 %v800_v13, 1e-06  ;;  %v846_v2 = vmul.f32 %v814_v30, %v814_v30  ;;  %v847_v14 = vmul.f32 %v815_v16, %v815_v16  ;;  %v848_v54 = vmul.f32 %v816_v23, %v816_v23 }
  0xb3   : > { %v849_v22 = vmul.f32 %v817_v32, %v817_v32  ;;  %v850_v13 = vmul.f32 %v818_v26, %v818_v26  ;;  %v852_v55 = vmul.f32 %v820_v52, %v820_v52  ;;  %v853_v56 = vmul.f32 %v821_v42, %v821_v42 }
  0xb4   : > { %v854_v57 = vmul.f32 %v822_v27, %v822_v27  ;;  %v855_v8 = vmul.f32 %v823_v39, %v823_v39  ;;  %v856_v59 = vmul.f32 %v824_v50, %v824_v50  ;;  %v857_v60 = vmul.f32 %v825_v34, %v825_v34 }
  0xb5   : > { %v858_v61 = vmul.f32 %v826_v21, %v826_v21  ;;  %v859_v53 = vmul.f32 %v827_v49, %v827_v49  ;;  %v860_v51 = vmul.f32 %v828_v35, %v828_v35  ;;  %v861_v4 = vmul.f32 %v829_v24, %v829_v24 }
  0xb6   : > { %v862_v47 = vmul.f32 %v830_v37, %v830_v37  ;;  %v863_v45 = vmul.f32 %v831_v40, %v831_v40  ;;  %v864_v44 = vmul.f32 %v832_v46, %v832_v46  ;;  %v865_v62 = vmul.f32 %v833_v11, %v8387_v6  ;;  %v11541_v11 = vld [vmem:[#allocation55_spill] sm:$0xff]  ;;  %v11546_v31 = vld [vmem:[#allocation60_spill] sm:$0xff] }
  0xb7   : > { %v866_v29 = vmul.f32 %v834_v15, %v8389_v48  ;;  %v867_v12 = vmul.f32 %v835_v20, %v8391_v58  ;;  %v868_v5 = vmul.f32 %v836_v19, %v8393_v43  ;;  %v869_v33 = vmul.f32 %v837_v38, %v8395_v63  ;;  %v11542_v48 = vld [vmem:[#allocation56_spill] sm:$0xff]  ;;  %v11543_v58 = vld [vmem:[#allocation57_spill] sm:$0xff]  ;;  %v11544_v43 = vld [vmem:[#allocation58_spill] sm:$0xff] }
  0xb8   : > { %v871_v6 = vmul.f32 %v839_v36, %v8399_v17  ;;  %v872_v15 = vmul.f32 %v840_v28, %v11541_v11  ;;  %v873_v20 = vmul.f32 %v841_v18, %v11542_v48  ;;  %v874_v19 = vmul.f32 %v842_v3, %v11543_v58  ;;  %v11545_v63 = vld [vmem:[#allocation59_spill] sm:$0xff] }
  0xb9   : > { %v875_v38 = vmul.f32 %v843_v0, %v11544_v43  ;;  %v876_v7 = vmul.f32 %v844_v1, %v11545_v63  ;;  %v877_v17 = vmul.f32 %v845_v10, %v11546_v31  ;;  %v878_v36 = vmul.f32 %v846_v2, %v814_v30 }
  0xba   : > { %v879_v11 = vmul.f32 %v847_v14, %v815_v16  ;;  %v880_v28 = vmul.f32 %v848_v54, %v816_v23  ;;  %v8452_v18 = vmul.f32 %v849_v22, %v817_v32  ;;  %v8454_v48 = vmul.f32 %v850_v13, %v818_v26 }
  0xbb   : > { %v8456_v3 = vmul.f32 %v851_v25, %v819_v41  ;;  %v8458_v58 = vmul.f32 %v852_v55, %v820_v52  ;;  %v8460_v0 = vmul.f32 %v853_v56, %v821_v42  ;;  %v8462_v43 = vmul.f32 %v854_v57, %v822_v27 }
  0xbc   : > { %v8464_v1 = vmul.f32 %v855_v8, %v823_v39  ;;  %v8466_v63 = vmul.f32 %v856_v59, %v824_v50  ;;  %v8468_v10 = vmul.f32 %v857_v60, %v825_v34  ;;  %v8470_v30 = vmul.f32 %v858_v61, %v826_v21 }
  0xbd   : > { %v8472_v16 = vmul.f32 %v859_v53, %v827_v49  ;;  %v8474_v23 = vmul.f32 %v860_v51, %v828_v35  ;;  %v8476_v25 = vmul.f32 %v861_v4, %v829_v24  ;;  %v8478_v55 = vmul.f32 %v862_v47, %v830_v37 }
  0xbe   : > { %v8480_v56 = vmul.f32 %v863_v45, %v831_v40  ;;  %v8482_v57 = vmul.f32 %v864_v44, %v832_v46  ;;  %v897_v8 = vrot.slane %v865_v62, 4  ;;  %v903_v39 = vrot.slane %v866_v29, 4 }
  0xbf   : > { %11547 = vst [vmem:[#allocation55_spill] sm:$0xff] %v8478_v55  ;;  %v909_v59 = vrot.slane %v867_v12, 4  ;;  %v915_v50 = vrot.slane %v868_v5, 4  ;;  %v921_v60 = vrot.slane %v869_v33, 4  ;;  %v927_v27 = vrot.slane %v870_v9, 4 }
  0xc0   : > { %11548 = vst [vmem:[#allocation56_spill] sm:$0xff] %v8480_v56  ;;  %v933_v61 = vrot.slane %v871_v6, 4  ;;  %v939_v52 = vrot.slane %v872_v15, 4  ;;  %v945_v53 = vrot.slane %v873_v20, 4  ;;  %v951_v49 = vrot.slane %v874_v19, 4 }
  0xc1   : > { %11549 = vst [vmem:[#allocation57_spill] sm:$0xff] %v8482_v57  ;;  %v957_v51 = vrot.slane %v875_v38, 4  ;;  %v963_v41 = vrot.slane %v876_v7, 4  ;;  %v969_v4 = vrot.slane %v877_v17, 4  ;;  %v975_v32 = vrot.slane %v878_v36, 4 }
  0xc2   : > { %v981_v47 = vrot.slane %v879_v11, 4  ;;  %v898_v37 = vadd.f32 %v897_v8, %v865_v62  ;;  %v904_v45 = vadd.f32 %v903_v39, %v866_v29  ;;  %v910_v26 = vadd.f32 %v909_v59, %v867_v12 }
  0xc3   : > { %v987_v44 = vrot.slane %v880_v28, 4  ;;  %v916_v42 = vadd.f32 %v915_v50, %v868_v5  ;;  %v922_v34 = vadd.f32 %v921_v60, %v869_v33  ;;  %v928_v21 = vadd.f32 %v927_v27, %v870_v9 }
  0xc4   : > { %v934_v35 = vadd.f32 %v933_v61, %v871_v6  ;;  %v940_v24 = vadd.f32 %v939_v52, %v872_v15  ;;  %v946_v40 = vadd.f32 %v945_v53, %v873_v20  ;;  %v952_v46 = vadd.f32 %v951_v49, %v874_v19 }
  0xc5   : > { %v958_v2 = vadd.f32 %v957_v51, %v875_v38  ;;  %v964_v14 = vadd.f32 %v963_v41, %v876_v7  ;;  %v970_v54 = vadd.f32 %v969_v4, %v877_v17  ;;  %v976_v22 = vadd.f32 %v975_v32, %v878_v36 }
  0xc6   : > { %v982_v13 = vadd.f32 %v981_v47, %v879_v11  ;;  %v899_v31 = vrot.slane %v898_v37, 2  ;;  %v905_v57 = vrot.slane %v904_v45, 2  ;;  %v911_v56 = vrot.slane %v910_v26, 2 }
  0xc7   : > { %v988_v55 = vadd.f32 %v987_v44, %v880_v28  ;;  %v917_v62 = vrot.slane %v916_v42, 2  ;;  %v923_v29 = vrot.slane %v922_v34, 2  ;;  %v929_v12 = vrot.slane %v928_v21, 2 }
  0xc8   : > { %v935_v8 = vrot.slane %v934_v35, 2  ;;  %v941_v5 = vrot.slane %v940_v24, 2  ;;  %v947_v33 = vrot.slane %v946_v40, 2  ;;  %v953_v9 = vrot.slane %v952_v46, 2 }
  0xc9   : > { %v959_v6 = vrot.slane %v958_v2, 2  ;;  %v965_v15 = vrot.slane %v964_v14, 2  ;;  %v971_v20 = vrot.slane %v970_v54, 2  ;;  %v977_v19 = vrot.slane %v976_v22, 2 }
  0xca   : > { %v983_v38 = vrot.slane %v982_v13, 2  ;;  %v900_v7 = vadd.f32 %v899_v31, %v898_v37  ;;  %v906_v17 = vadd.f32 %v905_v57, %v904_v45  ;;  %v912_v36 = vadd.f32 %v911_v56, %v910_v26 }
  0xcb   : > { %v989_v11 = vrot.slane %v988_v55, 2  ;;  %v918_v39 = vadd.f32 %v917_v62, %v916_v42  ;;  %v924_v59 = vadd.f32 %v923_v29, %v922_v34  ;;  %v930_v50 = vadd.f32 %v929_v12, %v928_v21 }
  0xcc   : > { %v936_v28 = vadd.f32 %v935_v8, %v934_v35  ;;  %v942_v60 = vadd.f32 %v941_v5, %v940_v24  ;;  %v948_v27 = vadd.f32 %v947_v33, %v946_v40  ;;  %v954_v61 = vadd.f32 %v953_v9, %v952_v46 }
  0xcd   : > { %v960_v52 = vadd.f32 %v959_v6, %v958_v2  ;;  %v966_v53 = vadd.f32 %v965_v15, %v964_v14  ;;  %v972_v49 = vadd.f32 %v971_v20, %v970_v54  ;;  %v978_v51 = vadd.f32 %v977_v19, %v976_v22 }
  0xce   : > { %v984_v41 = vadd.f32 %v983_v38, %v982_v13  ;;  %v901_v4 = vrot.slane %v900_v7, 1  ;;  %v907_v32 = vrot.slane %v906_v17, 1  ;;  %v913_v47 = vrot.slane %v912_v36, 1 }
  0xcf   : > { %v990_v44 = vadd.f32 %v989_v11, %v988_v55  ;;  %v919_v37 = vrot.slane %v918_v39, 1  ;;  %v925_v57 = vrot.slane %v924_v59, 1  ;;  %v931_v56 = vrot.slane %v930_v50, 1 }
  0xd0   : > { %v937_v45 = vrot.slane %v936_v28, 1  ;;  %v943_v26 = vrot.slane %v942_v60, 1  ;;  %v949_v42 = vrot.slane %v948_v27, 1  ;;  %v955_v34 = vrot.slane %v954_v61, 1 }
  0xd1   : > { %v961_v21 = vrot.slane %v960_v52, 1  ;;  %v967_v35 = vrot.slane %v966_v53, 1  ;;  %v973_v24 = vrot.slane %v972_v49, 1  ;;  %v979_v40 = vrot.slane %v978_v51, 1 }
  0xd2   : > { %v985_v46 = vrot.slane %v984_v41, 1  ;;  %v8484_v2 = vadd.f32 %v901_v4, %v900_v7  ;;  %v8486_v14 = vadd.f32 %v907_v32, %v906_v17  ;;  %v8488_v54 = vadd.f32 %v913_v47, %v912_v36  ;;  %v11555_v47 = vld [vmem:[#allocation57_spill] sm:$0xff] }
  0xd3   : > { %v991_v22 = vrot.slane %v990_v44, 1  ;;  %v8490_v55 = vadd.f32 %v919_v37, %v918_v39  ;;  %v8492_v13 = vadd.f32 %v925_v57, %v924_v59  ;;  %v8494_v31 = vadd.f32 %v931_v56, %v930_v50 }
  0xd4   : > { %v8496_v62 = vadd.f32 %v937_v45, %v936_v28  ;;  %v8498_v29 = vadd.f32 %v943_v26, %v942_v60  ;;  %v8500_v12 = vadd.f32 %v949_v42, %v948_v27  ;;  %v8502_v8 = vadd.f32 %v955_v34, %v954_v61 }
  0xd5   : > { %v8504_v5 = vadd.f32 %v961_v21, %v960_v52  ;;  %v8506_v33 = vadd.f32 %v967_v35, %v966_v53  ;;  %v8508_v9 = vadd.f32 %v973_v24, %v972_v49  ;;  %v8510_v6 = vadd.f32 %v979_v40, %v978_v51  ;;  %v11553_v52 = vld [vmem:[#allocation55_spill] sm:$0xff]  ;;  %v11554_v49 = vld [vmem:[#allocation56_spill] sm:$0xff] }
  0xd6   : > { %v8512_v15 = vadd.f32 %v985_v46, %v984_v41  ;;  %v8514_v20 = vadd.f32 %v991_v22, %v990_v44  ;;  %v993_v19 = vrot.slane %v8452_v18, 4  ;;  %v999_v38 = vrot.slane %v8454_v48, 4 }
  0xd7   : > { %11550 = vst [vmem:[#allocation58_spill] sm:$0xff] %v8510_v6  ;;  %v1005_v7 = vrot.slane %v8456_v3, 4  ;;  %v1011_v17 = vrot.slane %v8458_v58, 4  ;;  %v1017_v36 = vrot.slane %v8460_v0, 4  ;;  %v1023_v11 = vrot.slane %v8462_v43, 4 }
  0xd8   : > { %11551 = vst [vmem:[#allocation59_spill] sm:$0xff] %v8512_v15  ;;  %v1029_v39 = vrot.slane %v8464_v1, 4  ;;  %v1035_v59 = vrot.slane %v8466_v63, 4  ;;  %v1041_v50 = vrot.slane %v8468_v10, 4  ;;  %v1047_v28 = vrot.slane %v8470_v30, 4 }
  0xd9   : > { %11552 = vst [vmem:[#allocation60_spill] sm:$0xff] %v8514_v20  ;;  %v1053_v60 = vrot.slane %v8472_v16, 4  ;;  %v1059_v27 = vrot.slane %v8474_v23, 4  ;;  %v1065_v61 = vrot.slane %v8476_v25, 4  ;;  %v1071_v53 = vrot.slane %v11553_v52, 4 }
  0xda   : > { %v1077_v51 = vrot.slane %v11554_v49, 4  ;;  %v994_v41 = vadd.f32 %v993_v19, %v8452_v18  ;;  %v1000_v4 = vadd.f32 %v999_v38, %v8454_v48  ;;  %v1006_v32 = vadd.f32 %v1005_v7, %v8456_v3 }
  0xdb   : > { %v1083_v44 = vrot.slane %v11555_v47, 4  ;;  %v1012_v37 = vadd.f32 %v1011_v17, %v8458_v58  ;;  %v1018_v57 = vadd.f32 %v1017_v36, %v8460_v0  ;;  %v1024_v56 = vadd.f32 %v1023_v11, %v8462_v43 }
  0xdc   : > { %v1030_v45 = vadd.f32 %v1029_v39, %v8464_v1  ;;  %v1036_v26 = vadd.f32 %v1035_v59, %v8466_v63  ;;  %v1042_v42 = vadd.f32 %v1041_v50, %v8468_v10  ;;  %v1048_v18 = vadd.f32 %v1047_v28, %v8470_v30 }
  0xdd   : > { %v1054_v48 = vadd.f32 %v1053_v60, %v8472_v16  ;;  %v1060_v3 = vadd.f32 %v1059_v27, %v8474_v23  ;;  %v1066_v34 = vadd.f32 %v1065_v61, %v8476_v25  ;;  %v1072_v58 = vadd.f32 %v1071_v53, %v11553_v52 }
  0xde   : > { %v1078_v0 = vadd.f32 %v1077_v51, %v11554_v49  ;;  %v995_v21 = vrot.slane %v994_v41, 2  ;;  %v1001_v43 = vrot.slane %v1000_v4, 2  ;;  %v1007_v35 = vrot.slane %v1006_v32, 2 }
  0xdf   : > { %v1084_v1 = vadd.f32 %v1083_v44, %v11555_v47  ;;  %v1013_v63 = vrot.slane %v1012_v37, 2  ;;  %v1019_v24 = vrot.slane %v1018_v57, 2  ;;  %v1025_v10 = vrot.slane %v1024_v56, 2 }
  0xe0   : > { %v1031_v40 = vrot.slane %v1030_v45, 2  ;;  %v1037_v30 = vrot.slane %v1036_v26, 2  ;;  %v1043_v46 = vrot.slane %v1042_v42, 2  ;;  %v1049_v16 = vrot.slane %v1048_v18, 2 }
  0xe1   : > { %v1055_v22 = vrot.slane %v1054_v48, 2  ;;  %v1061_v23 = vrot.slane %v1060_v3, 2  ;;  %v1067_v19 = vrot.slane %v1066_v34, 2  ;;  %v1073_v25 = vrot.slane %v1072_v58, 2 }
  0xe2   : > { %v1079_v38 = vrot.slane %v1078_v0, 2  ;;  %v996_v7 = vadd.f32 %v995_v21, %v994_v41  ;;  %v1002_v17 = vadd.f32 %v1001_v43, %v1000_v4  ;;  %v1008_v36 = vadd.f32 %v1007_v35, %v1006_v32 }
  0xe3   : > { %v1085_v11 = vrot.slane %v1084_v1, 2  ;;  %v1014_v39 = vadd.f32 %v1013_v63, %v1012_v37  ;;  %v1020_v59 = vadd.f32 %v1019_v24, %v1018_v57  ;;  %v1026_v50 = vadd.f32 %v1025_v10, %v1024_v56 }
  0xe4   : > { %v1032_v28 = vadd.f32 %v1031_v40, %v1030_v45  ;;  %v1038_v60 = vadd.f32 %v1037_v30, %v1036_v26  ;;  %v1044_v27 = vadd.f32 %v1043_v46, %v1042_v42  ;;  %v1050_v61 = vadd.f32 %v1049_v16, %v1048_v18 }
  0xe5   : > { %v1056_v52 = vadd.f32 %v1055_v22, %v1054_v48  ;;  %v1062_v53 = vadd.f32 %v1061_v23, %v1060_v3  ;;  %v1068_v49 = vadd.f32 %v1067_v19, %v1066_v34  ;;  %v1074_v51 = vadd.f32 %v1073_v25, %v1072_v58  ;;  %v11556_v25 = vld [vmem:[#allocation26_spill] sm:$0xff] }
  0xe6   : > { %v1080_v47 = vadd.f32 %v1079_v38, %v1078_v0  ;;  %v997_v44 = vrot.slane %v996_v7, 1  ;;  %v1003_v20 = vrot.slane %v1002_v17, 1  ;;  %v1009_v15 = vrot.slane %v1008_v36, 1 }
  0xe7   : > { %v1086_v6 = vadd.f32 %v1085_v11, %v1084_v1  ;;  %v1015_v41 = vrot.slane %v1014_v39, 1  ;;  %v1021_v4 = vrot.slane %v1020_v59, 1  ;;  %v1027_v32 = vrot.slane %v1026_v50, 1 }
  0xe8   : > { %v1033_v21 = vrot.slane %v1032_v28, 1  ;;  %v1039_v37 = vrot.slane %v1038_v60, 1  ;;  %v1045_v57 = vrot.slane %v1044_v27, 1  ;;  %v1051_v56 = vrot.slane %v1050_v61, 1 }
  0xe9   : > { %v1057_v45 = vrot.slane %v1056_v52, 1  ;;  %v1063_v26 = vrot.slane %v1062_v53, 1  ;;  %v1069_v42 = vrot.slane %v1068_v49, 1  ;;  %v1075_v18 = vrot.slane %v1074_v51, 1 }
  0xea   : > { %v1081_v48 = vrot.slane %v1080_v47, 1  ;;  %v998_v3 = vadd.f32 %v997_v44, %v996_v7  ;;  %v1004_v34 = vadd.f32 %v1003_v20, %v1002_v17  ;;  %v1010_v58 = vadd.f32 %v1009_v15, %v1008_v36  ;;  %v11558_v20 = vld [vmem:[#allocation27_spill] sm:$0xff]  ;;  %v11560_v7 = vld [vmem:[#allocation28_spill] sm:$0xff]  ;;  %v11562_v36 = vld [vmem:[#allocation29_spill] sm:$0xff] }
  0xeb   : > { %v1087_v0 = vrot.slane %v1086_v6, 1  ;;  %v1016_v43 = vadd.f32 %v1015_v41, %v1014_v39  ;;  %v1022_v35 = vadd.f32 %v1021_v4, %v1020_v59  ;;  %v1028_v63 = vadd.f32 %v1027_v32, %v1026_v50  ;;  %v11564_v39 = vld [vmem:[#allocation30_spill] sm:$0xff]  ;;  %v11568_v50 = vld [vmem:[#allocation32_spill] sm:$0xff]  ;;  %v11586_v44 = vld [vmem:[#allocation59_spill] sm:$0xff] }
  0xec   : > { %v1034_v1 = vadd.f32 %v1033_v21, %v1032_v28  ;;  %v1040_v24 = vadd.f32 %v1039_v37, %v1038_v60  ;;  %v1046_v10 = vadd.f32 %v1045_v57, %v1044_v27  ;;  %v1052_v40 = vadd.f32 %v1051_v56, %v1050_v61  ;;  %v11570_v28 = vld [vmem:[#allocation33_spill] sm:$0xff]  ;;  %v11572_v60 = vld [vmem:[#allocation34_spill] sm:$0xff]  ;;  %v11574_v27 = vld [vmem:[#allocation35_spill] sm:$0xff] }
  0xed   : > { %v1058_v30 = vadd.f32 %v1057_v45, %v1056_v52  ;;  %v1064_v46 = vadd.f32 %v1063_v26, %v1062_v53  ;;  %v1070_v16 = vadd.f32 %v1069_v42, %v1068_v49  ;;  %v1076_v22 = vadd.f32 %v1075_v18, %v1074_v51  ;;  %v11576_v61 = vld [vmem:[#allocation36_spill] sm:$0xff]  ;;  %v11578_v52 = vld [vmem:[#allocation37_spill] sm:$0xff]  ;;  %v11580_v53 = vld [vmem:[#allocation38_spill] sm:$0xff] }
  0xee   : > { %v1082_v23 = vadd.f32 %v1081_v48, %v1080_v47  ;;  %v1088_v19 = vadd.f32 %v1087_v0, %v1086_v6  ;;  %v8550_v38 = vadd.f32 %v8484_v2, %v11556_v25  ;;  %v8554_v15 = vadd.f32 %v8486_v14, %v11558_v20  ;;  %v11566_v6 = vld [vmem:[#allocation31_spill] sm:$0xff]  ;;  %v11583_v51 = vld [vmem:[#allocation58_spill] sm:$0xff]  ;;  %v11585_v47 = vld [vmem:[#allocation40_spill] sm:$0xff] }
  0xef   : > { %v8558_v17 = vadd.f32 %v8488_v54, %v11560_v7  ;;  %v8562_v11 = vadd.f32 %v8490_v55, %v11562_v36  ;;  %v8566_v59 = vadd.f32 %v8492_v13, %v11564_v39  ;;  %v8570_v2 = vadd.f32 %v8494_v31, %v11566_v6  ;;  %v11582_v49 = vld [vmem:[#allocation39_spill] sm:$0xff]  ;;  %v11588_v41 = vld [vmem:[#allocation41_spill] sm:$0xff]  ;;  %v11589_v4 = vld [vmem:[#allocation60_spill] sm:$0xff] }
  0xf0   : > { %11557 = vst [vmem:[#allocation55_spill] sm:$0xff] %v8550_v38  ;;  %v8574_v14 = vadd.f32 %v8496_v62, %v11568_v50  ;;  %v8578_v54 = vadd.f32 %v8498_v29, %v11570_v28  ;;  %v8582_v55 = vadd.f32 %v8500_v12, %v11572_v60  ;;  %v8586_v13 = vadd.f32 %v8502_v8, %v11574_v27  ;;  %v11591_v32 = vld [vmem:[#allocation23_spill] sm:$0xff]  ;;  %v11597_v56 = vld [vmem:[#allocation42_spill] sm:$0xff]  ;;  %v11601_v18 = vld [vmem:[#allocation44_spill] sm:$0xff] }
  0xf1   : > { %11559 = vst [vmem:[#allocation56_spill] sm:$0xff] %v8554_v15  ;;  %v8590_v31 = vadd.f32 %v8504_v5, %v11576_v61  ;;  %v8594_v62 = vadd.f32 %v8506_v33, %v11578_v52  ;;  %v8598_v29 = vadd.f32 %v8508_v9, %v11580_v53  ;;  %v8602_v12 = vadd.f32 %v11583_v51, %v11582_v49  ;;  %v11593_v33 = vld [vmem:[#allocation24_spill] sm:$0xff]  ;;  %v11595_v9 = vld [vmem:[#allocation25_spill] sm:$0xff]  ;;  %v11599_v26 = vld [vmem:[#allocation43_spill] sm:$0xff] }
  0xf2   : > { %11561 = vst [vmem:[#allocation57_spill] sm:$0xff] %v8558_v17  ;;  %v8606_v8 = vadd.f32 %v11586_v44, %v11585_v47  ;;  %v8610_v5 = vadd.f32 %v11589_v4, %v11588_v41  ;;  %v8613_v21 = vadd.f32 %v998_v3, %v11591_v32  ;;  %v8616_v37 = vadd.f32 %v1004_v34, %v11593_v33  ;;  %v11603_v0 = vld [vmem:[#allocation45_spill] sm:$0xff]  ;;  %v1124_v3 = vld [vmem:[#allocation3 + $0x80] sm:$0xff]  ;;  %v1125_v20 = vld [vmem:[#allocation3 + $0x88] sm:$0xff] }
  0xf3   : > { %11563 = vst [vmem:[#allocation26_spill] sm:$0xff] %v8562_v11  ;;  %v8619_v57 = vadd.f32 %v1010_v58, %v11595_v9  ;;  %v8622_v45 = vadd.f32 %v1016_v43, %v11597_v56  ;;  %v8625_v42 = vadd.f32 %v1022_v35, %v11599_v26  ;;  %v8628_v48 = vadd.f32 %v1028_v63, %v11601_v18  ;;  %v11605_v7 = vld [vmem:[#allocation46_spill] sm:$0xff]  ;;  %v11607_v36 = vld [vmem:[#allocation47_spill] sm:$0xff]  ;;  %v11609_v39 = vld [vmem:[#allocation48_spill] sm:$0xff] }
  0xf4   : > { %11565 = vst [vmem:[#allocation27_spill] sm:$0xff] %v8566_v59  ;;  %v8631_v25 = vadd.f32 %v1034_v1, %v11603_v0  ;;  %v8634_v34 = vadd.f32 %v1040_v24, %v11605_v7  ;;  %v8637_v58 = vadd.f32 %v1046_v10, %v11607_v36  ;;  %v8640_v43 = vadd.f32 %v1052_v40, %v11609_v39  ;;  %v11611_v6 = vld [vmem:[#allocation49_spill] sm:$0xff]  ;;  %v1126_v50 = vld [vmem:[#allocation3 + $0x90] sm:$0xff]  ;;  %v11613_v28 = vld [vmem:[#allocation50_spill] sm:$0xff] }
  0xf5   : > { %11567 = vst [vmem:[#allocation28_spill] sm:$0xff] %v8570_v2  ;;  %v8643_v35 = vadd.f32 %v1058_v30, %v11611_v6  ;;  %v1127_v63 = vld [vmem:[#allocation3 + $0x98] sm:$0xff]  ;;  %v8646_v60 = vadd.f32 %v1064_v46, %v11613_v28  ;;  %v11615_v1 = vld [vmem:[#allocation51_spill] sm:$0xff]  ;;  %v11617_v61 = vld [vmem:[#allocation52_spill] sm:$0xff]  ;;  %v1140_v44 = vunpack.c.l.bf16 %v1124_v3  ;;  %v1141_v41 = vunpack.c.h.bf16 %v1124_v3 }
  0xf6   : > { %11569 = vst [vmem:[#allocation29_spill] sm:$0xff] %v8574_v14  ;;  %v8649_v27 = vadd.f32 %v1070_v16, %v11615_v1  ;;  %v8652_v24 = vadd.f32 %v1076_v22, %v11617_v61  ;;  %v11619_v52 = vld [vmem:[#allocation53_spill] sm:$0xff]  ;;  %v1128_v53 = vld [vmem:[#allocation3 + $0xa0] sm:$0xff]  ;;  %v1129_v40 = vld [vmem:[#allocation3 + $0xa8] sm:$0xff]  ;;  %v1142_v46 = vunpack.c.l.bf16 %v1125_v20  ;;  %v1143_v16 = vunpack.c.h.bf16 %v1125_v20 }
  0xf7   : > { %11571 = vst [vmem:[#allocation30_spill] sm:$0xff] %v8578_v54  ;;  %v8655_v10 = vadd.f32 %v1082_v23, %v11619_v52  ;;  %v11621_v49 = vld [vmem:[#allocation54_spill] sm:$0xff]  ;;  %v1130_v30 = vld [vmem:[#allocation3 + $0xb0] sm:$0xff]  ;;  %v1131_v47 = vld [vmem:[#allocation3 + $0xb8] sm:$0xff]  ;;  %v1144_v33 = vunpack.c.l.bf16 %v1126_v50  ;;  %v1145_v9 = vunpack.c.h.bf16 %v1126_v50  ;;  %v1146_v22 = vunpack.c.l.bf16 %v1127_v63 }
  0xf8   : > { %11573 = vst [vmem:[#allocation31_spill] sm:$0xff] %v8582_v55  ;;  %v8658_v51 = vadd.f32 %v1088_v19, %v11621_v49  ;;  %v1132_v4 = vld [vmem:[#allocation3 + $0x280] sm:$0xff]  ;;  %v1133_v32 = vld [vmem:[#allocation3 + $0x288] sm:$0xff]  ;;  %v1134_v56 = vld [vmem:[#allocation3 + $0x290] sm:$0xff]  ;;  %v1147_v23 = vunpack.c.h.bf16 %v1127_v63  ;;  %v1148_v18 = vunpack.c.l.bf16 %v1128_v53  ;;  %v1149_v0 = vunpack.c.h.bf16 %v1128_v53 }
  0xf9   : > { %11575 = vst [vmem:[#allocation32_spill] sm:$0xff] %v8586_v13  ;;  %v1135_v26 = vld [vmem:[#allocation3 + $0x298] sm:$0xff]  ;;  %v1150_v7 = vunpack.c.l.bf16 %v1129_v40  ;;  %v1136_v36 = vld [vmem:[#allocation3 + $0x2a0] sm:$0xff]  ;;  %v1151_v19 = vunpack.c.h.bf16 %v1129_v40  ;;  %v1152_v39 = vunpack.c.l.bf16 %v1130_v30  ;;  %v1153_v6 = vunpack.c.h.bf16 %v1130_v30  ;;  %v1137_v1 = vld [vmem:[#allocation3 + $0x2a8] sm:$0xff] }
  0xfa   : > { %11577 = vst [vmem:[#allocation33_spill] sm:$0xff] %v8590_v31  ;;  %v1154_v28 = vunpack.c.l.bf16 %v1131_v47  ;;  %v1155_v3 = vunpack.c.h.bf16 %v1131_v47  ;;  %v1156_v61 = vunpack.c.l.bf16 %v1132_v4  ;;  %v1157_v52 = vunpack.c.h.bf16 %v1132_v4  ;;  %v1138_v20 = vld [vmem:[#allocation3 + $0x2b0] sm:$0xff] }
  0xfb   : > { %11579 = vst [vmem:[#allocation34_spill] sm:$0xff] %v8594_v62  ;;  %v1158_v49 = vunpack.c.l.bf16 %v1133_v32  ;;  %v1159_v50 = vunpack.c.h.bf16 %v1133_v32  ;;  %v1163_v63 = vunpack.c.h.bf16 %v1135_v26  ;;  %v1165_v53 = vunpack.c.h.bf16 %v1136_v36 }
  0xfc   : > { %11581 = vst [vmem:[#allocation35_spill] sm:$0xff] %v8598_v29  ;;  %v1166_v40 = vunpack.c.l.bf16 %v1137_v1  ;;  %v1168_v30 = vunpack.c.l.bf16 %v1138_v20  ;;  %v1169_v47 = vunpack.c.h.bf16 %v1138_v20  ;;  %v8664_v4 = vmax.f32 %v1142_v46, 1e-06 }
  0xfd   : > { %11584 = vst [vmem:[#allocation36_spill] sm:$0xff] %v8602_v12  ;;  %v8682_v46 = vmax.f32 %v1150_v7, 1e-06  ;;  %v1189_v20 = vmax.f32 %v1157_v52, 1e-06 }
  0xfe   : > { %11587 = vst [vmem:[#allocation37_spill] sm:$0xff] %v8606_v8  ;;  %v1201_v8 = vmax.f32 %v1169_v47, 1e-06 }
  0xff   : > { %11590 = vst [vmem:[#allocation38_spill] sm:$0xff] %v8610_v5  ;;  %v1198_v5 = vmax.f32 %v1166_v40, 1e-06 }
 0x100   : > { %11592 = vst [vmem:[#allocation39_spill] sm:$0xff] %v8613_v21  ;;  %v1195_v21 = vmax.f32 %v1163_v63, 1e-06  ;;  %v1214_v63 = vmul.f32 %v8682_v46, %v8682_v46  ;;  %v1233_v17 = vmul.f32 %v1201_v8, %v1201_v8 }
 0x101   : > { %11594 = vst [vmem:[#allocation58_spill] sm:$0xff] %v8616_v37  ;;  %v1230_v2 = vmul.f32 %v1198_v5, %v1198_v5 }
 0x102   : > { %11596 = vst [vmem:[#allocation40_spill] sm:$0xff] %v8619_v57  ;;  %v1227_v55 = vmul.f32 %v1195_v21, %v1195_v21 }
 0x103   : > { %11598 = vst [vmem:[#allocation59_spill] sm:$0xff] %v8622_v45  ;;  %v1191_v45 = vmax.f32 %v1159_v50, 1e-06 }
 0x104   : > { %11600 = vst [vmem:[#allocation41_spill] sm:$0xff] %v8625_v42  ;;  %v1190_v42 = vmax.f32 %v1158_v49, 1e-06  ;;  %v1200_v49 = vmax.f32 %v1168_v30, 1e-06 }
 0x105   : > { %11602 = vst [vmem:[#allocation60_spill] sm:$0xff] %v8628_v48  ;;  %v8668_v48 = vmax.f32 %v1144_v33, 1e-06  ;;  %v1223_v29 = vmul.f32 %v1191_v45, %v1191_v45 }
 0x106   : > { %11604 = vst [vmem:[#allocation23_spill] sm:$0xff] %v8631_v25  ;;  %v8666_v25 = vmax.f32 %v1143_v16, 1e-06  ;;  %v8684_v16 = vmax.f32 %v1151_v19, 1e-06  ;;  %v1222_v12 = vmul.f32 %v1190_v42, %v1190_v42  ;;  %v1232_v11 = vmul.f32 %v1200_v49, %v1200_v49 }
 0x107   : > { %11606 = vst [vmem:[#allocation24_spill] sm:$0xff] %v8634_v34 }
 0x108   : > { %11608 = vst [vmem:[#allocation25_spill] sm:$0xff] %v8637_v58  ;;  %v8662_v58 = vmax.f32 %v1141_v41, 1e-06  ;;  %v1207_v7 = vmul.f32 %v8666_v25, %v8666_v25 }
 0x109   : > { %11610 = vst [vmem:[#allocation42_spill] sm:$0xff] %v8640_v43  ;;  %v1167_v43 = vunpack.c.h.bf16 %v1137_v1  ;;  %v8678_v1 = vmax.f32 %v1149_v0, 1e-06  ;;  %v1188_v0 = vmax.f32 %v1156_v61, 1e-06 }
 0x10a   : > { %11612 = vst [vmem:[#allocation43_spill] sm:$0xff] %v8643_v35  ;;  %v8660_v35 = vmax.f32 %v1140_v44, 1e-06  ;;  %v8674_v44 = vmax.f32 %v1147_v23, 1e-06  ;;  %v1205_v33 = vmul.f32 %v8662_v58, %v8662_v58 }
 0x10b   : > { %11614 = vst [vmem:[#allocation44_spill] sm:$0xff] %v8646_v60  ;;  %v1164_v60 = vunpack.c.l.bf16 %v1136_v36  ;;  %v8676_v36 = vmax.f32 %v1148_v18, 1e-06  ;;  %v1187_v23 = vmax.f32 %v1155_v3, 1e-06  ;;  %v1206_v18 = vmul.f32 %v8664_v4, %v8664_v4 }
 0x10c   : > { %11616 = vst [vmem:[#allocation45_spill] sm:$0xff] %v8649_v27  ;;  %v1162_v27 = vunpack.c.l.bf16 %v1135_v26  ;;  %v8672_v26 = vmax.f32 %v1146_v22, 1e-06  ;;  %v1204_v41 = vmul.f32 %v8660_v35, %v8660_v35  ;;  %v1186_v22 = vmax.f32 %v1154_v28, 1e-06 }
 0x10d   : > { %11618 = vst [vmem:[#allocation46_spill] sm:$0xff] %v8652_v24  ;;  %v1161_v24 = vunpack.c.h.bf16 %v1134_v56  ;;  %v1197_v3 = vmax.f32 %v1165_v53, 1e-06  ;;  %v1199_v61 = vmax.f32 %v1167_v43, 1e-06  ;;  %v1215_v43 = vmul.f32 %v8684_v16, %v8684_v16 }
 0x10e   : > { %11620 = vst [vmem:[#allocation47_spill] sm:$0xff] %v8655_v10  ;;  %v1160_v10 = vunpack.c.l.bf16 %v1134_v56  ;;  %v8670_v56 = vmax.f32 %v1145_v9, 1e-06  ;;  %v1185_v9 = vmax.f32 %v1153_v6, 1e-06  ;;  %v1210_v52 = vmul.f32 %v8672_v26, %v8672_v26 }
 0x10f   : > { %11622 = vst [vmem:[#allocation48_spill] sm:$0xff] %v8658_v51  ;;  %v1139_v51 = vld [vmem:[#allocation3 + $0x2b8] sm:$0xff]  ;;  %v1193_v57 = vmax.f32 %v1161_v24, 1e-06  ;;  %v1194_v37 = vmax.f32 %v1162_v27, 1e-06  ;;  %v1211_v24 = vmul.f32 %v8674_v44, %v8674_v44  ;;  %v1212_v27 = vmul.f32 %v8676_v36, %v8676_v36 }
 0x110   : > { %v1170_v34 = vunpack.c.l.bf16 %v1139_v51  ;;  %v1171_v32 = vunpack.c.h.bf16 %v1139_v51  ;;  %11623 = vst [vmem:[#allocation49_spill] sm:$0xff] %v8674_v44  ;;  %v8686_v51 = vmax.f32 %v1152_v39, 1e-06  ;;  %v1192_v19 = vmax.f32 %v1160_v10, 1e-06 }
 0x111   : > { %11624 = vst [vmem:[#allocation50_spill] sm:$0xff] %v8676_v36  ;;  %v1208_v39 = vmul.f32 %v8668_v48, %v8668_v48  ;;  %v1196_v6 = vmax.f32 %v1164_v60, 1e-06  ;;  %v1209_v28 = vmul.f32 %v8670_v56, %v8670_v56  ;;  %v1213_v60 = vmul.f32 %v8678_v1, %v8678_v1 }
 0x112   : > { %11625 = vst [vmem:[#allocation51_spill] sm:$0xff] %v8678_v1  ;;  %v1202_v50 = vmax.f32 %v1170_v34, 1e-06  ;;  %v1203_v10 = vmax.f32 %v1171_v32, 1e-06  ;;  %v1216_v53 = vmul.f32 %v8686_v51, %v8686_v51  ;;  %v1217_v34 = vmul.f32 %v1185_v9, %v1185_v9 }
 0x113   : > { %11626 = vst [vmem:[#allocation52_spill] sm:$0xff] %v8682_v46  ;;  %v1218_v40 = vmul.f32 %v1186_v22, %v1186_v22  ;;  %v1219_v30 = vmul.f32 %v1187_v23, %v1187_v23  ;;  %v1220_v47 = vmul.f32 %v1188_v0, %v1188_v0  ;;  %v1221_v32 = vmul.f32 %v1189_v20, %v1189_v20 }
 0x114   : > { %11627 = vst [vmem:[#allocation53_spill] sm:$0xff] %v8684_v16  ;;  %v1224_v62 = vmul.f32 %v1192_v19, %v1192_v19  ;;  %v1225_v31 = vmul.f32 %v1193_v57, %v1193_v57  ;;  %v1226_v13 = vmul.f32 %v1194_v37, %v1194_v37  ;;  %v1228_v54 = vmul.f32 %v1196_v6, %v1196_v6 }
 0x115   : > { %11628 = vst [vmem:[#allocation54_spill] sm:$0xff] %v8686_v51  ;;  %v1229_v14 = vmul.f32 %v1197_v3, %v1197_v3  ;;  %v1231_v59 = vmul.f32 %v1199_v61, %v1199_v61  ;;  %v1234_v15 = vmul.f32 %v1202_v50, %v1202_v50  ;;  %v1235_v38 = vmul.f32 %v1203_v10, %v1203_v10 }
 0x116   : > { %v1236_v51 = vmul.f32 %v1204_v41, %v8660_v35  ;;  %v1237_v16 = vmul.f32 %v1205_v33, %v8662_v58  ;;  %v1238_v46 = vmul.f32 %v1206_v18, %v8664_v4  ;;  %v1239_v1 = vmul.f32 %v1207_v7, %v8666_v25 }
 0x117   : > { %v1240_v36 = vmul.f32 %v1208_v39, %v8668_v48  ;;  %v1241_v44 = vmul.f32 %v1209_v28, %v8670_v56  ;;  %v1242_v35 = vmul.f32 %v1210_v52, %v8672_v26  ;;  %v11629_v41 = vld [vmem:[#allocation49_spill] sm:$0xff]  ;;  %v1249_v52 = vmul.f32 %v1217_v34, %v1185_v9 }
 0x118   : > { %v1243_v33 = vmul.f32 %v1211_v24, %v11629_v41  ;;  %v11630_v58 = vld [vmem:[#allocation50_spill] sm:$0xff]  ;;  %v1250_v24 = vmul.f32 %v1218_v40, %v1186_v22  ;;  %v1251_v41 = vmul.f32 %v1219_v30, %v1187_v23  ;;  %v8743_v9 = vmul.f32 %v1229_v14, %v1197_v3 }
 0x119   : > { %v1244_v4 = vmul.f32 %v1212_v27, %v11630_v58  ;;  %v11631_v18 = vld [vmem:[#allocation51_spill] sm:$0xff]  ;;  %v8725_v27 = vmul.f32 %v1220_v47, %v1188_v0  ;;  %v8727_v58 = vmul.f32 %v1221_v32, %v1189_v20  ;;  %v8745_v22 = vmul.f32 %v1230_v2, %v1198_v5 }
 0x11a   : > { %v1245_v7 = vmul.f32 %v1213_v60, %v11631_v18  ;;  %v11632_v25 = vld [vmem:[#allocation52_spill] sm:$0xff]  ;;  %v8729_v18 = vmul.f32 %v1222_v12, %v1190_v42  ;;  %v8731_v60 = vmul.f32 %v1223_v29, %v1191_v45  ;;  %v8747_v23 = vmul.f32 %v1231_v59, %v1199_v61 }
 0x11b   : > { %v1246_v39 = vmul.f32 %v1214_v63, %v11632_v25  ;;  %v11633_v48 = vld [vmem:[#allocation53_spill] sm:$0xff]  ;;  %v8733_v25 = vmul.f32 %v1224_v62, %v1192_v19  ;;  %v8735_v63 = vmul.f32 %v1225_v31, %v1193_v57  ;;  %v8749_v12 = vmul.f32 %v1232_v11, %v1200_v49 }
 0x11c   : > { %v1247_v28 = vmul.f32 %v1215_v43, %v11633_v48  ;;  %v11634_v56 = vld [vmem:[#allocation54_spill] sm:$0xff]  ;;  %v8737_v43 = vmul.f32 %v1226_v13, %v1194_v37  ;;  %v8739_v48 = vmul.f32 %v1227_v55, %v1195_v21  ;;  %v8751_v29 = vmul.f32 %v1233_v17, %v1201_v8 }
 0x11d   : > { %v1248_v26 = vmul.f32 %v1216_v53, %v11634_v56  ;;  %v8741_v53 = vmul.f32 %v1228_v54, %v1196_v6  ;;  %v8753_v62 = vmul.f32 %v1234_v15, %v1202_v50  ;;  %v8755_v31 = vmul.f32 %v1235_v38, %v1203_v10 }
 0x11e   : > { %11635 = vst [vmem:[#allocation49_spill] sm:$0xff] %v8751_v29  ;;  %v1268_v13 = vrot.slane %v1236_v51, 4  ;;  %v1274_v37 = vrot.slane %v1237_v16, 4  ;;  %v1280_v55 = vrot.slane %v1238_v46, 4  ;;  %v1286_v21 = vrot.slane %v1239_v1, 4 }
 0x11f   : > { %11636 = vst [vmem:[#allocation50_spill] sm:$0xff] %v8753_v62  ;;  %v1292_v54 = vrot.slane %v1240_v36, 4  ;;  %v1298_v57 = vrot.slane %v1241_v44, 4  ;;  %v1304_v14 = vrot.slane %v1242_v35, 4  ;;  %v1310_v45 = vrot.slane %v1243_v33, 4 }
 0x120   : > { %11637 = vst [vmem:[#allocation51_spill] sm:$0xff] %v8755_v31  ;;  %v1316_v2 = vrot.slane %v1244_v4, 4  ;;  %v1322_v5 = vrot.slane %v1245_v7, 4  ;;  %v1328_v59 = vrot.slane %v1246_v39, 4  ;;  %v1334_v42 = vrot.slane %v1247_v28, 4 }
 0x121   : > { %v1340_v11 = vrot.slane %v1248_v26, 4  ;;  %v1346_v0 = vrot.slane %v1249_v52, 4  ;;  %v1352_v17 = vrot.slane %v1250_v24, 4  ;;  %v1269_v8 = vadd.f32 %v1268_v13, %v1236_v51 }
 0x122   : > { %v1275_v15 = vadd.f32 %v1274_v37, %v1237_v16  ;;  %v1281_v20 = vadd.f32 %v1280_v55, %v1238_v46  ;;  %v1358_v38 = vrot.slane %v1251_v41, 4  ;;  %v1287_v19 = vadd.f32 %v1286_v21, %v1239_v1 }
 0x123   : > { %v1293_v6 = vadd.f32 %v1292_v54, %v1240_v36  ;;  %v1299_v3 = vadd.f32 %v1298_v57, %v1241_v44  ;;  %v1305_v61 = vadd.f32 %v1304_v14, %v1242_v35  ;;  %v1311_v49 = vadd.f32 %v1310_v45, %v1243_v33 }
 0x124   : > { %v1317_v50 = vadd.f32 %v1316_v2, %v1244_v4  ;;  %v1323_v10 = vadd.f32 %v1322_v5, %v1245_v7  ;;  %v1329_v34 = vadd.f32 %v1328_v59, %v1246_v39  ;;  %v1335_v40 = vadd.f32 %v1334_v42, %v1247_v28 }
 0x125   : > { %v1341_v30 = vadd.f32 %v1340_v11, %v1248_v26  ;;  %v1347_v47 = vadd.f32 %v1346_v0, %v1249_v52  ;;  %v1353_v32 = vadd.f32 %v1352_v17, %v1250_v24  ;;  %v1270_v56 = vrot.slane %v1269_v8, 2 }
 0x126   : > { %v1276_v31 = vrot.slane %v1275_v15, 2  ;;  %v1282_v62 = vrot.slane %v1281_v20, 2  ;;  %v1359_v29 = vadd.f32 %v1358_v38, %v1251_v41  ;;  %v1288_v51 = vrot.slane %v1287_v19, 2 }
 0x127   : > { %v1294_v16 = vrot.slane %v1293_v6, 2  ;;  %v1300_v46 = vrot.slane %v1299_v3, 2  ;;  %v1306_v13 = vrot.slane %v1305_v61, 2  ;;  %v1312_v1 = vrot.slane %v1311_v49, 2 }
 0x128   : > { %v1318_v36 = vrot.slane %v1317_v50, 2  ;;  %v1324_v44 = vrot.slane %v1323_v10, 2  ;;  %v1330_v35 = vrot.slane %v1329_v34, 2  ;;  %v1336_v33 = vrot.slane %v1335_v40, 2 }
 0x129   : > { %v1342_v4 = vrot.slane %v1341_v30, 2  ;;  %v1348_v7 = vrot.slane %v1347_v47, 2  ;;  %v1354_v39 = vrot.slane %v1353_v32, 2  ;;  %v1271_v28 = vadd.f32 %v1270_v56, %v1269_v8 }
 0x12a   : > { %v1277_v26 = vadd.f32 %v1276_v31, %v1275_v15  ;;  %v1283_v52 = vadd.f32 %v1282_v62, %v1281_v20  ;;  %v1360_v24 = vrot.slane %v1359_v29, 2  ;;  %v1289_v37 = vadd.f32 %v1288_v51, %v1287_v19 }
 0x12b   : > { %v1295_v55 = vadd.f32 %v1294_v16, %v1293_v6  ;;  %v1301_v21 = vadd.f32 %v1300_v46, %v1299_v3  ;;  %v1307_v41 = vadd.f32 %v1306_v13, %v1305_v61  ;;  %v1313_v54 = vadd.f32 %v1312_v1, %v1311_v49 }
 0x12c   : > { %v1319_v57 = vadd.f32 %v1318_v36, %v1317_v50  ;;  %v1325_v14 = vadd.f32 %v1324_v44, %v1323_v10  ;;  %v1331_v45 = vadd.f32 %v1330_v35, %v1329_v34  ;;  %v1337_v2 = vadd.f32 %v1336_v33, %v1335_v40 }
 0x12d   : > { %v1343_v5 = vadd.f32 %v1342_v4, %v1341_v30  ;;  %v1349_v59 = vadd.f32 %v1348_v7, %v1347_v47  ;;  %v1355_v42 = vadd.f32 %v1354_v39, %v1353_v32  ;;  %v1272_v11 = vrot.slane %v1271_v28, 1 }
 0x12e   : > { %v1278_v0 = vrot.slane %v1277_v26, 1  ;;  %v1284_v17 = vrot.slane %v1283_v52, 1  ;;  %v1361_v38 = vadd.f32 %v1360_v24, %v1359_v29  ;;  %v1290_v8 = vrot.slane %v1289_v37, 1 }
 0x12f   : > { %v1296_v31 = vrot.slane %v1295_v55, 1  ;;  %v1302_v62 = vrot.slane %v1301_v21, 1  ;;  %v1308_v15 = vrot.slane %v1307_v41, 1  ;;  %v1314_v20 = vrot.slane %v1313_v54, 1 }
 0x130   : > { %v1320_v19 = vrot.slane %v1319_v57, 1  ;;  %v1326_v6 = vrot.slane %v1325_v14, 1  ;;  %v1332_v3 = vrot.slane %v1331_v45, 1  ;;  %v1338_v61 = vrot.slane %v1337_v2, 1 }
 0x131   : > { %v1344_v49 = vrot.slane %v1343_v5, 1  ;;  %v1350_v50 = vrot.slane %v1349_v59, 1  ;;  %v1356_v10 = vrot.slane %v1355_v42, 1  ;;  %v8757_v34 = vadd.f32 %v1272_v11, %v1271_v28 }
 0x132   : > { %v8759_v40 = vadd.f32 %v1278_v0, %v1277_v26  ;;  %v8761_v30 = vadd.f32 %v1284_v17, %v1283_v52  ;;  %v1362_v47 = vrot.slane %v1361_v38, 1  ;;  %v8763_v29 = vadd.f32 %v1290_v8, %v1289_v37  ;;  %v11643_v17 = vld [vmem:[#allocation51_spill] sm:$0xff] }
 0x133   : > { %v8765_v32 = vadd.f32 %v1296_v31, %v1295_v55  ;;  %v8767_v56 = vadd.f32 %v1302_v62, %v1301_v21  ;;  %v8769_v51 = vadd.f32 %v1308_v15, %v1307_v41  ;;  %v8771_v16 = vadd.f32 %v1314_v20, %v1313_v54 }
 0x134   : > { %v8773_v46 = vadd.f32 %v1320_v19, %v1319_v57  ;;  %v8775_v13 = vadd.f32 %v1326_v6, %v1325_v14  ;;  %v8777_v1 = vadd.f32 %v1332_v3, %v1331_v45  ;;  %v8779_v36 = vadd.f32 %v1338_v61, %v1337_v2  ;;  %v11641_v45 = vld [vmem:[#allocation49_spill] sm:$0xff] }
 0x135   : > { %v8781_v44 = vadd.f32 %v1344_v49, %v1343_v5  ;;  %v8783_v35 = vadd.f32 %v1350_v50, %v1349_v59  ;;  %v8785_v33 = vadd.f32 %v1356_v10, %v1355_v42  ;;  %v8787_v4 = vadd.f32 %v1362_v47, %v1361_v38  ;;  %v11642_v5 = vld [vmem:[#allocation50_spill] sm:$0xff] }
 0x136   : > { %v1364_v7 = vrot.slane %v8725_v27, 4  ;;  %v1370_v39 = vrot.slane %v8727_v58, 4  ;;  %v1376_v28 = vrot.slane %v8729_v18, 4  ;;  %v1382_v26 = vrot.slane %v8731_v60, 4 }
 0x137   : > { %11638 = vst [vmem:[#allocation52_spill] sm:$0xff] %v8783_v35  ;;  %v1388_v52 = vrot.slane %v8733_v25, 4  ;;  %v1394_v24 = vrot.slane %v8735_v63, 4  ;;  %v1400_v37 = vrot.slane %v8737_v43, 4  ;;  %v1406_v55 = vrot.slane %v8739_v48, 4 }
 0x138   : > { %11639 = vst [vmem:[#allocation53_spill] sm:$0xff] %v8785_v33  ;;  %v1412_v21 = vrot.slane %v8741_v53, 4  ;;  %v1418_v41 = vrot.slane %v8743_v9, 4  ;;  %v1424_v54 = vrot.slane %v8745_v22, 4  ;;  %v1430_v57 = vrot.slane %v8747_v23, 4 }
 0x139   : > { %11640 = vst [vmem:[#allocation54_spill] sm:$0xff] %v8787_v4  ;;  %v1436_v14 = vrot.slane %v8749_v12, 4  ;;  %v1442_v2 = vrot.slane %v11641_v45, 4  ;;  %v1448_v59 = vrot.slane %v11642_v5, 4  ;;  %v1365_v42 = vadd.f32 %v1364_v7, %v8725_v27 }
 0x13a   : > { %v1371_v11 = vadd.f32 %v1370_v39, %v8727_v58  ;;  %v1377_v0 = vadd.f32 %v1376_v28, %v8729_v18  ;;  %v1454_v38 = vrot.slane %v11643_v17, 4  ;;  %v1383_v8 = vadd.f32 %v1382_v26, %v8731_v60 }
 0x13b   : > { %v1389_v31 = vadd.f32 %v1388_v52, %v8733_v25  ;;  %v1395_v62 = vadd.f32 %v1394_v24, %v8735_v63  ;;  %v1401_v15 = vadd.f32 %v1400_v37, %v8737_v43  ;;  %v1407_v20 = vadd.f32 %v1406_v55, %v8739_v48 }
 0x13c   : > { %v1413_v19 = vadd.f32 %v1412_v21, %v8741_v53  ;;  %v1419_v27 = vadd.f32 %v1418_v41, %v8743_v9  ;;  %v1425_v58 = vadd.f32 %v1424_v54, %v8745_v22  ;;  %v1431_v18 = vadd.f32 %v1430_v57, %v8747_v23 }
 0x13d   : > { %v1437_v6 = vadd.f32 %v1436_v14, %v8749_v12  ;;  %v1443_v60 = vadd.f32 %v1442_v2, %v11641_v45  ;;  %v1449_v25 = vadd.f32 %v1448_v59, %v11642_v5  ;;  %v1366_v3 = vrot.slane %v1365_v42, 2 }
 0x13e   : > { %v1372_v63 = vrot.slane %v1371_v11, 2  ;;  %v1378_v61 = vrot.slane %v1377_v0, 2  ;;  %v1455_v43 = vadd.f32 %v1454_v38, %v11643_v17  ;;  %v1384_v48 = vrot.slane %v1383_v8, 2 }
 0x13f   : > { %v1390_v49 = vrot.slane %v1389_v31, 2  ;;  %v1396_v53 = vrot.slane %v1395_v62, 2  ;;  %v1402_v50 = vrot.slane %v1401_v15, 2  ;;  %v1408_v9 = vrot.slane %v1407_v20, 2 }
 0x140   : > { %v1414_v10 = vrot.slane %v1413_v19, 2  ;;  %v1420_v22 = vrot.slane %v1419_v27, 2  ;;  %v1426_v47 = vrot.slane %v1425_v58, 2  ;;  %v1432_v23 = vrot.slane %v1431_v18, 2 }
 0x141   : > { %v1438_v7 = vrot.slane %v1437_v6, 2  ;;  %v1444_v12 = vrot.slane %v1443_v60, 2  ;;  %v1450_v39 = vrot.slane %v1449_v25, 2  ;;  %v1367_v28 = vadd.f32 %v1366_v3, %v1365_v42 }
 0x142   : > { %v1373_v26 = vadd.f32 %v1372_v63, %v1371_v11  ;;  %v1379_v52 = vadd.f32 %v1378_v61, %v1377_v0  ;;  %v1456_v24 = vrot.slane %v1455_v43, 2  ;;  %v1385_v37 = vadd.f32 %v1384_v48, %v1383_v8 }
 0x143   : > { %v1391_v55 = vadd.f32 %v1390_v49, %v1389_v31  ;;  %v1397_v21 = vadd.f32 %v1396_v53, %v1395_v62  ;;  %v1403_v41 = vadd.f32 %v1402_v50, %v1401_v15  ;;  %v1409_v54 = vadd.f32 %v1408_v9, %v1407_v20 }
 0x144   : > { %v1415_v57 = vadd.f32 %v1414_v10, %v1413_v19  ;;  %v1421_v14 = vadd.f32 %v1420_v22, %v1419_v27  ;;  %v1427_v45 = vadd.f32 %v1426_v47, %v1425_v58  ;;  %v1433_v2 = vadd.f32 %v1432_v23, %v1431_v18 }
 0x145   : > { %v1439_v5 = vadd.f32 %v1438_v7, %v1437_v6  ;;  %v1445_v59 = vadd.f32 %v1444_v12, %v1443_v60  ;;  %v1451_v17 = vadd.f32 %v1450_v39, %v1449_v25  ;;  %v1368_v38 = vrot.slane %v1367_v28, 1  ;;  %v11644_v12 = vld [vmem:[#allocation55_spill] sm:$0xff] }
 0x146   : > { %v1374_v4 = vrot.slane %v1373_v26, 1  ;;  %v1380_v33 = vrot.slane %v1379_v52, 1  ;;  %v1457_v35 = vadd.f32 %v1456_v24, %v1455_v43  ;;  %v1386_v42 = vrot.slane %v1385_v37, 1 }
 0x147   : > { %v1392_v11 = vrot.slane %v1391_v55, 1  ;;  %v1398_v0 = vrot.slane %v1397_v21, 1  ;;  %v1404_v3 = vrot.slane %v1403_v41, 1  ;;  %v1410_v8 = vrot.slane %v1409_v54, 1 }
 0x148   : > { %v1416_v31 = vrot.slane %v1415_v57, 1  ;;  %v1422_v62 = vrot.slane %v1421_v14, 1  ;;  %v1428_v15 = vrot.slane %v1427_v45, 1  ;;  %v1434_v20 = vrot.slane %v1433_v2, 1 }
 0x149   : > { %v1440_v19 = vrot.slane %v1439_v5, 1  ;;  %v1446_v27 = vrot.slane %v1445_v59, 1  ;;  %v1452_v58 = vrot.slane %v1451_v17, 1  ;;  %v1369_v18 = vadd.f32 %v1368_v38, %v1367_v28  ;;  %v11648_v28 = vld [vmem:[#allocation57_spill] sm:$0xff] }
 0x14a   : > { %v1375_v6 = vadd.f32 %v1374_v4, %v1373_v26  ;;  %v1381_v60 = vadd.f32 %v1380_v33, %v1379_v52  ;;  %v1458_v25 = vrot.slane %v1457_v35, 1  ;;  %v1387_v63 = vadd.f32 %v1386_v42, %v1385_v37  ;;  %v11646_v4 = vld [vmem:[#allocation56_spill] sm:$0xff]  ;;  %v11650_v52 = vld [vmem:[#allocation26_spill] sm:$0xff]  ;;  %v11652_v37 = vld [vmem:[#allocation27_spill] sm:$0xff] }
 0x14b   : > { %v1393_v61 = vadd.f32 %v1392_v11, %v1391_v55  ;;  %v1399_v48 = vadd.f32 %v1398_v0, %v1397_v21  ;;  %v1405_v43 = vadd.f32 %v1404_v3, %v1403_v41  ;;  %v1411_v49 = vadd.f32 %v1410_v8, %v1409_v54  ;;  %v11656_v21 = vld [vmem:[#allocation29_spill] sm:$0xff]  ;;  %v11658_v41 = vld [vmem:[#allocation30_spill] sm:$0xff]  ;;  %v11660_v54 = vld [vmem:[#allocation31_spill] sm:$0xff] }
 0x14c   : > { %v1417_v53 = vadd.f32 %v1416_v31, %v1415_v57  ;;  %v1423_v50 = vadd.f32 %v1422_v62, %v1421_v14  ;;  %v1429_v9 = vadd.f32 %v1428_v15, %v1427_v45  ;;  %v1435_v10 = vadd.f32 %v1434_v20, %v1433_v2  ;;  %v11662_v57 = vld [vmem:[#allocation32_spill] sm:$0xff]  ;;  %v11664_v14 = vld [vmem:[#allocation33_spill] sm:$0xff]  ;;  %v11666_v45 = vld [vmem:[#allocation34_spill] sm:$0xff] }
 0x14d   : > { %v1441_v22 = vadd.f32 %v1440_v19, %v1439_v5  ;;  %v1447_v47 = vadd.f32 %v1446_v27, %v1445_v59  ;;  %v1453_v23 = vadd.f32 %v1452_v58, %v1451_v17  ;;  %v1459_v7 = vadd.f32 %v1458_v25, %v1457_v35  ;;  %v11654_v35 = vld [vmem:[#allocation28_spill] sm:$0xff]  ;;  %v11668_v2 = vld [vmem:[#allocation35_spill] sm:$0xff]  ;;  %v11673_v17 = vld [vmem:[#allocation37_spill] sm:$0xff] }
 0x14e   : > { %v8823_v39 = vadd.f32 %v8757_v34, %v11644_v12  ;;  %v8827_v33 = vadd.f32 %v8759_v40, %v11646_v4  ;;  %v8831_v26 = vadd.f32 %v8761_v30, %v11648_v28  ;;  %v8835_v24 = vadd.f32 %v8763_v29, %v11650_v52  ;;  %v11670_v5 = vld [vmem:[#allocation36_spill] sm:$0xff]  ;;  %v11674_v38 = vld [vmem:[#allocation53_spill] sm:$0xff]  ;;  %v11676_v42 = vld [vmem:[#allocation38_spill] sm:$0xff] }
 0x14f   : > { %v8839_v55 = vadd.f32 %v8765_v32, %v11652_v37  ;;  %v8843_v34 = vadd.f32 %v8767_v56, %v11654_v35  ;;  %v8847_v40 = vadd.f32 %v8769_v51, %v11656_v21  ;;  %v8851_v30 = vadd.f32 %v8771_v16, %v11658_v41  ;;  %v11671_v59 = vld [vmem:[#allocation52_spill] sm:$0xff]  ;;  %v11677_v11 = vld [vmem:[#allocation54_spill] sm:$0xff]  ;;  %v11679_v0 = vld [vmem:[#allocation39_spill] sm:$0xff] }
 0x150   : > { %11645 = vst [vmem:[#allocation49_spill] sm:$0xff] %v8823_v39  ;;  %v8855_v29 = vadd.f32 %v8773_v46, %v11660_v54  ;;  %v8859_v32 = vadd.f32 %v8775_v13, %v11662_v57  ;;  %v8863_v56 = vadd.f32 %v8777_v1, %v11664_v14  ;;  %v8867_v51 = vadd.f32 %v8779_v36, %v11666_v45  ;;  %v11681_v36 = vld [vmem:[#allocation58_spill] sm:$0xff]  ;;  %v11685_v62 = vld [vmem:[#allocation59_spill] sm:$0xff]  ;;  %v11687_v20 = vld [vmem:[#allocation41_spill] sm:$0xff] }
 0x151   : > { %11647 = vst [vmem:[#allocation50_spill] sm:$0xff] %v8827_v33  ;;  %v8871_v16 = vadd.f32 %v8781_v44, %v11668_v2  ;;  %v8875_v46 = vadd.f32 %v11671_v59, %v11670_v5  ;;  %v8879_v13 = vadd.f32 %v11674_v38, %v11673_v17  ;;  %v8883_v1 = vadd.f32 %v11677_v11, %v11676_v42  ;;  %v11683_v44 = vld [vmem:[#allocation40_spill] sm:$0xff]  ;;  %v11691_v25 = vld [vmem:[#allocation23_spill] sm:$0xff]  ;;  %v11695_v52 = vld [vmem:[#allocation25_spill] sm:$0xff] }
 0x152   : > { %11649 = vst [vmem:[#allocation51_spill] sm:$0xff] %v8831_v26  ;;  %v8886_v3 = vadd.f32 %v1369_v18, %v11679_v0  ;;  %v8889_v8 = vadd.f32 %v1375_v6, %v11681_v36  ;;  %v8892_v31 = vadd.f32 %v1381_v60, %v11683_v44  ;;  %v8895_v15 = vadd.f32 %v1387_v63, %v11685_v62  ;;  %v11689_v27 = vld [vmem:[#allocation60_spill] sm:$0xff]  ;;  %v1495_v18 = vld [vmem:[#allocation3 + $0xc0] sm:$0xff]  ;;  %v1496_v4 = vld [vmem:[#allocation3 + $0xc8] sm:$0xff] }
 0x153   : > { %11651 = vst [vmem:[#allocation55_spill] sm:$0xff] %v8835_v24  ;;  %v8898_v19 = vadd.f32 %v1393_v61, %v11687_v20  ;;  %v8901_v58 = vadd.f32 %v1399_v48, %v11689_v27  ;;  %v8904_v12 = vadd.f32 %v1405_v43, %v11691_v25  ;;  %v11693_v28 = vld [vmem:[#allocation24_spill] sm:$0xff]  ;;  %v8910_v60 = vadd.f32 %v1417_v53, %v11695_v52  ;;  %v11697_v37 = vld [vmem:[#allocation42_spill] sm:$0xff]  ;;  %v11699_v35 = vld [vmem:[#allocation43_spill] sm:$0xff] }
 0x154   : > { %11653 = vst [vmem:[#allocation56_spill] sm:$0xff] %v8839_v55  ;;  %v8907_v6 = vadd.f32 %v1411_v49, %v11693_v28  ;;  %v8913_v63 = vadd.f32 %v1423_v50, %v11697_v37  ;;  %v8916_v61 = vadd.f32 %v1429_v9, %v11699_v35  ;;  %v1497_v21 = vld [vmem:[#allocation3 + $0xd0] sm:$0xff]  ;;  %v1498_v48 = vld [vmem:[#allocation3 + $0xd8] sm:$0xff]  ;;  %v11705_v14 = vld [vmem:[#allocation46_spill] sm:$0xff]  ;;  %v1511_v38 = vunpack.c.l.bf16 %v1495_v18 }
 0x155   : > { %11655 = vst [vmem:[#allocation57_spill] sm:$0xff] %v8843_v34  ;;  %v11701_v41 = vld [vmem:[#allocation44_spill] sm:$0xff]  ;;  %v11703_v43 = vld [vmem:[#allocation45_spill] sm:$0xff]  ;;  %v8925_v49 = vadd.f32 %v1447_v47, %v11705_v14  ;;  %v11707_v45 = vld [vmem:[#allocation47_spill] sm:$0xff]  ;;  %v1512_v42 = vunpack.c.h.bf16 %v1495_v18  ;;  %v1515_v36 = vunpack.c.l.bf16 %v1497_v21  ;;  %v1516_v44 = vunpack.c.h.bf16 %v1497_v21 }
 0x156   : > { %11657 = vst [vmem:[#allocation26_spill] sm:$0xff] %v8847_v40  ;;  %v8919_v54 = vadd.f32 %v1435_v10, %v11701_v41  ;;  %v8922_v57 = vadd.f32 %v1441_v22, %v11703_v43  ;;  %v8928_v53 = vadd.f32 %v1453_v23, %v11707_v45  ;;  %v1499_v2 = vld [vmem:[#allocation3 + $0xe0] sm:$0xff]  ;;  %v1500_v50 = vld [vmem:[#allocation3 + $0xe8] sm:$0xff]  ;;  %v11709_v5 = vld [vmem:[#allocation48_spill] sm:$0xff]  ;;  %v1513_v10 = vunpack.c.l.bf16 %v1496_v4 }
 0x157   : > { %11659 = vst [vmem:[#allocation27_spill] sm:$0xff] %v8851_v30  ;;  %v8931_v59 = vadd.f32 %v1459_v7, %v11709_v5  ;;  %v1501_v9 = vld [vmem:[#allocation3 + $0xf0] sm:$0xff]  ;;  %v1502_v17 = vld [vmem:[#allocation3 + $0xf8] sm:$0xff]  ;;  %v1503_v11 = vld [vmem:[#allocation3 + $0x2c0] sm:$0xff]  ;;  %v1514_v22 = vunpack.c.h.bf16 %v1496_v4  ;;  %v1517_v47 = vunpack.c.l.bf16 %v1498_v48  ;;  %v1518_v23 = vunpack.c.h.bf16 %v1498_v48 }
 0x158   : > { %11661 = vst [vmem:[#allocation28_spill] sm:$0xff] %v8855_v29  ;;  %v1504_v0 = vld [vmem:[#allocation3 + $0x2c8] sm:$0xff]  ;;  %v1505_v62 = vld [vmem:[#allocation3 + $0x2d0] sm:$0xff]  ;;  %v1506_v20 = vld [vmem:[#allocation3 + $0x2d8] sm:$0xff]  ;;  %v1519_v27 = vunpack.c.l.bf16 %v1499_v2  ;;  %v1520_v25 = vunpack.c.h.bf16 %v1499_v2  ;;  %v1521_v28 = vunpack.c.l.bf16 %v1500_v50  ;;  %v1522_v7 = vunpack.c.h.bf16 %v1500_v50 }
 0x159   : > { %11663 = vst [vmem:[#allocation29_spill] sm:$0xff] %v8859_v32  ;;  %v1507_v52 = vld [vmem:[#allocation3 + $0x2e0] sm:$0xff]  ;;  %v1523_v37 = vunpack.c.l.bf16 %v1501_v9  ;;  %v1524_v35 = vunpack.c.h.bf16 %v1501_v9  ;;  %v1525_v41 = vunpack.c.l.bf16 %v1502_v17  ;;  %v1508_v43 = vld [vmem:[#allocation3 + $0x2e8] sm:$0xff]  ;;  %v1526_v18 = vunpack.c.h.bf16 %v1502_v17  ;;  %v1509_v4 = vld [vmem:[#allocation3 + $0x2f0] sm:$0xff] }
 0x15a   : > { %11665 = vst [vmem:[#allocation30_spill] sm:$0xff] %v8863_v56  ;;  %v1527_v14 = vunpack.c.l.bf16 %v1503_v11  ;;  %v1528_v45 = vunpack.c.h.bf16 %v1503_v11  ;;  %v1529_v5 = vunpack.c.l.bf16 %v1504_v0  ;;  %v1530_v21 = vunpack.c.h.bf16 %v1504_v0 }
 0x15b   : > { %11667 = vst [vmem:[#allocation31_spill] sm:$0xff] %v8867_v51  ;;  %v1534_v48 = vunpack.c.h.bf16 %v1506_v20  ;;  %v1536_v2 = vunpack.c.h.bf16 %v1507_v52  ;;  %v1537_v50 = vunpack.c.l.bf16 %v1508_v43  ;;  %v1539_v9 = vunpack.c.l.bf16 %v1509_v4 }
 0x15c   : > { %11669 = vst [vmem:[#allocation32_spill] sm:$0xff] %v8871_v16  ;;  %v1540_v17 = vunpack.c.h.bf16 %v1509_v4  ;;  %v8937_v11 = vmax.f32 %v1513_v10, 1e-06  ;;  %v8955_v10 = vmax.f32 %v1521_v28, 1e-06 }
 0x15d   : > { %11672 = vst [vmem:[#allocation33_spill] sm:$0xff] %v8875_v46  ;;  %v1560_v4 = vmax.f32 %v1528_v45, 1e-06 }
 0x15e   : > { %11675 = vst [vmem:[#allocation34_spill] sm:$0xff] %v8879_v13  ;;  %v1572_v13 = vmax.f32 %v1540_v17, 1e-06 }
 0x15f   : > { %11678 = vst [vmem:[#allocation35_spill] sm:$0xff] %v8883_v1  ;;  %v1569_v1 = vmax.f32 %v1537_v50, 1e-06 }
 0x160   : > { %11680 = vst [vmem:[#allocation36_spill] sm:$0xff] %v8886_v3  ;;  %v1566_v3 = vmax.f32 %v1534_v48, 1e-06  ;;  %v1585_v48 = vmul.f32 %v8955_v10, %v8955_v10  ;;  %v1604_v26 = vmul.f32 %v1572_v13, %v1572_v13 }
 0x161   : > { %11682 = vst [vmem:[#allocation52_spill] sm:$0xff] %v8889_v8  ;;  %v1601_v34 = vmul.f32 %v1569_v1, %v1569_v1 }
 0x162   : > { %11684 = vst [vmem:[#allocation37_spill] sm:$0xff] %v8892_v31  ;;  %v1598_v29 = vmul.f32 %v1566_v3, %v1566_v3 }
 0x163   : > { %11686 = vst [vmem:[#allocation53_spill] sm:$0xff] %v8895_v15  ;;  %v1562_v15 = vmax.f32 %v1530_v21, 1e-06 }
 0x164   : > { %11688 = vst [vmem:[#allocation38_spill] sm:$0xff] %v8898_v19  ;;  %v1561_v19 = vmax.f32 %v1529_v5, 1e-06  ;;  %v1571_v5 = vmax.f32 %v1539_v9, 1e-06 }
 0x165   : > { %11690 = vst [vmem:[#allocation54_spill] sm:$0xff] %v8901_v58  ;;  %v8941_v58 = vmax.f32 %v1515_v36, 1e-06  ;;  %v1594_v16 = vmul.f32 %v1562_v15, %v1562_v15 }
 0x166   : > { %11692 = vst [vmem:[#allocation39_spill] sm:$0xff] %v8904_v12  ;;  %v8939_v12 = vmax.f32 %v1514_v22, 1e-06  ;;  %v8957_v22 = vmax.f32 %v1522_v7, 1e-06  ;;  %v1593_v46 = vmul.f32 %v1561_v19, %v1561_v19  ;;  %v1603_v24 = vmul.f32 %v1571_v5, %v1571_v5 }
 0x167   : > { %11694 = vst [vmem:[#allocation58_spill] sm:$0xff] %v8907_v6 }
 0x168   : > { %11696 = vst [vmem:[#allocation40_spill] sm:$0xff] %v8910_v60  ;;  %v8935_v60 = vmax.f32 %v1512_v42, 1e-06  ;;  %v1578_v28 = vmul.f32 %v8939_v12, %v8939_v12 }
 0x169   : > { %11698 = vst [vmem:[#allocation59_spill] sm:$0xff] %v8913_v63  ;;  %v1538_v63 = vunpack.c.h.bf16 %v1508_v43  ;;  %v8951_v43 = vmax.f32 %v1520_v25, 1e-06  ;;  %v1559_v25 = vmax.f32 %v1527_v14, 1e-06 }
 0x16a   : > { %11700 = vst [vmem:[#allocation41_spill] sm:$0xff] %v8916_v61  ;;  %v8933_v61 = vmax.f32 %v1511_v38, 1e-06  ;;  %v8947_v38 = vmax.f32 %v1518_v23, 1e-06  ;;  %v1576_v36 = vmul.f32 %v8935_v60, %v8935_v60 }
 0x16b   : > { %11702 = vst [vmem:[#allocation60_spill] sm:$0xff] %v8919_v54  ;;  %v1535_v54 = vunpack.c.l.bf16 %v1507_v52  ;;  %v8949_v52 = vmax.f32 %v1519_v27, 1e-06  ;;  %v1558_v23 = vmax.f32 %v1526_v18, 1e-06  ;;  %v1577_v27 = vmul.f32 %v8937_v11, %v8937_v11 }
 0x16c   : > { %11704 = vst [vmem:[#allocation23_spill] sm:$0xff] %v8922_v57  ;;  %v1533_v57 = vunpack.c.l.bf16 %v1506_v20  ;;  %v8945_v20 = vmax.f32 %v1517_v47, 1e-06  ;;  %v1575_v42 = vmul.f32 %v8933_v61, %v8933_v61  ;;  %v1557_v47 = vmax.f32 %v1525_v41, 1e-06 }
 0x16d   : > { %11706 = vst [vmem:[#allocation24_spill] sm:$0xff] %v8925_v49  ;;  %v1532_v49 = vunpack.c.h.bf16 %v1505_v62  ;;  %v1568_v18 = vmax.f32 %v1536_v2, 1e-06  ;;  %v1570_v14 = vmax.f32 %v1538_v63, 1e-06  ;;  %v1586_v63 = vmul.f32 %v8957_v22, %v8957_v22 }
 0x16e   : > { %11708 = vst [vmem:[#allocation25_spill] sm:$0xff] %v8928_v53  ;;  %v1531_v53 = vunpack.c.l.bf16 %v1505_v62  ;;  %v8943_v62 = vmax.f32 %v1516_v44, 1e-06  ;;  %v1556_v44 = vmax.f32 %v1524_v35, 1e-06  ;;  %v1581_v45 = vmul.f32 %v8945_v20, %v8945_v20 }
 0x16f   : > { %11710 = vst [vmem:[#allocation42_spill] sm:$0xff] %v8931_v59  ;;  %v1510_v59 = vld [vmem:[#allocation3 + $0x2f8] sm:$0xff]  ;;  %v1564_v31 = vmax.f32 %v1532_v49, 1e-06  ;;  %v1565_v8 = vmax.f32 %v1533_v57, 1e-06  ;;  %v1582_v49 = vmul.f32 %v8947_v38, %v8947_v38  ;;  %v1583_v57 = vmul.f32 %v8949_v52, %v8949_v52 }
 0x170   : > { %v1541_v6 = vunpack.c.l.bf16 %v1510_v59  ;;  %v1542_v0 = vunpack.c.h.bf16 %v1510_v59  ;;  %11711 = vst [vmem:[#allocation43_spill] sm:$0xff] %v8947_v38  ;;  %v8959_v59 = vmax.f32 %v1523_v37, 1e-06  ;;  %v1563_v7 = vmax.f32 %v1531_v53, 1e-06 }
 0x171   : > { %11712 = vst [vmem:[#allocation44_spill] sm:$0xff] %v8949_v52  ;;  %v1579_v37 = vmul.f32 %v8941_v58, %v8941_v58  ;;  %v1567_v35 = vmax.f32 %v1535_v54, 1e-06  ;;  %v1580_v41 = vmul.f32 %v8943_v62, %v8943_v62  ;;  %v1584_v54 = vmul.f32 %v8951_v43, %v8951_v43 }
 0x172   : > { %11713 = vst [vmem:[#allocation45_spill] sm:$0xff] %v8951_v43  ;;  %v1573_v21 = vmax.f32 %v1541_v6, 1e-06  ;;  %v1574_v53 = vmax.f32 %v1542_v0, 1e-06  ;;  %v1587_v2 = vmul.f32 %v8959_v59, %v8959_v59  ;;  %v1588_v6 = vmul.f32 %v1556_v44, %v1556_v44 }
 0x173   : > { %11714 = vst [vmem:[#allocation46_spill] sm:$0xff] %v8955_v10  ;;  %v1589_v50 = vmul.f32 %v1557_v47, %v1557_v47  ;;  %v1590_v9 = vmul.f32 %v1558_v23, %v1558_v23  ;;  %v1591_v17 = vmul.f32 %v1559_v25, %v1559_v25  ;;  %v1592_v0 = vmul.f32 %v1560_v4, %v1560_v4 }
 0x174   : > { %11715 = vst [vmem:[#allocation47_spill] sm:$0xff] %v8957_v22  ;;  %v1595_v51 = vmul.f32 %v1563_v7, %v1563_v7  ;;  %v1596_v56 = vmul.f32 %v1564_v31, %v1564_v31  ;;  %v1597_v32 = vmul.f32 %v1565_v8, %v1565_v8  ;;  %v1599_v30 = vmul.f32 %v1567_v35, %v1567_v35 }
 0x175   : > { %11716 = vst [vmem:[#allocation48_spill] sm:$0xff] %v8959_v59  ;;  %v1600_v40 = vmul.f32 %v1568_v18, %v1568_v18  ;;  %v1602_v55 = vmul.f32 %v1570_v14, %v1570_v14  ;;  %v1605_v33 = vmul.f32 %v1573_v21, %v1573_v21  ;;  %v1606_v39 = vmul.f32 %v1574_v53, %v1574_v53 }
 0x176   : > { %v1607_v59 = vmul.f32 %v1575_v42, %v8933_v61  ;;  %v1608_v22 = vmul.f32 %v1576_v36, %v8935_v60  ;;  %v1609_v10 = vmul.f32 %v1577_v27, %v8937_v11  ;;  %v1610_v43 = vmul.f32 %v1578_v28, %v8939_v12 }
 0x177   : > { %v1611_v52 = vmul.f32 %v1579_v37, %v8941_v58  ;;  %v1612_v38 = vmul.f32 %v1580_v41, %v8943_v62  ;;  %v1613_v42 = vmul.f32 %v1581_v45, %v8945_v20  ;;  %v11717_v61 = vld [vmem:[#allocation43_spill] sm:$0xff]  ;;  %v1620_v45 = vmul.f32 %v1588_v6, %v1556_v44 }
 0x178   : > { %v1614_v36 = vmul.f32 %v1582_v49, %v11717_v61  ;;  %v11718_v60 = vld [vmem:[#allocation44_spill] sm:$0xff]  ;;  %v1621_v49 = vmul.f32 %v1589_v50, %v1557_v47  ;;  %v1622_v61 = vmul.f32 %v1590_v9, %v1558_v23  ;;  %v9016_v44 = vmul.f32 %v1600_v40, %v1568_v18 }
 0x179   : > { %v1615_v11 = vmul.f32 %v1583_v57, %v11718_v60  ;;  %v11719_v27 = vld [vmem:[#allocation45_spill] sm:$0xff]  ;;  %v8998_v57 = vmul.f32 %v1591_v17, %v1559_v25  ;;  %v9000_v60 = vmul.f32 %v1592_v0, %v1560_v4  ;;  %v9018_v47 = vmul.f32 %v1601_v34, %v1569_v1 }
 0x17a   : > { %v1616_v12 = vmul.f32 %v1584_v54, %v11719_v27  ;;  %v11720_v28 = vld [vmem:[#allocation46_spill] sm:$0xff]  ;;  %v9002_v27 = vmul.f32 %v1593_v46, %v1561_v19  ;;  %v9004_v54 = vmul.f32 %v1594_v16, %v1562_v15  ;;  %v9020_v23 = vmul.f32 %v1602_v55, %v1570_v14 }
 0x17b   : > { %v1617_v37 = vmul.f32 %v1585_v48, %v11720_v28  ;;  %v11721_v58 = vld [vmem:[#allocation47_spill] sm:$0xff]  ;;  %v9006_v28 = vmul.f32 %v1595_v51, %v1563_v7  ;;  %v9008_v48 = vmul.f32 %v1596_v56, %v1564_v31  ;;  %v9022_v46 = vmul.f32 %v1603_v24, %v1571_v5 }
 0x17c   : > { %v1618_v41 = vmul.f32 %v1586_v63, %v11721_v58  ;;  %v11722_v62 = vld [vmem:[#allocation48_spill] sm:$0xff]  ;;  %v9010_v58 = vmul.f32 %v1597_v32, %v1565_v8  ;;  %v9012_v63 = vmul.f32 %v1598_v29, %v1566_v3  ;;  %v9024_v16 = vmul.f32 %v1604_v26, %v1572_v13 }
 0x17d   : > { %v1619_v20 = vmul.f32 %v1587_v2, %v11722_v62  ;;  %v9014_v2 = vmul.f32 %v1599_v30, %v1567_v35  ;;  %v9026_v51 = vmul.f32 %v1605_v33, %v1573_v21  ;;  %v9028_v56 = vmul.f32 %v1606_v39, %v1574_v53 }
 0x17e   : > { %11723 = vst [vmem:[#allocation43_spill] sm:$0xff] %v9024_v16  ;;  %v1639_v32 = vrot.slane %v1607_v59, 4  ;;  %v1645_v8 = vrot.slane %v1608_v22, 4  ;;  %v1651_v29 = vrot.slane %v1609_v10, 4  ;;  %v1657_v3 = vrot.slane %v1610_v43, 4 }
 0x17f   : > { %11724 = vst [vmem:[#allocation44_spill] sm:$0xff] %v9026_v51  ;;  %v1663_v30 = vrot.slane %v1611_v52, 4  ;;  %v1669_v31 = vrot.slane %v1612_v38, 4  ;;  %v1675_v40 = vrot.slane %v1613_v42, 4  ;;  %v1681_v15 = vrot.slane %v1614_v36, 4 }
 0x180   : > { %11725 = vst [vmem:[#allocation45_spill] sm:$0xff] %v9028_v56  ;;  %v1687_v34 = vrot.slane %v1615_v11, 4  ;;  %v1693_v1 = vrot.slane %v1616_v12, 4  ;;  %v1699_v55 = vrot.slane %v1617_v37, 4  ;;  %v1705_v19 = vrot.slane %v1618_v41, 4 }
 0x181   : > { %v1711_v24 = vrot.slane %v1619_v20, 4  ;;  %v1717_v25 = vrot.slane %v1620_v45, 4  ;;  %v1723_v26 = vrot.slane %v1621_v49, 4  ;;  %v1640_v13 = vadd.f32 %v1639_v32, %v1607_v59 }
 0x182   : > { %v1646_v33 = vadd.f32 %v1645_v8, %v1608_v22  ;;  %v1652_v4 = vadd.f32 %v1651_v29, %v1609_v10  ;;  %v1729_v39 = vrot.slane %v1622_v61, 4  ;;  %v1658_v7 = vadd.f32 %v1657_v3, %v1610_v43 }
 0x183   : > { %v1664_v35 = vadd.f32 %v1663_v30, %v1611_v52  ;;  %v1670_v18 = vadd.f32 %v1669_v31, %v1612_v38  ;;  %v1676_v14 = vadd.f32 %v1675_v40, %v1613_v42  ;;  %v1682_v5 = vadd.f32 %v1681_v15, %v1614_v36 }
 0x184   : > { %v1688_v21 = vadd.f32 %v1687_v34, %v1615_v11  ;;  %v1694_v53 = vadd.f32 %v1693_v1, %v1616_v12  ;;  %v1700_v6 = vadd.f32 %v1699_v55, %v1617_v37  ;;  %v1706_v50 = vadd.f32 %v1705_v19, %v1618_v41 }
 0x185   : > { %v1712_v9 = vadd.f32 %v1711_v24, %v1619_v20  ;;  %v1718_v17 = vadd.f32 %v1717_v25, %v1620_v45  ;;  %v1724_v0 = vadd.f32 %v1723_v26, %v1621_v49  ;;  %v1641_v62 = vrot.slane %v1640_v13, 2 }
 0x186   : > { %v1647_v56 = vrot.slane %v1646_v33, 2  ;;  %v1653_v51 = vrot.slane %v1652_v4, 2  ;;  %v1730_v16 = vadd.f32 %v1729_v39, %v1622_v61  ;;  %v1659_v59 = vrot.slane %v1658_v7, 2 }
 0x187   : > { %v1665_v22 = vrot.slane %v1664_v35, 2  ;;  %v1671_v10 = vrot.slane %v1670_v18, 2  ;;  %v1677_v32 = vrot.slane %v1676_v14, 2  ;;  %v1683_v43 = vrot.slane %v1682_v5, 2 }
 0x188   : > { %v1689_v52 = vrot.slane %v1688_v21, 2  ;;  %v1695_v38 = vrot.slane %v1694_v53, 2  ;;  %v1701_v42 = vrot.slane %v1700_v6, 2  ;;  %v1707_v36 = vrot.slane %v1706_v50, 2 }
 0x189   : > { %v1713_v11 = vrot.slane %v1712_v9, 2  ;;  %v1719_v12 = vrot.slane %v1718_v17, 2  ;;  %v1725_v37 = vrot.slane %v1724_v0, 2  ;;  %v1642_v41 = vadd.f32 %v1641_v62, %v1640_v13 }
 0x18a   : > { %v1648_v20 = vadd.f32 %v1647_v56, %v1646_v33  ;;  %v1654_v45 = vadd.f32 %v1653_v51, %v1652_v4  ;;  %v1731_v49 = vrot.slane %v1730_v16, 2  ;;  %v1660_v8 = vadd.f32 %v1659_v59, %v1658_v7 }
 0x18b   : > { %v1666_v29 = vadd.f32 %v1665_v22, %v1664_v35  ;;  %v1672_v3 = vadd.f32 %v1671_v10, %v1670_v18  ;;  %v1678_v61 = vadd.f32 %v1677_v32, %v1676_v14  ;;  %v1684_v30 = vadd.f32 %v1683_v43, %v1682_v5 }
 0x18c   : > { %v1690_v31 = vadd.f32 %v1689_v52, %v1688_v21  ;;  %v1696_v40 = vadd.f32 %v1695_v38, %v1694_v53  ;;  %v1702_v15 = vadd.f32 %v1701_v42, %v1700_v6  ;;  %v1708_v34 = vadd.f32 %v1707_v36, %v1706_v50 }
 0x18d   : > { %v1714_v1 = vadd.f32 %v1713_v11, %v1712_v9  ;;  %v1720_v55 = vadd.f32 %v1719_v12, %v1718_v17  ;;  %v1726_v19 = vadd.f32 %v1725_v37, %v1724_v0  ;;  %v1643_v24 = vrot.slane %v1642_v41, 1 }
 0x18e   : > { %v1649_v25 = vrot.slane %v1648_v20, 1  ;;  %v1655_v26 = vrot.slane %v1654_v45, 1  ;;  %v1732_v39 = vadd.f32 %v1731_v49, %v1730_v16  ;;  %v1661_v13 = vrot.slane %v1660_v8, 1 }
 0x18f   : > { %v1667_v56 = vrot.slane %v1666_v29, 1  ;;  %v1673_v51 = vrot.slane %v1672_v3, 1  ;;  %v1679_v33 = vrot.slane %v1678_v61, 1  ;;  %v1685_v4 = vrot.slane %v1684_v30, 1 }
 0x190   : > { %v1691_v7 = vrot.slane %v1690_v31, 1  ;;  %v1697_v35 = vrot.slane %v1696_v40, 1  ;;  %v1703_v18 = vrot.slane %v1702_v15, 1  ;;  %v1709_v14 = vrot.slane %v1708_v34, 1 }
 0x191   : > { %v1715_v5 = vrot.slane %v1714_v1, 1  ;;  %v1721_v21 = vrot.slane %v1720_v55, 1  ;;  %v1727_v53 = vrot.slane %v1726_v19, 1  ;;  %v9030_v6 = vadd.f32 %v1643_v24, %v1642_v41 }
 0x192   : > { %v9032_v50 = vadd.f32 %v1649_v25, %v1648_v20  ;;  %v9034_v9 = vadd.f32 %v1655_v26, %v1654_v45  ;;  %v1733_v17 = vrot.slane %v1732_v39, 1  ;;  %v9036_v16 = vadd.f32 %v1661_v13, %v1660_v8  ;;  %v11731_v26 = vld [vmem:[#allocation45_spill] sm:$0xff] }
 0x193   : > { %v9038_v0 = vadd.f32 %v1667_v56, %v1666_v29  ;;  %v9040_v62 = vadd.f32 %v1673_v51, %v1672_v3  ;;  %v9042_v59 = vadd.f32 %v1679_v33, %v1678_v61  ;;  %v9044_v22 = vadd.f32 %v1685_v4, %v1684_v30 }
 0x194   : > { %v9046_v10 = vadd.f32 %v1691_v7, %v1690_v31  ;;  %v9048_v32 = vadd.f32 %v1697_v35, %v1696_v40  ;;  %v9050_v43 = vadd.f32 %v1703_v18, %v1702_v15  ;;  %v9052_v52 = vadd.f32 %v1709_v14, %v1708_v34  ;;  %v11729_v15 = vld [vmem:[#allocation43_spill] sm:$0xff] }
 0x195   : > { %v9054_v38 = vadd.f32 %v1715_v5, %v1714_v1  ;;  %v9056_v42 = vadd.f32 %v1721_v21, %v1720_v55  ;;  %v9058_v36 = vadd.f32 %v1727_v53, %v1726_v19  ;;  %v9060_v11 = vadd.f32 %v1733_v17, %v1732_v39  ;;  %v11730_v1 = vld [vmem:[#allocation44_spill] sm:$0xff] }
 0x196   : > { %v1735_v12 = vrot.slane %v8998_v57, 4  ;;  %v1741_v37 = vrot.slane %v9000_v60, 4  ;;  %v1747_v41 = vrot.slane %v9002_v27, 4  ;;  %v1753_v20 = vrot.slane %v9004_v54, 4 }
 0x197   : > { %11726 = vst [vmem:[#allocation46_spill] sm:$0xff] %v9056_v42  ;;  %v1759_v45 = vrot.slane %v9006_v28, 4  ;;  %v1765_v49 = vrot.slane %v9008_v48, 4  ;;  %v1771_v8 = vrot.slane %v9010_v58, 4  ;;  %v1777_v29 = vrot.slane %v9012_v63, 4 }
 0x198   : > { %11727 = vst [vmem:[#allocation47_spill] sm:$0xff] %v9058_v36  ;;  %v1783_v3 = vrot.slane %v9014_v2, 4  ;;  %v1789_v61 = vrot.slane %v9016_v44, 4  ;;  %v1795_v30 = vrot.slane %v9018_v47, 4  ;;  %v1801_v31 = vrot.slane %v9020_v23, 4 }
 0x199   : > { %11728 = vst [vmem:[#allocation48_spill] sm:$0xff] %v9060_v11  ;;  %v1807_v40 = vrot.slane %v9022_v46, 4  ;;  %v1813_v34 = vrot.slane %v11729_v15, 4  ;;  %v1819_v55 = vrot.slane %v11730_v1, 4  ;;  %v1736_v19 = vadd.f32 %v1735_v12, %v8998_v57 }
 0x19a   : > { %v1742_v24 = vadd.f32 %v1741_v37, %v9000_v60  ;;  %v1748_v25 = vadd.f32 %v1747_v41, %v9002_v27  ;;  %v1825_v39 = vrot.slane %v11731_v26, 4  ;;  %v1754_v13 = vadd.f32 %v1753_v20, %v9004_v54 }
 0x19b   : > { %v1760_v56 = vadd.f32 %v1759_v45, %v9006_v28  ;;  %v1766_v51 = vadd.f32 %v1765_v49, %v9008_v48  ;;  %v1772_v33 = vadd.f32 %v1771_v8, %v9010_v58  ;;  %v1778_v4 = vadd.f32 %v1777_v29, %v9012_v63 }
 0x19c   : > { %v1784_v7 = vadd.f32 %v1783_v3, %v9014_v2  ;;  %v1790_v57 = vadd.f32 %v1789_v61, %v9016_v44  ;;  %v1796_v60 = vadd.f32 %v1795_v30, %v9018_v47  ;;  %v1802_v27 = vadd.f32 %v1801_v31, %v9020_v23 }
 0x19d   : > { %v1808_v35 = vadd.f32 %v1807_v40, %v9022_v46  ;;  %v1814_v54 = vadd.f32 %v1813_v34, %v11729_v15  ;;  %v1820_v28 = vadd.f32 %v1819_v55, %v11730_v1  ;;  %v1737_v18 = vrot.slane %v1736_v19, 2 }
 0x19e   : > { %v1743_v48 = vrot.slane %v1742_v24, 2  ;;  %v1749_v14 = vrot.slane %v1748_v25, 2  ;;  %v1826_v58 = vadd.f32 %v1825_v39, %v11731_v26  ;;  %v1755_v63 = vrot.slane %v1754_v13, 2 }
 0x19f   : > { %v1761_v5 = vrot.slane %v1760_v56, 2  ;;  %v1767_v2 = vrot.slane %v1766_v51, 2  ;;  %v1773_v21 = vrot.slane %v1772_v33, 2  ;;  %v1779_v44 = vrot.slane %v1778_v4, 2 }
 0x1a0   : > { %v1785_v53 = vrot.slane %v1784_v7, 2  ;;  %v1791_v47 = vrot.slane %v1790_v57, 2  ;;  %v1797_v17 = vrot.slane %v1796_v60, 2  ;;  %v1803_v23 = vrot.slane %v1802_v27, 2 }
 0x1a1   : > { %v1809_v12 = vrot.slane %v1808_v35, 2  ;;  %v1815_v46 = vrot.slane %v1814_v54, 2  ;;  %v1821_v37 = vrot.slane %v1820_v28, 2  ;;  %v1738_v41 = vadd.f32 %v1737_v18, %v1736_v19 }
 0x1a2   : > { %v1744_v20 = vadd.f32 %v1743_v48, %v1742_v24  ;;  %v1750_v45 = vadd.f32 %v1749_v14, %v1748_v25  ;;  %v1827_v49 = vrot.slane %v1826_v58, 2  ;;  %v1756_v8 = vadd.f32 %v1755_v63, %v1754_v13 }
 0x1a3   : > { %v1762_v29 = vadd.f32 %v1761_v5, %v1760_v56  ;;  %v1768_v3 = vadd.f32 %v1767_v2, %v1766_v51  ;;  %v1774_v61 = vadd.f32 %v1773_v21, %v1772_v33  ;;  %v1780_v30 = vadd.f32 %v1779_v44, %v1778_v4 }
 0x1a4   : > { %v1786_v31 = vadd.f32 %v1785_v53, %v1784_v7  ;;  %v1792_v40 = vadd.f32 %v1791_v47, %v1790_v57  ;;  %v1798_v15 = vadd.f32 %v1797_v17, %v1796_v60  ;;  %v1804_v34 = vadd.f32 %v1803_v23, %v1802_v27 }
 0x1a5   : > { %v1810_v1 = vadd.f32 %v1809_v12, %v1808_v35  ;;  %v1816_v55 = vadd.f32 %v1815_v46, %v1814_v54  ;;  %v1822_v26 = vadd.f32 %v1821_v37, %v1820_v28  ;;  %v1739_v39 = vrot.slane %v1738_v41, 1  ;;  %v11732_v46 = vld [vmem:[#allocation49_spill] sm:$0xff] }
 0x1a6   : > { %v1745_v11 = vrot.slane %v1744_v20, 1  ;;  %v1751_v36 = vrot.slane %v1750_v45, 1  ;;  %v1828_v42 = vadd.f32 %v1827_v49, %v1826_v58  ;;  %v1757_v19 = vrot.slane %v1756_v8, 1 }
 0x1a7   : > { %v1763_v24 = vrot.slane %v1762_v29, 1  ;;  %v1769_v25 = vrot.slane %v1768_v3, 1  ;;  %v1775_v18 = vrot.slane %v1774_v61, 1  ;;  %v1781_v13 = vrot.slane %v1780_v30, 1 }
 0x1a8   : > { %v1787_v56 = vrot.slane %v1786_v31, 1  ;;  %v1793_v51 = vrot.slane %v1792_v40, 1  ;;  %v1799_v33 = vrot.slane %v1798_v15, 1  ;;  %v1805_v4 = vrot.slane %v1804_v34, 1 }
 0x1a9   : > { %v1811_v7 = vrot.slane %v1810_v1, 1  ;;  %v1817_v57 = vrot.slane %v1816_v55, 1  ;;  %v1823_v60 = vrot.slane %v1822_v26, 1  ;;  %v1740_v27 = vadd.f32 %v1739_v39, %v1738_v41  ;;  %v11736_v41 = vld [vmem:[#allocation51_spill] sm:$0xff] }
 0x1aa   : > { %v1746_v35 = vadd.f32 %v1745_v11, %v1744_v20  ;;  %v1752_v54 = vadd.f32 %v1751_v36, %v1750_v45  ;;  %v1829_v28 = vrot.slane %v1828_v42, 1  ;;  %v1758_v48 = vadd.f32 %v1757_v19, %v1756_v8  ;;  %v11734_v11 = vld [vmem:[#allocation50_spill] sm:$0xff]  ;;  %v11738_v45 = vld [vmem:[#allocation55_spill] sm:$0xff]  ;;  %v11740_v8 = vld [vmem:[#allocation56_spill] sm:$0xff] }
 0x1ab   : > { %v1764_v14 = vadd.f32 %v1763_v24, %v1762_v29  ;;  %v1770_v63 = vadd.f32 %v1769_v25, %v1768_v3  ;;  %v1776_v58 = vadd.f32 %v1775_v18, %v1774_v61  ;;  %v1782_v5 = vadd.f32 %v1781_v13, %v1780_v30  ;;  %v11744_v3 = vld [vmem:[#allocation26_spill] sm:$0xff]  ;;  %v11746_v61 = vld [vmem:[#allocation27_spill] sm:$0xff]  ;;  %v11748_v30 = vld [vmem:[#allocation28_spill] sm:$0xff] }
 0x1ac   : > { %v1788_v2 = vadd.f32 %v1787_v56, %v1786_v31  ;;  %v1794_v21 = vadd.f32 %v1793_v51, %v1792_v40  ;;  %v1800_v44 = vadd.f32 %v1799_v33, %v1798_v15  ;;  %v1806_v53 = vadd.f32 %v1805_v4, %v1804_v34  ;;  %v11750_v31 = vld [vmem:[#allocation29_spill] sm:$0xff]  ;;  %v11752_v40 = vld [vmem:[#allocation30_spill] sm:$0xff]  ;;  %v11754_v15 = vld [vmem:[#allocation31_spill] sm:$0xff] }
 0x1ad   : > { %v1812_v47 = vadd.f32 %v1811_v7, %v1810_v1  ;;  %v1818_v17 = vadd.f32 %v1817_v57, %v1816_v55  ;;  %v1824_v23 = vadd.f32 %v1823_v60, %v1822_v26  ;;  %v1830_v12 = vadd.f32 %v1829_v28, %v1828_v42  ;;  %v11742_v42 = vld [vmem:[#allocation57_spill] sm:$0xff]  ;;  %v11756_v34 = vld [vmem:[#allocation32_spill] sm:$0xff]  ;;  %v11759_v55 = vld [vmem:[#allocation46_spill] sm:$0xff] }
 0x1ae   : > { %v9096_v37 = vadd.f32 %v9030_v6, %v11732_v46  ;;  %v9100_v36 = vadd.f32 %v9032_v50, %v11734_v11  ;;  %v9104_v20 = vadd.f32 %v9034_v9, %v11736_v41  ;;  %v9108_v49 = vadd.f32 %v9036_v16, %v11738_v45  ;;  %v11758_v1 = vld [vmem:[#allocation33_spill] sm:$0xff]  ;;  %v11761_v26 = vld [vmem:[#allocation34_spill] sm:$0xff]  ;;  %v11762_v39 = vld [vmem:[#allocation47_spill] sm:$0xff] }
 0x1af   : > { %v9112_v29 = vadd.f32 %v9038_v0, %v11740_v8  ;;  %v9116_v6 = vadd.f32 %v9040_v62, %v11742_v42  ;;  %v9120_v50 = vadd.f32 %v9042_v59, %v11744_v3  ;;  %v9124_v9 = vadd.f32 %v9044_v22, %v11746_v61  ;;  %v11764_v19 = vld [vmem:[#allocation35_spill] sm:$0xff]  ;;  %v11765_v24 = vld [vmem:[#allocation48_spill] sm:$0xff]  ;;  %v11773_v51 = vld [vmem:[#allocation53_spill] sm:$0xff] }
 0x1b0   : > { %11733 = vst [vmem:[#allocation43_spill] sm:$0xff] %v9096_v37  ;;  %v9128_v16 = vadd.f32 %v9046_v10, %v11748_v30  ;;  %v9132_v0 = vadd.f32 %v9048_v32, %v11750_v31  ;;  %v9136_v62 = vadd.f32 %v9050_v43, %v11752_v40  ;;  %v9140_v59 = vadd.f32 %v9052_v52, %v11754_v15  ;;  %v11767_v25 = vld [vmem:[#allocation36_spill] sm:$0xff]  ;;  %v11775_v4 = vld [vmem:[#allocation38_spill] sm:$0xff]  ;;  %v11779_v28 = vld [vmem:[#allocation39_spill] sm:$0xff] }
 0x1b1   : > { %11735 = vst [vmem:[#allocation44_spill] sm:$0xff] %v9100_v36  ;;  %v9144_v22 = vadd.f32 %v9054_v38, %v11756_v34  ;;  %v9148_v10 = vadd.f32 %v11759_v55, %v11758_v1  ;;  %v9152_v32 = vadd.f32 %v11762_v39, %v11761_v26  ;;  %v9156_v43 = vadd.f32 %v11765_v24, %v11764_v19  ;;  %v11769_v52 = vld [vmem:[#allocation52_spill] sm:$0xff]  ;;  %v11771_v38 = vld [vmem:[#allocation37_spill] sm:$0xff]  ;;  %v11777_v57 = vld [vmem:[#allocation54_spill] sm:$0xff] }
 0x1b2   : > { %11737 = vst [vmem:[#allocation45_spill] sm:$0xff] %v9104_v20  ;;  %v9159_v18 = vadd.f32 %v1740_v27, %v11767_v25  ;;  %v9162_v13 = vadd.f32 %v1746_v35, %v11769_v52  ;;  %v9165_v56 = vadd.f32 %v1752_v54, %v11771_v38  ;;  %v9168_v33 = vadd.f32 %v1758_v48, %v11773_v51  ;;  %v1866_v27 = vld [vmem:[#allocation3 + $0x100] sm:$0xff]  ;;  %v1867_v11 = vld [vmem:[#allocation3 + $0x108] sm:$0xff]  ;;  %v11783_v45 = vld [vmem:[#allocation40_spill] sm:$0xff] }
 0x1b3   : > { %11739 = vst [vmem:[#allocation49_spill] sm:$0xff] %v9108_v49  ;;  %v9171_v7 = vadd.f32 %v1764_v14, %v11775_v4  ;;  %v9174_v60 = vadd.f32 %v1770_v63, %v11777_v57  ;;  %v9177_v46 = vadd.f32 %v1776_v58, %v11779_v28  ;;  %v11781_v41 = vld [vmem:[#allocation58_spill] sm:$0xff]  ;;  %v9183_v54 = vadd.f32 %v1788_v2, %v11783_v45  ;;  %v11785_v8 = vld [vmem:[#allocation59_spill] sm:$0xff]  ;;  %v11787_v42 = vld [vmem:[#allocation41_spill] sm:$0xff] }
 0x1b4   : > { %11741 = vst [vmem:[#allocation50_spill] sm:$0xff] %v9112_v29  ;;  %v9180_v35 = vadd.f32 %v1782_v5, %v11781_v41  ;;  %v9186_v48 = vadd.f32 %v1794_v21, %v11785_v8  ;;  %v9189_v14 = vadd.f32 %v1800_v44, %v11787_v42  ;;  %v1868_v3 = vld [vmem:[#allocation3 + $0x110] sm:$0xff]  ;;  %v1869_v63 = vld [vmem:[#allocation3 + $0x118] sm:$0xff]  ;;  %v11791_v58 = vld [vmem:[#allocation23_spill] sm:$0xff]  ;;  %v1882_v39 = vunpack.c.l.bf16 %v1866_v27 }
 0x1b5   : > { %11743 = vst [vmem:[#allocation51_spill] sm:$0xff] %v9116_v6  ;;  %v11789_v61 = vld [vmem:[#allocation60_spill] sm:$0xff]  ;;  %v9195_v31 = vadd.f32 %v1812_v47, %v11791_v58  ;;  %v11795_v15 = vld [vmem:[#allocation25_spill] sm:$0xff]  ;;  %v1870_v34 = vld [vmem:[#allocation3 + $0x120] sm:$0xff]  ;;  %v1883_v19 = vunpack.c.h.bf16 %v1866_v27  ;;  %v1885_v47 = vunpack.c.h.bf16 %v1867_v11  ;;  %v1886_v52 = vunpack.c.l.bf16 %v1868_v3 }
 0x1b6   : > { %11745 = vst [vmem:[#allocation55_spill] sm:$0xff] %v9120_v50  ;;  %v9192_v30 = vadd.f32 %v1806_v53, %v11789_v61  ;;  %v11793_v40 = vld [vmem:[#allocation24_spill] sm:$0xff]  ;;  %v9201_v2 = vadd.f32 %v1824_v23, %v11795_v15  ;;  %v1871_v21 = vld [vmem:[#allocation3 + $0x128] sm:$0xff]  ;;  %v11797_v1 = vld [vmem:[#allocation42_spill] sm:$0xff]  ;;  %v1884_v53 = vunpack.c.l.bf16 %v1867_v11  ;;  %v1887_v38 = vunpack.c.h.bf16 %v1868_v3 }
 0x1b7   : > { %11747 = vst [vmem:[#allocation56_spill] sm:$0xff] %v9124_v9  ;;  %v9198_v5 = vadd.f32 %v1818_v17, %v11793_v40  ;;  %v9204_v55 = vadd.f32 %v1830_v12, %v11797_v1  ;;  %v1872_v44 = vld [vmem:[#allocation3 + $0x130] sm:$0xff]  ;;  %v1873_v26 = vld [vmem:[#allocation3 + $0x138] sm:$0xff]  ;;  %v1874_v24 = vld [vmem:[#allocation3 + $0x300] sm:$0xff]  ;;  %v1888_v17 = vunpack.c.l.bf16 %v1869_v63  ;;  %v1889_v23 = vunpack.c.h.bf16 %v1869_v63 }
 0x1b8   : > { %11749 = vst [vmem:[#allocation57_spill] sm:$0xff] %v9128_v16  ;;  %v1875_v25 = vld [vmem:[#allocation3 + $0x308] sm:$0xff]  ;;  %v1876_v51 = vld [vmem:[#allocation3 + $0x310] sm:$0xff]  ;;  %v1877_v4 = vld [vmem:[#allocation3 + $0x318] sm:$0xff]  ;;  %v1890_v57 = vunpack.c.l.bf16 %v1870_v34  ;;  %v1891_v28 = vunpack.c.h.bf16 %v1870_v34  ;;  %v1892_v41 = vunpack.c.l.bf16 %v1871_v21  ;;  %v1893_v12 = vunpack.c.h.bf16 %v1871_v21 }
 0x1b9   : > { %11751 = vst [vmem:[#allocation26_spill] sm:$0xff] %v9132_v0  ;;  %v1878_v45 = vld [vmem:[#allocation3 + $0x320] sm:$0xff]  ;;  %v1894_v8 = vunpack.c.l.bf16 %v1872_v44  ;;  %v1895_v42 = vunpack.c.h.bf16 %v1872_v44  ;;  %v1896_v61 = vunpack.c.l.bf16 %v1873_v26  ;;  %v1879_v58 = vld [vmem:[#allocation3 + $0x328] sm:$0xff]  ;;  %v1897_v27 = vunpack.c.h.bf16 %v1873_v26  ;;  %v1880_v11 = vld [vmem:[#allocation3 + $0x330] sm:$0xff] }
 0x1ba   : > { %11753 = vst [vmem:[#allocation27_spill] sm:$0xff] %v9136_v62  ;;  %v1898_v40 = vunpack.c.l.bf16 %v1874_v24  ;;  %v1899_v15 = vunpack.c.h.bf16 %v1874_v24  ;;  %v1900_v1 = vunpack.c.l.bf16 %v1875_v25  ;;  %v1901_v3 = vunpack.c.h.bf16 %v1875_v25 }
 0x1bb   : > { %11755 = vst [vmem:[#allocation28_spill] sm:$0xff] %v9140_v59  ;;  %v1905_v63 = vunpack.c.h.bf16 %v1877_v4  ;;  %v1907_v34 = vunpack.c.h.bf16 %v1878_v45  ;;  %v1908_v21 = vunpack.c.l.bf16 %v1879_v58  ;;  %v1910_v44 = vunpack.c.l.bf16 %v1880_v11 }
 0x1bc   : > { %11757 = vst [vmem:[#allocation29_spill] sm:$0xff] %v9144_v22  ;;  %v1911_v26 = vunpack.c.h.bf16 %v1880_v11  ;;  %v9210_v24 = vmax.f32 %v1884_v53, 1e-06  ;;  %v9228_v53 = vmax.f32 %v1892_v41, 1e-06 }
 0x1bd   : > { %11760 = vst [vmem:[#allocation30_spill] sm:$0xff] %v9148_v10  ;;  %v1931_v11 = vmax.f32 %v1899_v15, 1e-06 }
 0x1be   : > { %11763 = vst [vmem:[#allocation31_spill] sm:$0xff] %v9152_v32  ;;  %v1943_v32 = vmax.f32 %v1911_v26, 1e-06 }
 0x1bf   : > { %11766 = vst [vmem:[#allocation32_spill] sm:$0xff] %v9156_v43  ;;  %v1940_v43 = vmax.f32 %v1908_v21, 1e-06 }
 0x1c0   : > { %11768 = vst [vmem:[#allocation33_spill] sm:$0xff] %v9159_v18  ;;  %v1937_v18 = vmax.f32 %v1905_v63, 1e-06  ;;  %v1956_v63 = vmul.f32 %v9228_v53, %v9228_v53  ;;  %v1975_v20 = vmul.f32 %v1943_v32, %v1943_v32 }
 0x1c1   : > { %11770 = vst [vmem:[#allocation46_spill] sm:$0xff] %v9162_v13  ;;  %v1972_v6 = vmul.f32 %v1940_v43, %v1940_v43 }
 0x1c2   : > { %11772 = vst [vmem:[#allocation34_spill] sm:$0xff] %v9165_v56  ;;  %v1969_v16 = vmul.f32 %v1937_v18, %v1937_v18 }
 0x1c3   : > { %11774 = vst [vmem:[#allocation47_spill] sm:$0xff] %v9168_v33  ;;  %v1933_v33 = vmax.f32 %v1901_v3, 1e-06 }
 0x1c4   : > { %11776 = vst [vmem:[#allocation35_spill] sm:$0xff] %v9171_v7  ;;  %v1932_v7 = vmax.f32 %v1900_v1, 1e-06  ;;  %v1942_v1 = vmax.f32 %v1910_v44, 1e-06 }
 0x1c5   : > { %11778 = vst [vmem:[#allocation48_spill] sm:$0xff] %v9174_v60  ;;  %v9214_v60 = vmax.f32 %v1886_v52, 1e-06  ;;  %v1965_v22 = vmul.f32 %v1933_v33, %v1933_v33 }
 0x1c6   : > { %11780 = vst [vmem:[#allocation36_spill] sm:$0xff] %v9177_v46  ;;  %v9212_v46 = vmax.f32 %v1885_v47, 1e-06  ;;  %v9230_v47 = vmax.f32 %v1893_v12, 1e-06  ;;  %v1964_v10 = vmul.f32 %v1932_v7, %v1932_v7  ;;  %v1974_v49 = vmul.f32 %v1942_v1, %v1942_v1 }
 0x1c7   : > { %11782 = vst [vmem:[#allocation52_spill] sm:$0xff] %v9180_v35 }
 0x1c8   : > { %11784 = vst [vmem:[#allocation37_spill] sm:$0xff] %v9183_v54  ;;  %v9208_v54 = vmax.f32 %v1883_v19, 1e-06  ;;  %v1949_v41 = vmul.f32 %v9212_v46, %v9212_v46 }
 0x1c9   : > { %11786 = vst [vmem:[#allocation53_spill] sm:$0xff] %v9186_v48  ;;  %v1909_v48 = vunpack.c.h.bf16 %v1879_v58  ;;  %v9224_v58 = vmax.f32 %v1891_v28, 1e-06  ;;  %v1930_v28 = vmax.f32 %v1898_v40, 1e-06 }
 0x1ca   : > { %11788 = vst [vmem:[#allocation38_spill] sm:$0xff] %v9189_v14  ;;  %v9206_v14 = vmax.f32 %v1882_v39, 1e-06  ;;  %v9220_v39 = vmax.f32 %v1889_v23, 1e-06  ;;  %v1947_v52 = vmul.f32 %v9208_v54, %v9208_v54 }
 0x1cb   : > { %11790 = vst [vmem:[#allocation54_spill] sm:$0xff] %v9192_v30  ;;  %v1906_v30 = vunpack.c.l.bf16 %v1878_v45  ;;  %v9222_v45 = vmax.f32 %v1890_v57, 1e-06  ;;  %v1929_v23 = vmax.f32 %v1897_v27, 1e-06  ;;  %v1948_v57 = vmul.f32 %v9210_v24, %v9210_v24 }
 0x1cc   : > { %11792 = vst [vmem:[#allocation39_spill] sm:$0xff] %v9195_v31  ;;  %v1904_v31 = vunpack.c.l.bf16 %v1877_v4  ;;  %v9218_v4 = vmax.f32 %v1888_v17, 1e-06  ;;  %v1946_v19 = vmul.f32 %v9206_v14, %v9206_v14  ;;  %v1928_v17 = vmax.f32 %v1896_v61, 1e-06 }
 0x1cd   : > { %11794 = vst [vmem:[#allocation58_spill] sm:$0xff] %v9198_v5  ;;  %v1903_v5 = vunpack.c.h.bf16 %v1876_v51  ;;  %v1939_v27 = vmax.f32 %v1907_v34, 1e-06  ;;  %v1941_v40 = vmax.f32 %v1909_v48, 1e-06  ;;  %v1957_v48 = vmul.f32 %v9230_v47, %v9230_v47 }
 0x1ce   : > { %11796 = vst [vmem:[#allocation40_spill] sm:$0xff] %v9201_v2  ;;  %v1902_v2 = vunpack.c.l.bf16 %v1876_v51  ;;  %v9216_v51 = vmax.f32 %v1887_v38, 1e-06  ;;  %v1927_v38 = vmax.f32 %v1895_v42, 1e-06  ;;  %v1952_v15 = vmul.f32 %v9218_v4, %v9218_v4 }
 0x1cf   : > { %11798 = vst [vmem:[#allocation59_spill] sm:$0xff] %v9204_v55  ;;  %v1881_v55 = vld [vmem:[#allocation3 + $0x338] sm:$0xff]  ;;  %v1935_v56 = vmax.f32 %v1903_v5, 1e-06  ;;  %v1936_v13 = vmax.f32 %v1904_v31, 1e-06  ;;  %v1953_v5 = vmul.f32 %v9220_v39, %v9220_v39  ;;  %v1954_v31 = vmul.f32 %v9222_v45, %v9222_v45 }
 0x1d0   : > { %v1912_v35 = vunpack.c.l.bf16 %v1881_v55  ;;  %v1913_v25 = vunpack.c.h.bf16 %v1881_v55  ;;  %11799 = vst [vmem:[#allocation41_spill] sm:$0xff] %v9220_v39  ;;  %v9232_v55 = vmax.f32 %v1894_v8, 1e-06  ;;  %v1934_v12 = vmax.f32 %v1902_v2, 1e-06 }
 0x1d1   : > { %11800 = vst [vmem:[#allocation60_spill] sm:$0xff] %v9222_v45  ;;  %v1950_v8 = vmul.f32 %v9214_v60, %v9214_v60  ;;  %v1938_v42 = vmax.f32 %v1906_v30, 1e-06  ;;  %v1951_v61 = vmul.f32 %v9216_v51, %v9216_v51  ;;  %v1955_v30 = vmul.f32 %v9224_v58, %v9224_v58 }
 0x1d2   : > { %11801 = vst [vmem:[#allocation23_spill] sm:$0xff] %v9224_v58  ;;  %v1944_v3 = vmax.f32 %v1912_v35, 1e-06  ;;  %v1945_v2 = vmax.f32 %v1913_v25, 1e-06  ;;  %v1958_v34 = vmul.f32 %v9232_v55, %v9232_v55  ;;  %v1959_v35 = vmul.f32 %v1927_v38, %v1927_v38 }
 0x1d3   : > { %11802 = vst [vmem:[#allocation24_spill] sm:$0xff] %v9228_v53  ;;  %v1960_v21 = vmul.f32 %v1928_v17, %v1928_v17  ;;  %v1961_v44 = vmul.f32 %v1929_v23, %v1929_v23  ;;  %v1962_v26 = vmul.f32 %v1930_v28, %v1930_v28  ;;  %v1963_v25 = vmul.f32 %v1931_v11, %v1931_v11 }
 0x1d4   : > { %11803 = vst [vmem:[#allocation25_spill] sm:$0xff] %v9230_v47  ;;  %v1966_v59 = vmul.f32 %v1934_v12, %v1934_v12  ;;  %v1967_v62 = vmul.f32 %v1935_v56, %v1935_v56  ;;  %v1968_v0 = vmul.f32 %v1936_v13, %v1936_v13  ;;  %v1970_v9 = vmul.f32 %v1938_v42, %v1938_v42 }
 0x1d5   : > { %11804 = vst [vmem:[#allocation42_spill] sm:$0xff] %v9232_v55  ;;  %v1971_v50 = vmul.f32 %v1939_v27, %v1939_v27  ;;  %v1973_v29 = vmul.f32 %v1941_v40, %v1941_v40  ;;  %v1976_v36 = vmul.f32 %v1944_v3, %v1944_v3  ;;  %v1977_v37 = vmul.f32 %v1945_v2, %v1945_v2 }
 0x1d6   : > { %v1978_v55 = vmul.f32 %v1946_v19, %v9206_v14  ;;  %v1979_v47 = vmul.f32 %v1947_v52, %v9208_v54  ;;  %v1980_v53 = vmul.f32 %v1948_v57, %v9210_v24  ;;  %v1981_v58 = vmul.f32 %v1949_v41, %v9212_v46 }
 0x1d7   : > { %v1982_v45 = vmul.f32 %v1950_v8, %v9214_v60  ;;  %v1983_v39 = vmul.f32 %v1951_v61, %v9216_v51  ;;  %v1984_v14 = vmul.f32 %v1952_v15, %v9218_v4  ;;  %v11805_v19 = vld [vmem:[#allocation41_spill] sm:$0xff]  ;;  %v1991_v15 = vmul.f32 %v1959_v35, %v1927_v38 }
 0x1d8   : > { %v1985_v52 = vmul.f32 %v1953_v5, %v11805_v19  ;;  %v11806_v54 = vld [vmem:[#allocation60_spill] sm:$0xff]  ;;  %v1992_v5 = vmul.f32 %v1960_v21, %v1928_v17  ;;  %v1993_v19 = vmul.f32 %v1961_v44, %v1929_v23  ;;  %v9289_v38 = vmul.f32 %v1971_v50, %v1939_v27 }
 0x1d9   : > { %v1986_v24 = vmul.f32 %v1954_v31, %v11806_v54  ;;  %v11807_v57 = vld [vmem:[#allocation23_spill] sm:$0xff]  ;;  %v9271_v31 = vmul.f32 %v1962_v26, %v1930_v28  ;;  %v9273_v54 = vmul.f32 %v1963_v25, %v1931_v11  ;;  %v9291_v17 = vmul.f32 %v1972_v6, %v1940_v43 }
 0x1da   : > { %v1987_v41 = vmul.f32 %v1955_v30, %v11807_v57  ;;  %v11808_v46 = vld [vmem:[#allocation24_spill] sm:$0xff]  ;;  %v9275_v30 = vmul.f32 %v1964_v10, %v1932_v7  ;;  %v9277_v57 = vmul.f32 %v1965_v22, %v1933_v33  ;;  %v9293_v23 = vmul.f32 %v1973_v29, %v1941_v40 }
 0x1db   : > { %v1988_v8 = vmul.f32 %v1956_v63, %v11808_v46  ;;  %v11809_v60 = vld [vmem:[#allocation25_spill] sm:$0xff]  ;;  %v9279_v46 = vmul.f32 %v1966_v59, %v1934_v12  ;;  %v9281_v63 = vmul.f32 %v1967_v62, %v1935_v56  ;;  %v9295_v10 = vmul.f32 %v1974_v49, %v1942_v1 }
 0x1dc   : > { %v1989_v51 = vmul.f32 %v1957_v48, %v11809_v60  ;;  %v11810_v61 = vld [vmem:[#allocation42_spill] sm:$0xff]  ;;  %v9283_v48 = vmul.f32 %v1968_v0, %v1936_v13  ;;  %v9285_v60 = vmul.f32 %v1969_v16, %v1937_v18  ;;  %v9297_v22 = vmul.f32 %v1975_v20, %v1943_v32 }
 0x1dd   : > { %v1990_v4 = vmul.f32 %v1958_v34, %v11810_v61  ;;  %v9287_v34 = vmul.f32 %v1970_v9, %v1938_v42  ;;  %v9299_v59 = vmul.f32 %v1976_v36, %v1944_v3  ;;  %v9301_v62 = vmul.f32 %v1977_v37, %v1945_v2 }
 0x1de   : > { %11811 = vst [vmem:[#allocation41_spill] sm:$0xff] %v9297_v22  ;;  %v2010_v0 = vrot.slane %v1978_v55, 4  ;;  %v2016_v13 = vrot.slane %v1979_v47, 4  ;;  %v2022_v16 = vrot.slane %v1980_v53, 4  ;;  %v2028_v18 = vrot.slane %v1981_v58, 4 }
 0x1df   : > { %11812 = vst [vmem:[#allocation60_spill] sm:$0xff] %v9299_v59  ;;  %v2034_v9 = vrot.slane %v1982_v45, 4  ;;  %v2040_v56 = vrot.slane %v1983_v39, 4  ;;  %v2046_v50 = vrot.slane %v1984_v14, 4  ;;  %v2052_v33 = vrot.slane %v1985_v52, 4 }
 0x1e0   : > { %11813 = vst [vmem:[#allocation23_spill] sm:$0xff] %v9301_v62  ;;  %v2058_v6 = vrot.slane %v1986_v24, 4  ;;  %v2064_v43 = vrot.slane %v1987_v41, 4  ;;  %v2070_v29 = vrot.slane %v1988_v8, 4  ;;  %v2076_v7 = vrot.slane %v1989_v51, 4 }
 0x1e1   : > { %v2082_v49 = vrot.slane %v1990_v4, 4  ;;  %v2088_v28 = vrot.slane %v1991_v15, 4  ;;  %v2094_v20 = vrot.slane %v1992_v5, 4  ;;  %v2011_v32 = vadd.f32 %v2010_v0, %v1978_v55 }
 0x1e2   : > { %v2017_v36 = vadd.f32 %v2016_v13, %v1979_v47  ;;  %v2023_v11 = vadd.f32 %v2022_v16, %v1980_v53  ;;  %v2100_v37 = vrot.slane %v1993_v19, 4  ;;  %v2029_v12 = vadd.f32 %v2028_v18, %v1981_v58 }
 0x1e3   : > { %v2035_v42 = vadd.f32 %v2034_v9, %v1982_v45  ;;  %v2041_v27 = vadd.f32 %v2040_v56, %v1983_v39  ;;  %v2047_v40 = vadd.f32 %v2046_v50, %v1984_v14  ;;  %v2053_v1 = vadd.f32 %v2052_v33, %v1985_v52 }
 0x1e4   : > { %v2059_v3 = vadd.f32 %v2058_v6, %v1986_v24  ;;  %v2065_v2 = vadd.f32 %v2064_v43, %v1987_v41  ;;  %v2071_v35 = vadd.f32 %v2070_v29, %v1988_v8  ;;  %v2077_v21 = vadd.f32 %v2076_v7, %v1989_v51 }
 0x1e5   : > { %v2083_v44 = vadd.f32 %v2082_v49, %v1990_v4  ;;  %v2089_v26 = vadd.f32 %v2088_v28, %v1991_v15  ;;  %v2095_v25 = vadd.f32 %v2094_v20, %v1992_v5  ;;  %v2012_v61 = vrot.slane %v2011_v32, 2 }
 0x1e6   : > { %v2018_v62 = vrot.slane %v2017_v36, 2  ;;  %v2024_v59 = vrot.slane %v2023_v11, 2  ;;  %v2101_v22 = vadd.f32 %v2100_v37, %v1993_v19  ;;  %v2030_v55 = vrot.slane %v2029_v12, 2 }
 0x1e7   : > { %v2036_v47 = vrot.slane %v2035_v42, 2  ;;  %v2042_v53 = vrot.slane %v2041_v27, 2  ;;  %v2048_v0 = vrot.slane %v2047_v40, 2  ;;  %v2054_v58 = vrot.slane %v2053_v1, 2 }
 0x1e8   : > { %v2060_v45 = vrot.slane %v2059_v3, 2  ;;  %v2066_v39 = vrot.slane %v2065_v2, 2  ;;  %v2072_v14 = vrot.slane %v2071_v35, 2  ;;  %v2078_v52 = vrot.slane %v2077_v21, 2 }
 0x1e9   : > { %v2084_v24 = vrot.slane %v2083_v44, 2  ;;  %v2090_v41 = vrot.slane %v2089_v26, 2  ;;  %v2096_v8 = vrot.slane %v2095_v25, 2  ;;  %v2013_v51 = vadd.f32 %v2012_v61, %v2011_v32 }
 0x1ea   : > { %v2019_v4 = vadd.f32 %v2018_v62, %v2017_v36  ;;  %v2025_v15 = vadd.f32 %v2024_v59, %v2023_v11  ;;  %v2102_v5 = vrot.slane %v2101_v22, 2  ;;  %v2031_v13 = vadd.f32 %v2030_v55, %v2029_v12 }
 0x1eb   : > { %v2037_v16 = vadd.f32 %v2036_v47, %v2035_v42  ;;  %v2043_v18 = vadd.f32 %v2042_v53, %v2041_v27  ;;  %v2049_v19 = vadd.f32 %v2048_v0, %v2047_v40  ;;  %v2055_v9 = vadd.f32 %v2054_v58, %v2053_v1 }
 0x1ec   : > { %v2061_v56 = vadd.f32 %v2060_v45, %v2059_v3  ;;  %v2067_v50 = vadd.f32 %v2066_v39, %v2065_v2  ;;  %v2073_v33 = vadd.f32 %v2072_v14, %v2071_v35  ;;  %v2079_v6 = vadd.f32 %v2078_v52, %v2077_v21 }
 0x1ed   : > { %v2085_v43 = vadd.f32 %v2084_v24, %v2083_v44  ;;  %v2091_v29 = vadd.f32 %v2090_v41, %v2089_v26  ;;  %v2097_v7 = vadd.f32 %v2096_v8, %v2095_v25  ;;  %v2014_v49 = vrot.slane %v2013_v51, 1 }
 0x1ee   : > { %v2020_v28 = vrot.slane %v2019_v4, 1  ;;  %v2026_v20 = vrot.slane %v2025_v15, 1  ;;  %v2103_v37 = vadd.f32 %v2102_v5, %v2101_v22  ;;  %v2032_v32 = vrot.slane %v2031_v13, 1 }
 0x1ef   : > { %v2038_v62 = vrot.slane %v2037_v16, 1  ;;  %v2044_v59 = vrot.slane %v2043_v18, 1  ;;  %v2050_v36 = vrot.slane %v2049_v19, 1  ;;  %v2056_v11 = vrot.slane %v2055_v9, 1 }
 0x1f0   : > { %v2062_v12 = vrot.slane %v2061_v56, 1  ;;  %v2068_v42 = vrot.slane %v2067_v50, 1  ;;  %v2074_v27 = vrot.slane %v2073_v33, 1  ;;  %v2080_v40 = vrot.slane %v2079_v6, 1 }
 0x1f1   : > { %v2086_v1 = vrot.slane %v2085_v43, 1  ;;  %v2092_v3 = vrot.slane %v2091_v29, 1  ;;  %v2098_v2 = vrot.slane %v2097_v7, 1  ;;  %v9303_v35 = vadd.f32 %v2014_v49, %v2013_v51 }
 0x1f2   : > { %v9305_v21 = vadd.f32 %v2020_v28, %v2019_v4  ;;  %v9307_v44 = vadd.f32 %v2026_v20, %v2025_v15  ;;  %v2104_v26 = vrot.slane %v2103_v37, 1  ;;  %v9309_v22 = vadd.f32 %v2032_v32, %v2031_v13  ;;  %v11819_v20 = vld [vmem:[#allocation23_spill] sm:$0xff] }
 0x1f3   : > { %v9311_v25 = vadd.f32 %v2038_v62, %v2037_v16  ;;  %v9313_v61 = vadd.f32 %v2044_v59, %v2043_v18  ;;  %v9315_v55 = vadd.f32 %v2050_v36, %v2049_v19  ;;  %v9317_v47 = vadd.f32 %v2056_v11, %v2055_v9 }
 0x1f4   : > { %v9319_v53 = vadd.f32 %v2062_v12, %v2061_v56  ;;  %v9321_v0 = vadd.f32 %v2068_v42, %v2067_v50  ;;  %v9323_v58 = vadd.f32 %v2074_v27, %v2073_v33  ;;  %v9325_v45 = vadd.f32 %v2080_v40, %v2079_v6  ;;  %v11817_v33 = vld [vmem:[#allocation41_spill] sm:$0xff] }
 0x1f5   : > { %v9327_v39 = vadd.f32 %v2086_v1, %v2085_v43  ;;  %v9329_v14 = vadd.f32 %v2092_v3, %v2091_v29  ;;  %v9331_v52 = vadd.f32 %v2098_v2, %v2097_v7  ;;  %v9333_v24 = vadd.f32 %v2104_v26, %v2103_v37  ;;  %v11818_v43 = vld [vmem:[#allocation60_spill] sm:$0xff] }
 0x1f6   : > { %v2106_v41 = vrot.slane %v9271_v31, 4  ;;  %v2112_v8 = vrot.slane %v9273_v54, 4  ;;  %v2118_v51 = vrot.slane %v9275_v30, 4  ;;  %v2124_v4 = vrot.slane %v9277_v57, 4 }
 0x1f7   : > { %11814 = vst [vmem:[#allocation24_spill] sm:$0xff] %v9329_v14  ;;  %v2130_v15 = vrot.slane %v9279_v46, 4  ;;  %v2136_v5 = vrot.slane %v9281_v63, 4  ;;  %v2142_v13 = vrot.slane %v9283_v48, 4  ;;  %v2148_v16 = vrot.slane %v9285_v60, 4 }
 0x1f8   : > { %11815 = vst [vmem:[#allocation25_spill] sm:$0xff] %v9331_v52  ;;  %v2154_v18 = vrot.slane %v9287_v34, 4  ;;  %v2160_v19 = vrot.slane %v9289_v38, 4  ;;  %v2166_v9 = vrot.slane %v9291_v17, 4  ;;  %v2172_v56 = vrot.slane %v9293_v23, 4 }
 0x1f9   : > { %11816 = vst [vmem:[#allocation42_spill] sm:$0xff] %v9333_v24  ;;  %v2178_v50 = vrot.slane %v9295_v10, 4  ;;  %v2184_v6 = vrot.slane %v11817_v33, 4  ;;  %v2190_v29 = vrot.slane %v11818_v43, 4  ;;  %v2107_v7 = vadd.f32 %v2106_v41, %v9271_v31 }
 0x1fa   : > { %v2113_v49 = vadd.f32 %v2112_v8, %v9273_v54  ;;  %v2119_v28 = vadd.f32 %v2118_v51, %v9275_v30  ;;  %v2196_v37 = vrot.slane %v11819_v20, 4  ;;  %v2125_v32 = vadd.f32 %v2124_v4, %v9277_v57 }
 0x1fb   : > { %v2131_v62 = vadd.f32 %v2130_v15, %v9279_v46  ;;  %v2137_v59 = vadd.f32 %v2136_v5, %v9281_v63  ;;  %v2143_v36 = vadd.f32 %v2142_v13, %v9283_v48  ;;  %v2149_v11 = vadd.f32 %v2148_v16, %v9285_v60 }
 0x1fc   : > { %v2155_v12 = vadd.f32 %v2154_v18, %v9287_v34  ;;  %v2161_v31 = vadd.f32 %v2160_v19, %v9289_v38  ;;  %v2167_v54 = vadd.f32 %v2166_v9, %v9291_v17  ;;  %v2173_v30 = vadd.f32 %v2172_v56, %v9293_v23 }
 0x1fd   : > { %v2179_v42 = vadd.f32 %v2178_v50, %v9295_v10  ;;  %v2185_v57 = vadd.f32 %v2184_v6, %v11817_v33  ;;  %v2191_v46 = vadd.f32 %v2190_v29, %v11818_v43  ;;  %v2108_v27 = vrot.slane %v2107_v7, 2 }
 0x1fe   : > { %v2114_v63 = vrot.slane %v2113_v49, 2  ;;  %v2120_v40 = vrot.slane %v2119_v28, 2  ;;  %v2197_v48 = vadd.f32 %v2196_v37, %v11819_v20  ;;  %v2126_v60 = vrot.slane %v2125_v32, 2 }
 0x1ff   : > { %v2132_v1 = vrot.slane %v2131_v62, 2  ;;  %v2138_v34 = vrot.slane %v2137_v59, 2  ;;  %v2144_v3 = vrot.slane %v2143_v36, 2  ;;  %v2150_v38 = vrot.slane %v2149_v11, 2 }
 0x200   : > { %v2156_v2 = vrot.slane %v2155_v12, 2  ;;  %v2162_v17 = vrot.slane %v2161_v31, 2  ;;  %v2168_v26 = vrot.slane %v2167_v54, 2  ;;  %v2174_v23 = vrot.slane %v2173_v30, 2 }
 0x201   : > { %v2180_v41 = vrot.slane %v2179_v42, 2  ;;  %v2186_v10 = vrot.slane %v2185_v57, 2  ;;  %v2192_v8 = vrot.slane %v2191_v46, 2  ;;  %v2109_v51 = vadd.f32 %v2108_v27, %v2107_v7 }
 0x202   : > { %v2115_v4 = vadd.f32 %v2114_v63, %v2113_v49  ;;  %v2121_v15 = vadd.f32 %v2120_v40, %v2119_v28  ;;  %v2198_v5 = vrot.slane %v2197_v48, 2  ;;  %v2127_v13 = vadd.f32 %v2126_v60, %v2125_v32 }
 0x203   : > { %v2133_v16 = vadd.f32 %v2132_v1, %v2131_v62  ;;  %v2139_v18 = vadd.f32 %v2138_v34, %v2137_v59  ;;  %v2145_v19 = vadd.f32 %v2144_v3, %v2143_v36  ;;  %v2151_v9 = vadd.f32 %v2150_v38, %v2149_v11 }
 0x204   : > { %v2157_v56 = vadd.f32 %v2156_v2, %v2155_v12  ;;  %v2163_v50 = vadd.f32 %v2162_v17, %v2161_v31  ;;  %v2169_v33 = vadd.f32 %v2168_v26, %v2167_v54  ;;  %v2175_v6 = vadd.f32 %v2174_v23, %v2173_v30 }
 0x205   : > { %v2181_v43 = vadd.f32 %v2180_v41, %v2179_v42  ;;  %v2187_v29 = vadd.f32 %v2186_v10, %v2185_v57  ;;  %v2193_v20 = vadd.f32 %v2192_v8, %v2191_v46  ;;  %v2110_v37 = vrot.slane %v2109_v51, 1  ;;  %v11820_v10 = vld [vmem:[#allocation43_spill] sm:$0xff] }
 0x206   : > { %v2116_v24 = vrot.slane %v2115_v4, 1  ;;  %v2122_v52 = vrot.slane %v2121_v15, 1  ;;  %v2199_v14 = vadd.f32 %v2198_v5, %v2197_v48  ;;  %v2128_v7 = vrot.slane %v2127_v13, 1 }
 0x207   : > { %v2134_v49 = vrot.slane %v2133_v16, 1  ;;  %v2140_v28 = vrot.slane %v2139_v18, 1  ;;  %v2146_v27 = vrot.slane %v2145_v19, 1  ;;  %v2152_v32 = vrot.slane %v2151_v9, 1 }
 0x208   : > { %v2158_v62 = vrot.slane %v2157_v56, 1  ;;  %v2164_v59 = vrot.slane %v2163_v50, 1  ;;  %v2170_v36 = vrot.slane %v2169_v33, 1  ;;  %v2176_v11 = vrot.slane %v2175_v6, 1 }
 0x209   : > { %v2182_v12 = vrot.slane %v2181_v43, 1  ;;  %v2188_v31 = vrot.slane %v2187_v29, 1  ;;  %v2194_v54 = vrot.slane %v2193_v20, 1  ;;  %v2111_v30 = vadd.f32 %v2110_v37, %v2109_v51  ;;  %v11824_v51 = vld [vmem:[#allocation45_spill] sm:$0xff] }
 0x20a   : > { %v2117_v42 = vadd.f32 %v2116_v24, %v2115_v4  ;;  %v2123_v57 = vadd.f32 %v2122_v52, %v2121_v15  ;;  %v2200_v46 = vrot.slane %v2199_v14, 1  ;;  %v2129_v63 = vadd.f32 %v2128_v7, %v2127_v13  ;;  %v11822_v24 = vld [vmem:[#allocation44_spill] sm:$0xff]  ;;  %v11826_v15 = vld [vmem:[#allocation49_spill] sm:$0xff]  ;;  %v11828_v13 = vld [vmem:[#allocation50_spill] sm:$0xff] }
 0x20b   : > { %v2135_v40 = vadd.f32 %v2134_v49, %v2133_v16  ;;  %v2141_v60 = vadd.f32 %v2140_v28, %v2139_v18  ;;  %v2147_v48 = vadd.f32 %v2146_v27, %v2145_v19  ;;  %v2153_v1 = vadd.f32 %v2152_v32, %v2151_v9  ;;  %v11832_v18 = vld [vmem:[#allocation55_spill] sm:$0xff]  ;;  %v11834_v19 = vld [vmem:[#allocation56_spill] sm:$0xff]  ;;  %v11836_v9 = vld [vmem:[#allocation57_spill] sm:$0xff] }
 0x20c   : > { %v2159_v34 = vadd.f32 %v2158_v62, %v2157_v56  ;;  %v2165_v3 = vadd.f32 %v2164_v59, %v2163_v50  ;;  %v2171_v38 = vadd.f32 %v2170_v36, %v2169_v33  ;;  %v2177_v2 = vadd.f32 %v2176_v11, %v2175_v6  ;;  %v11838_v56 = vld [vmem:[#allocation26_spill] sm:$0xff]  ;;  %v11840_v50 = vld [vmem:[#allocation27_spill] sm:$0xff]  ;;  %v11842_v33 = vld [vmem:[#allocation28_spill] sm:$0xff] }
 0x20d   : > { %v2183_v17 = vadd.f32 %v2182_v12, %v2181_v43  ;;  %v2189_v26 = vadd.f32 %v2188_v31, %v2187_v29  ;;  %v2195_v23 = vadd.f32 %v2194_v54, %v2193_v20  ;;  %v2201_v41 = vadd.f32 %v2200_v46, %v2199_v14  ;;  %v11830_v14 = vld [vmem:[#allocation51_spill] sm:$0xff]  ;;  %v11844_v6 = vld [vmem:[#allocation29_spill] sm:$0xff]  ;;  %v11846_v43 = vld [vmem:[#allocation30_spill] sm:$0xff] }
 0x20e   : > { %v9369_v8 = vadd.f32 %v9303_v35, %v11820_v10  ;;  %v9373_v52 = vadd.f32 %v9305_v21, %v11822_v24  ;;  %v9377_v4 = vadd.f32 %v9307_v44, %v11824_v51  ;;  %v9381_v5 = vadd.f32 %v9309_v22, %v11826_v15  ;;  %v11847_v29 = vld [vmem:[#allocation24_spill] sm:$0xff]  ;;  %v11849_v20 = vld [vmem:[#allocation31_spill] sm:$0xff]  ;;  %v11850_v37 = vld [vmem:[#allocation25_spill] sm:$0xff] }
 0x20f   : > { %v9385_v16 = vadd.f32 %v9311_v25, %v11828_v13  ;;  %v9389_v35 = vadd.f32 %v9313_v61, %v11830_v14  ;;  %v9393_v21 = vadd.f32 %v9315_v55, %v11832_v18  ;;  %v9397_v44 = vadd.f32 %v9317_v47, %v11834_v19  ;;  %v11852_v7 = vld [vmem:[#allocation32_spill] sm:$0xff]  ;;  %v11853_v49 = vld [vmem:[#allocation42_spill] sm:$0xff]  ;;  %v11855_v28 = vld [vmem:[#allocation33_spill] sm:$0xff] }
 0x210   : > { %11821 = vst [vmem:[#allocation41_spill] sm:$0xff] %v9369_v8  ;;  %v9401_v22 = vadd.f32 %v9319_v53, %v11836_v9  ;;  %v9405_v25 = vadd.f32 %v9321_v0, %v11838_v56  ;;  %v9409_v61 = vadd.f32 %v9323_v58, %v11840_v50  ;;  %v9413_v55 = vadd.f32 %v9325_v45, %v11842_v33  ;;  %v11857_v45 = vld [vmem:[#allocation46_spill] sm:$0xff]  ;;  %v11861_v59 = vld [vmem:[#allocation47_spill] sm:$0xff]  ;;  %v11865_v31 = vld [vmem:[#allocation48_spill] sm:$0xff] }
 0x211   : > { %11823 = vst [vmem:[#allocation60_spill] sm:$0xff] %v9373_v52  ;;  %v9417_v47 = vadd.f32 %v9327_v39, %v11844_v6  ;;  %v9421_v53 = vadd.f32 %v11847_v29, %v11846_v43  ;;  %v9425_v0 = vadd.f32 %v11850_v37, %v11849_v20  ;;  %v9429_v58 = vadd.f32 %v11853_v49, %v11852_v7  ;;  %v11859_v39 = vld [vmem:[#allocation34_spill] sm:$0xff]  ;;  %v11863_v11 = vld [vmem:[#allocation35_spill] sm:$0xff]  ;;  %v11867_v46 = vld [vmem:[#allocation36_spill] sm:$0xff] }
 0x212   : > { %11825 = vst [vmem:[#allocation23_spill] sm:$0xff] %v9377_v4  ;;  %v9432_v27 = vadd.f32 %v2111_v30, %v11855_v28  ;;  %v9435_v32 = vadd.f32 %v2117_v42, %v11857_v45  ;;  %v9438_v62 = vadd.f32 %v2123_v57, %v11859_v39  ;;  %v9441_v36 = vadd.f32 %v2129_v63, %v11861_v59  ;;  %v2237_v30 = vld [vmem:[#allocation3 + $0x140] sm:$0xff]  ;;  %v2238_v24 = vld [vmem:[#allocation3 + $0x148] sm:$0xff]  ;;  %v11869_v51 = vld [vmem:[#allocation52_spill] sm:$0xff] }
 0x213   : > { %11827 = vst [vmem:[#allocation43_spill] sm:$0xff] %v9381_v5  ;;  %v9444_v12 = vadd.f32 %v2135_v40, %v11863_v11  ;;  %v9447_v54 = vadd.f32 %v2141_v60, %v11865_v31  ;;  %v9450_v10 = vadd.f32 %v2147_v48, %v11867_v46  ;;  %v9453_v42 = vadd.f32 %v2153_v1, %v11869_v51  ;;  %v11871_v15 = vld [vmem:[#allocation37_spill] sm:$0xff]  ;;  %v11875_v14 = vld [vmem:[#allocation38_spill] sm:$0xff]  ;;  %v2239_v18 = vld [vmem:[#allocation3 + $0x150] sm:$0xff] }
 0x214   : > { %11829 = vst [vmem:[#allocation44_spill] sm:$0xff] %v9385_v16  ;;  %v9456_v57 = vadd.f32 %v2159_v34, %v11871_v15  ;;  %v11873_v13 = vld [vmem:[#allocation53_spill] sm:$0xff]  ;;  %v9462_v40 = vadd.f32 %v2171_v38, %v11875_v14  ;;  %v11877_v19 = vld [vmem:[#allocation54_spill] sm:$0xff]  ;;  %v11879_v48 = vld [vmem:[#allocation39_spill] sm:$0xff]  ;;  %v2253_v37 = vunpack.c.l.bf16 %v2237_v30  ;;  %v2254_v7 = vunpack.c.h.bf16 %v2237_v30 }
 0x215   : > { %11831 = vst [vmem:[#allocation45_spill] sm:$0xff] %v9389_v35  ;;  %v9459_v63 = vadd.f32 %v2165_v3, %v11873_v13  ;;  %v2240_v60 = vld [vmem:[#allocation3 + $0x158] sm:$0xff]  ;;  %v9465_v9 = vadd.f32 %v2177_v2, %v11877_v19  ;;  %v9468_v56 = vadd.f32 %v2183_v17, %v11879_v48  ;;  %v11881_v50 = vld [vmem:[#allocation58_spill] sm:$0xff]  ;;  %v11883_v33 = vld [vmem:[#allocation40_spill] sm:$0xff]  ;;  %v2255_v2 = vunpack.c.l.bf16 %v2238_v24 }
 0x216   : > { %11833 = vst [vmem:[#allocation49_spill] sm:$0xff] %v9393_v21  ;;  %v9471_v1 = vadd.f32 %v2189_v26, %v11881_v50  ;;  %v9474_v34 = vadd.f32 %v2195_v23, %v11883_v33  ;;  %v2241_v6 = vld [vmem:[#allocation3 + $0x160] sm:$0xff]  ;;  %v2242_v3 = vld [vmem:[#allocation3 + $0x168] sm:$0xff]  ;;  %v2243_v38 = vld [vmem:[#allocation3 + $0x170] sm:$0xff]  ;;  %v2256_v17 = vunpack.c.h.bf16 %v2238_v24  ;;  %v2257_v45 = vunpack.c.l.bf16 %v2239_v18 }
 0x217   : > { %11835 = vst [vmem:[#allocation50_spill] sm:$0xff] %v9397_v44  ;;  %v11885_v43 = vld [vmem:[#allocation59_spill] sm:$0xff]  ;;  %v2244_v20 = vld [vmem:[#allocation3 + $0x178] sm:$0xff]  ;;  %v2245_v49 = vld [vmem:[#allocation3 + $0x340] sm:$0xff]  ;;  %v2258_v39 = vunpack.c.h.bf16 %v2239_v18  ;;  %v2259_v26 = vunpack.c.l.bf16 %v2240_v60  ;;  %v2260_v23 = vunpack.c.h.bf16 %v2240_v60  ;;  %v2261_v31 = vunpack.c.l.bf16 %v2241_v6 }
 0x218   : > { %11837 = vst [vmem:[#allocation51_spill] sm:$0xff] %v9401_v22  ;;  %v9477_v29 = vadd.f32 %v2201_v41, %v11885_v43  ;;  %v2246_v28 = vld [vmem:[#allocation3 + $0x348] sm:$0xff]  ;;  %v2247_v59 = vld [vmem:[#allocation3 + $0x350] sm:$0xff]  ;;  %v2248_v11 = vld [vmem:[#allocation3 + $0x358] sm:$0xff]  ;;  %v2262_v46 = vunpack.c.h.bf16 %v2241_v6  ;;  %v2263_v51 = vunpack.c.l.bf16 %v2242_v3  ;;  %v2264_v41 = vunpack.c.h.bf16 %v2242_v3 }
 0x219   : > { %11839 = vst [vmem:[#allocation55_spill] sm:$0xff] %v9405_v25  ;;  %v2249_v15 = vld [vmem:[#allocation3 + $0x360] sm:$0xff]  ;;  %v2265_v13 = vunpack.c.l.bf16 %v2243_v38  ;;  %v2266_v14 = vunpack.c.h.bf16 %v2243_v38  ;;  %v2267_v19 = vunpack.c.l.bf16 %v2244_v20  ;;  %v2250_v48 = vld [vmem:[#allocation3 + $0x368] sm:$0xff]  ;;  %v2268_v30 = vunpack.c.h.bf16 %v2244_v20  ;;  %v2251_v24 = vld [vmem:[#allocation3 + $0x370] sm:$0xff] }
 0x21a   : > { %11841 = vst [vmem:[#allocation56_spill] sm:$0xff] %v9409_v61  ;;  %v2269_v50 = vunpack.c.l.bf16 %v2245_v49  ;;  %v2270_v33 = vunpack.c.h.bf16 %v2245_v49  ;;  %v2271_v43 = vunpack.c.l.bf16 %v2246_v28  ;;  %v2272_v18 = vunpack.c.h.bf16 %v2246_v28 }
 0x21b   : > { %11843 = vst [vmem:[#allocation57_spill] sm:$0xff] %v9413_v55  ;;  %v2276_v60 = vunpack.c.h.bf16 %v2248_v11  ;;  %v2278_v6 = vunpack.c.h.bf16 %v2249_v15  ;;  %v2279_v3 = vunpack.c.l.bf16 %v2250_v48  ;;  %v2281_v38 = vunpack.c.l.bf16 %v2251_v24 }
 0x21c   : > { %11845 = vst [vmem:[#allocation26_spill] sm:$0xff] %v9417_v47  ;;  %v2282_v20 = vunpack.c.h.bf16 %v2251_v24  ;;  %v9483_v49 = vmax.f32 %v2255_v2, 1e-06  ;;  %v9501_v2 = vmax.f32 %v2263_v51, 1e-06 }
 0x21d   : > { %11848 = vst [vmem:[#allocation27_spill] sm:$0xff] %v9421_v53  ;;  %v2302_v24 = vmax.f32 %v2270_v33, 1e-06 }
 0x21e   : > { %11851 = vst [vmem:[#allocation28_spill] sm:$0xff] %v9425_v0  ;;  %v2314_v0 = vmax.f32 %v2282_v20, 1e-06 }
 0x21f   : > { %11854 = vst [vmem:[#allocation29_spill] sm:$0xff] %v9429_v58  ;;  %v2311_v58 = vmax.f32 %v2279_v3, 1e-06 }
 0x220   : > { %11856 = vst [vmem:[#allocation30_spill] sm:$0xff] %v9432_v27  ;;  %v2308_v27 = vmax.f32 %v2276_v60, 1e-06  ;;  %v2327_v60 = vmul.f32 %v9501_v2, %v9501_v2  ;;  %v2346_v4 = vmul.f32 %v2314_v0, %v2314_v0 }
 0x221   : > { %11858 = vst [vmem:[#allocation24_spill] sm:$0xff] %v9435_v32  ;;  %v2343_v35 = vmul.f32 %v2311_v58, %v2311_v58 }
 0x222   : > { %11860 = vst [vmem:[#allocation31_spill] sm:$0xff] %v9438_v62  ;;  %v2340_v22 = vmul.f32 %v2308_v27, %v2308_v27 }
 0x223   : > { %11862 = vst [vmem:[#allocation25_spill] sm:$0xff] %v9441_v36  ;;  %v2304_v36 = vmax.f32 %v2272_v18, 1e-06 }
 0x224   : > { %11864 = vst [vmem:[#allocation32_spill] sm:$0xff] %v9444_v12  ;;  %v2303_v12 = vmax.f32 %v2271_v43, 1e-06  ;;  %v2313_v43 = vmax.f32 %v2281_v38, 1e-06 }
 0x225   : > { %11866 = vst [vmem:[#allocation42_spill] sm:$0xff] %v9447_v54  ;;  %v9487_v54 = vmax.f32 %v2257_v45, 1e-06  ;;  %v2336_v47 = vmul.f32 %v2304_v36, %v2304_v36 }
 0x226   : > { %11868 = vst [vmem:[#allocation33_spill] sm:$0xff] %v9450_v10  ;;  %v9485_v10 = vmax.f32 %v2256_v17, 1e-06  ;;  %v9503_v17 = vmax.f32 %v2264_v41, 1e-06  ;;  %v2335_v53 = vmul.f32 %v2303_v12, %v2303_v12  ;;  %v2345_v5 = vmul.f32 %v2313_v43, %v2313_v43 }
 0x227   : > { %11870 = vst [vmem:[#allocation46_spill] sm:$0xff] %v9453_v42 }
 0x228   : > { %11872 = vst [vmem:[#allocation34_spill] sm:$0xff] %v9456_v57  ;;  %v9481_v57 = vmax.f32 %v2254_v7, 1e-06  ;;  %v2320_v51 = vmul.f32 %v9485_v10, %v9485_v10 }
 0x229   : > { %11874 = vst [vmem:[#allocation47_spill] sm:$0xff] %v9459_v63  ;;  %v2280_v63 = vunpack.c.h.bf16 %v2250_v48  ;;  %v9497_v48 = vmax.f32 %v2262_v46, 1e-06  ;;  %v2301_v46 = vmax.f32 %v2269_v50, 1e-06 }
 0x22a   : > { %11876 = vst [vmem:[#allocation35_spill] sm:$0xff] %v9462_v40  ;;  %v9479_v40 = vmax.f32 %v2253_v37, 1e-06  ;;  %v9493_v37 = vmax.f32 %v2260_v23, 1e-06  ;;  %v2318_v45 = vmul.f32 %v9481_v57, %v9481_v57 }
 0x22b   : > { %11878 = vst [vmem:[#allocation48_spill] sm:$0xff] %v9465_v9  ;;  %v2277_v9 = vunpack.c.l.bf16 %v2249_v15  ;;  %v9495_v15 = vmax.f32 %v2261_v31, 1e-06  ;;  %v2300_v23 = vmax.f32 %v2268_v30, 1e-06  ;;  %v2319_v31 = vmul.f32 %v9483_v49, %v9483_v49 }
 0x22c   : > { %11880 = vst [vmem:[#allocation36_spill] sm:$0xff] %v9468_v56  ;;  %v2275_v56 = vunpack.c.l.bf16 %v2248_v11  ;;  %v9491_v11 = vmax.f32 %v2259_v26, 1e-06  ;;  %v2317_v7 = vmul.f32 %v9479_v40, %v9479_v40  ;;  %v2299_v26 = vmax.f32 %v2267_v19, 1e-06 }
 0x22d   : > { %11882 = vst [vmem:[#allocation52_spill] sm:$0xff] %v9471_v1  ;;  %v2274_v1 = vunpack.c.h.bf16 %v2247_v59  ;;  %v2310_v30 = vmax.f32 %v2278_v6, 1e-06  ;;  %v2312_v50 = vmax.f32 %v2280_v63, 1e-06  ;;  %v2328_v63 = vmul.f32 %v9503_v17, %v9503_v17 }
 0x22e   : > { %11884 = vst [vmem:[#allocation37_spill] sm:$0xff] %v9474_v34  ;;  %v2273_v34 = vunpack.c.l.bf16 %v2247_v59  ;;  %v9489_v59 = vmax.f32 %v2258_v39, 1e-06  ;;  %v2298_v39 = vmax.f32 %v2266_v14, 1e-06  ;;  %v2323_v33 = vmul.f32 %v9491_v11, %v9491_v11 }
 0x22f   : > { %11886 = vst [vmem:[#allocation53_spill] sm:$0xff] %v9477_v29  ;;  %v2252_v29 = vld [vmem:[#allocation3 + $0x378] sm:$0xff]  ;;  %v2306_v62 = vmax.f32 %v2274_v1, 1e-06  ;;  %v2307_v32 = vmax.f32 %v2275_v56, 1e-06  ;;  %v2324_v1 = vmul.f32 %v9493_v37, %v9493_v37  ;;  %v2325_v56 = vmul.f32 %v9495_v15, %v9495_v15 }
 0x230   : > { %v2283_v42 = vunpack.c.l.bf16 %v2252_v29  ;;  %v2284_v28 = vunpack.c.h.bf16 %v2252_v29  ;;  %11887 = vst [vmem:[#allocation38_spill] sm:$0xff] %v9493_v37  ;;  %v9505_v29 = vmax.f32 %v2265_v13, 1e-06  ;;  %v2305_v41 = vmax.f32 %v2273_v34, 1e-06 }
 0x231   : > { %11888 = vst [vmem:[#allocation54_spill] sm:$0xff] %v9495_v15  ;;  %v2321_v13 = vmul.f32 %v9487_v54, %v9487_v54  ;;  %v2309_v14 = vmax.f32 %v2277_v9, 1e-06  ;;  %v2322_v19 = vmul.f32 %v9489_v59, %v9489_v59  ;;  %v2326_v9 = vmul.f32 %v9497_v48, %v9497_v48 }
 0x232   : > { %11889 = vst [vmem:[#allocation39_spill] sm:$0xff] %v9497_v48  ;;  %v2315_v18 = vmax.f32 %v2283_v42, 1e-06  ;;  %v2316_v34 = vmax.f32 %v2284_v28, 1e-06  ;;  %v2329_v6 = vmul.f32 %v9505_v29, %v9505_v29  ;;  %v2330_v42 = vmul.f32 %v2298_v39, %v2298_v39 }
 0x233   : > { %11890 = vst [vmem:[#allocation58_spill] sm:$0xff] %v9501_v2  ;;  %v2331_v3 = vmul.f32 %v2299_v26, %v2299_v26  ;;  %v2332_v38 = vmul.f32 %v2300_v23, %v2300_v23  ;;  %v2333_v20 = vmul.f32 %v2301_v46, %v2301_v46  ;;  %v2334_v28 = vmul.f32 %v2302_v24, %v2302_v24 }
 0x234   : > { %11891 = vst [vmem:[#allocation40_spill] sm:$0xff] %v9503_v17  ;;  %v2337_v55 = vmul.f32 %v2305_v41, %v2305_v41  ;;  %v2338_v61 = vmul.f32 %v2306_v62, %v2306_v62  ;;  %v2339_v25 = vmul.f32 %v2307_v32, %v2307_v32  ;;  %v2341_v44 = vmul.f32 %v2309_v14, %v2309_v14 }
 0x235   : > { %11892 = vst [vmem:[#allocation59_spill] sm:$0xff] %v9505_v29  ;;  %v2342_v21 = vmul.f32 %v2310_v30, %v2310_v30  ;;  %v2344_v16 = vmul.f32 %v2312_v50, %v2312_v50  ;;  %v2347_v52 = vmul.f32 %v2315_v18, %v2315_v18  ;;  %v2348_v8 = vmul.f32 %v2316_v34, %v2316_v34 }
 0x236   : > { %v2349_v29 = vmul.f32 %v2317_v7, %v9479_v40  ;;  %v2350_v17 = vmul.f32 %v2318_v45, %v9481_v57  ;;  %v2351_v2 = vmul.f32 %v2319_v31, %v9483_v49  ;;  %v2352_v48 = vmul.f32 %v2320_v51, %v9485_v10 }
 0x237   : > { %v2353_v15 = vmul.f32 %v2321_v13, %v9487_v54  ;;  %v2354_v37 = vmul.f32 %v2322_v19, %v9489_v59  ;;  %v2355_v7 = vmul.f32 %v2323_v33, %v9491_v11  ;;  %v11893_v40 = vld [vmem:[#allocation38_spill] sm:$0xff]  ;;  %v2362_v33 = vmul.f32 %v2330_v42, %v2298_v39 }
 0x238   : > { %v2356_v45 = vmul.f32 %v2324_v1, %v11893_v40  ;;  %v11894_v57 = vld [vmem:[#allocation54_spill] sm:$0xff]  ;;  %v2363_v1 = vmul.f32 %v2331_v3, %v2299_v26  ;;  %v2364_v40 = vmul.f32 %v2332_v38, %v2300_v23  ;;  %v9562_v39 = vmul.f32 %v2342_v21, %v2310_v30 }
 0x239   : > { %v2357_v31 = vmul.f32 %v2325_v56, %v11894_v57  ;;  %v11895_v49 = vld [vmem:[#allocation39_spill] sm:$0xff]  ;;  %v9544_v56 = vmul.f32 %v2333_v20, %v2301_v46  ;;  %v9546_v57 = vmul.f32 %v2334_v28, %v2302_v24  ;;  %v9564_v26 = vmul.f32 %v2343_v35, %v2311_v58 }
 0x23a   : > { %v2358_v10 = vmul.f32 %v2326_v9, %v11895_v49  ;;  %v11896_v51 = vld [vmem:[#allocation58_spill] sm:$0xff]  ;;  %v9548_v9 = vmul.f32 %v2335_v53, %v2303_v12  ;;  %v9550_v49 = vmul.f32 %v2336_v47, %v2304_v36  ;;  %v9566_v23 = vmul.f32 %v2344_v16, %v2312_v50 }
 0x23b   : > { %v2359_v13 = vmul.f32 %v2327_v60, %v11896_v51  ;;  %v11897_v54 = vld [vmem:[#allocation40_spill] sm:$0xff]  ;;  %v9552_v51 = vmul.f32 %v2337_v55, %v2305_v41  ;;  %v9554_v60 = vmul.f32 %v2338_v61, %v2306_v62  ;;  %v9568_v53 = vmul.f32 %v2345_v5, %v2313_v43 }
 0x23c   : > { %v2360_v19 = vmul.f32 %v2328_v63, %v11897_v54  ;;  %v11898_v59 = vld [vmem:[#allocation59_spill] sm:$0xff]  ;;  %v9556_v54 = vmul.f32 %v2339_v25, %v2307_v32  ;;  %v9558_v63 = vmul.f32 %v2340_v22, %v2308_v27  ;;  %v9570_v47 = vmul.f32 %v2346_v4, %v2314_v0 }
 0x23d   : > { %v2361_v11 = vmul.f32 %v2329_v6, %v11898_v59  ;;  %v9560_v6 = vmul.f32 %v2341_v44, %v2309_v14  ;;  %v9572_v55 = vmul.f32 %v2347_v52, %v2315_v18  ;;  %v9574_v61 = vmul.f32 %v2348_v8, %v2316_v34 }
 0x23e   : > { %11899 = vst [vmem:[#allocation38_spill] sm:$0xff] %v9570_v47  ;;  %v2381_v25 = vrot.slane %v2349_v29, 4  ;;  %v2387_v32 = vrot.slane %v2350_v17, 4  ;;  %v2393_v22 = vrot.slane %v2351_v2, 4  ;;  %v2399_v27 = vrot.slane %v2352_v48, 4 }
 0x23f   : > { %11900 = vst [vmem:[#allocation54_spill] sm:$0xff] %v9572_v55  ;;  %v2405_v44 = vrot.slane %v2353_v15, 4  ;;  %v2411_v62 = vrot.slane %v2354_v37, 4  ;;  %v2417_v21 = vrot.slane %v2355_v7, 4  ;;  %v2423_v36 = vrot.slane %v2356_v45, 4 }
 0x240   : > { %11901 = vst [vmem:[#allocation39_spill] sm:$0xff] %v9574_v61  ;;  %v2429_v35 = vrot.slane %v2357_v31, 4  ;;  %v2435_v58 = vrot.slane %v2358_v10, 4  ;;  %v2441_v16 = vrot.slane %v2359_v13, 4  ;;  %v2447_v12 = vrot.slane %v2360_v19, 4 }
 0x241   : > { %v2453_v5 = vrot.slane %v2361_v11, 4  ;;  %v2459_v46 = vrot.slane %v2362_v33, 4  ;;  %v2465_v4 = vrot.slane %v2363_v1, 4  ;;  %v2382_v0 = vadd.f32 %v2381_v25, %v2349_v29 }
 0x242   : > { %v2388_v52 = vadd.f32 %v2387_v32, %v2350_v17  ;;  %v2394_v24 = vadd.f32 %v2393_v22, %v2351_v2  ;;  %v2471_v8 = vrot.slane %v2364_v40, 4  ;;  %v2400_v41 = vadd.f32 %v2399_v27, %v2352_v48 }
 0x243   : > { %v2406_v14 = vadd.f32 %v2405_v44, %v2353_v15  ;;  %v2412_v30 = vadd.f32 %v2411_v62, %v2354_v37  ;;  %v2418_v50 = vadd.f32 %v2417_v21, %v2355_v7  ;;  %v2424_v43 = vadd.f32 %v2423_v36, %v2356_v45 }
 0x244   : > { %v2430_v18 = vadd.f32 %v2429_v35, %v2357_v31  ;;  %v2436_v34 = vadd.f32 %v2435_v58, %v2358_v10  ;;  %v2442_v42 = vadd.f32 %v2441_v16, %v2359_v13  ;;  %v2448_v3 = vadd.f32 %v2447_v12, %v2360_v19 }
 0x245   : > { %v2454_v38 = vadd.f32 %v2453_v5, %v2361_v11  ;;  %v2460_v20 = vadd.f32 %v2459_v46, %v2362_v33  ;;  %v2466_v28 = vadd.f32 %v2465_v4, %v2363_v1  ;;  %v2383_v59 = vrot.slane %v2382_v0, 2 }
 0x246   : > { %v2389_v61 = vrot.slane %v2388_v52, 2  ;;  %v2395_v55 = vrot.slane %v2394_v24, 2  ;;  %v2472_v47 = vadd.f32 %v2471_v8, %v2364_v40  ;;  %v2401_v29 = vrot.slane %v2400_v41, 2 }
 0x247   : > { %v2407_v17 = vrot.slane %v2406_v14, 2  ;;  %v2413_v2 = vrot.slane %v2412_v30, 2  ;;  %v2419_v25 = vrot.slane %v2418_v50, 2  ;;  %v2425_v48 = vrot.slane %v2424_v43, 2 }
 0x248   : > { %v2431_v15 = vrot.slane %v2430_v18, 2  ;;  %v2437_v37 = vrot.slane %v2436_v34, 2  ;;  %v2443_v7 = vrot.slane %v2442_v42, 2  ;;  %v2449_v45 = vrot.slane %v2448_v3, 2 }
 0x249   : > { %v2455_v31 = vrot.slane %v2454_v38, 2  ;;  %v2461_v10 = vrot.slane %v2460_v20, 2  ;;  %v2467_v13 = vrot.slane %v2466_v28, 2  ;;  %v2384_v19 = vadd.f32 %v2383_v59, %v2382_v0 }
 0x24a   : > { %v2390_v11 = vadd.f32 %v2389_v61, %v2388_v52  ;;  %v2396_v33 = vadd.f32 %v2395_v55, %v2394_v24  ;;  %v2473_v1 = vrot.slane %v2472_v47, 2  ;;  %v2402_v32 = vadd.f32 %v2401_v29, %v2400_v41 }
 0x24b   : > { %v2408_v22 = vadd.f32 %v2407_v17, %v2406_v14  ;;  %v2414_v27 = vadd.f32 %v2413_v2, %v2412_v30  ;;  %v2420_v40 = vadd.f32 %v2419_v25, %v2418_v50  ;;  %v2426_v44 = vadd.f32 %v2425_v48, %v2424_v43 }
 0x24c   : > { %v2432_v62 = vadd.f32 %v2431_v15, %v2430_v18  ;;  %v2438_v21 = vadd.f32 %v2437_v37, %v2436_v34  ;;  %v2444_v36 = vadd.f32 %v2443_v7, %v2442_v42  ;;  %v2450_v35 = vadd.f32 %v2449_v45, %v2448_v3 }
 0x24d   : > { %v2456_v58 = vadd.f32 %v2455_v31, %v2454_v38  ;;  %v2462_v16 = vadd.f32 %v2461_v10, %v2460_v20  ;;  %v2468_v12 = vadd.f32 %v2467_v13, %v2466_v28  ;;  %v2385_v5 = vrot.slane %v2384_v19, 1 }
 0x24e   : > { %v2391_v46 = vrot.slane %v2390_v11, 1  ;;  %v2397_v4 = vrot.slane %v2396_v33, 1  ;;  %v2474_v8 = vadd.f32 %v2473_v1, %v2472_v47  ;;  %v2403_v0 = vrot.slane %v2402_v32, 1 }
 0x24f   : > { %v2409_v61 = vrot.slane %v2408_v22, 1  ;;  %v2415_v55 = vrot.slane %v2414_v27, 1  ;;  %v2421_v52 = vrot.slane %v2420_v40, 1  ;;  %v2427_v24 = vrot.slane %v2426_v44, 1 }
 0x250   : > { %v2433_v41 = vrot.slane %v2432_v62, 1  ;;  %v2439_v14 = vrot.slane %v2438_v21, 1  ;;  %v2445_v30 = vrot.slane %v2444_v36, 1  ;;  %v2451_v50 = vrot.slane %v2450_v35, 1 }
 0x251   : > { %v2457_v43 = vrot.slane %v2456_v58, 1  ;;  %v2463_v18 = vrot.slane %v2462_v16, 1  ;;  %v2469_v34 = vrot.slane %v2468_v12, 1  ;;  %v9576_v42 = vadd.f32 %v2385_v5, %v2384_v19 }
 0x252   : > { %v9578_v3 = vadd.f32 %v2391_v46, %v2390_v11  ;;  %v9580_v38 = vadd.f32 %v2397_v4, %v2396_v33  ;;  %v2475_v20 = vrot.slane %v2474_v8, 1  ;;  %v9582_v47 = vadd.f32 %v2403_v0, %v2402_v32  ;;  %v11907_v4 = vld [vmem:[#allocation39_spill] sm:$0xff] }
 0x253   : > { %v9584_v28 = vadd.f32 %v2409_v61, %v2408_v22  ;;  %v9586_v59 = vadd.f32 %v2415_v55, %v2414_v27  ;;  %v9588_v29 = vadd.f32 %v2421_v52, %v2420_v40  ;;  %v9590_v17 = vadd.f32 %v2427_v24, %v2426_v44 }
 0x254   : > { %v9592_v2 = vadd.f32 %v2433_v41, %v2432_v62  ;;  %v9594_v25 = vadd.f32 %v2439_v14, %v2438_v21  ;;  %v9596_v48 = vadd.f32 %v2445_v30, %v2444_v36  ;;  %v9598_v15 = vadd.f32 %v2451_v50, %v2450_v35  ;;  %v11905_v36 = vld [vmem:[#allocation38_spill] sm:$0xff] }
 0x255   : > { %v9600_v37 = vadd.f32 %v2457_v43, %v2456_v58  ;;  %v9602_v7 = vadd.f32 %v2463_v18, %v2462_v16  ;;  %v9604_v45 = vadd.f32 %v2469_v34, %v2468_v12  ;;  %v9606_v31 = vadd.f32 %v2475_v20, %v2474_v8  ;;  %v11906_v58 = vld [vmem:[#allocation54_spill] sm:$0xff] }
 0x256   : > { %v2477_v10 = vrot.slane %v9544_v56, 4  ;;  %v2483_v13 = vrot.slane %v9546_v57, 4  ;;  %v2489_v19 = vrot.slane %v9548_v9, 4  ;;  %v2495_v11 = vrot.slane %v9550_v49, 4 }
 0x257   : > { %11902 = vst [vmem:[#allocation58_spill] sm:$0xff] %v9602_v7  ;;  %v2501_v33 = vrot.slane %v9552_v51, 4  ;;  %v2507_v1 = vrot.slane %v9554_v60, 4  ;;  %v2513_v32 = vrot.slane %v9556_v54, 4  ;;  %v2519_v22 = vrot.slane %v9558_v63, 4 }
 0x258   : > { %11903 = vst [vmem:[#allocation40_spill] sm:$0xff] %v9604_v45  ;;  %v2525_v27 = vrot.slane %v9560_v6, 4  ;;  %v2531_v40 = vrot.slane %v9562_v39, 4  ;;  %v2537_v44 = vrot.slane %v9564_v26, 4  ;;  %v2543_v62 = vrot.slane %v9566_v23, 4 }
 0x259   : > { %11904 = vst [vmem:[#allocation59_spill] sm:$0xff] %v9606_v31  ;;  %v2549_v21 = vrot.slane %v9568_v53, 4  ;;  %v2555_v35 = vrot.slane %v11905_v36, 4  ;;  %v2561_v16 = vrot.slane %v11906_v58, 4  ;;  %v2478_v12 = vadd.f32 %v2477_v10, %v9544_v56 }
 0x25a   : > { %v2484_v5 = vadd.f32 %v2483_v13, %v9546_v57  ;;  %v2490_v46 = vadd.f32 %v2489_v19, %v9548_v9  ;;  %v2567_v8 = vrot.slane %v11907_v4, 4  ;;  %v2496_v0 = vadd.f32 %v2495_v11, %v9550_v49 }
 0x25b   : > { %v2502_v61 = vadd.f32 %v2501_v33, %v9552_v51  ;;  %v2508_v55 = vadd.f32 %v2507_v1, %v9554_v60  ;;  %v2514_v52 = vadd.f32 %v2513_v32, %v9556_v54  ;;  %v2520_v24 = vadd.f32 %v2519_v22, %v9558_v63 }
 0x25c   : > { %v2526_v41 = vadd.f32 %v2525_v27, %v9560_v6  ;;  %v2532_v56 = vadd.f32 %v2531_v40, %v9562_v39  ;;  %v2538_v57 = vadd.f32 %v2537_v44, %v9564_v26  ;;  %v2544_v9 = vadd.f32 %v2543_v62, %v9566_v23 }
 0x25d   : > { %v2550_v14 = vadd.f32 %v2549_v21, %v9568_v53  ;;  %v2556_v49 = vadd.f32 %v2555_v35, %v11905_v36  ;;  %v2562_v51 = vadd.f32 %v2561_v16, %v11906_v58  ;;  %v2479_v30 = vrot.slane %v2478_v12, 2 }
 0x25e   : > { %v2485_v60 = vrot.slane %v2484_v5, 2  ;;  %v2491_v50 = vrot.slane %v2490_v46, 2  ;;  %v2568_v54 = vadd.f32 %v2567_v8, %v11907_v4  ;;  %v2497_v63 = vrot.slane %v2496_v0, 2 }
 0x25f   : > { %v2503_v43 = vrot.slane %v2502_v61, 2  ;;  %v2509_v6 = vrot.slane %v2508_v55, 2  ;;  %v2515_v18 = vrot.slane %v2514_v52, 2  ;;  %v2521_v39 = vrot.slane %v2520_v24, 2 }
 0x260   : > { %v2527_v34 = vrot.slane %v2526_v41, 2  ;;  %v2533_v26 = vrot.slane %v2532_v56, 2  ;;  %v2539_v20 = vrot.slane %v2538_v57, 2  ;;  %v2545_v23 = vrot.slane %v2544_v9, 2 }
 0x261   : > { %v2551_v10 = vrot.slane %v2550_v14, 2  ;;  %v2557_v53 = vrot.slane %v2556_v49, 2  ;;  %v2563_v13 = vrot.slane %v2562_v51, 2  ;;  %v2480_v19 = vadd.f32 %v2479_v30, %v2478_v12 }
 0x262   : > { %v2486_v11 = vadd.f32 %v2485_v60, %v2484_v5  ;;  %v2492_v33 = vadd.f32 %v2491_v50, %v2490_v46  ;;  %v2569_v1 = vrot.slane %v2568_v54, 2  ;;  %v2498_v32 = vadd.f32 %v2497_v63, %v2496_v0 }
 0x263   : > { %v2504_v22 = vadd.f32 %v2503_v43, %v2502_v61  ;;  %v2510_v27 = vadd.f32 %v2509_v6, %v2508_v55  ;;  %v2516_v40 = vadd.f32 %v2515_v18, %v2514_v52  ;;  %v2522_v44 = vadd.f32 %v2521_v39, %v2520_v24 }
 0x264   : > { %v2528_v62 = vadd.f32 %v2527_v34, %v2526_v41  ;;  %v2534_v21 = vadd.f32 %v2533_v26, %v2532_v56  ;;  %v2540_v36 = vadd.f32 %v2539_v20, %v2538_v57  ;;  %v2546_v35 = vadd.f32 %v2545_v23, %v2544_v9 }
 0x265   : > { %v2552_v58 = vadd.f32 %v2551_v10, %v2550_v14  ;;  %v2558_v16 = vadd.f32 %v2557_v53, %v2556_v49  ;;  %v2564_v4 = vadd.f32 %v2563_v13, %v2562_v51  ;;  %v2481_v8 = vrot.slane %v2480_v19, 1  ;;  %v11908_v53 = vld [vmem:[#allocation41_spill] sm:$0xff] }
 0x266   : > { %v2487_v31 = vrot.slane %v2486_v11, 1  ;;  %v2493_v45 = vrot.slane %v2492_v33, 1  ;;  %v2570_v7 = vadd.f32 %v2569_v1, %v2568_v54  ;;  %v2499_v12 = vrot.slane %v2498_v32, 1 }
 0x267   : > { %v2505_v5 = vrot.slane %v2504_v22, 1  ;;  %v2511_v46 = vrot.slane %v2510_v27, 1  ;;  %v2517_v30 = vrot.slane %v2516_v40, 1  ;;  %v2523_v0 = vrot.slane %v2522_v44, 1 }
 0x268   : > { %v2529_v61 = vrot.slane %v2528_v62, 1  ;;  %v2535_v55 = vrot.slane %v2534_v21, 1  ;;  %v2541_v52 = vrot.slane %v2540_v36, 1  ;;  %v2547_v24 = vrot.slane %v2546_v35, 1 }
 0x269   : > { %v2553_v41 = vrot.slane %v2552_v58, 1  ;;  %v2559_v56 = vrot.slane %v2558_v16, 1  ;;  %v2565_v57 = vrot.slane %v2564_v4, 1  ;;  %v2482_v9 = vadd.f32 %v2481_v8, %v2480_v19  ;;  %v11912_v19 = vld [vmem:[#allocation23_spill] sm:$0xff]  ;;  %v11938_v8 = vld [vmem:[#allocation40_spill] sm:$0xff] }
 0x26a   : > { %v2488_v14 = vadd.f32 %v2487_v31, %v2486_v11  ;;  %v2494_v49 = vadd.f32 %v2493_v45, %v2492_v33  ;;  %v2571_v51 = vrot.slane %v2570_v7, 1  ;;  %v2500_v60 = vadd.f32 %v2499_v12, %v2498_v32  ;;  %v11910_v31 = vld [vmem:[#allocation60_spill] sm:$0xff]  ;;  %v11914_v33 = vld [vmem:[#allocation43_spill] sm:$0xff]  ;;  %v11940_v12 = vld [vmem:[#allocation29_spill] sm:$0xff] }
 0x26b   : > { %v2506_v50 = vadd.f32 %v2505_v5, %v2504_v22  ;;  %v2512_v63 = vadd.f32 %v2511_v46, %v2510_v27  ;;  %v2518_v54 = vadd.f32 %v2517_v30, %v2516_v40  ;;  %v2524_v43 = vadd.f32 %v2523_v0, %v2522_v44  ;;  %v11916_v32 = vld [vmem:[#allocation44_spill] sm:$0xff]  ;;  %v11920_v27 = vld [vmem:[#allocation49_spill] sm:$0xff]  ;;  %v11922_v40 = vld [vmem:[#allocation50_spill] sm:$0xff] }
 0x26c   : > { %v2530_v6 = vadd.f32 %v2529_v61, %v2528_v62  ;;  %v2536_v18 = vadd.f32 %v2535_v55, %v2534_v21  ;;  %v2542_v39 = vadd.f32 %v2541_v52, %v2540_v36  ;;  %v2548_v34 = vadd.f32 %v2547_v24, %v2546_v35  ;;  %v11924_v44 = vld [vmem:[#allocation51_spill] sm:$0xff]  ;;  %v11928_v21 = vld [vmem:[#allocation56_spill] sm:$0xff]  ;;  %v11930_v36 = vld [vmem:[#allocation57_spill] sm:$0xff] }
 0x26d   : > { %v2554_v26 = vadd.f32 %v2553_v41, %v2552_v58  ;;  %v2560_v20 = vadd.f32 %v2559_v56, %v2558_v16  ;;  %v2566_v23 = vadd.f32 %v2565_v57, %v2564_v4  ;;  %v2572_v10 = vadd.f32 %v2571_v51, %v2570_v7  ;;  %v11918_v7 = vld [vmem:[#allocation45_spill] sm:$0xff]  ;;  %v11926_v62 = vld [vmem:[#allocation55_spill] sm:$0xff]  ;;  %v11932_v35 = vld [vmem:[#allocation26_spill] sm:$0xff] }
 0x26e   : > { %v9642_v13 = vadd.f32 %v9576_v42, %v11908_v53  ;;  %v9646_v45 = vadd.f32 %v9578_v3, %v11910_v31  ;;  %v9650_v11 = vadd.f32 %v9580_v38, %v11912_v19  ;;  %v9654_v1 = vadd.f32 %v9582_v47, %v11914_v33  ;;  %v11934_v58 = vld [vmem:[#allocation27_spill] sm:$0xff]  ;;  %v11935_v16 = vld [vmem:[#allocation58_spill] sm:$0xff]  ;;  %v11937_v4 = vld [vmem:[#allocation28_spill] sm:$0xff] }
 0x26f   : > { %v9658_v22 = vadd.f32 %v9584_v28, %v11916_v32  ;;  %v9662_v42 = vadd.f32 %v9586_v59, %v11918_v7  ;;  %v9666_v3 = vadd.f32 %v9588_v29, %v11920_v27  ;;  %v9670_v38 = vadd.f32 %v9590_v17, %v11922_v40  ;;  %v11941_v5 = vld [vmem:[#allocation59_spill] sm:$0xff]  ;;  %v11943_v46 = vld [vmem:[#allocation30_spill] sm:$0xff]  ;;  %v11949_v55 = vld [vmem:[#allocation25_spill] sm:$0xff] }
 0x270   : > { %11909 = vst [vmem:[#allocation38_spill] sm:$0xff] %v9642_v13  ;;  %v9674_v47 = vadd.f32 %v9592_v2, %v11924_v44  ;;  %v9678_v28 = vadd.f32 %v9594_v25, %v11926_v62  ;;  %v9682_v59 = vadd.f32 %v9596_v48, %v11928_v21  ;;  %v9686_v29 = vadd.f32 %v9598_v15, %v11930_v36  ;;  %v11945_v15 = vld [vmem:[#allocation24_spill] sm:$0xff]  ;;  %v11953_v56 = vld [vmem:[#allocation42_spill] sm:$0xff]  ;;  %v11955_v51 = vld [vmem:[#allocation33_spill] sm:$0xff] }
 0x271   : > { %11911 = vst [vmem:[#allocation54_spill] sm:$0xff] %v9646_v45  ;;  %v9690_v17 = vadd.f32 %v9600_v37, %v11932_v35  ;;  %v9694_v2 = vadd.f32 %v11935_v16, %v11934_v58  ;;  %v9698_v25 = vadd.f32 %v11938_v8, %v11937_v4  ;;  %v9702_v48 = vadd.f32 %v11941_v5, %v11940_v12  ;;  %v11947_v37 = vld [vmem:[#allocation31_spill] sm:$0xff]  ;;  %v11951_v24 = vld [vmem:[#allocation32_spill] sm:$0xff]  ;;  %v11957_v19 = vld [vmem:[#allocation46_spill] sm:$0xff] }
 0x272   : > { %11913 = vst [vmem:[#allocation39_spill] sm:$0xff] %v9650_v11  ;;  %v9705_v30 = vadd.f32 %v2482_v9, %v11943_v46  ;;  %v9708_v0 = vadd.f32 %v2488_v14, %v11945_v15  ;;  %v9711_v61 = vadd.f32 %v2494_v49, %v11947_v37  ;;  %v9714_v52 = vadd.f32 %v2500_v60, %v11949_v55  ;;  %v2608_v9 = vld [vmem:[#allocation3 + $0x180] sm:$0xff]  ;;  %v2609_v31 = vld [vmem:[#allocation3 + $0x188] sm:$0xff]  ;;  %v2610_v27 = vld [vmem:[#allocation3 + $0x190] sm:$0xff] }
 0x273   : > { %11915 = vst [vmem:[#allocation41_spill] sm:$0xff] %v9654_v1  ;;  %v9717_v41 = vadd.f32 %v2506_v50, %v11951_v24  ;;  %v9720_v57 = vadd.f32 %v2512_v63, %v11953_v56  ;;  %v9723_v53 = vadd.f32 %v2518_v54, %v11955_v51  ;;  %v9726_v14 = vadd.f32 %v2524_v43, %v11957_v19  ;;  %v11959_v33 = vld [vmem:[#allocation34_spill] sm:$0xff]  ;;  %v11961_v32 = vld [vmem:[#allocation47_spill] sm:$0xff]  ;;  %v2611_v63 = vld [vmem:[#allocation3 + $0x198] sm:$0xff] }
 0x274   : > { %11917 = vst [vmem:[#allocation60_spill] sm:$0xff] %v9658_v22  ;;  %v9729_v49 = vadd.f32 %v2530_v6, %v11959_v33  ;;  %v9732_v60 = vadd.f32 %v2536_v18, %v11961_v32  ;;  %v11963_v7 = vld [vmem:[#allocation35_spill] sm:$0xff]  ;;  %v11965_v40 = vld [vmem:[#allocation48_spill] sm:$0xff]  ;;  %v11971_v36 = vld [vmem:[#allocation37_spill] sm:$0xff]  ;;  %v2624_v8 = vunpack.c.l.bf16 %v2608_v9  ;;  %v2625_v12 = vunpack.c.h.bf16 %v2608_v9 }
 0x275   : > { %11919 = vst [vmem:[#allocation23_spill] sm:$0xff] %v9662_v42  ;;  %v9735_v50 = vadd.f32 %v2542_v39, %v11963_v7  ;;  %v9738_v44 = vadd.f32 %v2548_v34, %v11965_v40  ;;  %v11967_v54 = vld [vmem:[#allocation36_spill] sm:$0xff]  ;;  %v9747_v6 = vadd.f32 %v2566_v23, %v11971_v36  ;;  %v2612_v35 = vld [vmem:[#allocation3 + $0x1a0] sm:$0xff]  ;;  %v2613_v18 = vld [vmem:[#allocation3 + $0x1a8] sm:$0xff]  ;;  %v2626_v34 = vunpack.c.l.bf16 %v2609_v31 }
 0x276   : > { %11921 = vst [vmem:[#allocation43_spill] sm:$0xff] %v9666_v3  ;;  %v9741_v62 = vadd.f32 %v2554_v26, %v11967_v54  ;;  %v11969_v21 = vld [vmem:[#allocation52_spill] sm:$0xff]  ;;  %v11973_v58 = vld [vmem:[#allocation53_spill] sm:$0xff]  ;;  %v2616_v5 = vld [vmem:[#allocation3 + $0x380] sm:$0xff]  ;;  %v2627_v26 = vunpack.c.h.bf16 %v2609_v31  ;;  %v2628_v15 = vunpack.c.l.bf16 %v2610_v27  ;;  %v2629_v37 = vunpack.c.h.bf16 %v2610_v27 }
 0x277   : > { %11923 = vst [vmem:[#allocation44_spill] sm:$0xff] %v9670_v38  ;;  %v9744_v43 = vadd.f32 %v2560_v20, %v11969_v21  ;;  %v9750_v16 = vadd.f32 %v2572_v10, %v11973_v58  ;;  %v2614_v39 = vld [vmem:[#allocation3 + $0x1b0] sm:$0xff]  ;;  %v2615_v4 = vld [vmem:[#allocation3 + $0x1b8] sm:$0xff]  ;;  %v2617_v46 = vld [vmem:[#allocation3 + $0x388] sm:$0xff]  ;;  %v2630_v20 = vunpack.c.l.bf16 %v2611_v63  ;;  %v2631_v23 = vunpack.c.h.bf16 %v2611_v63 }
 0x278   : > { %11925 = vst [vmem:[#allocation45_spill] sm:$0xff] %v9674_v47  ;;  %v2618_v55 = vld [vmem:[#allocation3 + $0x390] sm:$0xff]  ;;  %v2619_v24 = vld [vmem:[#allocation3 + $0x398] sm:$0xff]  ;;  %v2632_v56 = vunpack.c.l.bf16 %v2612_v35  ;;  %v2633_v51 = vunpack.c.h.bf16 %v2612_v35  ;;  %v2634_v19 = vunpack.c.l.bf16 %v2613_v18  ;;  %v2620_v33 = vld [vmem:[#allocation3 + $0x3a0] sm:$0xff]  ;;  %v2635_v10 = vunpack.c.h.bf16 %v2613_v18 }
 0x279   : > { %11927 = vst [vmem:[#allocation49_spill] sm:$0xff] %v9678_v28  ;;  %v2636_v32 = vunpack.c.l.bf16 %v2614_v39  ;;  %v2637_v7 = vunpack.c.h.bf16 %v2614_v39  ;;  %v2638_v40 = vunpack.c.l.bf16 %v2615_v4  ;;  %v2621_v54 = vld [vmem:[#allocation3 + $0x3a8] sm:$0xff]  ;;  %v2639_v9 = vunpack.c.h.bf16 %v2615_v4  ;;  %v2622_v31 = vld [vmem:[#allocation3 + $0x3b0] sm:$0xff] }
 0x27a   : > { %11929 = vst [vmem:[#allocation50_spill] sm:$0xff] %v9682_v59  ;;  %v2640_v21 = vunpack.c.l.bf16 %v2616_v5  ;;  %v2641_v36 = vunpack.c.h.bf16 %v2616_v5  ;;  %v2642_v58 = vunpack.c.l.bf16 %v2617_v46  ;;  %v2643_v27 = vunpack.c.h.bf16 %v2617_v46 }
 0x27b   : > { %11931 = vst [vmem:[#allocation51_spill] sm:$0xff] %v9686_v29  ;;  %v2647_v63 = vunpack.c.h.bf16 %v2619_v24  ;;  %v2649_v35 = vunpack.c.h.bf16 %v2620_v33  ;;  %v2650_v18 = vunpack.c.l.bf16 %v2621_v54  ;;  %v2652_v39 = vunpack.c.l.bf16 %v2622_v31 }
 0x27c   : > { %11933 = vst [vmem:[#allocation55_spill] sm:$0xff] %v9690_v17  ;;  %v2653_v4 = vunpack.c.h.bf16 %v2622_v31  ;;  %v9756_v5 = vmax.f32 %v2626_v34, 1e-06  ;;  %v9774_v34 = vmax.f32 %v2634_v19, 1e-06 }
 0x27d   : > { %11936 = vst [vmem:[#allocation56_spill] sm:$0xff] %v9694_v2  ;;  %v2673_v31 = vmax.f32 %v2641_v36, 1e-06 }
 0x27e   : > { %11939 = vst [vmem:[#allocation57_spill] sm:$0xff] %v9698_v25  ;;  %v2685_v25 = vmax.f32 %v2653_v4, 1e-06 }
 0x27f   : > { %11942 = vst [vmem:[#allocation26_spill] sm:$0xff] %v9702_v48  ;;  %v2682_v48 = vmax.f32 %v2650_v18, 1e-06 }
 0x280   : > { %11944 = vst [vmem:[#allocation27_spill] sm:$0xff] %v9705_v30  ;;  %v2679_v30 = vmax.f32 %v2647_v63, 1e-06  ;;  %v2698_v63 = vmul.f32 %v9774_v34, %v9774_v34  ;;  %v2717_v11 = vmul.f32 %v2685_v25, %v2685_v25 }
 0x281   : > { %11946 = vst [vmem:[#allocation58_spill] sm:$0xff] %v9708_v0  ;;  %v2714_v42 = vmul.f32 %v2682_v48, %v2682_v48 }
 0x282   : > { %11948 = vst [vmem:[#allocation28_spill] sm:$0xff] %v9711_v61  ;;  %v2711_v47 = vmul.f32 %v2679_v30, %v2679_v30 }
 0x283   : > { %11950 = vst [vmem:[#allocation40_spill] sm:$0xff] %v9714_v52  ;;  %v2675_v52 = vmax.f32 %v2643_v27, 1e-06 }
 0x284   : > { %11952 = vst [vmem:[#allocation29_spill] sm:$0xff] %v9717_v41  ;;  %v2674_v41 = vmax.f32 %v2642_v58, 1e-06  ;;  %v2684_v58 = vmax.f32 %v2652_v39, 1e-06 }
 0x285   : > { %11954 = vst [vmem:[#allocation59_spill] sm:$0xff] %v9720_v57  ;;  %v9760_v57 = vmax.f32 %v2628_v15, 1e-06  ;;  %v2707_v17 = vmul.f32 %v2675_v52, %v2675_v52 }
 0x286   : > { %11956 = vst [vmem:[#allocation30_spill] sm:$0xff] %v9723_v53  ;;  %v9758_v53 = vmax.f32 %v2627_v26, 1e-06  ;;  %v9776_v26 = vmax.f32 %v2635_v10, 1e-06  ;;  %v2706_v2 = vmul.f32 %v2674_v41, %v2674_v41  ;;  %v2716_v1 = vmul.f32 %v2684_v58, %v2684_v58 }
 0x287   : > { %11958 = vst [vmem:[#allocation24_spill] sm:$0xff] %v9726_v14 }
 0x288   : > { %11960 = vst [vmem:[#allocation31_spill] sm:$0xff] %v9729_v49  ;;  %v9754_v49 = vmax.f32 %v2625_v12, 1e-06  ;;  %v2691_v19 = vmul.f32 %v9758_v53, %v9758_v53 }
 0x289   : > { %11962 = vst [vmem:[#allocation25_spill] sm:$0xff] %v9732_v60  ;;  %v2651_v60 = vunpack.c.h.bf16 %v2621_v54  ;;  %v9770_v54 = vmax.f32 %v2633_v51, 1e-06  ;;  %v2672_v51 = vmax.f32 %v2640_v21, 1e-06 }
 0x28a   : > { %11964 = vst [vmem:[#allocation32_spill] sm:$0xff] %v9735_v50  ;;  %v9752_v50 = vmax.f32 %v2624_v8, 1e-06  ;;  %v9766_v8 = vmax.f32 %v2631_v23, 1e-06  ;;  %v2689_v15 = vmul.f32 %v9754_v49, %v9754_v49 }
 0x28b   : > { %11966 = vst [vmem:[#allocation42_spill] sm:$0xff] %v9738_v44  ;;  %v2648_v44 = vunpack.c.l.bf16 %v2620_v33  ;;  %v9768_v33 = vmax.f32 %v2632_v56, 1e-06  ;;  %v2671_v23 = vmax.f32 %v2639_v9, 1e-06  ;;  %v2690_v56 = vmul.f32 %v9756_v5, %v9756_v5 }
 0x28c   : > { %11968 = vst [vmem:[#allocation33_spill] sm:$0xff] %v9741_v62  ;;  %v2646_v62 = vunpack.c.l.bf16 %v2619_v24  ;;  %v9764_v24 = vmax.f32 %v2630_v20, 1e-06  ;;  %v2688_v12 = vmul.f32 %v9752_v50, %v9752_v50  ;;  %v2670_v20 = vmax.f32 %v2638_v40, 1e-06 }
 0x28d   : > { %11970 = vst [vmem:[#allocation46_spill] sm:$0xff] %v9744_v43  ;;  %v2645_v43 = vunpack.c.h.bf16 %v2618_v55  ;;  %v2681_v9 = vmax.f32 %v2649_v35, 1e-06  ;;  %v2683_v21 = vmax.f32 %v2651_v60, 1e-06  ;;  %v2699_v60 = vmul.f32 %v9776_v26, %v9776_v26 }
 0x28e   : > { %11972 = vst [vmem:[#allocation34_spill] sm:$0xff] %v9747_v6  ;;  %v2644_v6 = vunpack.c.l.bf16 %v2618_v55  ;;  %v9762_v55 = vmax.f32 %v2629_v37, 1e-06  ;;  %v2669_v37 = vmax.f32 %v2637_v7, 1e-06  ;;  %v2694_v36 = vmul.f32 %v9764_v24, %v9764_v24 }
 0x28f   : > { %11974 = vst [vmem:[#allocation47_spill] sm:$0xff] %v9750_v16  ;;  %v2623_v16 = vld [vmem:[#allocation3 + $0x3b8] sm:$0xff]  ;;  %v2677_v61 = vmax.f32 %v2645_v43, 1e-06  ;;  %v2678_v0 = vmax.f32 %v2646_v62, 1e-06  ;;  %v2695_v43 = vmul.f32 %v9766_v8, %v9766_v8  ;;  %v2696_v62 = vmul.f32 %v9768_v33, %v9768_v33 }
 0x290   : > { %v2654_v14 = vunpack.c.l.bf16 %v2623_v16  ;;  %v2655_v46 = vunpack.c.h.bf16 %v2623_v16  ;;  %11975 = vst [vmem:[#allocation35_spill] sm:$0xff] %v9766_v8  ;;  %v9778_v16 = vmax.f32 %v2636_v32, 1e-06  ;;  %v2676_v10 = vmax.f32 %v2644_v6, 1e-06 }
 0x291   : > { %11976 = vst [vmem:[#allocation48_spill] sm:$0xff] %v9768_v33  ;;  %v2692_v32 = vmul.f32 %v9760_v57, %v9760_v57  ;;  %v2680_v7 = vmax.f32 %v2648_v44, 1e-06  ;;  %v2693_v40 = vmul.f32 %v9762_v55, %v9762_v55  ;;  %v2697_v44 = vmul.f32 %v9770_v54, %v9770_v54 }
 0x292   : > { %11977 = vst [vmem:[#allocation36_spill] sm:$0xff] %v9770_v54  ;;  %v2686_v27 = vmax.f32 %v2654_v14, 1e-06  ;;  %v2687_v6 = vmax.f32 %v2655_v46, 1e-06  ;;  %v2700_v35 = vmul.f32 %v9778_v16, %v9778_v16  ;;  %v2701_v14 = vmul.f32 %v2669_v37, %v2669_v37 }
 0x293   : > { %11978 = vst [vmem:[#allocation52_spill] sm:$0xff] %v9774_v34  ;;  %v2702_v18 = vmul.f32 %v2670_v20, %v2670_v20  ;;  %v2703_v39 = vmul.f32 %v2671_v23, %v2671_v23  ;;  %v2704_v4 = vmul.f32 %v2672_v51, %v2672_v51  ;;  %v2705_v46 = vmul.f32 %v2673_v31, %v2673_v31 }
 0x294   : > { %11979 = vst [vmem:[#allocation37_spill] sm:$0xff] %v9776_v26  ;;  %v2708_v29 = vmul.f32 %v2676_v10, %v2676_v10  ;;  %v2709_v59 = vmul.f32 %v2677_v61, %v2677_v61  ;;  %v2710_v28 = vmul.f32 %v2678_v0, %v2678_v0  ;;  %v2712_v38 = vmul.f32 %v2680_v7, %v2680_v7 }
 0x295   : > { %11980 = vst [vmem:[#allocation53_spill] sm:$0xff] %v9778_v16  ;;  %v2713_v3 = vmul.f32 %v2681_v9, %v2681_v9  ;;  %v2715_v22 = vmul.f32 %v2683_v21, %v2683_v21  ;;  %v2718_v45 = vmul.f32 %v2686_v27, %v2686_v27  ;;  %v2719_v13 = vmul.f32 %v2687_v6, %v2687_v6 }
 0x296   : > { %v2720_v16 = vmul.f32 %v2688_v12, %v9752_v50  ;;  %v2721_v26 = vmul.f32 %v2689_v15, %v9754_v49  ;;  %v2722_v34 = vmul.f32 %v2690_v56, %v9756_v5  ;;  %v2723_v54 = vmul.f32 %v2691_v19, %v9758_v53 }
 0x297   : > { %v2724_v33 = vmul.f32 %v2692_v32, %v9760_v57  ;;  %v2725_v8 = vmul.f32 %v2693_v40, %v9762_v55  ;;  %v2726_v12 = vmul.f32 %v2694_v36, %v9764_v24  ;;  %v11981_v50 = vld [vmem:[#allocation35_spill] sm:$0xff]  ;;  %v2733_v36 = vmul.f32 %v2701_v14, %v2669_v37 }
 0x298   : > { %v2727_v15 = vmul.f32 %v2695_v43, %v11981_v50  ;;  %v11982_v49 = vld [vmem:[#allocation48_spill] sm:$0xff]  ;;  %v2734_v43 = vmul.f32 %v2702_v18, %v2670_v20  ;;  %v2735_v50 = vmul.f32 %v2703_v39, %v2671_v23  ;;  %v9835_v37 = vmul.f32 %v2713_v3, %v2681_v9 }
 0x299   : > { %v2728_v5 = vmul.f32 %v2696_v62, %v11982_v49  ;;  %v11983_v56 = vld [vmem:[#allocation36_spill] sm:$0xff]  ;;  %v9817_v49 = vmul.f32 %v2704_v4, %v2672_v51  ;;  %v9819_v62 = vmul.f32 %v2705_v46, %v2673_v31  ;;  %v9837_v20 = vmul.f32 %v2714_v42, %v2682_v48 }
 0x29a   : > { %v2729_v19 = vmul.f32 %v2697_v44, %v11983_v56  ;;  %v11984_v53 = vld [vmem:[#allocation52_spill] sm:$0xff]  ;;  %v9821_v44 = vmul.f32 %v2706_v2, %v2674_v41  ;;  %v9823_v56 = vmul.f32 %v2707_v17, %v2675_v52  ;;  %v9839_v23 = vmul.f32 %v2715_v22, %v2683_v21 }
 0x29b   : > { %v2730_v32 = vmul.f32 %v2698_v63, %v11984_v53  ;;  %v11985_v57 = vld [vmem:[#allocation37_spill] sm:$0xff]  ;;  %v9825_v53 = vmul.f32 %v2708_v29, %v2676_v10  ;;  %v9827_v63 = vmul.f32 %v2709_v59, %v2677_v61  ;;  %v9841_v2 = vmul.f32 %v2716_v1, %v2684_v58 }
 0x29c   : > { %v2731_v40 = vmul.f32 %v2699_v60, %v11985_v57  ;;  %v11986_v55 = vld [vmem:[#allocation53_spill] sm:$0xff]  ;;  %v9829_v57 = vmul.f32 %v2710_v28, %v2678_v0  ;;  %v9831_v60 = vmul.f32 %v2711_v47, %v2679_v30  ;;  %v9843_v17 = vmul.f32 %v2717_v11, %v2685_v25 }
 0x29d   : > { %v2732_v24 = vmul.f32 %v2700_v35, %v11986_v55  ;;  %v9833_v35 = vmul.f32 %v2712_v38, %v2680_v7  ;;  %v9845_v29 = vmul.f32 %v2718_v45, %v2686_v27  ;;  %v9847_v59 = vmul.f32 %v2719_v13, %v2687_v6 }
 0x29e   : > { %11987 = vst [vmem:[#allocation35_spill] sm:$0xff] %v9843_v17  ;;  %v2752_v28 = vrot.slane %v2720_v16, 4  ;;  %v2758_v0 = vrot.slane %v2721_v26, 4  ;;  %v2764_v47 = vrot.slane %v2722_v34, 4  ;;  %v2770_v30 = vrot.slane %v2723_v54, 4 }
 0x29f   : > { %11988 = vst [vmem:[#allocation48_spill] sm:$0xff] %v9845_v29  ;;  %v2776_v38 = vrot.slane %v2724_v33, 4  ;;  %v2782_v61 = vrot.slane %v2725_v8, 4  ;;  %v2788_v3 = vrot.slane %v2726_v12, 4  ;;  %v2794_v52 = vrot.slane %v2727_v15, 4 }
 0x2a0   : > { %11989 = vst [vmem:[#allocation36_spill] sm:$0xff] %v9847_v59  ;;  %v2800_v42 = vrot.slane %v2728_v5, 4  ;;  %v2806_v48 = vrot.slane %v2729_v19, 4  ;;  %v2812_v22 = vrot.slane %v2730_v32, 4  ;;  %v2818_v41 = vrot.slane %v2731_v40, 4 }
 0x2a1   : > { %v2824_v1 = vrot.slane %v2732_v24, 4  ;;  %v2830_v51 = vrot.slane %v2733_v36, 4  ;;  %v2836_v11 = vrot.slane %v2734_v43, 4  ;;  %v2753_v25 = vadd.f32 %v2752_v28, %v2720_v16 }
 0x2a2   : > { %v2759_v45 = vadd.f32 %v2758_v0, %v2721_v26  ;;  %v2765_v31 = vadd.f32 %v2764_v47, %v2722_v34  ;;  %v2842_v13 = vrot.slane %v2735_v50, 4  ;;  %v2771_v10 = vadd.f32 %v2770_v30, %v2723_v54 }
 0x2a3   : > { %v2777_v7 = vadd.f32 %v2776_v38, %v2724_v33  ;;  %v2783_v9 = vadd.f32 %v2782_v61, %v2725_v8  ;;  %v2789_v21 = vadd.f32 %v2788_v3, %v2726_v12  ;;  %v2795_v58 = vadd.f32 %v2794_v52, %v2727_v15 }
 0x2a4   : > { %v2801_v27 = vadd.f32 %v2800_v42, %v2728_v5  ;;  %v2807_v6 = vadd.f32 %v2806_v48, %v2729_v19  ;;  %v2813_v14 = vadd.f32 %v2812_v22, %v2730_v32  ;;  %v2819_v18 = vadd.f32 %v2818_v41, %v2731_v40 }
 0x2a5   : > { %v2825_v39 = vadd.f32 %v2824_v1, %v2732_v24  ;;  %v2831_v4 = vadd.f32 %v2830_v51, %v2733_v36  ;;  %v2837_v46 = vadd.f32 %v2836_v11, %v2734_v43  ;;  %v2754_v55 = vrot.slane %v2753_v25, 2 }
 0x2a6   : > { %v2760_v59 = vrot.slane %v2759_v45, 2  ;;  %v2766_v29 = vrot.slane %v2765_v31, 2  ;;  %v2843_v17 = vadd.f32 %v2842_v13, %v2735_v50  ;;  %v2772_v16 = vrot.slane %v2771_v10, 2 }
 0x2a7   : > { %v2778_v26 = vrot.slane %v2777_v7, 2  ;;  %v2784_v34 = vrot.slane %v2783_v9, 2  ;;  %v2790_v28 = vrot.slane %v2789_v21, 2  ;;  %v2796_v54 = vrot.slane %v2795_v58, 2 }
 0x2a8   : > { %v2802_v33 = vrot.slane %v2801_v27, 2  ;;  %v2808_v8 = vrot.slane %v2807_v6, 2  ;;  %v2814_v12 = vrot.slane %v2813_v14, 2  ;;  %v2820_v15 = vrot.slane %v2819_v18, 2 }
 0x2a9   : > { %v2826_v5 = vrot.slane %v2825_v39, 2  ;;  %v2832_v19 = vrot.slane %v2831_v4, 2  ;;  %v2838_v32 = vrot.slane %v2837_v46, 2  ;;  %v2755_v40 = vadd.f32 %v2754_v55, %v2753_v25 }
 0x2aa   : > { %v2761_v24 = vadd.f32 %v2760_v59, %v2759_v45  ;;  %v2767_v36 = vadd.f32 %v2766_v29, %v2765_v31  ;;  %v2844_v43 = vrot.slane %v2843_v17, 2  ;;  %v2773_v0 = vadd.f32 %v2772_v16, %v2771_v10 }
 0x2ab   : > { %v2779_v47 = vadd.f32 %v2778_v26, %v2777_v7  ;;  %v2785_v30 = vadd.f32 %v2784_v34, %v2783_v9  ;;  %v2791_v50 = vadd.f32 %v2790_v28, %v2789_v21  ;;  %v2797_v38 = vadd.f32 %v2796_v54, %v2795_v58 }
 0x2ac   : > { %v2803_v61 = vadd.f32 %v2802_v33, %v2801_v27  ;;  %v2809_v3 = vadd.f32 %v2808_v8, %v2807_v6  ;;  %v2815_v52 = vadd.f32 %v2814_v12, %v2813_v14  ;;  %v2821_v42 = vadd.f32 %v2820_v15, %v2819_v18 }
 0x2ad   : > { %v2827_v48 = vadd.f32 %v2826_v5, %v2825_v39  ;;  %v2833_v22 = vadd.f32 %v2832_v19, %v2831_v4  ;;  %v2839_v41 = vadd.f32 %v2838_v32, %v2837_v46  ;;  %v2756_v1 = vrot.slane %v2755_v40, 1 }
 0x2ae   : > { %v2762_v51 = vrot.slane %v2761_v24, 1  ;;  %v2768_v11 = vrot.slane %v2767_v36, 1  ;;  %v2845_v13 = vadd.f32 %v2844_v43, %v2843_v17  ;;  %v2774_v25 = vrot.slane %v2773_v0, 1 }
 0x2af   : > { %v2780_v59 = vrot.slane %v2779_v47, 1  ;;  %v2786_v29 = vrot.slane %v2785_v30, 1  ;;  %v2792_v45 = vrot.slane %v2791_v50, 1  ;;  %v2798_v31 = vrot.slane %v2797_v38, 1 }
 0x2b0   : > { %v2804_v10 = vrot.slane %v2803_v61, 1  ;;  %v2810_v7 = vrot.slane %v2809_v3, 1  ;;  %v2816_v9 = vrot.slane %v2815_v52, 1  ;;  %v2822_v21 = vrot.slane %v2821_v42, 1 }
 0x2b1   : > { %v2828_v58 = vrot.slane %v2827_v48, 1  ;;  %v2834_v27 = vrot.slane %v2833_v22, 1  ;;  %v2840_v6 = vrot.slane %v2839_v41, 1  ;;  %v9849_v14 = vadd.f32 %v2756_v1, %v2755_v40 }
 0x2b2   : > { %v9851_v18 = vadd.f32 %v2762_v51, %v2761_v24  ;;  %v9853_v39 = vadd.f32 %v2768_v11, %v2767_v36  ;;  %v2846_v4 = vrot.slane %v2845_v13, 1  ;;  %v9855_v17 = vadd.f32 %v2774_v25, %v2773_v0  ;;  %v11995_v11 = vld [vmem:[#allocation36_spill] sm:$0xff] }
 0x2b3   : > { %v9857_v46 = vadd.f32 %v2780_v59, %v2779_v47  ;;  %v9859_v55 = vadd.f32 %v2786_v29, %v2785_v30  ;;  %v9861_v16 = vadd.f32 %v2792_v45, %v2791_v50  ;;  %v9863_v26 = vadd.f32 %v2798_v31, %v2797_v38 }
 0x2b4   : > { %v9865_v34 = vadd.f32 %v2804_v10, %v2803_v61  ;;  %v9867_v28 = vadd.f32 %v2810_v7, %v2809_v3  ;;  %v9869_v54 = vadd.f32 %v2816_v9, %v2815_v52  ;;  %v9871_v33 = vadd.f32 %v2822_v21, %v2821_v42  ;;  %v11993_v52 = vld [vmem:[#allocation35_spill] sm:$0xff] }
 0x2b5   : > { %v9873_v8 = vadd.f32 %v2828_v58, %v2827_v48  ;;  %v9875_v12 = vadd.f32 %v2834_v27, %v2833_v22  ;;  %v9877_v15 = vadd.f32 %v2840_v6, %v2839_v41  ;;  %v9879_v5 = vadd.f32 %v2846_v4, %v2845_v13  ;;  %v11994_v48 = vld [vmem:[#allocation48_spill] sm:$0xff] }
 0x2b6   : > { %v2848_v19 = vrot.slane %v9817_v49, 4  ;;  %v2854_v32 = vrot.slane %v9819_v62, 4  ;;  %v2860_v40 = vrot.slane %v9821_v44, 4  ;;  %v2866_v24 = vrot.slane %v9823_v56, 4 }
 0x2b7   : > { %11990 = vst [vmem:[#allocation52_spill] sm:$0xff] %v9875_v12  ;;  %v2872_v36 = vrot.slane %v9825_v53, 4  ;;  %v2878_v43 = vrot.slane %v9827_v63, 4  ;;  %v2884_v0 = vrot.slane %v9829_v57, 4  ;;  %v2890_v47 = vrot.slane %v9831_v60, 4 }
 0x2b8   : > { %11991 = vst [vmem:[#allocation37_spill] sm:$0xff] %v9877_v15  ;;  %v2896_v30 = vrot.slane %v9833_v35, 4  ;;  %v2902_v50 = vrot.slane %v9835_v37, 4  ;;  %v2908_v38 = vrot.slane %v9837_v20, 4  ;;  %v2914_v61 = vrot.slane %v9839_v23, 4 }
 0x2b9   : > { %11992 = vst [vmem:[#allocation53_spill] sm:$0xff] %v9879_v5  ;;  %v2920_v3 = vrot.slane %v9841_v2, 4  ;;  %v2926_v42 = vrot.slane %v11993_v52, 4  ;;  %v2932_v22 = vrot.slane %v11994_v48, 4  ;;  %v2849_v41 = vadd.f32 %v2848_v19, %v9817_v49 }
 0x2ba   : > { %v2855_v1 = vadd.f32 %v2854_v32, %v9819_v62  ;;  %v2861_v51 = vadd.f32 %v2860_v40, %v9821_v44  ;;  %v2938_v13 = vrot.slane %v11995_v11, 4  ;;  %v2867_v25 = vadd.f32 %v2866_v24, %v9823_v56 }
 0x2bb   : > { %v2873_v59 = vadd.f32 %v2872_v36, %v9825_v53  ;;  %v2879_v29 = vadd.f32 %v2878_v43, %v9827_v63  ;;  %v2885_v45 = vadd.f32 %v2884_v0, %v9829_v57  ;;  %v2891_v31 = vadd.f32 %v2890_v47, %v9831_v60 }
 0x2bc   : > { %v2897_v10 = vadd.f32 %v2896_v30, %v9833_v35  ;;  %v2903_v49 = vadd.f32 %v2902_v50, %v9835_v37  ;;  %v2909_v62 = vadd.f32 %v2908_v38, %v9837_v20  ;;  %v2915_v44 = vadd.f32 %v2914_v61, %v9839_v23 }
 0x2bd   : > { %v2921_v7 = vadd.f32 %v2920_v3, %v9841_v2  ;;  %v2927_v56 = vadd.f32 %v2926_v42, %v11993_v52  ;;  %v2933_v53 = vadd.f32 %v2932_v22, %v11994_v48  ;;  %v2850_v9 = vrot.slane %v2849_v41, 2 }
 0x2be   : > { %v2856_v63 = vrot.slane %v2855_v1, 2  ;;  %v2862_v21 = vrot.slane %v2861_v51, 2  ;;  %v2939_v57 = vadd.f32 %v2938_v13, %v11995_v11  ;;  %v2868_v60 = vrot.slane %v2867_v25, 2 }
 0x2bf   : > { %v2874_v58 = vrot.slane %v2873_v59, 2  ;;  %v2880_v35 = vrot.slane %v2879_v29, 2  ;;  %v2886_v27 = vrot.slane %v2885_v45, 2  ;;  %v2892_v37 = vrot.slane %v2891_v31, 2 }
 0x2c0   : > { %v2898_v6 = vrot.slane %v2897_v10, 2  ;;  %v2904_v20 = vrot.slane %v2903_v49, 2  ;;  %v2910_v4 = vrot.slane %v2909_v62, 2  ;;  %v2916_v23 = vrot.slane %v2915_v44, 2 }
 0x2c1   : > { %v2922_v19 = vrot.slane %v2921_v7, 2  ;;  %v2928_v2 = vrot.slane %v2927_v56, 2  ;;  %v2934_v32 = vrot.slane %v2933_v53, 2  ;;  %v2851_v40 = vadd.f32 %v2850_v9, %v2849_v41 }
 0x2c2   : > { %v2857_v24 = vadd.f32 %v2856_v63, %v2855_v1  ;;  %v2863_v36 = vadd.f32 %v2862_v21, %v2861_v51  ;;  %v2940_v43 = vrot.slane %v2939_v57, 2  ;;  %v2869_v0 = vadd.f32 %v2868_v60, %v2867_v25 }
 0x2c3   : > { %v2875_v47 = vadd.f32 %v2874_v58, %v2873_v59  ;;  %v2881_v30 = vadd.f32 %v2880_v35, %v2879_v29  ;;  %v2887_v50 = vadd.f32 %v2886_v27, %v2885_v45  ;;  %v2893_v38 = vadd.f32 %v2892_v37, %v2891_v31 }
 0x2c4   : > { %v2899_v61 = vadd.f32 %v2898_v6, %v2897_v10  ;;  %v2905_v3 = vadd.f32 %v2904_v20, %v2903_v49  ;;  %v2911_v52 = vadd.f32 %v2910_v4, %v2909_v62  ;;  %v2917_v42 = vadd.f32 %v2916_v23, %v2915_v44 }
 0x2c5   : > { %v2923_v48 = vadd.f32 %v2922_v19, %v2921_v7  ;;  %v2929_v22 = vadd.f32 %v2928_v2, %v2927_v56  ;;  %v2935_v11 = vadd.f32 %v2934_v32, %v2933_v53  ;;  %v2852_v13 = vrot.slane %v2851_v40, 1  ;;  %v11996_v2 = vld [vmem:[#allocation38_spill] sm:$0xff] }
 0x2c6   : > { %v2858_v5 = vrot.slane %v2857_v24, 1  ;;  %v2864_v15 = vrot.slane %v2863_v36, 1  ;;  %v2941_v12 = vadd.f32 %v2940_v43, %v2939_v57  ;;  %v2870_v41 = vrot.slane %v2869_v0, 1 }
 0x2c7   : > { %v2876_v1 = vrot.slane %v2875_v47, 1  ;;  %v2882_v51 = vrot.slane %v2881_v30, 1  ;;  %v2888_v9 = vrot.slane %v2887_v50, 1  ;;  %v2894_v25 = vrot.slane %v2893_v38, 1 }
 0x2c8   : > { %v2900_v59 = vrot.slane %v2899_v61, 1  ;;  %v2906_v29 = vrot.slane %v2905_v3, 1  ;;  %v2912_v45 = vrot.slane %v2911_v52, 1  ;;  %v2918_v31 = vrot.slane %v2917_v42, 1 }
 0x2c9   : > { %v2924_v10 = vrot.slane %v2923_v48, 1  ;;  %v2930_v49 = vrot.slane %v2929_v22, 1  ;;  %v2936_v62 = vrot.slane %v2935_v11, 1  ;;  %v2853_v44 = vadd.f32 %v2852_v13, %v2851_v40  ;;  %v12000_v40 = vld [vmem:[#allocation39_spill] sm:$0xff]  ;;  %v12026_v13 = vld [vmem:[#allocation37_spill] sm:$0xff] }
 0x2ca   : > { %v2859_v7 = vadd.f32 %v2858_v5, %v2857_v24  ;;  %v2865_v56 = vadd.f32 %v2864_v15, %v2863_v36  ;;  %v2942_v53 = vrot.slane %v2941_v12, 1  ;;  %v2871_v63 = vadd.f32 %v2870_v41, %v2869_v0  ;;  %v11998_v5 = vld [vmem:[#allocation54_spill] sm:$0xff]  ;;  %v12002_v36 = vld [vmem:[#allocation41_spill] sm:$0xff]  ;;  %v12004_v0 = vld [vmem:[#allocation60_spill] sm:$0xff] }
 0x2cb   : > { %v2877_v21 = vadd.f32 %v2876_v1, %v2875_v47  ;;  %v2883_v60 = vadd.f32 %v2882_v51, %v2881_v30  ;;  %v2889_v57 = vadd.f32 %v2888_v9, %v2887_v50  ;;  %v2895_v58 = vadd.f32 %v2894_v25, %v2893_v38  ;;  %v12008_v30 = vld [vmem:[#allocation43_spill] sm:$0xff]  ;;  %v12010_v50 = vld [vmem:[#allocation44_spill] sm:$0xff]  ;;  %v12012_v38 = vld [vmem:[#allocation45_spill] sm:$0xff] }
 0x2cc   : > { %v2901_v35 = vadd.f32 %v2900_v59, %v2899_v61  ;;  %v2907_v27 = vadd.f32 %v2906_v29, %v2905_v3  ;;  %v2913_v37 = vadd.f32 %v2912_v45, %v2911_v52  ;;  %v2919_v6 = vadd.f32 %v2918_v31, %v2917_v42  ;;  %v12014_v61 = vld [vmem:[#allocation49_spill] sm:$0xff]  ;;  %v12016_v3 = vld [vmem:[#allocation50_spill] sm:$0xff]  ;;  %v12018_v52 = vld [vmem:[#allocation51_spill] sm:$0xff] }
 0x2cd   : > { %v2925_v20 = vadd.f32 %v2924_v10, %v2923_v48  ;;  %v2931_v4 = vadd.f32 %v2930_v49, %v2929_v22  ;;  %v2937_v23 = vadd.f32 %v2936_v62, %v2935_v11  ;;  %v2943_v19 = vadd.f32 %v2942_v53, %v2941_v12  ;;  %v12006_v12 = vld [vmem:[#allocation23_spill] sm:$0xff]  ;;  %v12022_v48 = vld [vmem:[#allocation56_spill] sm:$0xff]  ;;  %v12025_v11 = vld [vmem:[#allocation57_spill] sm:$0xff] }
 0x2ce   : > { %v9915_v32 = vadd.f32 %v9849_v14, %v11996_v2  ;;  %v9919_v15 = vadd.f32 %v9851_v18, %v11998_v5  ;;  %v9923_v24 = vadd.f32 %v9853_v39, %v12000_v40  ;;  %v9927_v43 = vadd.f32 %v9855_v17, %v12002_v36  ;;  %v12020_v42 = vld [vmem:[#allocation55_spill] sm:$0xff]  ;;  %v12023_v22 = vld [vmem:[#allocation52_spill] sm:$0xff]  ;;  %v12028_v41 = vld [vmem:[#allocation26_spill] sm:$0xff] }
 0x2cf   : > { %v9931_v47 = vadd.f32 %v9857_v46, %v12004_v0  ;;  %v9935_v14 = vadd.f32 %v9859_v55, %v12006_v12  ;;  %v9939_v18 = vadd.f32 %v9861_v16, %v12008_v30  ;;  %v9943_v39 = vadd.f32 %v9863_v26, %v12010_v50  ;;  %v12029_v1 = vld [vmem:[#allocation53_spill] sm:$0xff]  ;;  %v12031_v51 = vld [vmem:[#allocation27_spill] sm:$0xff]  ;;  %v12037_v29 = vld [vmem:[#allocation40_spill] sm:$0xff] }
 0x2d0   : > { %11997 = vst [vmem:[#allocation35_spill] sm:$0xff] %v9915_v32  ;;  %v9947_v17 = vadd.f32 %v9865_v34, %v12012_v38  ;;  %v9951_v46 = vadd.f32 %v9867_v28, %v12014_v61  ;;  %v9955_v55 = vadd.f32 %v9869_v54, %v12016_v3  ;;  %v9959_v16 = vadd.f32 %v9871_v33, %v12018_v52  ;;  %v12033_v33 = vld [vmem:[#allocation58_spill] sm:$0xff]  ;;  %v12039_v31 = vld [vmem:[#allocation29_spill] sm:$0xff]  ;;  %v12041_v49 = vld [vmem:[#allocation59_spill] sm:$0xff] }
 0x2d1   : > { %11999 = vst [vmem:[#allocation48_spill] sm:$0xff] %v9919_v15  ;;  %v9963_v26 = vadd.f32 %v9873_v8, %v12020_v42  ;;  %v9967_v34 = vadd.f32 %v12023_v22, %v12022_v48  ;;  %v9971_v28 = vadd.f32 %v12026_v13, %v12025_v11  ;;  %v9975_v54 = vadd.f32 %v12029_v1, %v12028_v41  ;;  %v12035_v8 = vld [vmem:[#allocation28_spill] sm:$0xff]  ;;  %v12043_v53 = vld [vmem:[#allocation30_spill] sm:$0xff]  ;;  %v2980_v5 = vld [vmem:[#allocation3 + $0x1c8] sm:$0xff] }
 0x2d2   : > { %12001 = vst [vmem:[#allocation36_spill] sm:$0xff] %v9923_v24  ;;  %v9978_v9 = vadd.f32 %v2853_v44, %v12031_v51  ;;  %v9981_v25 = vadd.f32 %v2859_v7, %v12033_v33  ;;  %v9984_v59 = vadd.f32 %v2865_v56, %v12035_v8  ;;  %v9987_v45 = vadd.f32 %v2871_v63, %v12037_v29  ;;  %v2979_v44 = vld [vmem:[#allocation3 + $0x1c0] sm:$0xff]  ;;  %v12045_v40 = vld [vmem:[#allocation24_spill] sm:$0xff]  ;;  %v12047_v36 = vld [vmem:[#allocation31_spill] sm:$0xff] }
 0x2d3   : > { %12003 = vst [vmem:[#allocation38_spill] sm:$0xff] %v9927_v43  ;;  %v9990_v10 = vadd.f32 %v2877_v21, %v12039_v31  ;;  %v9993_v62 = vadd.f32 %v2883_v60, %v12041_v49  ;;  %v9996_v2 = vadd.f32 %v2889_v57, %v12043_v53  ;;  %v9999_v7 = vadd.f32 %v2895_v58, %v12045_v40  ;;  %v12049_v0 = vld [vmem:[#allocation25_spill] sm:$0xff]  ;;  %v12051_v12 = vld [vmem:[#allocation32_spill] sm:$0xff]  ;;  %v12053_v50 = vld [vmem:[#allocation42_spill] sm:$0xff] }
 0x2d4   : > { %12005 = vst [vmem:[#allocation54_spill] sm:$0xff] %v9931_v47  ;;  %v10002_v56 = vadd.f32 %v2901_v35, %v12047_v36  ;;  %v10005_v63 = vadd.f32 %v2907_v27, %v12049_v0  ;;  %v10008_v21 = vadd.f32 %v2913_v37, %v12051_v12  ;;  %v2981_v30 = vld [vmem:[#allocation3 + $0x1d0] sm:$0xff]  ;;  %v2982_v60 = vld [vmem:[#allocation3 + $0x1d8] sm:$0xff]  ;;  %v10011_v38 = vadd.f32 %v2919_v6, %v12053_v50  ;;  %v12057_v3 = vld [vmem:[#allocation46_spill] sm:$0xff] }
 0x2d5   : > { %12007 = vst [vmem:[#allocation39_spill] sm:$0xff] %v9935_v14  ;;  %v12055_v57 = vld [vmem:[#allocation33_spill] sm:$0xff]  ;;  %v10017_v58 = vadd.f32 %v2931_v4, %v12057_v3  ;;  %v12059_v52 = vld [vmem:[#allocation34_spill] sm:$0xff]  ;;  %v2984_v27 = vld [vmem:[#allocation3 + $0x1e8] sm:$0xff]  ;;  %v2995_v13 = vunpack.c.l.bf16 %v2979_v44  ;;  %v2996_v41 = vunpack.c.h.bf16 %v2979_v44  ;;  %v2997_v6 = vunpack.c.l.bf16 %v2980_v5 }
 0x2d6   : > { %12009 = vst [vmem:[#allocation41_spill] sm:$0xff] %v9939_v18  ;;  %v10014_v61 = vadd.f32 %v2925_v20, %v12055_v57  ;;  %v10020_v35 = vadd.f32 %v2937_v23, %v12059_v52  ;;  %v2983_v42 = vld [vmem:[#allocation3 + $0x1e0] sm:$0xff]  ;;  %v12061_v48 = vld [vmem:[#allocation47_spill] sm:$0xff]  ;;  %v2985_v37 = vld [vmem:[#allocation3 + $0x1f0] sm:$0xff]  ;;  %v2998_v20 = vunpack.c.h.bf16 %v2980_v5  ;;  %v2999_v33 = vunpack.c.l.bf16 %v2981_v30 }
 0x2d7   : > { %12011 = vst [vmem:[#allocation60_spill] sm:$0xff] %v9943_v39  ;;  %v10023_v22 = vadd.f32 %v2943_v19, %v12061_v48  ;;  %v2986_v11 = vld [vmem:[#allocation3 + $0x1f8] sm:$0xff]  ;;  %v2987_v1 = vld [vmem:[#allocation3 + $0x3c0] sm:$0xff]  ;;  %v2988_v51 = vld [vmem:[#allocation3 + $0x3c8] sm:$0xff]  ;;  %v3000_v8 = vunpack.c.h.bf16 %v2981_v30  ;;  %v3001_v4 = vunpack.c.l.bf16 %v2982_v60  ;;  %v3002_v23 = vunpack.c.h.bf16 %v2982_v60 }
 0x2d8   : > { %12013 = vst [vmem:[#allocation23_spill] sm:$0xff] %v9947_v17  ;;  %v2989_v29 = vld [vmem:[#allocation3 + $0x3d0] sm:$0xff]  ;;  %v2990_v31 = vld [vmem:[#allocation3 + $0x3d8] sm:$0xff]  ;;  %v3003_v49 = vunpack.c.l.bf16 %v2983_v42  ;;  %v3004_v53 = vunpack.c.h.bf16 %v2983_v42  ;;  %v3005_v40 = vunpack.c.l.bf16 %v2984_v27  ;;  %v2991_v36 = vld [vmem:[#allocation3 + $0x3e0] sm:$0xff]  ;;  %v3006_v19 = vunpack.c.h.bf16 %v2984_v27 }
 0x2d9   : > { %12015 = vst [vmem:[#allocation43_spill] sm:$0xff] %v9951_v46  ;;  %v3007_v0 = vunpack.c.l.bf16 %v2985_v37  ;;  %v3008_v12 = vunpack.c.h.bf16 %v2985_v37  ;;  %v3009_v50 = vunpack.c.l.bf16 %v2986_v11  ;;  %v2992_v57 = vld [vmem:[#allocation3 + $0x3e8] sm:$0xff]  ;;  %v3010_v44 = vunpack.c.h.bf16 %v2986_v11  ;;  %v2993_v5 = vld [vmem:[#allocation3 + $0x3f0] sm:$0xff] }
 0x2da   : > { %12017 = vst [vmem:[#allocation44_spill] sm:$0xff] %v9955_v55  ;;  %v3011_v3 = vunpack.c.l.bf16 %v2987_v1  ;;  %v3012_v52 = vunpack.c.h.bf16 %v2987_v1  ;;  %v3013_v48 = vunpack.c.l.bf16 %v2988_v51  ;;  %v3014_v30 = vunpack.c.h.bf16 %v2988_v51 }
 0x2db   : > { %12019 = vst [vmem:[#allocation45_spill] sm:$0xff] %v9959_v16  ;;  %v3018_v60 = vunpack.c.h.bf16 %v2990_v31  ;;  %v3020_v42 = vunpack.c.h.bf16 %v2991_v36  ;;  %v3022_v27 = vunpack.c.h.bf16 %v2992_v57  ;;  %v10025_v37 = vmax.f32 %v2996_v41, 1e-06 }
 0x2dc   : > { %12021 = vst [vmem:[#allocation49_spill] sm:$0xff] %v9963_v26  ;;  %v10029_v1 = vmax.f32 %v2998_v20, 1e-06  ;;  %v10031_v51 = vmax.f32 %v2999_v33, 1e-06 }
 0x2dd   : > { %12024 = vst [vmem:[#allocation50_spill] sm:$0xff] %v9967_v34  ;;  %v10047_v20 = vmax.f32 %v3007_v0, 1e-06  ;;  %v10051_v33 = vmax.f32 %v3008_v12, 1e-06 }
 0x2de   : > { %12027 = vst [vmem:[#allocation51_spill] sm:$0xff] %v9971_v28  ;;  %v10067_v0 = vmax.f32 %v3014_v30, 1e-06 }
 0x2df   : > { %12030 = vst [vmem:[#allocation55_spill] sm:$0xff] %v9975_v54 }
 0x2e0   : > { %12032 = vst [vmem:[#allocation56_spill] sm:$0xff] %v9978_v9  ;;  %v3078_v26 = vmul.f32 %v10067_v0, %v10067_v0 }
 0x2e1   : > { %12034 = vst [vmem:[#allocation52_spill] sm:$0xff] %v9981_v25 }
 0x2e2   : > { %12036 = vst [vmem:[#allocation57_spill] sm:$0xff] %v9984_v59 }
 0x2e3   : > { %12038 = vst [vmem:[#allocation37_spill] sm:$0xff] %v9987_v45  ;;  %v10083_v45 = vmax.f32 %v3020_v42, 1e-06 }
 0x2e4   : > { %12040 = vst [vmem:[#allocation26_spill] sm:$0xff] %v9990_v10 }
 0x2e5   : > { %12042 = vst [vmem:[#allocation53_spill] sm:$0xff] %v9993_v62  ;;  %v3084_v14 = vmul.f32 %v10083_v45, %v10083_v45 }
 0x2e6   : > { %12044 = vst [vmem:[#allocation27_spill] sm:$0xff] %v9996_v2  ;;  %v10027_v2 = vmax.f32 %v2997_v6, 1e-06  ;;  %v10045_v6 = vmax.f32 %v3006_v19, 1e-06  ;;  %v3062_v19 = vmul.f32 %v10029_v1, %v10029_v1 }
 0x2e7   : > { %12046 = vst [vmem:[#allocation58_spill] sm:$0xff] %v9999_v7  ;;  %v3024_v7 = vunpack.c.h.bf16 %v2993_v5 }
 0x2e8   : > { %12048 = vst [vmem:[#allocation28_spill] sm:$0xff] %v10002_v56  ;;  %v3023_v56 = vunpack.c.l.bf16 %v2993_v5  ;;  %v10043_v5 = vmax.f32 %v3005_v40, 1e-06  ;;  %v10063_v40 = vmax.f32 %v3013_v48, 1e-06 }
 0x2e9   : > { %12050 = vst [vmem:[#allocation40_spill] sm:$0xff] %v10005_v63  ;;  %v3021_v63 = vunpack.c.l.bf16 %v2992_v57  ;;  %v10041_v57 = vmax.f32 %v3004_v53, 1e-06  ;;  %v10061_v53 = vmax.f32 %v3012_v52, 1e-06 }
 0x2ea   : > { %12052 = vst [vmem:[#allocation29_spill] sm:$0xff] %v10008_v21  ;;  %v3027_v21 = vmax.f32 %v2995_v13, 1e-06  ;;  %v10039_v13 = vmax.f32 %v3003_v49, 1e-06  ;;  %v3077_v34 = vmul.f32 %v10063_v40, %v10063_v40 }
 0x2eb   : > { %12054 = vst [vmem:[#allocation59_spill] sm:$0xff] %v10011_v38  ;;  %v3019_v38 = vunpack.c.l.bf16 %v2991_v36  ;;  %v10037_v36 = vmax.f32 %v3002_v23, 1e-06  ;;  %v3061_v23 = vmul.f32 %v10027_v2, %v10027_v2  ;;  %v10059_v49 = vmax.f32 %v3011_v3, 1e-06 }
 0x2ec   : > { %12056 = vst [vmem:[#allocation30_spill] sm:$0xff] %v10014_v61  ;;  %v3017_v61 = vunpack.c.l.bf16 %v2990_v31  ;;  %v10035_v31 = vmax.f32 %v3001_v4, 1e-06  ;;  %v3059_v41 = vmul.f32 %v3027_v21, %v3027_v21  ;;  %v10055_v4 = vmax.f32 %v3010_v44, 1e-06 }
 0x2ed   : > { %12058 = vst [vmem:[#allocation24_spill] sm:$0xff] %v10017_v58  ;;  %v3016_v58 = vunpack.c.h.bf16 %v2989_v29  ;;  %v3063_v44 = vmul.f32 %v10031_v51, %v10031_v51  ;;  %v10077_v3 = vmax.f32 %v3018_v60, 1e-06  ;;  %v10079_v52 = vmax.f32 %v3019_v38, 1e-06 }
 0x2ee   : > { %12060 = vst [vmem:[#allocation31_spill] sm:$0xff] %v10020_v35  ;;  %v3015_v35 = vunpack.c.l.bf16 %v2989_v29  ;;  %v10033_v29 = vmax.f32 %v3000_v8, 1e-06  ;;  %v10053_v8 = vmax.f32 %v3009_v50, 1e-06  ;;  %v3066_v38 = vmul.f32 %v10037_v36, %v10037_v36 }
 0x2ef   : > { %12062 = vst [vmem:[#allocation25_spill] sm:$0xff] %v10023_v22  ;;  %v2994_v22 = vld [vmem:[#allocation3 + $0x3f8] sm:$0xff]  ;;  %v10071_v50 = vmax.f32 %v3016_v58, 1e-06  ;;  %v10075_v10 = vmax.f32 %v3017_v61, 1e-06  ;;  %v3065_v58 = vmul.f32 %v10035_v31, %v10035_v31  ;;  %v3068_v42 = vmul.f32 %v10041_v57, %v10041_v57 }
 0x2f0   : > { %v3025_v11 = vunpack.c.l.bf16 %v2994_v22  ;;  %v3026_v62 = vunpack.c.h.bf16 %v2994_v22  ;;  %v3060_v22 = vmul.f32 %v10025_v37, %v10025_v37  ;;  %v10069_v12 = vmax.f32 %v3015_v35, 1e-06  ;;  %12063 = vst [vmem:[#allocation32_spill] sm:$0xff] %v10079_v52 }
 0x2f1   : > { %v3064_v48 = vmul.f32 %v10033_v29, %v10033_v29  ;;  %12064 = vst [vmem:[#allocation42_spill] sm:$0xff] %v10083_v45  ;;  %v10085_v30 = vmax.f32 %v3021_v63, 1e-06  ;;  %v10087_v35 = vmax.f32 %v3022_v27, 1e-06  ;;  %v3067_v63 = vmul.f32 %v10039_v13, %v10039_v13 }
 0x2f2   : > { %v10091_v59 = vmax.f32 %v3023_v56, 1e-06  ;;  %v10093_v61 = vmax.f32 %v3024_v7, 1e-06  ;;  %v10095_v60 = vmax.f32 %v3025_v11, 1e-06  ;;  %v3069_v27 = vmul.f32 %v10043_v5, %v10043_v5 }
 0x2f3   : > { %12065 = vst [vmem:[#allocation33_spill] sm:$0xff] %v10085_v30  ;;  %v10099_v25 = vmax.f32 %v3026_v62, 1e-06  ;;  %v3070_v7 = vmul.f32 %v10045_v6, %v10045_v6  ;;  %v3071_v56 = vmul.f32 %v10047_v20, %v10047_v20  ;;  %v3072_v11 = vmul.f32 %v10051_v33, %v10051_v33 }
 0x2f4   : > { %12066 = vst [vmem:[#allocation46_spill] sm:$0xff] %v10087_v35  ;;  %v3073_v62 = vmul.f32 %v10053_v8, %v10053_v8  ;;  %v3074_v9 = vmul.f32 %v10055_v4, %v10055_v4  ;;  %v3075_v54 = vmul.f32 %v10059_v49, %v10059_v49  ;;  %v3076_v28 = vmul.f32 %v10061_v53, %v10061_v53 }
 0x2f5   : > { %12067 = vst [vmem:[#allocation34_spill] sm:$0xff] %v10091_v59  ;;  %v3079_v16 = vmul.f32 %v10069_v12, %v10069_v12  ;;  %v3080_v55 = vmul.f32 %v10071_v50, %v10071_v50  ;;  %v3091_v46 = vmul.f32 %v3059_v41, %v3027_v21  ;;  %v3081_v17 = vmul.f32 %v10075_v10, %v10075_v10 }
 0x2f6   : > { %12068 = vst [vmem:[#allocation47_spill] sm:$0xff] %v10093_v61  ;;  %v3082_v39 = vmul.f32 %v10077_v3, %v10077_v3  ;;  %v3083_v18 = vmul.f32 %v10079_v52, %v10079_v52  ;;  %v3085_v47 = vmul.f32 %v10085_v30, %v10085_v30  ;;  %v3086_v43 = vmul.f32 %v10087_v35, %v10087_v35 }
 0x2f7   : > { %12069 = vst [vmem:[#allocation61_spill] sm:$0xff] %v10095_v60  ;;  %v3087_v21 = vmul.f32 %v10091_v59, %v10091_v59  ;;  %v3092_v41 = vmul.f32 %v3060_v22, %v10025_v37  ;;  %v3088_v24 = vmul.f32 %v10093_v61, %v10093_v61  ;;  %v3089_v15 = vmul.f32 %v10095_v60, %v10095_v60 }
 0x2f8   : > { %v3093_v32 = vmul.f32 %v3061_v23, %v10027_v2  ;;  %v3094_v45 = vmul.f32 %v3062_v19, %v10029_v1  ;;  %v3090_v30 = vmul.f32 %v10099_v25, %v10099_v25  ;;  %v3095_v35 = vmul.f32 %v3063_v44, %v10031_v51 }
 0x2f9   : > { %v3096_v52 = vmul.f32 %v3064_v48, %v10033_v29  ;;  %v3123_v59 = vrot.slane %v3091_v46, 4  ;;  %v3097_v37 = vmul.f32 %v3065_v58, %v10035_v31  ;;  %v3098_v22 = vmul.f32 %v3066_v38, %v10037_v36 }
 0x2fa   : > { %v3099_v61 = vmul.f32 %v3067_v63, %v10039_v13  ;;  %v10158_v60 = vmul.f32 %v3068_v42, %v10041_v57  ;;  %v10161_v2 = vmul.f32 %v3069_v27, %v10043_v5  ;;  %v10164_v1 = vmul.f32 %v3070_v7, %v10045_v6 }
 0x2fb   : > { %v10167_v51 = vmul.f32 %v3071_v56, %v10047_v20  ;;  %v3129_v29 = vrot.slane %v3092_v41, 4  ;;  %v10170_v23 = vmul.f32 %v3072_v11, %v10051_v33  ;;  %v10173_v31 = vmul.f32 %v3073_v62, %v10053_v8 }
 0x2fc   : > { %v3135_v36 = vrot.slane %v3093_v32, 4  ;;  %v3141_v13 = vrot.slane %v3094_v45, 4  ;;  %v10176_v57 = vmul.f32 %v3074_v9, %v10055_v4  ;;  %v10179_v5 = vmul.f32 %v3075_v54, %v10059_v49  ;;  %v12070_v49 = vld [vmem:[#allocation32_spill] sm:$0xff] }
 0x2fd   : > { %v3124_v6 = vadd.f32 %v3123_v59, %v3091_v46  ;;  %v3147_v19 = vrot.slane %v3095_v35, 4  ;;  %v10182_v20 = vmul.f32 %v3076_v28, %v10061_v53  ;;  %v10185_v44 = vmul.f32 %v3077_v34, %v10063_v40 }
 0x2fe   : > { %v3153_v33 = vrot.slane %v3096_v52, 4  ;;  %v3159_v48 = vrot.slane %v3097_v37, 4  ;;  %v10188_v8 = vmul.f32 %v3078_v26, %v10067_v0  ;;  %v10191_v58 = vmul.f32 %v3079_v16, %v10069_v12  ;;  %v12071_v16 = vld [vmem:[#allocation42_spill] sm:$0xff]  ;;  %v12072_v12 = vld [vmem:[#allocation33_spill] sm:$0xff] }
 0x2ff   : > { %v3130_v9 = vadd.f32 %v3129_v29, %v3092_v41  ;;  %v3165_v4 = vrot.slane %v3098_v22, 4  ;;  %v10194_v54 = vmul.f32 %v3080_v55, %v10071_v50  ;;  %v10197_v46 = vmul.f32 %v3081_v17, %v10075_v10  ;;  %v12073_v17 = vld [vmem:[#allocation46_spill] sm:$0xff]  ;;  %v12076_v27 = vld [vmem:[#allocation61_spill] sm:$0xff] }
 0x300   : > { %v3136_v28 = vadd.f32 %v3135_v36, %v3093_v32  ;;  %v3142_v59 = vadd.f32 %v3141_v13, %v3094_v45  ;;  %v10200_v34 = vmul.f32 %v3082_v39, %v10077_v3  ;;  %v10203_v53 = vmul.f32 %v3083_v18, %v12070_v49  ;;  %v12074_v32 = vld [vmem:[#allocation34_spill] sm:$0xff]  ;;  %v12075_v18 = vld [vmem:[#allocation47_spill] sm:$0xff] }
 0x301   : > { %v3125_v26 = vrot.slane %v3124_v6, 2  ;;  %v3148_v40 = vadd.f32 %v3147_v19, %v3095_v35  ;;  %v10206_v0 = vmul.f32 %v3084_v14, %v12071_v16  ;;  %v10209_v38 = vmul.f32 %v3085_v47, %v12072_v12 }
 0x302   : > { %v3154_v55 = vadd.f32 %v3153_v33, %v3096_v52  ;;  %v3160_v50 = vadd.f32 %v3159_v48, %v3097_v37  ;;  %v10212_v10 = vmul.f32 %v3086_v43, %v12073_v17  ;;  %v10215_v45 = vmul.f32 %v3087_v21, %v12074_v32 }
 0x303   : > { %v3131_v39 = vrot.slane %v3130_v9, 2  ;;  %v3166_v3 = vadd.f32 %v3165_v4, %v3098_v22  ;;  %v10218_v63 = vmul.f32 %v3088_v24, %v12075_v18  ;;  %v3137_v35 = vrot.slane %v3136_v28, 2 }
 0x304   : > { %v3143_v42 = vrot.slane %v3142_v59, 2  ;;  %v3171_v14 = vrot.slane %v3099_v61, 4  ;;  %v10221_v7 = vmul.f32 %v3089_v15, %v12076_v27  ;;  %v10224_v47 = vmul.f32 %v3090_v30, %v10099_v25 }
 0x305   : > { %v3126_v52 = vadd.f32 %v3125_v26, %v3124_v6  ;;  %v3149_v43 = vrot.slane %v3148_v40, 2  ;;  %v3155_v56 = vrot.slane %v3154_v55, 2  ;;  %v3161_v11 = vrot.slane %v3160_v50, 2 }
 0x306   : > { %v3177_v62 = vrot.slane %v10158_v60, 4  ;;  %v3183_v21 = vrot.slane %v10161_v2, 4  ;;  %v3132_v41 = vadd.f32 %v3131_v39, %v3130_v9  ;;  %v3167_v24 = vrot.slane %v3166_v3, 2 }
 0x307   : > { %v3189_v37 = vrot.slane %v10164_v1, 4  ;;  %v3195_v22 = vrot.slane %v10167_v51, 4  ;;  %v3138_v29 = vadd.f32 %v3137_v35, %v3136_v28  ;;  %v3144_v15 = vadd.f32 %v3143_v42, %v3142_v59 }
 0x308   : > { %v3172_v36 = vadd.f32 %v3171_v14, %v3099_v61  ;;  %v3201_v25 = vrot.slane %v10170_v23, 4  ;;  %v3127_v30 = vrot.slane %v3126_v52, 1  ;;  %v3150_v13 = vadd.f32 %v3149_v43, %v3148_v40 }
 0x309   : > { %v3207_v6 = vrot.slane %v10173_v31, 4  ;;  %v3213_v19 = vrot.slane %v10176_v57, 4  ;;  %v3156_v33 = vadd.f32 %v3155_v56, %v3154_v55  ;;  %v3162_v48 = vadd.f32 %v3161_v11, %v3160_v50 }
 0x30a   : > { %v3178_v9 = vadd.f32 %v3177_v62, %v10158_v60  ;;  %v3184_v4 = vadd.f32 %v3183_v21, %v10161_v2  ;;  %v3133_v49 = vrot.slane %v3132_v41, 1  ;;  %v3168_v26 = vadd.f32 %v3167_v24, %v3166_v3 }
 0x30b   : > { %v3190_v28 = vadd.f32 %v3189_v37, %v10164_v1  ;;  %v3196_v61 = vadd.f32 %v3195_v22, %v10167_v51  ;;  %v3139_v59 = vrot.slane %v3138_v29, 1  ;;  %v3145_v16 = vrot.slane %v3144_v15, 1 }
 0x30c   : > { %v3173_v12 = vrot.slane %v3172_v36, 2  ;;  %v3202_v40 = vadd.f32 %v3201_v25, %v10170_v23  ;;  %v10238_v17 = vadd.f32 %v3127_v30, %v3126_v52  ;;  %v3151_v32 = vrot.slane %v3150_v13, 1 }
 0x30d   : > { %v3208_v55 = vadd.f32 %v3207_v6, %v10173_v31  ;;  %v3214_v60 = vadd.f32 %v3213_v19, %v10176_v57  ;;  %v3157_v50 = vrot.slane %v3156_v33, 1  ;;  %v3163_v2 = vrot.slane %v3162_v48, 1 }
 0x30e   : > { %v3179_v39 = vrot.slane %v3178_v9, 2  ;;  %v3185_v3 = vrot.slane %v3184_v4, 2  ;;  %v10242_v18 = vadd.f32 %v3133_v49, %v3132_v41  ;;  %v3169_v1 = vrot.slane %v3168_v26, 1 }
 0x30f   : > { %v3191_v51 = vrot.slane %v3190_v28, 2  ;;  %v3197_v35 = vrot.slane %v3196_v61, 2  ;;  %v10244_v42 = vadd.f32 %v3139_v59, %v3138_v29  ;;  %v10246_v14 = vadd.f32 %v3145_v16, %v3144_v15 }
 0x310   : > { %v3174_v23 = vadd.f32 %v3173_v12, %v3172_v36  ;;  %v3203_v27 = vrot.slane %v3202_v40, 2  ;;  %v10248_v52 = vadd.f32 %v3151_v32, %v3150_v13  ;;  %v3209_v31 = vrot.slane %v3208_v55, 2 }
 0x311   : > { %v3215_v43 = vrot.slane %v3214_v60, 2  ;;  %v3219_v57 = vrot.slane %v10179_v5, 4  ;;  %v10251_v56 = vadd.f32 %v3157_v50, %v3156_v33  ;;  %v10253_v11 = vadd.f32 %v3163_v2, %v3162_v48 }
 0x312   : > { %v3180_v62 = vadd.f32 %v3179_v39, %v3178_v9  ;;  %v3186_v21 = vadd.f32 %v3185_v3, %v3184_v4  ;;  %v10255_v41 = vadd.f32 %v3169_v1, %v3168_v26  ;;  %v3192_v24 = vadd.f32 %v3191_v51, %v3190_v28 }
 0x313   : > { %v3198_v37 = vadd.f32 %v3197_v35, %v3196_v61  ;;  %v3225_v22 = vrot.slane %v10182_v20, 4  ;;  %v3175_v29 = vrot.slane %v3174_v23, 1  ;;  %v3204_v15 = vadd.f32 %v3203_v27, %v3202_v40 }
 0x314   : > { %v3231_v36 = vrot.slane %v10185_v44, 4  ;;  %v3237_v25 = vrot.slane %v10188_v8, 4  ;;  %v3210_v30 = vadd.f32 %v3209_v31, %v3208_v55  ;;  %v3216_v13 = vadd.f32 %v3215_v43, %v3214_v60 }
 0x315   : > { %v3220_v6 = vadd.f32 %v3219_v57, %v10179_v5  ;;  %v3243_v19 = vrot.slane %v10191_v58, 4  ;;  %v3181_v33 = vrot.slane %v3180_v62, 1  ;;  %v3187_v48 = vrot.slane %v3186_v21, 1 }
 0x316   : > { %v3249_v9 = vrot.slane %v10194_v54, 4  ;;  %v3255_v4 = vrot.slane %v10197_v46, 4  ;;  %v3193_v49 = vrot.slane %v3192_v24, 1  ;;  %v3199_v26 = vrot.slane %v3198_v37, 1 }
 0x317   : > { %v3226_v28 = vadd.f32 %v3225_v22, %v10182_v20  ;;  %v3261_v61 = vrot.slane %v10200_v34, 4  ;;  %v10266_v59 = vadd.f32 %v3175_v29, %v3174_v23  ;;  %v3205_v16 = vrot.slane %v3204_v15, 1 }
 0x318   : > { %v3232_v12 = vadd.f32 %v3231_v36, %v10185_v44  ;;  %v3238_v5 = vadd.f32 %v3237_v25, %v10188_v8  ;;  %v3211_v40 = vrot.slane %v3210_v30, 1  ;;  %v3217_v32 = vrot.slane %v3216_v13, 1 }
 0x319   : > { %v3221_v55 = vrot.slane %v3220_v6, 2  ;;  %v3244_v60 = vadd.f32 %v3243_v19, %v10191_v58  ;;  %v10271_v50 = vadd.f32 %v3181_v33, %v3180_v62  ;;  %v10273_v2 = vadd.f32 %v3187_v48, %v3186_v21 }
 0x31a   : > { %v3250_v20 = vadd.f32 %v3249_v9, %v10194_v54  ;;  %v3256_v39 = vadd.f32 %v3255_v4, %v10197_v46  ;;  %v10277_v3 = vadd.f32 %v3193_v49, %v3192_v24  ;;  %v10279_v1 = vadd.f32 %v3199_v26, %v3198_v37 }
 0x31b   : > { %v3227_v44 = vrot.slane %v3226_v28, 2  ;;  %v3262_v8 = vadd.f32 %v3261_v61, %v10200_v34  ;;  %v10282_v51 = vadd.f32 %v3205_v16, %v3204_v15  ;;  %v3233_v35 = vrot.slane %v3232_v12, 2 }
 0x31c   : > { %v3239_v23 = vrot.slane %v3238_v5, 2  ;;  %v3267_v58 = vrot.slane %v10203_v53, 4  ;;  %v10285_v27 = vadd.f32 %v3211_v40, %v3210_v30  ;;  %v10287_v31 = vadd.f32 %v3217_v32, %v3216_v13 }
 0x31d   : > { %v3222_v54 = vadd.f32 %v3221_v55, %v3220_v6  ;;  %v3245_v43 = vrot.slane %v3244_v60, 2  ;;  %v3251_v46 = vrot.slane %v3250_v20, 2  ;;  %v3257_v57 = vrot.slane %v3256_v39, 2 }
 0x31e   : > { %v3273_v62 = vrot.slane %v10206_v0, 4  ;;  %v3279_v21 = vrot.slane %v10209_v38, 4  ;;  %v3228_v24 = vadd.f32 %v3227_v44, %v3226_v28  ;;  %v3263_v34 = vrot.slane %v3262_v8, 2 }
 0x31f   : > { %v3285_v37 = vrot.slane %v10212_v10, 4  ;;  %v3291_v22 = vrot.slane %v10215_v45, 4  ;;  %v3234_v29 = vadd.f32 %v3233_v35, %v3232_v12  ;;  %v3240_v15 = vadd.f32 %v3239_v23, %v3238_v5 }
 0x320   : > { %v3268_v36 = vadd.f32 %v3267_v58, %v10203_v53  ;;  %v3297_v25 = vrot.slane %v10218_v63, 4  ;;  %v3223_v30 = vrot.slane %v3222_v54, 1  ;;  %v3246_v13 = vadd.f32 %v3245_v43, %v3244_v60 }
 0x321   : > { %v3303_v6 = vrot.slane %v10221_v7, 4  ;;  %v3309_v19 = vrot.slane %v10224_v47, 4  ;;  %v3252_v33 = vadd.f32 %v3251_v46, %v3250_v20  ;;  %v3258_v48 = vadd.f32 %v3257_v57, %v3256_v39 }
 0x322   : > { %v3274_v9 = vadd.f32 %v3273_v62, %v10206_v0  ;;  %v3280_v4 = vadd.f32 %v3279_v21, %v10209_v38  ;;  %v3229_v49 = vrot.slane %v3228_v24, 1  ;;  %v3264_v26 = vadd.f32 %v3263_v34, %v3262_v8 }
 0x323   : > { %v3286_v28 = vadd.f32 %v3285_v37, %v10212_v10  ;;  %v3292_v53 = vadd.f32 %v3291_v22, %v10215_v45  ;;  %v3235_v61 = vrot.slane %v3234_v29, 1  ;;  %v3241_v16 = vrot.slane %v3240_v15, 1 }
 0x324   : > { %v3269_v12 = vrot.slane %v3268_v36, 2  ;;  %v3298_v5 = vadd.f32 %v3297_v25, %v10218_v63  ;;  %v10302_v40 = vadd.f32 %v3223_v30, %v3222_v54  ;;  %v3247_v32 = vrot.slane %v3246_v13, 1 }
 0x325   : > { %v3304_v55 = vadd.f32 %v3303_v6, %v10221_v7  ;;  %v3310_v0 = vadd.f32 %v3309_v19, %v10224_v47  ;;  %v3253_v60 = vrot.slane %v3252_v33, 1  ;;  %v3259_v38 = vrot.slane %v3258_v48, 1  ;;  %v12077_v47 = vld [vmem:[#allocation35_spill] sm:$0xff]  ;;  %v12080_v6 = vld [vmem:[#allocation38_spill] sm:$0xff] }
 0x326   : > { %v3275_v20 = vrot.slane %v3274_v9, 2  ;;  %v3281_v39 = vrot.slane %v3280_v4, 2  ;;  %v10306_v44 = vadd.f32 %v3229_v49, %v3228_v24  ;;  %v3265_v10 = vrot.slane %v3264_v26, 1  ;;  %v12078_v24 = vld [vmem:[#allocation48_spill] sm:$0xff] }
 0x327   : > { %v3287_v45 = vrot.slane %v3286_v28, 2  ;;  %v3293_v8 = vrot.slane %v3292_v53, 2  ;;  %v10308_v35 = vadd.f32 %v3235_v61, %v3234_v29  ;;  %v10310_v23 = vadd.f32 %v3241_v16, %v3240_v15  ;;  %v12079_v15 = vld [vmem:[#allocation36_spill] sm:$0xff]  ;;  %v12083_v16 = vld [vmem:[#allocation41_spill] sm:$0xff] }
 0x328   : > { %v3270_v63 = vadd.f32 %v3269_v12, %v3268_v36  ;;  %v3299_v58 = vrot.slane %v3298_v5, 2  ;;  %v10312_v54 = vadd.f32 %v3247_v32, %v3246_v13  ;;  %v3305_v7 = vrot.slane %v3304_v55, 2 }
 0x329   : > { %v3311_v43 = vrot.slane %v3310_v0, 2  ;;  %v3315_v46 = vadd.f32 %v10238_v17, %v12077_v47  ;;  %v10316_v57 = vadd.f32 %v3253_v60, %v3252_v33  ;;  %v3276_v62 = vadd.f32 %v3275_v20, %v3274_v9  ;;  %v12081_v9 = vld [vmem:[#allocation54_spill] sm:$0xff] }
 0x32a   : > { %v3282_v21 = vadd.f32 %v3281_v39, %v3280_v4  ;;  %v3316_v34 = vadd.f32 %v10242_v18, %v12078_v24  ;;  %v10320_v37 = vadd.f32 %v3259_v38, %v3258_v48  ;;  %v3288_v22 = vadd.f32 %v3287_v45, %v3286_v28  ;;  %v12082_v28 = vld [vmem:[#allocation39_spill] sm:$0xff]  ;;  %v12089_v24 = vld [vmem:[#allocation49_spill] sm:$0xff] }
 0x32b   : > { %v3294_v29 = vadd.f32 %v3293_v8, %v3292_v53  ;;  %v3317_v36 = vadd.f32 %v10244_v42, %v12079_v15  ;;  %v10324_v25 = vadd.f32 %v3265_v10, %v3264_v26  ;;  %v3271_v30 = vrot.slane %v3270_v63, 1  ;;  %v12085_v38 = vld [vmem:[#allocation23_spill] sm:$0xff] }
 0x32c   : > { %v3300_v13 = vadd.f32 %v3299_v58, %v3298_v5  ;;  %v3318_v17 = vadd.f32 %v10246_v14, %v12080_v6  ;;  %v3306_v19 = vadd.f32 %v3305_v7, %v3304_v55  ;;  %v3312_v33 = vadd.f32 %v3311_v43, %v3310_v0  ;;  %v12084_v55 = vld [vmem:[#allocation60_spill] sm:$0xff]  ;;  %v12086_v10 = vld [vmem:[#allocation43_spill] sm:$0xff]  ;;  %v12088_v43 = vld [vmem:[#allocation45_spill] sm:$0xff] }
 0x32d   : > { %v3319_v4 = vadd.f32 %v10248_v52, %v12081_v9  ;;  %v3347_v18 = vmul.f32 0.015625, %v3315_v46  ;;  %v3277_v48 = vrot.slane %v3276_v62, 1  ;;  %v3283_v49 = vrot.slane %v3282_v21, 1  ;;  %v12087_v58 = vld [vmem:[#allocation44_spill] sm:$0xff] }
 0x32e   : > { %v3320_v53 = vadd.f32 %v10251_v56, %v12082_v28  ;;  %v3348_v61 = vmul.f32 0.015625, %v3316_v34  ;;  %v3289_v42 = vrot.slane %v3288_v22, 1  ;;  %v3295_v26 = vrot.slane %v3294_v29, 1 }
 0x32f   : > { %v3321_v12 = vadd.f32 %v10253_v11, %v12083_v16  ;;  %v3349_v5 = vmul.f32 0.015625, %v3317_v36  ;;  %v3272_v32 = vadd.f32 %v3271_v30, %v3270_v63  ;;  %v3301_v14 = vrot.slane %v3300_v13, 1  ;;  %v12090_v36 = vld [vmem:[#allocation50_spill] sm:$0xff] }
 0x330   : > { %v3322_v0 = vadd.f32 %v10255_v41, %v12084_v55  ;;  %v3350_v60 = vmul.f32 0.015625, %v3318_v17  ;;  %v3307_v52 = vrot.slane %v3306_v19, 1  ;;  %v3323_v20 = vadd.f32 %v10266_v59, %v12085_v38 }
 0x331   : > { %v3351_v39 = vmul.f32 0.015625, %v3319_v4  ;;  %7570 = vlog2.f32 %v3347_v18  ;;  %v3313_v56 = vrot.slane %v3312_v33, 1  ;;  %v3324_v45 = vadd.f32 %v10271_v50, %v12086_v10  ;;  %v12092_v4 = vld [vmem:[#allocation55_spill] sm:$0xff] }
 0x332   : > { %v3352_v8 = vmul.f32 0.015625, %v3320_v53  ;;  %7572 = vlog2.f32 %v3348_v61  ;;  %v3278_v11 = vadd.f32 %v3277_v48, %v3276_v62  ;;  %v3325_v63 = vadd.f32 %v10273_v2, %v12087_v58  ;;  %v12094_v53 = vld [vmem:[#allocation52_spill] sm:$0xff]  ;;  %v12095_v61 = vld [vmem:[#allocation57_spill] sm:$0xff] }
 0x333   : > { %v3353_v7 = vmul.f32 0.015625, %v3321_v12  ;;  %7574 = vlog2.f32 %v3349_v5  ;;  %v3284_v41 = vadd.f32 %v3283_v49, %v3282_v21  ;;  %v3326_v47 = vadd.f32 %v10277_v3, %v12088_v43  ;;  %v12091_v21 = vld [vmem:[#allocation51_spill] sm:$0xff]  ;;  %v12093_v49 = vld [vmem:[#allocation56_spill] sm:$0xff]  ;;  %v12097_v12 = vld [vmem:[#allocation26_spill] sm:$0xff] }
 0x334   : > { %v3354_v46 = vmul.f32 0.015625, %v3322_v0  ;;  %7576 = vlog2.f32 %v3350_v60  ;;  %v3290_v59 = vadd.f32 %v3289_v42, %v3288_v22  ;;  %v3327_v34 = vadd.f32 %v10279_v1, %v12089_v24  ;;  %v12099_v0 = vld [vmem:[#allocation27_spill] sm:$0xff] }
 0x335   : > { %v3355_v15 = vmul.f32 0.015625, %v3323_v20  ;;  %7578 = vlog2.f32 %v3351_v39  ;;  %v3296_v50 = vadd.f32 %v3295_v26, %v3294_v29  ;;  %v3328_v62 = vadd.f32 %v10282_v51, %v12090_v36  ;;  %v12101_v20 = vld [vmem:[#allocation28_spill] sm:$0xff] }
 0x336   : > { %v3356_v30 = vmul.f32 0.015625, %v3324_v45  ;;  %7580 = vlog2.f32 %v3352_v8  ;;  %v3302_v6 = vadd.f32 %v3301_v14, %v3300_v13  ;;  %v3329_v17 = vadd.f32 %v10285_v27, %v12091_v21  ;;  %v12098_v14 = vld [vmem:[#allocation53_spill] sm:$0xff] }
 0x337   : > { %v7571_v2 = vpop.eup %7570  ;;  %v3357_v3 = vmul.f32 0.015625, %v3325_v63  ;;  %7582 = vlog2.f32 %v3353_v7  ;;  %v3308_v22 = vadd.f32 %v3307_v52, %v3306_v19  ;;  %v3330_v1 = vadd.f32 %v10287_v31, %v12092_v4  ;;  %v12096_v31 = vld [vmem:[#allocation37_spill] sm:$0xff]  ;;  %v12100_v52 = vld [vmem:[#allocation58_spill] sm:$0xff]  ;;  %v12104_v63 = vld [vmem:[#allocation59_spill] sm:$0xff] }
 0x338   : > { %v7573_v9 = vpop.eup %7572  ;;  %v3358_v18 = vmul.f32 0.015625, %v3326_v47  ;;  %7584 = vlog2.f32 %v3354_v46  ;;  %v3314_v48 = vadd.f32 %v3313_v56, %v3312_v33  ;;  %v3331_v51 = vadd.f32 %v10302_v40, %v12093_v49  ;;  %v12102_v56 = vld [vmem:[#allocation40_spill] sm:$0xff]  ;;  %v12103_v45 = vld [vmem:[#allocation29_spill] sm:$0xff]  ;;  %v12105_v7 = vld [vmem:[#allocation30_spill] sm:$0xff] }
 0x339   : > { %v7575_v29 = vpop.eup %7574  ;;  %v3359_v28 = vmul.f32 0.015625, %v3327_v34  ;;  %7586 = vlog2.f32 %v3355_v15  ;;  %v3332_v27 = vadd.f32 %v10306_v44, %v12094_v53  ;;  %v3333_v42 = vadd.f32 %v10308_v35, %v12095_v61 }
 0x33a   : > { %v7577_v13 = vpop.eup %7576  ;;  %v3360_v19 = vmul.f32 0.015625, %v3328_v62  ;;  %7588 = vlog2.f32 %v3356_v30  ;;  %v3334_v16 = vadd.f32 %v10310_v23, %v12096_v31  ;;  %v3335_v33 = vadd.f32 %v10312_v54, %v12097_v12 }
 0x33b   : > { %v7579_v26 = vpop.eup %7578  ;;  %v3361_v5 = vmul.f32 0.015625, %v3329_v17  ;;  %7590 = vlog2.f32 %v3357_v3  ;;  %v3336_v55 = vadd.f32 %v10316_v57, %v12098_v14  ;;  %v3337_v44 = vadd.f32 %v10320_v37, %v12099_v0 }
 0x33c   : > { %v7581_v40 = vpop.eup %7580  ;;  %v3362_v60 = vmul.f32 0.015625, %v3330_v1  ;;  %7592 = vlog2.f32 %v3358_v18  ;;  %v3338_v38 = vadd.f32 %v10324_v25, %v12100_v52  ;;  %v3339_v23 = vadd.f32 %v3272_v32, %v12101_v20  ;;  %v12106_v25 = vld [vmem:[#allocation24_spill] sm:$0xff]  ;;  %v12107_v32 = vld [vmem:[#allocation31_spill] sm:$0xff] }
 0x33d   : > { %v7583_v35 = vpop.eup %7582  ;;  %v3363_v39 = vmul.f32 0.015625, %v3331_v51  ;;  %7594 = vlog2.f32 %v3359_v28  ;;  %v3340_v10 = vadd.f32 %v3278_v11, %v12102_v56  ;;  %v3341_v8 = vadd.f32 %v3284_v41, %v12103_v45  ;;  %v12108_v11 = vld [vmem:[#allocation25_spill] sm:$0xff] }
 0x33e   : > { %v7585_v54 = vpop.eup %7584  ;;  %v3364_v58 = vmul.f32 0.015625, %v3332_v27  ;;  %7596 = vlog2.f32 %v3360_v19  ;;  %v3342_v37 = vadd.f32 %v3290_v59, %v12104_v63  ;;  %v3343_v43 = vadd.f32 %v3296_v50, %v12105_v7 }
 0x33f   : > { %v7587_v57 = vpop.eup %7586  ;;  %v3365_v47 = vmul.f32 0.015625, %v3333_v42  ;;  %7598 = vlog2.f32 %v3361_v5  ;;  %v3344_v24 = vadd.f32 %v3302_v6, %v12106_v25  ;;  %v3345_v34 = vadd.f32 %v3308_v22, %v12107_v32 }
 0x340   : > { %v7589_v46 = vpop.eup %7588  ;;  %v3366_v15 = vmul.f32 0.015625, %v3334_v16  ;;  %7600 = vlog2.f32 %v3362_v60  ;;  %v3346_v62 = vadd.f32 %v3314_v48, %v12108_v11  ;;  %v3367_v41 = vmul.f32 0.015625, %v3335_v33 }
 0x341   : > { %v7591_v36 = vpop.eup %7590  ;;  %v3368_v30 = vmul.f32 0.015625, %v3336_v55  ;;  %7602 = vlog2.f32 %v3363_v39  ;;  %v3369_v17 = vmul.f32 0.015625, %v3337_v44  ;;  %v3370_v59 = vmul.f32 0.015625, %v3338_v38 }
 0x342   : > { %v7593_v21 = vpop.eup %7592  ;;  %v3371_v3 = vmul.f32 0.015625, %v3339_v23  ;;  %7604 = vlog2.f32 %v3364_v58  ;;  %v3372_v4 = vmul.f32 0.015625, %v3340_v10  ;;  %v3380_v1 = vmul.f32 0.6931472, %v7571_v2 }
 0x343   : > { %v7595_v50 = vpop.eup %7594  ;;  %v3382_v18 = vmul.f32 0.6931472, %v7573_v9  ;;  %7606 = vlog2.f32 %v3365_v47  ;;  %v3384_v22 = vmul.f32 0.6931472, %v7575_v29  ;;  %v3386_v49 = vmul.f32 0.6931472, %v7577_v13 }
 0x344   : > { %v7597_v6 = vpop.eup %7596  ;;  %v3388_v51 = vmul.f32 0.6931472, %v7579_v26  ;;  %7608 = vlog2.f32 %v3366_v15  ;;  %v3373_v48 = vmul.f32 0.015625, %v3341_v8  ;;  %v3374_v53 = vmul.f32 0.015625, %v3342_v37 }
 0x345   : > { %v7599_v28 = vpop.eup %7598  ;;  %v3390_v27 = vmul.f32 0.6931472, %v7581_v40  ;;  %7610 = vlog2.f32 %v3367_v41  ;;  %v3375_v42 = vmul.f32 0.015625, %v3343_v43  ;;  %v3376_v19 = vmul.f32 0.015625, %v3344_v24 }
 0x346   : > { %v7601_v61 = vpop.eup %7600  ;;  %v3392_v31 = vmul.f32 0.6931472, %v7583_v35  ;;  %7612 = vlog2.f32 %v3368_v30  ;;  %v3394_v12 = vmul.f32 0.6931472, %v7585_v54  ;;  %v3443_v2 = vmul.f32 0.33333334, %v3380_v1 }
 0x347   : > { %v7603_v16 = vpop.eup %7602  ;;  %7614 = vlog2.f32 %v3369_v17  ;;  %v3444_v9 = vmul.f32 0.33333334, %v3382_v18  ;;  %v3445_v29 = vmul.f32 0.33333334, %v3384_v22  ;;  %v3446_v13 = vmul.f32 0.33333334, %v3386_v49 }
 0x348   : > { %v7605_v33 = vpop.eup %7604  ;;  %7616 = vlog2.f32 %v3370_v59  ;;  %v3447_v26 = vmul.f32 0.33333334, %v3388_v51  ;;  %v3377_v14 = vmul.f32 0.015625, %v3345_v34  ;;  %v3396_v55 = vmul.f32 0.6931472, %v7587_v57 }
 0x349   : > { %v7607_v5 = vpop.eup %7606  ;;  %7618 = vlog2.f32 %v3371_v3  ;;  %v3448_v40 = vmul.f32 0.33333334, %v3390_v27  ;;  %v3378_v44 = vmul.f32 0.015625, %v3346_v62  ;;  %v3398_v60 = vmul.f32 0.6931472, %v7589_v46 }
 0x34a   : > { %v7609_v0 = vpop.eup %7608  ;;  %7620 = vlog2.f32 %v3372_v4  ;;  %v3449_v35 = vmul.f32 0.33333334, %v3392_v31  ;;  %v3450_v38 = vmul.f32 0.33333334, %v3394_v12  ;;  %v3475_v20 = vmul.f32 1.442695, %v3443_v2 }
 0x34b   : > { %v7611_v52 = vpop.eup %7610  ;;  %7622 = vlog2.f32 %v3373_v48  ;;  %v3477_v23 = vmul.f32 1.442695, %v3444_v9  ;;  %v3479_v54 = vmul.f32 1.442695, %v3445_v29  ;;  %v3481_v56 = vmul.f32 1.442695, %v3446_v13 }
 0x34c   : > { %v7613_v39 = vpop.eup %7612  ;;  %7624 = vlog2.f32 %v3374_v53  ;;  %v3483_v10 = vmul.f32 1.442695, %v3447_v26  ;;  %v3400_v8 = vmul.f32 0.6931472, %v7591_v36  ;;  %v3451_v58 = vmul.f32 0.33333334, %v3396_v55 }
 0x34d   : > { %v7615_v45 = vpop.eup %7614  ;;  %7626 = vlog2.f32 %v3375_v42  ;;  %v3485_v57 = vmul.f32 1.442695, %v3448_v40  ;;  %v3402_v37 = vmul.f32 0.6931472, %v7593_v21  ;;  %v3452_v7 = vmul.f32 0.33333334, %v3398_v60 }
 0x34e   : > { %v7617_v63 = vpop.eup %7616  ;;  %7628 = vlog2.f32 %v3376_v19  ;;  %v3487_v43 = vmul.f32 1.442695, %v3449_v35  ;;  %v3404_v46 = vmul.f32 0.6931472, %v7595_v50  ;;  %v3406_v25 = vmul.f32 0.6931472, %v7597_v6 }
 0x34f   : > { %v7619_v47 = vpop.eup %7618  ;;  %7630 = vlog2.f32 %v3377_v14  ;;  %v3489_v24 = vmul.f32 1.442695, %v3450_v38  ;;  %v3408_v34 = vmul.f32 0.6931472, %v7599_v28  ;;  %v3410_v15 = vmul.f32 0.6931472, %v7601_v61 }
 0x350   : > { %v7621_v32 = vpop.eup %7620  ;;  %v3412_v11 = vmul.f32 0.6931472, %v7603_v16  ;;  %7632 = vlog2.f32 %v3378_v44  ;;  %v3414_v36 = vmul.f32 0.6931472, %v7605_v33  ;;  %v3453_v41 = vmul.f32 0.33333334, %v3400_v8 }
 0x351   : > { %v7623_v62 = vpop.eup %7622  ;;  %7634 = vpow2.f32 %v3475_v20  ;;  %v3491_v30 = vmul.f32 1.442695, %v3451_v58  ;;  %v3416_v21 = vmul.f32 0.6931472, %v7607_v5  ;;  %v3454_v59 = vmul.f32 0.33333334, %v3402_v37 }
 0x352   : > { %v7625_v17 = vpop.eup %7624  ;;  %7636 = vpow2.f32 %v3477_v23  ;;  %v3493_v3 = vmul.f32 1.442695, %v3452_v7  ;;  %v3418_v50 = vmul.f32 0.6931472, %v7609_v0  ;;  %v3455_v1 = vmul.f32 0.33333334, %v3404_v46 }
 0x353   : > { %v7627_v4 = vpop.eup %7626  ;;  %v3456_v18 = vmul.f32 0.33333334, %v3406_v25  ;;  %7638 = vpow2.f32 %v3479_v54  ;;  %v3457_v22 = vmul.f32 0.33333334, %v3408_v34  ;;  %v3458_v49 = vmul.f32 0.33333334, %v3410_v15 }
 0x354   : > { %v7629_v6 = vpop.eup %7628  ;;  %v3459_v51 = vmul.f32 0.33333334, %v3412_v11  ;;  %7640 = vpow2.f32 %v3481_v56  ;;  %v3420_v48 = vmul.f32 0.6931472, %v7611_v52  ;;  %v3460_v53 = vmul.f32 0.33333334, %v3414_v36 }
 0x355   : > { %v7631_v28 = vpop.eup %7630  ;;  %7642 = vpow2.f32 %v3483_v10  ;;  %v3495_v27 = vmul.f32 1.442695, %v3453_v41  ;;  %v3422_v42 = vmul.f32 0.6931472, %v7613_v39  ;;  %v3461_v19 = vmul.f32 0.33333334, %v3416_v21 }
 0x356   : > { %v7633_v61 = vpop.eup %7632  ;;  %7644 = vpow2.f32 %v3485_v57  ;;  %v3497_v31 = vmul.f32 1.442695, %v3454_v59  ;;  %v3462_v12 = vmul.f32 0.33333334, %v3418_v50  ;;  %v3499_v2 = vmul.f32 1.442695, %v3455_v1 }
 0x357   : > { %v10376_v16 = vpop.eup %7634  ;;  %7646 = vpow2.f32 %v3487_v43  ;;  %v3501_v9 = vmul.f32 1.442695, %v3456_v18  ;;  %v3503_v29 = vmul.f32 1.442695, %v3457_v22  ;;  %v3505_v13 = vmul.f32 1.442695, %v3458_v49 }
 0x358   : > { %v10378_v33 = vpop.eup %7636  ;;  %7648 = vpow2.f32 %v3489_v24  ;;  %v3507_v26 = vmul.f32 1.442695, %v3459_v51  ;;  %v3424_v14 = vmul.f32 0.6931472, %v7615_v45  ;;  %v3463_v55 = vmul.f32 0.33333334, %v3420_v48 }
 0x359   : > { %v10380_v5 = vpop.eup %7638  ;;  %7650 = vpow2.f32 %v3491_v30  ;;  %v3509_v40 = vmul.f32 1.442695, %v3460_v53  ;;  %v3426_v44 = vmul.f32 0.6931472, %v7617_v63  ;;  %v3464_v60 = vmul.f32 0.33333334, %v3422_v42 }
 0x35a   : > { %v10382_v0 = vpop.eup %7640  ;;  %7652 = vpow2.f32 %v3493_v3  ;;  %v3511_v35 = vmul.f32 1.442695, %v3461_v19  ;;  %v3428_v38 = vmul.f32 0.6931472, %v7619_v47  ;;  %v3430_v20 = vmul.f32 0.6931472, %v7621_v32 }
 0x35b   : > { %v10384_v52 = vpop.eup %7642  ;;  %7654 = vpow2.f32 %v3495_v27  ;;  %v3513_v23 = vmul.f32 1.442695, %v3462_v12  ;;  %v3432_v54 = vmul.f32 0.6931472, %v7623_v62  ;;  %v3434_v56 = vmul.f32 0.6931472, %v7625_v17 }
 0x35c   : > { %v10386_v39 = vpop.eup %7644  ;;  %v3436_v10 = vmul.f32 0.6931472, %v7627_v4  ;;  %7656 = vpow2.f32 %v3497_v31  ;;  %v3438_v8 = vmul.f32 0.6931472, %v7629_v6  ;;  %v3440_v58 = vmul.f32 0.6931472, %v7631_v28 }
 0x35d   : > { %v10388_v45 = vpop.eup %7646  ;;  %v3465_v57 = vmul.f32 0.33333334, %v3424_v14  ;;  %7658 = vpow2.f32 %v3499_v2  ;;  %v3442_v37 = vmul.f32 0.6931472, %v7633_v61  ;;  %v3466_v7 = vmul.f32 0.33333334, %v3426_v44 }
 0x35e   : > { %v10390_v63 = vpop.eup %7648  ;;  %7660 = vpow2.f32 %v3501_v9  ;;  %v3515_v43 = vmul.f32 1.442695, %v3463_v55  ;;  %v3467_v46 = vmul.f32 0.33333334, %v3428_v38  ;;  %v3468_v25 = vmul.f32 0.33333334, %v3430_v20 }
 0x35f   : > { %v10392_v47 = vpop.eup %7650  ;;  %7662 = vpow2.f32 %v3503_v29  ;;  %v3517_v24 = vmul.f32 1.442695, %v3464_v60  ;;  %v3469_v34 = vmul.f32 0.33333334, %v3432_v54  ;;  %v3470_v15 = vmul.f32 0.33333334, %v3434_v56 }
 0x360   : > { %v10394_v32 = vpop.eup %7652  ;;  %v3471_v11 = vmul.f32 0.33333334, %v3436_v10  ;;  %7664 = vpow2.f32 %v3505_v13  ;;  %v3472_v36 = vmul.f32 0.33333334, %v3438_v8  ;;  %v3473_v41 = vmul.f32 0.33333334, %v3440_v58 }
 0x361   : > { %v10396_v62 = vpop.eup %7654  ;;  %7666 = vpow2.f32 %v3507_v26  ;;  %v3519_v30 = vmul.f32 1.442695, %v3465_v57  ;;  %v3474_v21 = vmul.f32 0.33333334, %v3442_v37  ;;  %v3521_v59 = vmul.f32 1.442695, %v3466_v7 }
 0x362   : > { %v10398_v17 = vpop.eup %7656  ;;  %7668 = vpow2.f32 %v3509_v40  ;;  %v3539_v3 = vld [vmem:[#allocation11] sm:$0xff]  ;;  %v3523_v50 = vmul.f32 1.442695, %v3467_v46  ;;  %v3525_v1 = vmul.f32 1.442695, %v3468_v25  ;;  %v3540_v18 = vld [vmem:[#allocation11 + $0x8] sm:$0xff] }
 0x363   : > { %v10400_v4 = vpop.eup %7658  ;;  %7670 = vpow2.f32 %v3511_v35  ;;  %v10402_v6 = vld [vmem:[#allocation9] sm:$0xff]  ;;  %v3527_v49 = vmul.f32 1.442695, %v3469_v34  ;;  %v3529_v51 = vmul.f32 1.442695, %v3470_v15  ;;  %v10410_v12 = vld [vmem:[#allocation9 + $0x8] sm:$0xff] }
 0x364   : > { %v10404_v22 = vpop.eup %7660  ;;  %7672 = vpow2.f32 %v3513_v23  ;;  %v3531_v28 = vmul.f32 1.442695, %v3471_v11  ;;  %v3533_v53 = vmul.f32 1.442695, %v3472_v36  ;;  %v3535_v27 = vmul.f32 1.442695, %v3473_v41 }
 0x365   : > { %v7663_v48 = vpop.eup %7662  ;;  %7674 = vpow2.f32 %v3515_v43  ;;  %v10406_v61 = vadd.f32 1e-05, %v3539_v3  ;;  %v3537_v19 = vmul.f32 1.442695, %v3474_v21  ;;  %v10408_v31 = vadd.f32 1e-05, %v3540_v18 }
 0x366   : > { %v7665_v42 = vpop.eup %7664  ;;  %7676 = vpow2.f32 %v3517_v24  ;;  %v3568_v2 = vperm.slane %v10402_v6, 1  ;;  %v3567_v29 = vperm.slane %v10402_v6, 0  ;;  %v3569_v13 = vperm.slane %v10402_v6, 2 }
 0x367   : > { %v7667_v9 = vpop.eup %7666  ;;  %7678 = vpow2.f32 %v3519_v30  ;;  %v3570_v26 = vperm.slane %v10402_v6, 3  ;;  %v3571_v55 = vperm.slane %v10402_v6, 4  ;;  %v3572_v40 = vperm.slane %v10402_v6, 5 }
 0x368   : > { %v7669_v14 = vpop.eup %7668  ;;  %7680 = vpow2.f32 %v3521_v59  ;;  %v3573_v44 = vperm.slane %v10402_v6, 6  ;;  %v3574_v35 = vperm.slane %v10402_v6, 7  ;;  %v3575_v38 = vperm.slane %v10410_v12, 0  ;;  %v10490_v59 = vld [vmem:[#allocation6] sm:$0xff] }
 0x369   : > { %v7671_v60 = vpop.eup %7670  ;;  %7682 = vpow2.f32 %v3523_v50  ;;  %v3576_v20 = vperm.slane %v10410_v12, 1  ;;  %v3577_v54 = vperm.slane %v10410_v12, 2  ;;  %v3578_v56 = vperm.slane %v10410_v12, 3 }
 0x36a   : > { %v7673_v23 = vpop.eup %7672  ;;  %7684 = vpow2.f32 %v3525_v1  ;;  %v3579_v10 = vperm.slane %v10410_v12, 4  ;;  %v3580_v58 = vperm.slane %v10410_v12, 5  ;;  %v3581_v57 = vperm.slane %v10410_v12, 6 }
 0x36b   : > { %v7675_v8 = vpop.eup %7674  ;;  %7686 = vpow2.f32 %v3527_v49  ;;  %v3582_v37 = vperm.slane %v10410_v12, 7  ;;  %v10429_v43 = vsub.f32 %v10376_v16, %v3567_v29  ;;  %v10432_v46 = vsub.f32 %v10378_v33, %v3568_v2 }
 0x36c   : > { %v7677_v7 = vpop.eup %7676  ;;  %7688 = vpow2.f32 %v3529_v51  ;;  %v10435_v25 = vsub.f32 %v10380_v5, %v3569_v13  ;;  %v10438_v34 = vsub.f32 %v10382_v0, %v3570_v26  ;;  %v10441_v15 = vsub.f32 %v10384_v52, %v3571_v55 }
 0x36d   : > { %v7679_v24 = vpop.eup %7678  ;;  %7690 = vpow2.f32 %v3531_v28  ;;  %v10444_v11 = vsub.f32 %v10386_v39, %v3572_v40  ;;  %v10447_v16 = vsub.f32 %v10388_v45, %v3573_v44  ;;  %v10450_v33 = vsub.f32 %v10390_v63, %v3574_v35 }
 0x36e   : > { %v7681_v36 = vpop.eup %7680  ;;  %7692 = vpow2.f32 %v3533_v53  ;;  %v10453_v5 = vsub.f32 %v10392_v47, %v3575_v38  ;;  %v10457_v0 = vsub.f32 %v10394_v32, %v3576_v20  ;;  %v10460_v52 = vsub.f32 %v10396_v62, %v3577_v54  ;;  %v10509_v53 = vld [vmem:[#allocation6 + $0x8] sm:$0xff] }
 0x36f   : > { %v7683_v41 = vpop.eup %7682  ;;  %7694 = vrsqrt.f32 %v10406_v61  ;;  %v10465_v39 = vsub.f32 %v10398_v17, %v3578_v56  ;;  %v10471_v63 = vsub.f32 %v10400_v4, %v3579_v10  ;;  %v10476_v47 = vsub.f32 %v10404_v22, %v3580_v58 }
 0x370   : > { %v7685_v45 = vpop.eup %7684  ;;  %7696 = vrsqrt.f32 %v10408_v31  ;;  %v10480_v32 = vsub.f32 %v7663_v48, %v3581_v57  ;;  %v10484_v30 = vsub.f32 %v7665_v42, %v3582_v37  ;;  %v10486_v17 = vsub.f32 %v7667_v9, %v3567_v29 }
 0x371   : > { %v7687_v62 = vpop.eup %7686  ;;  %7698 = vpow2.f32 %v3535_v27  ;;  %v10488_v21 = vsub.f32 %v7669_v14, %v3568_v2  ;;  %vm3549_vm0 = vweird.f32 %v10406_v61  ;;  %v10493_v4 = vsub.f32 %v7671_v60, %v3569_v13 }
 0x372   : > { %v7689_v3 = vpop.eup %7688  ;;  %7700 = vpow2.f32 %v3537_v19  ;;  %v10495_v50 = vsub.f32 %v7673_v23, %v3570_v26  ;;  %v10497_v1 = vsub.f32 %v7675_v8, %v3571_v55  ;;  %vm3559_vm1 = vweird.f32 %v10408_v31 }
 0x373   : > { %v7691_v18 = vpop.eup %7690  ;;  %v10500_v6 = vsub.f32 %v7677_v7, %v3572_v40  ;;  %v10502_v22 = vsub.f32 %v7679_v24, %v3573_v44  ;;  %v10504_v49 = vsub.f32 %v7681_v36, %v3574_v35  ;;  %v3701_v51 = vperm.slane %v10490_v59, 0 }
 0x374   : > { %v7693_v28 = vpop.eup %7692  ;;  %v10507_v48 = vsub.f32 %v7683_v41, %v3575_v38  ;;  %v3702_v27 = vperm.slane %v10490_v59, 1  ;;  %v10514_v9 = vsub.f32 %v7685_v45, %v3576_v20  ;;  %v10516_v29 = vsub.f32 %v7687_v62, %v3577_v54  ;;  %v10543_v54 = vld [vmem:[#allocation8] sm:$0xff] }
 0x375   : > { %v7695_v2 = vpop.eup %7694  ;;  %v10523_v40 = vsub.f32 %v7689_v3, %v3578_v56  ;;  %v10533_v24 = vsub.f32 %v7691_v18, %v3579_v10  ;;  %v10539_v45 = vsub.f32 %v7693_v28, %v3580_v58  ;;  %v10554_v28 = vld [vmem:[#allocation8 + $0x8] sm:$0xff] }
 0x376   : > { %v7697_v14 = vpop.eup %7696  ;;  %v3544_v55 = vmul.f32 %v7695_v2, %v10406_v61  ;;  %vm3550_vm2 = vweird.f32 %v7695_v2 }
 0x377   : > { %v7699_v35 = vpop.eup %7698  ;;  %v3554_v38 = vmul.f32 %v7697_v14, %v10408_v31  ;;  %vm3560_vm3 = vweird.f32 %v7697_v14  ;;  %vm3551_vm4 = vmor %vm3549_vm0, %vm3550_vm2 }
 0x378   : > { %v7701_v8 = vpop.eup %7700  ;;  %v3545_v7 = vmul.f32 %v7695_v2, %v3544_v55  ;;  %v10547_v10 = vsub.f32 %v7699_v35, %v3581_v57  ;;  %vm3561_vm5 = vmor %vm3559_vm1, %vm3560_vm3 }
 0x379   : > { %v3555_v41 = vmul.f32 %v7697_v14, %v3554_v38  ;;  %v10552_v58 = vsub.f32 %v7701_v8, %v3582_v37 }
 0x37a   : > { %v3546_v55 = vmul.f32 0.5, %v3545_v7 }
 0x37b   : > { %v3556_v36 = vmul.f32 0.5, %v3555_v41 }
 0x37c   : > { %v3547_v3 = vsub.f32 1.5, %v3546_v55 }
 0x37d   : > { %v3557_v35 = vsub.f32 1.5, %v3556_v36 }
 0x37e   : > { %v3548_v8 = vmul.f32 %v7695_v2, %v3547_v3 }
 0x37f   : > { %v3558_v7 = vmul.f32 %v7697_v14, %v3557_v35 }
 0x380   : > { %v3552_v12 = vsel %vm3551_vm4, %v7695_v2, %v3548_v8 }
 0x381   : > { %v3562_v38 = vsel %vm3561_vm5, %v7697_v14, %v3558_v7  ;;  %v3633_v55 = vperm.slane %v3552_v12, 0  ;;  %v3634_v18 = vperm.slane %v3552_v12, 1  ;;  %v3635_v62 = vperm.slane %v3552_v12, 2 }
 0x382   : > { %v3636_v56 = vperm.slane %v3552_v12, 3  ;;  %v3637_v57 = vperm.slane %v3552_v12, 4  ;;  %v3638_v35 = vperm.slane %v3552_v12, 5  ;;  %v3639_v23 = vperm.slane %v3552_v12, 6 }
 0x383   : > { %v3640_v61 = vperm.slane %v3552_v12, 7  ;;  %v3641_v20 = vperm.slane %v3562_v38, 0  ;;  %v3642_v36 = vperm.slane %v3562_v38, 1  ;;  %v3643_v60 = vperm.slane %v3562_v38, 2 }
 0x384   : > { %v3644_v41 = vperm.slane %v3562_v38, 3  ;;  %v3645_v2 = vperm.slane %v3562_v38, 4  ;;  %v3646_v8 = vperm.slane %v3562_v38, 5  ;;  %v3647_v37 = vperm.slane %v3562_v38, 6 }
 0x385   : > { %v3648_v44 = vperm.slane %v3562_v38, 7  ;;  %v3665_v3 = vmul.f32 %v3633_v55, %v10429_v43  ;;  %v3666_v14 = vmul.f32 %v3634_v18, %v10432_v46  ;;  %v3667_v7 = vmul.f32 %v3635_v62, %v10435_v25 }
 0x386   : > { %v3668_v31 = vmul.f32 %v3636_v56, %v10438_v34  ;;  %v3669_v26 = vmul.f32 %v3637_v57, %v10441_v15  ;;  %v3670_v12 = vmul.f32 %v3638_v35, %v10444_v11  ;;  %v3671_v13 = vmul.f32 %v3639_v23, %v10447_v16 }
 0x387   : > { %v3672_v19 = vmul.f32 %v3640_v61, %v10450_v33  ;;  %v3673_v42 = vmul.f32 %v3641_v20, %v10453_v5  ;;  %v3674_v38 = vmul.f32 %v3642_v36, %v10457_v0  ;;  %v3675_v43 = vmul.f32 %v3643_v60, %v10460_v52 }
 0x388   : > { %v3676_v46 = vmul.f32 %v3644_v41, %v10465_v39  ;;  %v3677_v25 = vmul.f32 %v3645_v2, %v10471_v63  ;;  %v3678_v34 = vmul.f32 %v3646_v8, %v10476_v47  ;;  %v3679_v15 = vmul.f32 %v3647_v37, %v10480_v32 }
 0x389   : > { %v3680_v11 = vmul.f32 %v3648_v44, %v10484_v30  ;;  %v3681_v16 = vmul.f32 %v3633_v55, %v10486_v17  ;;  %v3682_v33 = vmul.f32 %v3634_v18, %v10488_v21  ;;  %v3683_v5 = vmul.f32 %v3635_v62, %v10493_v4 }
 0x38a   : > { %v3684_v0 = vmul.f32 %v3636_v56, %v10495_v50  ;;  %v3685_v52 = vmul.f32 %v3637_v57, %v10497_v1  ;;  %v3686_v39 = vmul.f32 %v3638_v35, %v10500_v6  ;;  %v3687_v63 = vmul.f32 %v3639_v23, %v10502_v22 }
 0x38b   : > { %v3688_v47 = vmul.f32 %v3640_v61, %v10504_v49  ;;  %v3689_v32 = vmul.f32 %v3641_v20, %v10507_v48  ;;  %v3690_v30 = vmul.f32 %v3642_v36, %v10514_v9  ;;  %v3691_v17 = vmul.f32 %v3643_v60, %v10516_v29 }
 0x38c   : > { %v3692_v21 = vmul.f32 %v3644_v41, %v10523_v40  ;;  %v3693_v4 = vmul.f32 %v3645_v2, %v10533_v24  ;;  %v3694_v50 = vmul.f32 %v3646_v8, %v10539_v45  ;;  %v3695_v1 = vmul.f32 %v3647_v37, %v10547_v10 }
 0x38d   : > { %v3696_v6 = vmul.f32 %v3648_v44, %v10552_v58  ;;  %v3733_v22 = vmul.f32 %v3701_v51, %v3665_v3  ;;  %v3734_v49 = vmul.f32 %v3702_v27, %v3666_v14  ;;  %v12109_v48 = vperm.slane %v10490_v59, 2 }
 0x38e   : > { %v12110_v29 = vperm.slane %v10490_v59, 3  ;;  %v12111_v60 = vperm.slane %v10490_v59, 4  ;;  %v12112_v23 = vperm.slane %v10490_v59, 5  ;;  %v12113_v44 = vperm.slane %v10490_v59, 6 }
 0x38f   : > { %v3735_v9 = vmul.f32 %v12109_v48, %v3667_v7  ;;  %v12114_v45 = vperm.slane %v10490_v59, 7  ;;  %v12115_v10 = vperm.slane %v10509_v53, 0  ;;  %v12116_v58 = vperm.slane %v10509_v53, 1 }
 0x390   : > { %v3736_v40 = vmul.f32 %v12110_v29, %v3668_v31  ;;  %v3737_v20 = vmul.f32 %v12111_v60, %v3669_v26  ;;  %v3738_v24 = vmul.f32 %v12112_v23, %v3670_v12  ;;  %v3739_v56 = vmul.f32 %v12113_v44, %v3671_v13 }
 0x391   : > { %v3740_v62 = vmul.f32 %v12114_v45, %v3672_v19  ;;  %v3741_v18 = vmul.f32 %v12115_v10, %v3673_v42  ;;  %v3742_v57 = vmul.f32 %v12116_v58, %v3674_v38  ;;  %v12117_v41 = vperm.slane %v10509_v53, 2 }
 0x392   : > { %v12118_v26 = vperm.slane %v10509_v53, 3  ;;  %v12119_v61 = vperm.slane %v10509_v53, 4  ;;  %v12120_v13 = vperm.slane %v10509_v53, 5  ;;  %v12121_v19 = vperm.slane %v10509_v53, 6 }
 0x393   : > { %v3743_v37 = vmul.f32 %v12117_v41, %v3675_v43  ;;  %v12122_v42 = vperm.slane %v10509_v53, 7  ;;  %v3749_v2 = vmul.f32 %v3701_v51, %v3681_v16  ;;  %v3750_v8 = vmul.f32 %v3702_v27, %v3682_v33 }
 0x394   : > { %v3744_v55 = vmul.f32 %v12118_v26, %v3676_v46  ;;  %v3745_v36 = vmul.f32 %v12119_v61, %v3677_v25  ;;  %v3746_v3 = vmul.f32 %v12120_v13, %v3678_v34  ;;  %v3747_v31 = vmul.f32 %v12121_v19, %v3679_v15 }
 0x395   : > { %v3748_v35 = vmul.f32 %v12122_v42, %v3680_v11  ;;  %v12123_v14 = vmov %v12109_v48  ;;  %v12124_v12 = vmov %v12110_v29  ;;  %v12125_v43 = vmov %v12111_v60 }
 0x396   : > { %v3751_v7 = vmul.f32 %v12123_v14, %v3683_v5  ;;  %v3752_v38 = vmul.f32 %v12124_v12, %v3684_v0  ;;  %v3753_v46 = vmul.f32 %v12125_v43, %v3685_v52  ;;  %v12126_v25 = vmov %v12112_v23 }
 0x397   : > { %v3754_v34 = vmul.f32 %v12126_v25, %v3686_v39  ;;  %v12127_v15 = vmov %v12113_v44  ;;  %v12128_v51 = vmov %v12114_v45  ;;  %v12129_v27 = vmov %v12115_v10 }
 0x398   : > { %v3755_v11 = vmul.f32 %v12127_v15, %v3687_v63  ;;  %v3756_v16 = vmul.f32 %v12128_v51, %v3688_v47  ;;  %v3757_v33 = vmul.f32 %v12129_v27, %v3689_v32  ;;  %v12130_v5 = vmov %v12116_v58 }
 0x399   : > { %v3758_v48 = vmul.f32 %v12130_v5, %v3690_v30  ;;  %v12131_v0 = vmov %v12117_v41  ;;  %v12132_v52 = vmov %v12118_v26  ;;  %v12133_v39 = vmov %v12119_v61 }
 0x39a   : > { %v3759_v29 = vmul.f32 %v12131_v0, %v3691_v17  ;;  %v3760_v60 = vmul.f32 %v12132_v52, %v3692_v21  ;;  %v3761_v23 = vmul.f32 %v12133_v39, %v3693_v4  ;;  %v12134_v63 = vmov %v12120_v13 }
 0x39b   : > { %v3762_v44 = vmul.f32 %v12134_v63, %v3694_v50  ;;  %v12135_v59 = vmov %v12121_v19  ;;  %v12136_v32 = vmov %v12122_v42  ;;  %v12137_v30 = vperm.slane %v10543_v54, 0 }
 0x39c   : > { %v3763_v47 = vmul.f32 %v12135_v59, %v3695_v1  ;;  %v3764_v45 = vmul.f32 %v12136_v32, %v3696_v6  ;;  %v12138_v17 = vperm.slane %v10543_v54, 1  ;;  %v12139_v21 = vperm.slane %v10543_v54, 2 }
 0x39d   : > { %v3801_v10 = vadd.f32 %v12137_v30, %v3733_v22  ;;  %v12140_v4 = vperm.slane %v10543_v54, 3  ;;  %v12141_v50 = vperm.slane %v10543_v54, 4  ;;  %v12142_v1 = vperm.slane %v10543_v54, 5 }
 0x39e   : > { %v3802_v58 = vadd.f32 %v12138_v17, %v3734_v49  ;;  %v3803_v41 = vadd.f32 %v12139_v21, %v3735_v9  ;;  %v12143_v53 = vperm.slane %v10543_v54, 6  ;;  %v12144_v22 = vperm.slane %v10543_v54, 7 }
 0x39f   : > { %v3804_v26 = vadd.f32 %v12140_v4, %v3736_v40  ;;  %v3805_v61 = vadd.f32 %v12141_v50, %v3737_v20  ;;  %v3806_v13 = vadd.f32 %v12142_v1, %v3738_v24  ;;  %v12145_v49 = vperm.slane %v10554_v28, 0 }
 0x3a0   : > { %v3807_v6 = vadd.f32 %v12143_v53, %v3739_v56  ;;  %v3808_v19 = vadd.f32 %v12144_v22, %v3740_v62  ;;  %v12146_v9 = vperm.slane %v10554_v28, 1  ;;  %v12147_v40 = vperm.slane %v10554_v28, 2 }
 0x3a1   : > { %v3809_v42 = vadd.f32 %v12145_v49, %v3741_v18  ;;  %v12148_v20 = vperm.slane %v10554_v28, 3  ;;  %v12149_v24 = vperm.slane %v10554_v28, 4  ;;  %v12150_v56 = vperm.slane %v10554_v28, 5 }
 0x3a2   : > { %v3810_v14 = vadd.f32 %v12146_v9, %v3742_v57  ;;  %v3811_v12 = vadd.f32 %v12147_v40, %v3743_v37  ;;  %v12151_v62 = vperm.slane %v10554_v28, 6  ;;  %v12152_v18 = vperm.slane %v10554_v28, 7 }
 0x3a3   : > { %v3812_v43 = vadd.f32 %v12148_v20, %v3744_v55  ;;  %v3813_v25 = vadd.f32 %v12149_v24, %v3745_v36  ;;  %v3814_v15 = vadd.f32 %v12150_v56, %v3746_v3  ;;  %v12153_v57 = vmov %v12137_v30 }
 0x3a4   : > { %v3815_v51 = vadd.f32 %v12151_v62, %v3747_v31  ;;  %v3816_v27 = vadd.f32 %v12152_v18, %v3748_v35  ;;  %v3817_v5 = vadd.f32 %v12153_v57, %v3749_v2  ;;  %v12154_v37 = vmov %v12138_v17 }
 0x3a5   : > { %v3818_v0 = vadd.f32 %v12154_v37, %v3750_v8  ;;  %v12155_v55 = vmov %v12139_v21  ;;  %v12156_v36 = vmov %v12140_v4  ;;  %v12157_v3 = vmov %v12141_v50 }
 0x3a6   : > { %v3819_v52 = vadd.f32 %v12155_v55, %v3751_v7  ;;  %v3820_v39 = vadd.f32 %v12156_v36, %v3752_v38  ;;  %v3821_v63 = vadd.f32 %v12157_v3, %v3753_v46  ;;  %v12158_v31 = vmov %v12142_v1 }
 0x3a7   : > { %v3822_v59 = vadd.f32 %v12158_v31, %v3754_v34  ;;  %v12159_v35 = vmov %v12143_v53  ;;  %v12160_v2 = vmov %v12144_v22  ;;  %v12161_v8 = vmov %v12145_v49 }
 0x3a8   : > { %v3823_v32 = vadd.f32 %v12159_v35, %v3755_v11  ;;  %v3824_v30 = vadd.f32 %v12160_v2, %v3756_v16  ;;  %v3825_v17 = vadd.f32 %v12161_v8, %v3757_v33  ;;  %v12162_v7 = vmov %v12146_v9 }
 0x3a9   : > { %v3826_v21 = vadd.f32 %v12162_v7, %v3758_v48  ;;  %v12163_v38 = vmov %v12147_v40  ;;  %v12164_v46 = vmov %v12148_v20  ;;  %v12165_v34 = vmov %v12149_v24 }
 0x3aa   : > { %v3827_v4 = vadd.f32 %v12163_v38, %v3759_v29  ;;  %v3828_v50 = vadd.f32 %v12164_v46, %v3760_v60  ;;  %v3829_v1 = vadd.f32 %v12165_v34, %v3761_v23  ;;  %v12166_v11 = vmov %v12150_v56 }
 0x3ab   : > { %v3830_v53 = vadd.f32 %v12166_v11, %v3762_v44  ;;  %v12167_v54 = vmov %v12151_v62  ;;  %v12168_v33 = vmov %v12152_v18  ;;  %v3865_v49 = vrot.slane %v3802_v58, 6 }
 0x3ac   : > { %v3831_v16 = vadd.f32 %v12167_v54, %v3763_v47  ;;  %v3832_v22 = vadd.f32 %v12168_v33, %v3764_v45  ;;  %v3866_v48 = vrot.slane %v3803_v41, 4  ;;  %v3867_v9 = vrot.slane %v3804_v26, 2 }
 0x3ad   : > { %v3868_v40 = vrot.slane %v3806_v13, 6  ;;  %v3869_v29 = vrot.slane %v3807_v6, 4  ;;  %v3870_v20 = vrot.slane %v3808_v19, 2  ;;  %v3871_v24 = vrot.slane %v3810_v14, 6 }
 0x3ae   : > { %v3872_v60 = vrot.slane %v3811_v12, 4  ;;  %v3873_v56 = vrot.slane %v3812_v43, 2  ;;  %v3874_v62 = vrot.slane %v3814_v15, 6  ;;  %v3875_v23 = vrot.slane %v3815_v51, 4 }
 0x3af   : > { %v3876_v18 = vrot.slane %v3816_v27, 2  ;;  %v3877_v57 = vrot.slane %v3818_v0, 6  ;;  %v3878_v44 = vrot.slane %v3819_v52, 4  ;;  %v3879_v37 = vrot.slane %v3820_v39, 2 }
 0x3b0   : > { %v3880_v55 = vrot.slane %v3822_v59, 6  ;;  %v3881_v47 = vrot.slane %v3823_v32, 4  ;;  %v3882_v36 = vrot.slane %v3824_v30, 2  ;;  %v3883_v28 = vrot.slane %v3826_v21, 6 }
 0x3b1   : > { %v3884_v45 = vrot.slane %v3827_v4, 4  ;;  %v3885_v58 = vrot.slane %v3828_v50, 2  ;;  %v3886_v41 = vrot.slane %v3830_v53, 6  ;;  %v3887_v26 = vrot.slane %v3831_v16, 4 }
 0x3b2   : > { %v3888_v13 = vrot.slane %v3832_v22, 2  ;;  %v3890_v6 = vsel %vm3889_vm6, %v3801_v10, %v3865_v49  ;;  %v3892_v19 = vsel %vm3891_vm7, %v3866_v48, %v3867_v9  ;;  %v3895_v14 = vsel %vm3889_vm6, %v3805_v61, %v3868_v40 }
 0x3b3   : > { %v3896_v12 = vsel %vm3891_vm7, %v3869_v29, %v3870_v20  ;;  %v3894_v43 = vsel %vm3893_vm8, %v3890_v6, %v3892_v19  ;;  %v3898_v51 = vsel %vm3889_vm6, %v3809_v42, %v3871_v24  ;;  %v3899_v27 = vsel %vm3891_vm7, %v3872_v60, %v3873_v56 }
 0x3b4   : > { %v3897_v15 = vsel %vm3893_vm8, %v3895_v14, %v3896_v12  ;;  %v3900_v0 = vsel %vm3893_vm8, %v3898_v51, %v3899_v27  ;;  %v3901_v52 = vsel %vm3889_vm6, %v3813_v25, %v3874_v62  ;;  %v3902_v10 = vsel %vm3891_vm7, %v3875_v23, %v3876_v18 }
 0x3b5   : > { %v3904_v39 = vsel %vm3889_vm6, %v3817_v5, %v3877_v57  ;;  %v3903_v61 = vsel %vm3893_vm8, %v3901_v52, %v3902_v10  ;;  %v3905_v3 = vsel %vm3891_vm7, %v3878_v44, %v3879_v37  ;;  %v3907_v31 = vsel %vm3889_vm6, %v3821_v63, %v3880_v55 }
 0x3b6   : > { %v3908_v59 = vsel %vm3891_vm7, %v3881_v47, %v3882_v36  ;;  %v3906_v42 = vsel %vm3893_vm8, %v3904_v39, %v3905_v3  ;;  %v3910_v32 = vsel %vm3889_vm6, %v3825_v17, %v3883_v28  ;;  %v3911_v25 = vsel %vm3891_vm7, %v3884_v45, %v3885_v58 }
 0x3b7   : > { %v3909_v35 = vsel %vm3893_vm8, %v3907_v31, %v3908_v59  ;;  %v3912_v2 = vsel %vm3893_vm8, %v3910_v32, %v3911_v25  ;;  %v3913_v5 = vsel %vm3889_vm6, %v3829_v1, %v3886_v41  ;;  %v3914_v30 = vsel %vm3891_vm7, %v3887_v26, %v3888_v13 }
 0x3b8   : > { %v3920_v8 = vrot.slane %v3906_v42, 7  ;;  %v3915_v7 = vsel %vm3893_vm8, %v3913_v5, %v3914_v30  ;;  %v3931_v21 = vrot.slane %v3909_v35, 7  ;;  %v3938_v38 = vrot.slane %v3912_v2, 7 }
 0x3b9   : > { %v3945_v4 = vrot.slane %v3915_v7, 7 }
 0x3ba   : > { %v3922_v63 = vsel %vm3921_vm9, %v3920_v8, %v3894_v43  ;;  %v3932_v50 = vsel %vm3921_vm9, %v3931_v21, %v3897_v15  ;;  %v3939_v34 = vsel %vm3921_vm9, %v3938_v38, %v3900_v0 }
 0x3bb   : > { %v3924_v17 = vsel %vm3923_vm10, %v3920_v8, %v3922_v63  ;;  %v3933_v11 = vsel %vm3923_vm10, %v3931_v21, %v3932_v50  ;;  %v3940_v53 = vsel %vm3923_vm10, %v3938_v38, %v3939_v34  ;;  %v3946_v54 = vsel %vm3921_vm9, %v3945_v4, %v3903_v61 }
 0x3bc   : > { %v3926_v46 = vsel %vm3925_vm11, %v3920_v8, %v3924_v17  ;;  %v3934_v16 = vsel %vm3925_vm11, %v3931_v21, %v3933_v11  ;;  %v3941_v33 = vsel %vm3925_vm11, %v3938_v38, %v3940_v53  ;;  %v3947_v22 = vsel %vm3923_vm10, %v3945_v4, %v3946_v54 }
 0x3bd   : > { %v3928_v1 = vsel %vm3927_vm12, %v3920_v8, %v3926_v46  ;;  %v3935_v49 = vsel %vm3927_vm12, %v3931_v21, %v3934_v16  ;;  %v3942_v48 = vsel %vm3927_vm12, %v3938_v38, %v3941_v33  ;;  %v3948_v9 = vsel %vm3925_vm11, %v3945_v4, %v3947_v22 }
 0x3be   : > { %3954 = vst [vmem:[#allocation2 + $0x10] sm:$0xff] %v3928_v1  ;;  %v3949_v40 = vsel %vm3927_vm12, %v3945_v4, %v3948_v9 }
 0x3bf   : > { %3958 = vst [vmem:[#allocation14] sm:$0xff] %v3928_v1 }
 0x3c0   : > { %3955 = vst [vmem:[#allocation2] sm:$0xff] %v3935_v49 }
 0x3c1   : > { %3956 = vst [vmem:[#allocation2 + $0x18] sm:$0xff] %v3942_v48 }
 0x3c2   : > { %3957 = vst [vmem:[#allocation2 + $0x8] sm:$0xff] %v3949_v40 }
 0x3c3   : > { %3959 = vst [vmem:[#allocation14 + $0x8] sm:$0xff] %v3935_v49 }
 0x3c4   : > { %3960 = vst [vmem:[#allocation14 + $0x10] sm:$0xff] %v3942_v48 }
 0x3c5   : > { %3961 = vst [vmem:[#allocation14 + $0x18] sm:$0xff] %v3949_v40 }
 0x3c6 PF: > { %v6230_v29 = vld [vmem:[%s8183_s20 + $0x70] sm:$0xf]  ;;  %v7219_v20 = vld [vmem:[%s8183_s20 + $0x74] sm:$0xf0]  ;;  %v6222_v55 = vld [vmem:[%s8183_s20 + $0x60] sm:$0xf] }
 0x3c7   : > { %v6294_v24 = vld [vmem:[%s8183_s20 + $0xf0] sm:$0xf]  ;;  %v6231_v60 = vor.u32 %v7219_v20, %v6230_v29  ;;  %v7235_v56 = vld [vmem:[%s8183_s20 + $0xf4] sm:$0xf0]  ;;  %v7217_v36 = vld [vmem:[%s8183_s20 + $0x64] sm:$0xf0] }
 0x3c8   : > { %v6358_v62 = vld [vmem:[%s8183_s20 + $0x170] sm:$0xf]  ;;  %v7251_v23 = vld [vmem:[%s8183_s20 + $0x174] sm:$0xf0]  ;;  %v6295_v18 = vor.u32 %v7235_v56, %v6294_v24  ;;  %v6286_v28 = vld [vmem:[%s8183_s20 + $0xe0] sm:$0xf]  ;;  %v6223_v58 = vor.u32 %v7217_v36, %v6222_v55 }
 0x3c9   : > { %v6359_v57 = vor.u32 %v7251_v23, %v6358_v62  ;;  %v6422_v44 = vld [vmem:[%s8183_s20 + $0x1f0] sm:$0xf]  ;;  %v7267_v37 = vld [vmem:[%s8183_s20 + $0x1f4] sm:$0xf0]  ;;  %5559 = vmatpush.bf16.msra.mxu0 %v6231_v60  ;;  %v7233_v45 = vld [vmem:[%s8183_s20 + $0xe4] sm:$0xf0] }
 0x3ca   : > { %v6423_v47 = vor.u32 %v7267_v37, %v6422_v44  ;;  %5572 = vmatpush.bf16.msra.mxu1 %v6295_v18  ;;  %v6287_v41 = vor.u32 %v7233_v45, %v6286_v28  ;;  %v6350_v26 = vld [vmem:[%s8183_s20 + $0x160] sm:$0xf]  ;;  %v7249_v13 = vld [vmem:[%s8183_s20 + $0x164] sm:$0xf0]  ;;  %v6214_v12 = vld [vmem:[%s8183_s20 + $0x50] sm:$0xf] }
 0x3cb   : > { %5585 = vmatpush.bf16.msra.mxu2 %v6359_v57  ;;  %v6414_v6 = vld [vmem:[%s8183_s20 + $0x1e0] sm:$0xf]  ;;  %v6351_v19 = vor.u32 %v7249_v13, %v6350_v26  ;;  %v7265_v14 = vld [vmem:[%s8183_s20 + $0x1e4] sm:$0xf0]  ;;  %v7215_v43 = vld [vmem:[%s8183_s20 + $0x54] sm:$0xf0] }
 0x3cc   : > { %5598 = vmatpush.bf16.msra.mxu3 %v6423_v47  ;;  %v6415_v15 = vor.u32 %v7265_v14, %v6414_v6  ;;  %v6278_v51 = vld [vmem:[%s8183_s20 + $0xd0] sm:$0xf]  ;;  %v7231_v27 = vld [vmem:[%s8183_s20 + $0xd4] sm:$0xf0]  ;;  %v6215_v52 = vor.u32 %v7215_v43, %v6214_v12  ;;  %v6206_v59 = vld [vmem:[%s8183_s20 + $0x40] sm:$0xf] }
 0x3cd   : > { %v6342_v0 = vld [vmem:[%s8183_s20 + $0x150] sm:$0xf]  ;;  %5560 = vmatpush.bf16.msra.mxu0 %v6223_v58  ;;  %v7247_v10 = vld [vmem:[%s8183_s20 + $0x154] sm:$0xf0]  ;;  %v6279_v3 = vor.u32 %v7231_v27, %v6278_v51  ;;  %v7213_v42 = vld [vmem:[%s8183_s20 + $0x44] sm:$0xf0] }
 0x3ce   : > { %v6406_v39 = vld [vmem:[%s8183_s20 + $0x1d0] sm:$0xf]  ;;  %v7263_v61 = vld [vmem:[%s8183_s20 + $0x1d4] sm:$0xf0]  ;;  %5573 = vmatpush.bf16.msra.mxu1 %v6287_v41  ;;  %v6343_v31 = vor.u32 %v7247_v10, %v6342_v0  ;;  %v6270_v35 = vld [vmem:[%s8183_s20 + $0xc0] sm:$0xf]  ;;  %v6207_v7 = vor.u32 %v7213_v42, %v6206_v59 }
 0x3cf   : > { %5586 = vmatpush.bf16.msra.mxu2 %v6351_v19  ;;  %v6407_v32 = vor.u32 %v7263_v61, %v6406_v39  ;;  %v7229_v25 = vld [vmem:[%s8183_s20 + $0xc4] sm:$0xf0]  ;;  %v6334_v2 = vld [vmem:[%s8183_s20 + $0x140] sm:$0xf]  ;;  %v6198_v38 = vld [vmem:[%s8183_s20 + $0x30] sm:$0xf] }
 0x3d0   : > { %5599 = vmatpush.bf16.msra.mxu3 %v6415_v15  ;;  %v7245_v5 = vld [vmem:[%s8183_s20 + $0x144] sm:$0xf0]  ;;  %v6398_v30 = vld [vmem:[%s8183_s20 + $0x1c0] sm:$0xf]  ;;  %v6271_v63 = vor.u32 %v7229_v25, %v6270_v35  ;;  %v7211_v17 = vld [vmem:[%s8183_s20 + $0x34] sm:$0xf0] }
 0x3d1   : > { %v7261_v8 = vld [vmem:[%s8183_s20 + $0x1c4] sm:$0xf0]  ;;  %5561 = vmatpush.bf16.msra.mxu0 %v6215_v52  ;;  %v6335_v21 = vor.u32 %v7245_v5, %v6334_v2  ;;  %v6262_v4 = vld [vmem:[%s8183_s20 + $0xb0] sm:$0xf]  ;;  %v7227_v50 = vld [vmem:[%s8183_s20 + $0xb4] sm:$0xf0]  ;;  %v6199_v54 = vor.u32 %v7211_v17, %v6198_v38 }
 0x3d2   : > { %5574 = vmatpush.bf16.msra.mxu1 %v6279_v3  ;;  %v6399_v46 = vor.u32 %v7261_v8, %v6398_v30  ;;  %v6326_v34 = vld [vmem:[%s8183_s20 + $0x130] sm:$0xf]  ;;  %v7243_v1 = vld [vmem:[%s8183_s20 + $0x134] sm:$0xf0]  ;;  %v6263_v16 = vor.u32 %v7227_v50, %v6262_v4  ;;  %v6190_v22 = vld [vmem:[%s8183_s20 + $0x20] sm:$0xf] }
 0x3d3   : > { %5587 = vmatpush.bf16.msra.mxu2 %v6343_v31  ;;  %v6390_v11 = vld [vmem:[%s8183_s20 + $0x1b0] sm:$0xf]  ;;  %v7259_v53 = vld [vmem:[%s8183_s20 + $0x1b4] sm:$0xf0]  ;;  %v6327_v33 = vor.u32 %v7243_v1, %v6326_v34  ;;  %v7209_v49 = vld [vmem:[%s8183_s20 + $0x24] sm:$0xf0] }
 0x3d4   : > { %5600 = vmatpush.bf16.msra.mxu3 %v6407_v32  ;;  %v6254_v48 = vld [vmem:[%s8183_s20 + $0xa0] sm:$0xf]  ;;  %v6391_v9 = vor.u32 %v7259_v53, %v6390_v11  ;;  %v7225_v40 = vld [vmem:[%s8183_s20 + $0xa4] sm:$0xf0]  ;;  %v6191_v56 = vor.u32 %v7209_v49, %v6190_v22  ;;  %v6182_v18 = vld [vmem:[%s8183_s20 + $0x10] sm:$0xf] }
 0x3d5   : > { %5562 = vmatpush.bf16.msra.mxu0 %v6207_v7  ;;  %v6318_v29 = vld [vmem:[%s8183_s20 + $0x120] sm:$0xf]  ;;  %v7241_v20 = vld [vmem:[%s8183_s20 + $0x124] sm:$0xf0]  ;;  %v6255_v62 = vor.u32 %v7225_v40, %v6254_v48  ;;  %v7207_v57 = vld [vmem:[%s8183_s20 + $0x14] sm:$0xf0] }
 0x3d6   : > { %5575 = vmatpush.bf16.msra.mxu1 %v6271_v63  ;;  %v6382_v24 = vld [vmem:[%s8183_s20 + $0x1a0] sm:$0xf]  ;;  %v7257_v60 = vld [vmem:[%s8183_s20 + $0x1a4] sm:$0xf0]  ;;  %v6319_v23 = vor.u32 %v7241_v20, %v6318_v29  ;;  %v6246_v44 = vld [vmem:[%s8183_s20 + $0x90] sm:$0xf]  ;;  %v6183_v58 = vor.u32 %v7207_v57, %v6182_v18 }
 0x3d7   : > { %5588 = vmatpush.bf16.msra.mxu2 %v6335_v21  ;;  %v6383_v37 = vor.u32 %v7257_v60, %v6382_v24  ;;  %v7223_v55 = vld [vmem:[%s8183_s20 + $0x94] sm:$0xf0]  ;;  %v6310_v47 = vld [vmem:[%s8183_s20 + $0x110] sm:$0xf]  ;;  %v6174_v41 = vld [vmem:[%s8183_s20] sm:$0xf] }
 0x3d8   : > { %5601 = vmatpush.bf16.msra.mxu3 %v6399_v46  ;;  %v7239_v36 = vld [vmem:[%s8183_s20 + $0x114] sm:$0xf0]  ;;  %v6374_v28 = vld [vmem:[%s8183_s20 + $0x190] sm:$0xf]  ;;  %v7205_v26 = vld [vmem:[%s8183_s20 + $0x4] sm:$0xf0]  ;;  %v6247_v13 = vor.u32 %v7223_v55, %v6246_v44 }
 0x3d9   : > { %5563 = vmatpush.bf16.msra.mxu0 %v6199_v54  ;;  %v7255_v45 = vld [vmem:[%s8183_s20 + $0x194] sm:$0xf0]  ;;  %v6311_v6 = vor.u32 %v7239_v36, %v6310_v47  ;;  %v6238_v19 = vld [vmem:[%s8183_s20 + $0x80] sm:$0xf]  ;;  %v7221_v14 = vld [vmem:[%s8183_s20 + $0x84] sm:$0xf0]  ;;  %v6175_v39 = vor.u32 %v7205_v26, %v6174_v41 }
 0x3da   : > { %5576 = vmatpush.bf16.msra.mxu1 %v6263_v16  ;;  %v6302_v12 = vld [vmem:[%s8183_s20 + $0x100] sm:$0xf]  ;;  %v6375_v43 = vor.u32 %v7255_v45, %v6374_v28  ;;  %v7237_v15 = vld [vmem:[%s8183_s20 + $0x104] sm:$0xf0]  ;;  %v6486_v0 = vld [vmem:[%s8183_s20 + $0x270] sm:$0xf]  ;;  %v6239_v59 = vor.u32 %v7221_v14, %v6238_v19 }
 0x3db   : > { %5589 = vmatpush.bf16.msra.mxu2 %v6327_v33  ;;  %v6366_v51 = vld [vmem:[%s8183_s20 + $0x180] sm:$0xf]  ;;  %v7253_v27 = vld [vmem:[%s8183_s20 + $0x184] sm:$0xf0]  ;;  %v7283_v52 = vld [vmem:[%s8183_s20 + $0x274] sm:$0xf0]  ;;  %v6303_v42 = vor.u32 %v7237_v15, %v6302_v12 }
 0x3dc   : > { %5602 = vmatpush.bf16.msra.mxu3 %v6391_v9  ;;  %v6550_v10 = vld [vmem:[%s8183_s20 + $0x2f0] sm:$0xf]  ;;  %v7299_v61 = vld [vmem:[%s8183_s20 + $0x2f4] sm:$0xf0]  ;;  %v6367_v25 = vor.u32 %v7253_v27, %v6366_v51  ;;  %v6487_v2 = vor.u32 %v7283_v52, %v6486_v0  ;;  %v6478_v8 = vld [vmem:[%s8183_s20 + $0x260] sm:$0xf] }
 0x3dd   : > { %5564 = vmatpush.bf16.msra.mxu0 %v6191_v56  ;;  %v6614_v3 = vld [vmem:[%s8183_s20 + $0x370] sm:$0xf]  ;;  %v7315_v31 = vld [vmem:[%s8183_s20 + $0x374] sm:$0xf0]  ;;  %v6551_v5 = vor.u32 %v7299_v61, %v6550_v10  ;;  %v7281_v7 = vld [vmem:[%s8183_s20 + $0x264] sm:$0xf0] }
 0x3de   : > { %5577 = vmatpush.bf16.msra.mxu1 %v6255_v62  ;;  %v6678_v35 = vld [vmem:[%s8183_s20 + $0x3f0] sm:$0xf]  ;;  %v7331_v32 = vld [vmem:[%s8183_s20 + $0x3f4] sm:$0xf0]  ;;  %v6615_v30 = vor.u32 %v7315_v31, %v6614_v3  ;;  %v6542_v63 = vld [vmem:[%s8183_s20 + $0x2e0] sm:$0xf]  ;;  %v6479_v34 = vor.u32 %v7281_v7, %v6478_v8 }
 0x3df   : > { %5590 = vmatpush.bf16.msra.mxu2 %v6319_v23  ;;  %v6679_v21 = vor.u32 %v7331_v32, %v6678_v35  ;;  %v7297_v38 = vld [vmem:[%s8183_s20 + $0x2e4] sm:$0xf0]  ;;  %v6606_v17 = vld [vmem:[%s8183_s20 + $0x360] sm:$0xf]  ;;  %v6470_v1 = vld [vmem:[%s8183_s20 + $0x250] sm:$0xf] }
 0x3e0   : > { %5603 = vmatpush.bf16.msra.mxu3 %v6383_v37  ;;  %v7313_v4 = vld [vmem:[%s8183_s20 + $0x364] sm:$0xf0]  ;;  %v6670_v46 = vld [vmem:[%s8183_s20 + $0x3e0] sm:$0xf]  ;;  %v7279_v11 = vld [vmem:[%s8183_s20 + $0x254] sm:$0xf0]  ;;  %v6543_v53 = vor.u32 %v7297_v38, %v6542_v63 }
 0x3e1   : > { %5565 = vmatpush.bf16.msra.mxu0 %v6183_v58  ;;  %v7329_v50 = vld [vmem:[%s8183_s20 + $0x3e4] sm:$0xf0]  ;;  %v6607_v54 = vor.u32 %v7313_v4, %v6606_v17  ;;  %v6534_v16 = vld [vmem:[%s8183_s20 + $0x2d0] sm:$0xf]  ;;  %v7295_v33 = vld [vmem:[%s8183_s20 + $0x2d4] sm:$0xf0]  ;;  %v6471_v20 = vor.u32 %v7279_v11, %v6470_v1 }
 0x3e2   : > { %5578 = vmatpush.bf16.msra.mxu1 %v6247_v13  ;;  %v3962_v22 = vld [vmem:[#allocation2 + $0x10] sm:$0xff]  ;;  %v6671_v49 = vor.u32 %v7329_v50, %v6670_v46  ;;  %v7311_v9 = vld [vmem:[%s8183_s20 + $0x354] sm:$0xf0]  ;;  %v6462_v24 = vld [vmem:[%s8183_s20 + $0x240] sm:$0xf]  ;;  %v6535_v60 = vor.u32 %v7295_v33, %v6534_v16  ;;  %s8004_s30 = smov [#allocation14]  }
 0x3e3   : > { %5591 = vmatpush.bf16.msra.mxu2 %v6311_v6  ;;  %v6598_v48 = vld [vmem:[%s8183_s20 + $0x350] sm:$0xf]  ;;  %3970 = vst [vmem:[#allocation1] ss:$4 sm:$0xff] %v3962_v22  ;;  %v7327_v29 = vld [vmem:[%s8183_s20 + $0x3d4] sm:$0xf0] }
 0x3e4   : > { %5604 = vmatpush.bf16.msra.mxu3 %v6375_v43  ;;  %v6662_v40 = vld [vmem:[%s8183_s20 + $0x3d0] sm:$0xf]  ;;  %v6599_v56 = vor.u32 %v7311_v9, %v6598_v48  ;;  %v7277_v62 = vld [vmem:[%s8183_s20 + $0x244] sm:$0xf0]  ;;  %v6526_v23 = vld [vmem:[%s8183_s20 + $0x2c0] sm:$0xf] }
 0x3e5   : > { %5566 = vmatpush.bf16.msra.mxu0 %v6175_v39  ;;  %v7293_v18 = vld [vmem:[%s8183_s20 + $0x2c4] sm:$0xf0]  ;;  %v6663_v57 = vor.u32 %v7327_v29, %v6662_v40  ;;  %v6590_v44 = vld [vmem:[%s8183_s20 + $0x340] sm:$0xf]  ;;  %v6454_v36 = vld [vmem:[%s8183_s20 + $0x230] sm:$0xf]  ;;  %v6463_v45 = vor.u32 %v7277_v62, %v6462_v24 }
 0x3e6   : > { %5579 = vmatpush.bf16.msra.mxu1 %v6239_v59  ;;  %v7309_v37 = vld [vmem:[%s8183_s20 + $0x344] sm:$0xf0]  ;;  %v6654_v55 = vld [vmem:[%s8183_s20 + $0x3c0] sm:$0xf]  ;;  %v7275_v28 = vld [vmem:[%s8183_s20 + $0x234] sm:$0xf0]  ;;  %v6527_v19 = vor.u32 %v7293_v18, %v6526_v23 }
 0x3e7   : > { %5592 = vmatpush.bf16.msra.mxu2 %v6303_v42  ;;  %v7325_v47 = vld [vmem:[%s8183_s20 + $0x3c4] sm:$0xf0]  ;;  %v6518_v58 = vld [vmem:[%s8183_s20 + $0x2b0] sm:$0xf]  ;;  %v7291_v41 = vld [vmem:[%s8183_s20 + $0x2b4] sm:$0xf0]  ;;  %v6591_v14 = vor.u32 %v7309_v37, %v6590_v44  ;;  %v6455_v31 = vor.u32 %v7275_v28, %v6454_v36 }
 0x3e8   : > { %5605 = vmatpush.bf16.msra.mxu3 %v6367_v25  ;;  %v6582_v26 = vld [vmem:[%s8183_s20 + $0x330] sm:$0xf]  ;;  %v7307_v13 = vld [vmem:[%s8183_s20 + $0x334] sm:$0xf0]  ;;  %v6655_v15 = vor.u32 %v7325_v47, %v6654_v55  ;;  %v6519_v59 = vor.u32 %v7291_v41, %v6518_v58  ;;  %v6446_v35 = vld [vmem:[%s8183_s20 + $0x220] sm:$0xf] }
 0x3e9   : > { %5611 = vmatpush.bf16.msrb.mxu0 %v6487_v2  ;;  %v3964_v6 = vld [vmem:[#allocation2 + $0x18] sm:$0xff]  ;;  %v6646_v10 = vld [vmem:[%s8183_s20 + $0x3b0] sm:$0xf]  ;;  %v6583_v42 = vor.u32 %v7307_v13, %v6582_v26  ;;  %v7273_v32 = vld [vmem:[%s8183_s20 + $0x224] sm:$0xf0]  ;;  %s5993_s9 = sshll.u32 %s8004_s30, 4  ;;  %s5994_s9 = int_to_ptr.vmem [resolvable:$true] %s5993_s9 }
 0x3ea   : > { %5624 = vmatpush.bf16.msrb.mxu1 %v6551_v5  ;;  %v3975_v12 = vld.sshfl [vmem:[#allocation1 + $0x10] sm:$0xff pattern:$0x73625140]  ;;  %v3973_v43 = vld.sshfl [vmem:[#allocation1] sm:$0xff pattern:$0x73625140] }
 0x3eb   : > { %5637 = vmatpush.bf16.msrb.mxu2 %v6615_v30  ;;  %v10874_v51 = vpack.c.bf16 %v3975_v12, %v3975_v12  ;;  %v10876_v27 = vpack.c.bf16 %v3973_v43, %v3973_v43  ;;  %v3976_v0 = vld.sshfl [vmem:[#allocation1 + $0x18] sm:$0xff pattern:$0x73625140]  ;;  %v3974_v52 = vld.sshfl [vmem:[#allocation1 + $0x8] sm:$0xff pattern:$0x73625140] }
 0x3ec   : > { %5650 = vmatpush.bf16.msrb.mxu3 %v6679_v21  ;;  %v7323_v39 = vld [vmem:[%s8183_s20 + $0x3b4] sm:$0xf0]  ;;  %v10880_v61 = vpack.c.bf16 %v3976_v0, %v3976_v0  ;;  %3981 = vst [vmem:[#allocation1] ss:$4 sm:$0xff] %v3964_v6  ;;  %v10882_v3 = vpack.c.bf16 %v3974_v52, %v3974_v52  ;;  %v6510_v25 = vld [vmem:[%s8183_s20 + $0x2a0] sm:$0xf]  ;;  %v6447_v21 = vor.u32 %v7273_v32, %v6446_v35 }
 0x3ed   : > { %5612 = vmatpush.bf16.msrb.mxu0 %v6479_v34  ;;  %5593 = vmatmul.bf16.vlgmr.msra.gmra.mxu2 %v10874_v51  ;;  %v6647_v2 = vor.u32 %v7323_v39, %v6646_v10  ;;  %v7289_v5 = vld [vmem:[%s8183_s20 + $0x2a4] sm:$0xf0]  ;;  %v6574_v30 = vld [vmem:[%s8183_s20 + $0x320] sm:$0xf]  ;;  %v6438_v38 = vld [vmem:[%s8183_s20 + $0x210] sm:$0xf] }
 0x3ee   : > { %5625 = vmatpush.bf16.msrb.mxu1 %v6543_v53  ;;  %v7305_v8 = vld [vmem:[%s8183_s20 + $0x324] sm:$0xf0]  ;;  %5567 = vmatmul.bf16.vlgmr.msra.gmra.mxu0 %v10876_v27  ;;  %v6638_v7 = vld [vmem:[%s8183_s20 + $0x3a0] sm:$0xf]  ;;  %v7271_v17 = vld [vmem:[%s8183_s20 + $0x214] sm:$0xf0]  ;;  %v6511_v4 = vor.u32 %v7289_v5, %v6510_v25 }
 0x3ef   : > { %5638 = vmatpush.bf16.msrb.mxu2 %v6607_v54  ;;  %v7321_v63 = vld [vmem:[%s8183_s20 + $0x3a4] sm:$0xf0]  ;;  %5606 = vmatmul.bf16.vlgmr.msra.gmra.mxu3 %v10880_v61  ;;  %v6575_v46 = vor.u32 %v7305_v8, %v6574_v30  ;;  %v6502_v50 = vld [vmem:[%s8183_s20 + $0x290] sm:$0xf]  ;;  %v7287_v34 = vld [vmem:[%s8183_s20 + $0x294] sm:$0xf0] }
 0x3f0   : > { %5651 = vmatpush.bf16.msrb.mxu3 %v6671_v49  ;;  %5580 = vmatmul.bf16.vlgmr.msra.gmra.mxu1 %v10882_v3  ;;  %v6566_v1 = vld [vmem:[%s8183_s20 + $0x310] sm:$0xf]  ;;  %v6639_v11 = vor.u32 %v7321_v63, %v6638_v7  ;;  %v7303_v53 = vld [vmem:[%s8183_s20 + $0x314] sm:$0xf0]  ;;  %v3963_v16 = vld [vmem:[#allocation2] sm:$0xff]  ;;  %v6439_v49 = vor.u32 %v7271_v17, %v6438_v38  ;;  %v6503_v29 = vor.u32 %v7287_v34, %v6502_v50  ;;  %s5995_s18 = sshll.u32 %s11401_s6, 4  ;;  %s5996_s18 = int_to_ptr.hbm [resolvable:$true] %s5995_s18 }
 0x3f1   : > { %5613 = vmatpush.bf16.msrb.mxu0 %v6471_v20  ;;  %v6630_v54 = vld [vmem:[%s8183_s20 + $0x390] sm:$0xf]  ;;  %v7319_v33 = vld [vmem:[%s8183_s20 + $0x394] sm:$0xf0]  ;;  %v6430_v22 = vld [vmem:[%s8183_s20 + $0x200] sm:$0xf]  ;;  %v6567_v20 = vor.u32 %v7303_v53, %v6566_v1 }
 0x3f2   : > { %5626 = vmatpush.bf16.msrb.mxu1 %v6535_v60  ;;  %3972 = vst [vmem:[#allocation1 + $0x20] ss:$4 sm:$0xff] %v3963_v16  ;;  %v7269_v48 = vld [vmem:[%s8183_s20 + $0x204] sm:$0xf0]  ;;  %v6494_v9 = vld [vmem:[%s8183_s20 + $0x280] sm:$0xf]  ;;  %v6631_v62 = vor.u32 %v7319_v33, %v6630_v54 }
 0x3f3   : > { %5639 = vmatpush.bf16.msrb.mxu2 %v6599_v56  ;;  %v7285_v40 = vld [vmem:[%s8183_s20 + $0x284] sm:$0xf0]  ;;  %v6558_v24 = vld [vmem:[%s8183_s20 + $0x300] sm:$0xf]  ;;  %v6742_v18 = vld [vmem:[%s8183_s20 + $0x470] sm:$0xf]  ;;  %v6431_v47 = vor.u32 %v7269_v48, %v6430_v22 }
 0x3f4   : > { %5652 = vmatpush.bf16.msrb.mxu3 %v6663_v57  ;;  %v7301_v60 = vld [vmem:[%s8183_s20 + $0x304] sm:$0xf0]  ;;  %v6622_v56 = vld [vmem:[%s8183_s20 + $0x380] sm:$0xf]  ;;  %v7347_v57 = vld [vmem:[%s8183_s20 + $0x474] sm:$0xf0]  ;;  %v6495_v58 = vor.u32 %v7285_v40, %v6494_v9 }
 0x3f5   : > { %5614 = vmatpush.bf16.msrb.mxu0 %v6463_v45  ;;  %v7317_v23 = vld [vmem:[%s8183_s20 + $0x384] sm:$0xf0]  ;;  %v6806_v44 = vld [vmem:[%s8183_s20 + $0x4f0] sm:$0xf]  ;;  %v7363_v37 = vld [vmem:[%s8183_s20 + $0x4f4] sm:$0xf0]  ;;  %v6559_v41 = vor.u32 %v7301_v60, %v6558_v24 }
 0x3f6   : > { %5627 = vmatpush.bf16.msrb.mxu1 %v6527_v19  ;;  %v6870_v55 = vld [vmem:[%s8183_s20 + $0x570] sm:$0xf]  ;;  %v7379_v36 = vld [vmem:[%s8183_s20 + $0x574] sm:$0xf0]  ;;  %v6734_v26 = vld [vmem:[%s8183_s20 + $0x460] sm:$0xf]  ;;  %v6623_v19 = vor.u32 %v7317_v23, %v6622_v56  ;;  %v6807_v52 = vor.u32 %v7363_v37, %v6806_v44 }
 0x3f7   : > { %5640 = vmatpush.bf16.msrb.mxu2 %v6591_v14  ;;  %v6934_v28 = vld [vmem:[%s8183_s20 + $0x5f0] sm:$0xf]  ;;  %v7395_v45 = vld [vmem:[%s8183_s20 + $0x5f4] sm:$0xf0]  ;;  %v7345_v13 = vld [vmem:[%s8183_s20 + $0x464] sm:$0xf0]  ;;  %v6743_v14 = vor.u32 %v7347_v57, %v6742_v18  ;;  %v6871_v10 = vor.u32 %v7379_v36, %v6870_v55 }
 0x3f8   : > { %5653 = vmatpush.bf16.msrb.mxu3 %v6655_v15  ;;  %v3965_v6 = vld [vmem:[#allocation2 + $0x8] sm:$0xff]  ;;  %v6798_v12 = vld [vmem:[%s8183_s20 + $0x4e0] sm:$0xf]  ;;  %v6735_v8 = vor.u32 %v7345_v13, %v6734_v26  ;;  %v6726_v38 = vld [vmem:[%s8183_s20 + $0x450] sm:$0xf]  ;;  %p12169_p2 = scmp.eq.s32.totalorder %s8066_s28, 1 }
 0x3f9   : > { %5615 = vmatpush.bf16.msrb.mxu0 %v6455_v31  ;;  %v7361_v43 = vld [vmem:[%s8183_s20 + $0x4e4] sm:$0xf0]  ;;  %v3977_v0 = vld.sshfl [vmem:[#allocation1 + $0x20] sm:$0xff pattern:$0x73625140]  ;;  %s7460_s11 = sshll.u32 %s8066_s28, 2 }
 0x3fa   : > { %5628 = vmatpush.bf16.msrb.mxu1 %v6519_v59  ;;  %v3979_v15 = vld.sshfl [vmem:[#allocation1 + $0x30] sm:$0xff pattern:$0x73625140]  ;;  %v3980_v39 = vld.sshfl [vmem:[#allocation1 + $0x38] sm:$0xff pattern:$0x73625140]  ;;  %v6935_v59 = vor.u32 %v7395_v45, %v6934_v28  ;;  %v10930_v5 = vpack.c.bf16 %v3977_v0, %v3977_v0  ;;  %v6799_v63 = vor.u32 %v7361_v43, %v6798_v12  ;;  %s6006_s16 = scalar_lea.hbm %s11402_s7, %s7460_s11 }
 0x3fb   : > { %5641 = vmatpush.bf16.msrb.mxu2 %v6583_v42  ;;  %v3978_v31 = vld.sshfl [vmem:[#allocation1 + $0x28] sm:$0xff pattern:$0x73625140]  ;;  %v7377_v35 = vld [vmem:[%s8183_s20 + $0x564] sm:$0xf0]  ;;  %v10926_v32 = vpack.c.bf16 %v3979_v15, %v3979_v15  ;;  %v10932_v30 = vpack.c.bf16 %v3980_v39, %v3980_v39  ;;  %s6008_s22 = sshll.u32 %s8190_s23, 4  ;;  %s6009_s22 = int_to_ptr.vmem [resolvable:$true] %s6008_s22 }
 0x3fc   : > { %5654 = vmatpush.bf16.msrb.mxu3 %v6647_v2  ;;  %v6862_v42 = vld [vmem:[%s8183_s20 + $0x560] sm:$0xf]  ;;  %3982 = vst [vmem:[#allocation1 + $0x20] ss:$4 sm:$0xff] %v3965_v6  ;;  %v7393_v2 = vld [vmem:[%s8183_s20 + $0x5e4] sm:$0xf0]  ;;  %v10934_v7 = vpack.c.bf16 %v3978_v31, %v3978_v31 }
 0x3fd   : > { %5616 = vmatpush.bf16.msrb.mxu0 %v6447_v21  ;;  %v6926_v25 = vld [vmem:[%s8183_s20 + $0x5e0] sm:$0xf]  ;;  %v6863_v21 = vor.u32 %v7377_v35, %v6862_v42  ;;  %v7343_v17 = vld [vmem:[%s8183_s20 + $0x454] sm:$0xf0]  ;;  %v6854_v34 = vld [vmem:[%s8183_s20 + $0x550] sm:$0xf] }
 0x3fe   : > { %5629 = vmatpush.bf16.msrb.mxu1 %v6511_v4  ;;  %v6790_v4 = vld [vmem:[%s8183_s20 + $0x4d0] sm:$0xf]  ;;  %v7359_v50 = vld [vmem:[%s8183_s20 + $0x4d4] sm:$0xf0]  ;;  %v6727_v54 = vor.u32 %v7343_v17, %v6726_v38  ;;  %v6718_v22 = vld [vmem:[%s8183_s20 + $0x440] sm:$0xf] }
 0x3ff   : > { %5642 = vmatpush.bf16.msrb.mxu2 %v6575_v46  ;;  %v6927_v46 = vor.u32 %v7393_v2, %v6926_v25  ;;  %v7375_v1 = vld [vmem:[%s8183_s20 + $0x554] sm:$0xf0]  ;;  %v6791_v16 = vor.u32 %v7359_v50, %v6790_v4  ;;  %v6782_v48 = vld [vmem:[%s8183_s20 + $0x4c0] sm:$0xf]  ;;  %v7357_v40 = vld [vmem:[%s8183_s20 + $0x4c4] sm:$0xf0] }
 0x400   : > { %5655 = vmatpush.bf16.msrb.mxu3 %v6639_v11  ;;  %v6918_v11 = vld [vmem:[%s8183_s20 + $0x5d0] sm:$0xf]  ;;  %v7391_v53 = vld [vmem:[%s8183_s20 + $0x5d4] sm:$0xf0]  ;;  %v6855_v33 = vor.u32 %v7375_v1, %v6854_v34  ;;  %v6910_v24 = vld [vmem:[%s8183_s20 + $0x5c0] sm:$0xf] }
 0x401   : > { %5617 = vmatpush.bf16.msrb.mxu0 %v6439_v49  ;;  %v7341_v49 = vld [vmem:[%s8183_s20 + $0x444] sm:$0xf0]  ;;  %v6919_v9 = vor.u32 %v7391_v53, %v6918_v11  ;;  %v6710_v18 = vld [vmem:[%s8183_s20 + $0x430] sm:$0xf]  ;;  %v7339_v57 = vld [vmem:[%s8183_s20 + $0x434] sm:$0xf0] }
 0x402   : > { %5630 = vmatpush.bf16.msrb.mxu1 %v6503_v29  ;;  %v6846_v29 = vld [vmem:[%s8183_s20 + $0x540] sm:$0xf]  ;;  %v7389_v60 = vld [vmem:[%s8183_s20 + $0x5c4] sm:$0xf0]  ;;  %v6719_v56 = vor.u32 %v7341_v49, %v6718_v22  ;;  %v6774_v44 = vld [vmem:[%s8183_s20 + $0x4b0] sm:$0xf] }
 0x403   : > { %5643 = vmatpush.bf16.msrb.mxu2 %v6567_v20  ;;  %v7373_v20 = vld [vmem:[%s8183_s20 + $0x544] sm:$0xf0]  ;;  %v6911_v37 = vor.u32 %v7389_v60, %v6910_v24  ;;  %v7355_v55 = vld [vmem:[%s8183_s20 + $0x4b4] sm:$0xf0]  ;;  %v6902_v28 = vld [vmem:[%s8183_s20 + $0x5b0] sm:$0xf] }
 0x404   : > { %5656 = vmatpush.bf16.msrb.mxu3 %v6631_v62  ;;  %v6783_v62 = vor.u32 %v7357_v40, %v6782_v48  ;;  %v6847_v23 = vor.u32 %v7373_v20, %v6846_v29  ;;  %v7371_v36 = vld [vmem:[%s8183_s20 + $0x534] sm:$0xf0]  ;;  %v6702_v13 = vld [vmem:[%s8183_s20 + $0x420] sm:$0xf]  ;;  %v7337_v6 = vld [vmem:[%s8183_s20 + $0x424] sm:$0xf0] }
 0x405   : > { %5618 = vmatpush.bf16.msrb.mxu0 %v6431_v47  ;;  %v6838_v47 = vld [vmem:[%s8183_s20 + $0x530] sm:$0xf]  ;;  %v7387_v45 = vld [vmem:[%s8183_s20 + $0x5b4] sm:$0xf0]  ;;  %v7353_v12 = vld [vmem:[%s8183_s20 + $0x4a4] sm:$0xf0] }
 0x406   : > { %5631 = vmatpush.bf16.msrb.mxu1 %v6495_v58  ;;  %v6711_v58 = vor.u32 %v7339_v57, %v6710_v18  ;;  %v6839_v26 = vor.u32 %v7371_v36, %v6838_v47  ;;  %v6830_v43 = vld [vmem:[%s8183_s20 + $0x520] sm:$0xf]  ;;  %v7369_v15 = vld [vmem:[%s8183_s20 + $0x524] sm:$0xf0]  ;;  %v7335_v42 = vld [vmem:[%s8183_s20 + $0x414] sm:$0xf0] }
 0x407   : > { %5644 = vmatpush.bf16.msrb.mxu2 %v6559_v41  ;;  %v6775_v41 = vor.u32 %v7355_v55, %v6774_v44  ;;  %v6894_v0 = vld [vmem:[%s8183_s20 + $0x5a0] sm:$0xf]  ;;  %v6831_v31 = vor.u32 %v7369_v15, %v6830_v43  ;;  %v6758_v35 = vld [vmem:[%s8183_s20 + $0x490] sm:$0xf]  ;;  %v7351_v2 = vld [vmem:[%s8183_s20 + $0x494] sm:$0xf0] }
 0x408   : > { %5657 = vmatpush.bf16.msrb.mxu3 %v6623_v19  ;;  %5619 = vmatmul.bf16.vlgmr.msrb.gmra.mxu0 %v10930_v5  ;;  %v6766_v19 = vld [vmem:[%s8183_s20 + $0x4a0] sm:$0xf]  ;;  %v7383_v38 = vld [vmem:[%s8183_s20 + $0x594] sm:$0xf0]  ;;  %v7349_v34 = vld [vmem:[%s8183_s20 + $0x484] sm:$0xf0]  ;;  %v6759_v1 = vor.u32 %v7351_v2, %v6758_v35 }
 0x409   : > { %5663 = vmatpush.bf16.msra.mxu0 %v6743_v14  ;;  %5632 = vmatmul.bf16.vlgmr.msrb.gmra.mxu1 %v10934_v7  ;;  %v6903_v14 = vor.u32 %v7387_v45, %v6902_v28  ;;  %v6767_v39 = vor.u32 %v7353_v12, %v6766_v19  ;;  %v6686_v17 = vld [vmem:[%s8183_s20 + $0x400] sm:$0xf]  ;;  %v7381_v22 = vld [vmem:[%s8183_s20 + $0x584] sm:$0xf0]  ;;  %v6998_v49 = vld [vmem:[%s8183_s20 + $0x670] sm:$0xf] }
 0x40a   : > { %5676 = vmatpush.bf16.msra.mxu1 %v6807_v52  ;;  %5645 = vmatmul.bf16.vlgmr.msrb.gmra.mxu2 %v10926_v32  ;;  %v7385_v52 = vld [vmem:[%s8183_s20 + $0x5a4] sm:$0xf0]  ;;  %v6750_v50 = vld [vmem:[%s8183_s20 + $0x480] sm:$0xf]  ;;  %v7411_v48 = vld [vmem:[%s8183_s20 + $0x674] sm:$0xf0] }
 0x40b   : > { %5689 = vmatpush.bf16.msra.mxu2 %v6871_v10  ;;  %5658 = vmatmul.bf16.vlgmr.msrb.gmra.mxu3 %v10932_v30  ;;  %v6703_v10 = vor.u32 %v7337_v6, %v6702_v13  ;;  %v6895_v25 = vor.u32 %v7385_v52, %v6894_v0  ;;  %v6814_v53 = vld [vmem:[%s8183_s20 + $0x500] sm:$0xf]  ;;  %v7427_v40 = vld [vmem:[%s8183_s20 + $0x6f4] sm:$0xf0]  ;;  %v7126_v29 = vld [vmem:[%s8183_s20 + $0x770] sm:$0xf] }
 0x40c   : > { %5702 = vmatpush.bf16.msra.mxu3 %v6935_v59  ;;  %v6694_v59 = vld [vmem:[%s8183_s20 + $0x410] sm:$0xf]  ;;  %v7443_v24 = vld [vmem:[%s8183_s20 + $0x774] sm:$0xf0]  ;;  %v6990_v45 = vld [vmem:[%s8183_s20 + $0x660] sm:$0xf] }
 0x40d   : > { %5664 = vmatpush.bf16.msra.mxu0 %v6735_v8  ;;  %v6822_v8 = vld [vmem:[%s8183_s20 + $0x510] sm:$0xf]  ;;  %v6695_v4 = vor.u32 %v7335_v42, %v6694_v59  ;;  %v3983_v18 = vld.sshfl [vmem:[#allocation1] sm:$0xff pattern:$0x73625140]  ;;  %v7127_v28 = vor.u32 %v7443_v24, %v7126_v29  ;;  %s6010_s1 = sshll.u32 %s6006_s16, 4  ;;  %s6011_s1 = int_to_ptr.hbm [resolvable:$true] %s6010_s1 }
 0x40e   : > { %5677 = vmatpush.bf16.msra.mxu1 %v6799_v63  ;;  %v7367_v63 = vld [vmem:[%s8183_s20 + $0x514] sm:$0xf0]  ;;  %v7190_v60 = vld [vmem:[%s8183_s20 + $0x7f0] sm:$0xf]  ;;  %v10999_v13 = vpack.c.bf16 %v3983_v18, %v3983_v18  ;;  %v7425_v6 = vld [vmem:[%s8183_s20 + $0x6e4] sm:$0xf0] }
 0x40f   : > { %5690 = vmatpush.bf16.msra.mxu2 %v6863_v21  ;;  %v6886_v21 = vld [vmem:[%s8183_s20 + $0x590] sm:$0xf]  ;;  %v6823_v11 = vor.u32 %v7367_v63, %v6822_v8  ;;  %v3985_v57 = vld.sshfl [vmem:[#allocation1 + $0x10] sm:$0xff pattern:$0x73625140]  ;;  %vm5978_vm13 = vcmask 1041408  }
 0x410   : > { %5703 = vmatpush.bf16.msra.mxu3 %v6927_v46  ;;  %v7333_v46 = vld [vmem:[%s8183_s20 + $0x404] sm:$0xf0]  ;;  %v3984_v55 = vld.sshfl [vmem:[#allocation1 + $0x8] sm:$0xff pattern:$0x73625140]  ;;  %v11004_v12 = vpack.c.bf16 %v3985_v57, %v3985_v57  ;;  %s5983_s12 = scalar_lea.sflag [#allocation16], %s8179_s0 }
 0x411   : > { %5665 = vmatpush.bf16.msra.mxu0 %v6727_v54  ;;  %v7365_v54 = vld [vmem:[%s8183_s20 + $0x504] sm:$0xf0]  ;;  %v6687_v20 = vor.u32 %v7333_v46, %v6686_v17  ;;  %v3986_v47 = vld.sshfl [vmem:[#allocation1 + $0x18] sm:$0xff pattern:$0x73625140]  ;;  %v11006_v43 = vpack.c.bf16 %v3984_v55, %v3984_v55  ;;  %s7930_s10 = scalar_lea.hbm %s11402_s7, 8 }
 0x412   : > { %5678 = vmatpush.bf16.msra.mxu1 %v6791_v16  ;;  %v6878_v16 = vld [vmem:[%s8183_s20 + $0x580] sm:$0xf]  ;;  %v7457_v0 = vld [vmem:[%s8183_s20 + $0x7e4] sm:$0xf0]  ;;  %v11010_v52 = vpack.c.bf16 %v3986_v47, %v3986_v47  ;;  %v6982_v59 = vld [vmem:[%s8183_s20 + $0x650] sm:$0xf] }
 0x413   : > { %5691 = vmatpush.bf16.msra.mxu2 %v6855_v33  ;;  %v6887_v33 = vor.u32 %v7383_v38, %v6886_v21  ;;  %v6879_v44 = vor.u32 %v7381_v22, %v6878_v16  ;;  %v7118_v19 = vld [vmem:[%s8183_s20 + $0x760] sm:$0xf]  ;;  %v7407_v42 = vld [vmem:[%s8183_s20 + $0x654] sm:$0xf0]  ;;  %v7046_v35 = vld [vmem:[%s8183_s20 + $0x6d0] sm:$0xf] }
 0x414   : > { %5704 = vmatpush.bf16.msra.mxu3 %v6919_v9  ;;  %v7062_v9 = vld [vmem:[%s8183_s20 + $0x6f0] sm:$0xf]  ;;  %v7182_v15 = vld [vmem:[%s8183_s20 + $0x7e0] sm:$0xf]  ;;  %v7423_v2 = vld [vmem:[%s8183_s20 + $0x6d4] sm:$0xf0]  ;;  %v6983_v17 = vor.u32 %v7407_v42, %v6982_v59 }
 0x415   : > { %5666 = vmatpush.bf16.msra.mxu0 %v6719_v56  ;;  %v7459_v56 = vld [vmem:[%s8183_s20 + $0x7f4] sm:$0xf0]  ;;  %v7063_v36 = vor.u32 %v7427_v40, %v7062_v9  ;;  %v7110_v8 = vld [vmem:[%s8183_s20 + $0x750] sm:$0xf]  ;;  %v7437_v16 = vld [vmem:[%s8183_s20 + $0x744] sm:$0xf0] }
 0x416   : > { %5679 = vmatpush.bf16.msra.mxu1 %v6783_v62  ;;  %v6751_v62 = vor.u32 %v7349_v34, %v6750_v50  ;;  %v7439_v63 = vld [vmem:[%s8183_s20 + $0x754] sm:$0xf0]  ;;  %v7174_v21 = vld [vmem:[%s8183_s20 + $0x7d0] sm:$0xf]  ;;  %v6974_v50 = vld [vmem:[%s8183_s20 + $0x640] sm:$0xf] }
 0x417   : > { %5692 = vmatpush.bf16.msra.mxu2 %v6847_v23  ;;  %v6815_v23 = vor.u32 %v7365_v54, %v6814_v53  ;;  %v7455_v38 = vld [vmem:[%s8183_s20 + $0x7d4] sm:$0xf0]  ;;  %v7111_v46 = vor.u32 %v7439_v63, %v7110_v8  ;;  %v7405_v34 = vld [vmem:[%s8183_s20 + $0x644] sm:$0xf0]  ;;  %v7102_v54 = vld [vmem:[%s8183_s20 + $0x740] sm:$0xf] }
 0x418   : > { %5705 = vmatpush.bf16.msra.mxu3 %v6911_v37  ;;  %v6999_v37 = vor.u32 %v7411_v48, %v6998_v49  ;;  %v7421_v53 = vld [vmem:[%s8183_s20 + $0x6c4] sm:$0xf0]  ;;  %v6975_v49 = vor.u32 %v7405_v34, %v6974_v50  ;;  %v7103_v9 = vor.u32 %v7437_v16, %v7102_v54  ;;  %v6966_v40 = vld [vmem:[%s8183_s20 + $0x630] sm:$0xf]  ;;  %v7403_v29 = vld [vmem:[%s8183_s20 + $0x634] sm:$0xf0] }
 0x419   : > { %5667 = vmatpush.bf16.msra.mxu0 %v6711_v58  ;;  %v7409_v58 = vld [vmem:[%s8183_s20 + $0x664] sm:$0xf0]  ;;  %v7451_v18 = vld [vmem:[%s8183_s20 + $0x7b4] sm:$0xf0]  ;;  %v6967_v57 = vor.u32 %v7403_v29, %v6966_v40  ;;  %v6958_v55 = vld [vmem:[%s8183_s20 + $0x620] sm:$0xf] }
 0x41a   : > { %5680 = vmatpush.bf16.msra.mxu1 %v6775_v41  ;;  %v7054_v41 = vld [vmem:[%s8183_s20 + $0x6e0] sm:$0xf]  ;;  %v7453_v22 = vld [vmem:[%s8183_s20 + $0x7c4] sm:$0xf0]  ;;  %v7415_v59 = vld [vmem:[%s8183_s20 + $0x694] sm:$0xf0] }
 0x41b   : > { %5693 = vmatpush.bf16.msra.mxu2 %v6839_v26  ;;  %v7191_v26 = vor.u32 %v7459_v56, %v7190_v60  ;;  %v7419_v60 = vld [vmem:[%s8183_s20 + $0x6b4] sm:$0xf0]  ;;  %v7094_v56 = vld [vmem:[%s8183_s20 + $0x730] sm:$0xf]  ;;  %v7401_v47 = vld [vmem:[%s8183_s20 + $0x624] sm:$0xf0] }
 0x41c   : > { %5706 = vmatpush.bf16.msra.mxu3 %v6903_v14  ;;  %v7441_v14 = vld [vmem:[%s8183_s20 + $0x764] sm:$0xf0]  ;;  %v7078_v42 = vld [vmem:[%s8183_s20 + $0x710] sm:$0xf]  ;;  %v6942_v8 = vld [vmem:[%s8183_s20 + $0x600] sm:$0xf] }
 0x41d   : > { %5668 = vmatpush.bf16.msra.mxu0 %v6703_v10  ;;  %v6991_v10 = vor.u32 %v7409_v58, %v6990_v45  ;;  %v7417_v45 = vld [vmem:[%s8183_s20 + $0x6a4] sm:$0xf0]  ;;  %v7086_v58 = vld [vmem:[%s8183_s20 + $0x720] sm:$0xf]  ;;  %v7218_v54 = vld [vmem:[%s8183_s20 + $0x74] sm:$0xf] }
 0x41e   : > { %5681 = vmatpush.bf16.msra.mxu1 %v6767_v39  ;;  %v7055_v39 = vor.u32 %v7425_v6, %v7054_v41  ;;  %v7433_v41 = vld [vmem:[%s8183_s20 + $0x724] sm:$0xf0]  ;;  %v7070_v50 = vld [vmem:[%s8183_s20 + $0x700] sm:$0xf]  ;;  %v6232_v16 = vld [vmem:[%s8183_s20 + $0x78] sm:$0xf0] }
 0x41f   : > { %5694 = vmatpush.bf16.msra.mxu2 %v6831_v31  ;;  %v7119_v31 = vor.u32 %v7441_v14, %v7118_v19  ;;  %v7449_v6 = vld [vmem:[%s8183_s20 + $0x7a4] sm:$0xf0]  ;;  %v6959_v19 = vor.u32 %v7401_v47, %v6958_v55  ;;  %v7266_v40 = vld [vmem:[%s8183_s20 + $0x1f4] sm:$0xf]  ;;  %v6424_v29 = vld [vmem:[%s8183_s20 + $0x1f8] sm:$0xf0] }
 0x420   : > { %5707 = vmatpush.bf16.msra.mxu3 %v6895_v25  ;;  %v7183_v25 = vor.u32 %v7457_v0, %v7182_v15  ;;  %v7087_v15 = vor.u32 %v7433_v41, %v7086_v58  ;;  %v6950_v0 = vld [vmem:[%s8183_s20 + $0x610] sm:$0xf]  ;;  %v7429_v34 = vld [vmem:[%s8183_s20 + $0x704] sm:$0xf0]  ;;  %v7216_v55 = vld [vmem:[%s8183_s20 + $0x64] sm:$0xf] }
 0x421   : > { %5669 = vmatpush.bf16.msra.mxu0 %v6695_v4  ;;  %v7047_v4 = vor.u32 %v7423_v2, %v7046_v35  ;;  %v7431_v35 = vld [vmem:[%s8183_s20 + $0x714] sm:$0xf0]  ;;  %v6224_v47 = vld [vmem:[%s8183_s20 + $0x68] sm:$0xf0]  ;;  %v7248_v41 = vld [vmem:[%s8183_s20 + $0x164] sm:$0xf] }
 0x422   : > { %5682 = vmatpush.bf16.msra.mxu1 %v6759_v1  ;;  %v7038_v1 = vld [vmem:[%s8183_s20 + $0x6c0] sm:$0xf]  ;;  %v7447_v2 = vld [vmem:[%s8183_s20 + $0x794] sm:$0xf0]  ;;  %v6288_v58 = vld [vmem:[%s8183_s20 + $0xe8] sm:$0xf0] }
 0x423   : > { %5695 = vmatpush.bf16.msra.mxu2 %v6823_v11  ;;  %v7175_v11 = vor.u32 %v7455_v38, %v7174_v21  ;;  %v7039_v48 = vor.u32 %v7421_v53, %v7038_v1  ;;  %v7397_v21 = vld [vmem:[%s8183_s20 + $0x604] sm:$0xf0]  ;;  %v7006_v38 = vld [vmem:[%s8183_s20 + $0x680] sm:$0xf]  ;;  %7484 = dma.vmem_to_hbm [thread:$0]  (%p12169_p2), %s5994_s9, 512, %s5996_s18, [#allocation5]  }
 0x424   : > { %5708 = vmatpush.bf16.msra.mxu3 %v6887_v33  ;;  %v7166_v33 = vld [vmem:[%s8183_s20 + $0x7c0] sm:$0xf]  ;;  %v7445_v53 = vld [vmem:[%s8183_s20 + $0x784] sm:$0xf0] }
 0x425   : > { %5670 = vmatpush.bf16.msra.mxu0 %v6687_v20  ;;  %v7030_v20 = vld [vmem:[%s8183_s20 + $0x6b0] sm:$0xf]  ;;  %v7167_v24 = vor.u32 %v7453_v22, %v7166_v33  ;;  %v7134_v1 = vld [vmem:[%s8183_s20 + $0x780] sm:$0xf]  ;;  %v7234_v33 = vld [vmem:[%s8183_s20 + $0xf4] sm:$0xf] }
 0x426   : > { %5683 = vmatpush.bf16.msra.mxu1 %v6751_v62  ;;  %v7435_v62 = vld [vmem:[%s8183_s20 + $0x734] sm:$0xf0]  ;;  %v6296_v22 = vld [vmem:[%s8183_s20 + $0xf8] sm:$0xf0] }
 0x427   : > { %5696 = vmatpush.bf16.msra.mxu2 %v6815_v23  ;;  %v7158_v23 = vld [vmem:[%s8183_s20 + $0x7b0] sm:$0xf] }
 0x428   : > { %5709 = vmatpush.bf16.msra.mxu3 %v6879_v44  ;;  %5671 = vmatmul.bf16.vlgmr.msra.gmra.mxu0 %v10999_v13  ;;  %v7031_v44 = vor.u32 %v7419_v60, %v7030_v20  ;;  %v3987_v60 = vld.sshfl [vmem:[#allocation1 + $0x20] sm:$0xff pattern:$0x73625140] }
 0x429   : > { %5715 = vmatpush.bf16.msrb.mxu0 %v6999_v37  ;;  %5684 = vmatmul.bf16.vlgmr.msra.gmra.mxu1 %v11006_v43  ;;  %v7095_v37 = vor.u32 %v7435_v62, %v7094_v56  ;;  %v3989_v56 = vld.sshfl [vmem:[#allocation1 + $0x30] sm:$0xff pattern:$0x73625140]  ;;  %v7135_v62 = vor.u32 %v7445_v53, %v7134_v1  ;;  %v7228_v1 = vld [vmem:[%s8183_s20 + $0xc4] sm:$0xf] }
 0x42a   : > { %5728 = vmatpush.bf16.msrb.mxu1 %v7063_v36  ;;  %5697 = vmatmul.bf16.vlgmr.msra.gmra.mxu2 %v11004_v12  ;;  %v7022_v36 = vld [vmem:[%s8183_s20 + $0x6a0] sm:$0xf]  ;;  %v6272_v53 = vld [vmem:[%s8183_s20 + $0xc8] sm:$0xf0] }
 0x42b   : > { %5741 = vmatpush.bf16.msrb.mxu2 %v7127_v28  ;;  %5710 = vmatmul.bf16.vlgmr.msra.gmra.mxu3 %v11010_v52  ;;  %v7159_v28 = vor.u32 %v7451_v18, %v7158_v23  ;;  %v7023_v14 = vor.u32 %v7417_v45, %v7022_v36  ;;  %v6235_v23 = vor.u32 %v7218_v54, %v6232_v16  ;;  %v3988_v18 = vld.sshfl [vmem:[#allocation1 + $0x28] sm:$0xff pattern:$0x73625140]  ;;  %v6336_v16 = vld [vmem:[%s8183_s20 + $0x148] sm:$0xf0] }
 0x42c   : > { %5754 = vmatpush.bf16.msrb.mxu3 %v7191_v26  ;;  %v7150_v26 = vld [vmem:[%s8183_s20 + $0x7a0] sm:$0xf]  ;;  %v7232_v36 = vld [vmem:[%s8183_s20 + $0xe4] sm:$0xf]  ;;  %v11075_v45 = vpack.c.bf16 %v3987_v60, %v3987_v60  ;;  %v6264_v60 = vld [vmem:[%s8183_s20 + $0xb8] sm:$0xf0] }
 0x42d   : > { %5716 = vmatpush.bf16.msrb.mxu0 %v6991_v10  ;;  %v7399_v10 = vld [vmem:[%s8183_s20 + $0x614] sm:$0xf0]  ;;  %v7244_v54 = vld [vmem:[%s8183_s20 + $0x144] sm:$0xf] }
 0x42e   : > { %5729 = vmatpush.bf16.msrb.mxu1 %v7055_v39  ;;  %v7014_v39 = vld [vmem:[%s8183_s20 + $0x690] sm:$0xf]  ;;  %v6951_v63 = vor.u32 %v7399_v10, %v6950_v0  ;;  %v6227_v10 = vor.u32 %v7216_v55, %v6224_v47  ;;  %v7208_v55 = vld [vmem:[%s8183_s20 + $0x24] sm:$0xf]  ;;  %v6192_v47 = vld [vmem:[%s8183_s20 + $0x28] sm:$0xf0] }
 0x42f   : > { %5742 = vmatpush.bf16.msrb.mxu2 %v7119_v31  ;;  %v7151_v31 = vor.u32 %v7449_v6, %v7150_v26  ;;  %v6352_v26 = vld [vmem:[%s8183_s20 + $0x168] sm:$0xf0]  ;;  %v11080_v6 = vpack.c.bf16 %v3989_v56, %v3989_v56  ;;  %v7242_v56 = vld [vmem:[%s8183_s20 + $0x134] sm:$0xf] }
 0x430   : > { %5755 = vmatpush.bf16.msrb.mxu3 %v7183_v25  ;;  %v7142_v25 = vld [vmem:[%s8183_s20 + $0x790] sm:$0xf] }
 0x431   : > { %5717 = vmatpush.bf16.msrb.mxu0 %v6983_v17  ;;  %v7413_v17 = vld [vmem:[%s8183_s20 + $0x684] sm:$0xf0] }
 0x432   : > { %5730 = vmatpush.bf16.msrb.mxu1 %v7047_v4  ;;  %v7015_v4 = vor.u32 %v7415_v59, %v7014_v39  ;;  %v7007_v20 = vor.u32 %v7413_v17, %v7006_v38  ;;  %v6291_v39 = vor.u32 %v7232_v36, %v6288_v58  ;;  %v7214_v59 = vld [vmem:[%s8183_s20 + $0x54] sm:$0xf]  ;;  %v6408_v38 = vld [vmem:[%s8183_s20 + $0x1d8] sm:$0xf0]  ;;  %v7224_v36 = vld [vmem:[%s8183_s20 + $0xa4] sm:$0xf] }
 0x433   : > { %5743 = vmatpush.bf16.msrb.mxu2 %v7111_v46  ;;  %v7079_v46 = vor.u32 %v7431_v35, %v7078_v42  ;;  %v6216_v42 = vld [vmem:[%s8183_s20 + $0x58] sm:$0xf0]  ;;  %v7230_v35 = vld [vmem:[%s8183_s20 + $0xd4] sm:$0xf]  ;;  %v6256_v58 = vld [vmem:[%s8183_s20 + $0xa8] sm:$0xf0] }
 0x434   : > { %5756 = vmatpush.bf16.msrb.mxu3 %v7175_v11  ;;  %v7143_v11 = vor.u32 %v7447_v2, %v7142_v25  ;;  %v6280_v2 = vld [vmem:[%s8183_s20 + $0xd8] sm:$0xf0]  ;;  %v6219_v17 = vor.u32 %v7214_v59, %v6216_v42  ;;  %v7206_v59 = vld [vmem:[%s8183_s20 + $0x14] sm:$0xf] }
 0x435   : > { %5718 = vmatpush.bf16.msrb.mxu0 %v6975_v49  ;;  %v7250_v49 = vld [vmem:[%s8183_s20 + $0x174] sm:$0xf]  ;;  %v6184_v42 = vld [vmem:[%s8183_s20 + $0x18] sm:$0xf0] }
 0x436   : > { %5731 = vmatpush.bf16.msrb.mxu1 %v7039_v48  ;;  %v6943_v48 = vor.u32 %v7397_v21, %v6942_v8  ;;  %v7246_v8 = vld [vmem:[%s8183_s20 + $0x154] sm:$0xf] }
 0x437   : > { %5744 = vmatpush.bf16.msrb.mxu2 %v7103_v9  ;;  %v6360_v9 = vld [vmem:[%s8183_s20 + $0x178] sm:$0xf0]  ;;  %v7262_v21 = vld [vmem:[%s8183_s20 + $0x1d4] sm:$0xf] }
 0x438   : > { %5757 = vmatpush.bf16.msrb.mxu3 %v7167_v24  ;;  %v7071_v24 = vor.u32 %v7429_v34, %v7070_v50  ;;  %v7212_v50 = vld [vmem:[%s8183_s20 + $0x44] sm:$0xf]  ;;  %v6208_v34 = vld [vmem:[%s8183_s20 + $0x48] sm:$0xf0] }
 0x439   : > { %5719 = vmatpush.bf16.msrb.mxu0 %v6967_v57  ;;  %v3990_v57 = vld.sshfl [vmem:[#allocation1 + $0x38] sm:$0xff pattern:$0x73625140] }
 0x43a   : > { %5732 = vmatpush.bf16.msrb.mxu1 %v7031_v44  ;;  %v6299_v44 = vor.u32 %v7234_v33, %v6296_v22  ;;  %v11086_v0 = vpack.c.bf16 %v3990_v57, %v3990_v57  ;;  %v7260_v33 = vld [vmem:[%s8183_s20 + $0x1c4] sm:$0xf]  ;;  %v6400_v22 = vld [vmem:[%s8183_s20 + $0x1c8] sm:$0xf0] }
 0x43b   : > { %5745 = vmatpush.bf16.msrb.mxu2 %v7095_v37  ;;  %v6363_v37 = vor.u32 %v7250_v49, %v6360_v9  ;;  %v6211_v49 = vor.u32 %v7212_v50, %v6208_v34  ;;  %v6339_v9 = vor.u32 %v7244_v54, %v6336_v16  ;;  %v6304_v16 = vld [vmem:[%s8183_s20 + $0x108] sm:$0xf0] }
 0x43c   : > { %5758 = vmatpush.bf16.msrb.mxu3 %v7159_v28  ;;  %v6427_v28 = vor.u32 %v7266_v40, %v6424_v29  ;;  %v7210_v40 = vld [vmem:[%s8183_s20 + $0x34] sm:$0xf]  ;;  %v6200_v29 = vld [vmem:[%s8183_s20 + $0x38] sm:$0xf0] }
 0x43d   : > { %5720 = vmatpush.bf16.msrb.mxu0 %v6959_v19  ;;  %v11082_v19 = vpack.c.bf16 %v3988_v18, %v3988_v18  ;;  %v6392_v18 = vld [vmem:[%s8183_s20 + $0x1b8] sm:$0xf0]  ;;  %v6203_v57 = vor.u32 %v7210_v40, %v6200_v29 }
 0x43e   : > { %5733 = vmatpush.bf16.msrb.mxu1 %v7023_v14  ;;  %v7264_v14 = vld [vmem:[%s8183_s20 + $0x1e4] sm:$0xf]  ;;  %v6552_v29 = vld [vmem:[%s8183_s20 + $0x2f8] sm:$0xf0] }
 0x43f   : > { %5746 = vmatpush.bf16.msrb.mxu2 %v7087_v15  ;;  %v6416_v15 = vld [vmem:[%s8183_s20 + $0x1e8] sm:$0xf0] }
 0x440   : > { %5759 = vmatpush.bf16.msrb.mxu3 %v7151_v31  ;;  %v6355_v31 = vor.u32 %v7248_v41, %v6352_v26  ;;  %v6419_v25 = vor.u32 %v7264_v14, %v6416_v15  ;;  %v7240_v41 = vld [vmem:[%s8183_s20 + $0x124] sm:$0xf]  ;;  %v6320_v26 = vld [vmem:[%s8183_s20 + $0x128] sm:$0xf0] }
 0x441   : > { %5721 = vmatpush.bf16.msrb.mxu0 %v6951_v63  ;;  %v6344_v63 = vld [vmem:[%s8183_s20 + $0x158] sm:$0xf0]  ;;  %v7256_v14 = vld [vmem:[%s8183_s20 + $0x1a4] sm:$0xf]  ;;  %v6384_v15 = vld [vmem:[%s8183_s20 + $0x1a8] sm:$0xf0] }
 0x442   : > { %5734 = vmatpush.bf16.msrb.mxu1 %v7015_v4  ;;  %v6283_v4 = vor.u32 %v7230_v35, %v6280_v2  ;;  %v7222_v35 = vld [vmem:[%s8183_s20 + $0x94] sm:$0xf]  ;;  %v6248_v2 = vld [vmem:[%s8183_s20 + $0x98] sm:$0xf0] }
 0x443   : > { %5747 = vmatpush.bf16.msrb.mxu2 %v7079_v46  ;;  %v6347_v46 = vor.u32 %v7246_v8, %v6344_v63  ;;  %v7238_v8 = vld [vmem:[%s8183_s20 + $0x114] sm:$0xf]  ;;  %v6312_v63 = vld [vmem:[%s8183_s20 + $0x118] sm:$0xf0]  ;;  %v6251_v50 = vor.u32 %v7222_v35, %v6248_v2 }
 0x444   : > { %5760 = vmatpush.bf16.msrb.mxu3 %v7143_v11  ;;  %v6411_v11 = vor.u32 %v7262_v21, %v6408_v38  ;;  %v7254_v21 = vld [vmem:[%s8183_s20 + $0x194] sm:$0xf]  ;;  %v6376_v38 = vld [vmem:[%s8183_s20 + $0x198] sm:$0xf0]  ;;  %v6315_v34 = vor.u32 %v7238_v8, %v6312_v63 }
 0x445   : > { %5722 = vmatpush.bf16.msrb.mxu0 %v6943_v48  ;;  %v6275_v48 = vor.u32 %v7228_v1, %v6272_v53  ;;  %v7220_v1 = vld [vmem:[%s8183_s20 + $0x84] sm:$0xf]  ;;  %v6379_v54 = vor.u32 %v7254_v21, %v6376_v38  ;;  %v7294_v35 = vld [vmem:[%s8183_s20 + $0x2d4] sm:$0xf]  ;;  %v6536_v2 = vld [vmem:[%s8183_s20 + $0x2d8] sm:$0xf0] }
 0x446   : > { %5735 = vmatpush.bf16.msrb.mxu1 %v7007_v20  ;;  %v7226_v20 = vld [vmem:[%s8183_s20 + $0xb4] sm:$0xf]  ;;  %v7236_v53 = vld [vmem:[%s8183_s20 + $0x104] sm:$0xf]  ;;  %v6600_v63 = vld [vmem:[%s8183_s20 + $0x358] sm:$0xf0] }
 0x447   : > { %5748 = vmatpush.bf16.msrb.mxu2 %v7071_v24  ;;  %v6403_v24 = vor.u32 %v7260_v33, %v6400_v22  ;;  %v7252_v33 = vld [vmem:[%s8183_s20 + $0x184] sm:$0xf]  ;;  %v6368_v22 = vld [vmem:[%s8183_s20 + $0x188] sm:$0xf0]  ;;  %v7310_v8 = vld [vmem:[%s8183_s20 + $0x354] sm:$0xf] }
 0x448   : > { %5761 = vmatpush.bf16.msrb.mxu3 %v7135_v62  ;;  %5723 = vmatmul.bf16.vlgmr.msrb.gmra.mxu0 %v11075_v45  ;;  %v6328_v62 = vld [vmem:[%s8183_s20 + $0x138] sm:$0xf0]  ;;  %v7326_v21 = vld [vmem:[%s8183_s20 + $0x3d4] sm:$0xf] }
 0x449   : > { %5767 = vmatpush.bf16.msra.mxu0 %v6235_v23  ;;  %5736 = vmatmul.bf16.vlgmr.msrb.gmra.mxu1 %v11082_v19  ;;  %v7258_v23 = vld [vmem:[%s8183_s20 + $0x1b4] sm:$0xf]  ;;  %v6664_v38 = vld [vmem:[%s8183_s20 + $0x3d8] sm:$0xf0] }
 0x44a   : > { %5780 = vmatpush.bf16.msra.mxu1 %v6299_v44  ;;  %5749 = vmatmul.bf16.vlgmr.msrb.gmra.mxu2 %v11080_v6  ;;  %v6267_v44 = vor.u32 %v7226_v20, %v6264_v60  ;;  %v7314_v20 = vld [vmem:[%s8183_s20 + $0x374] sm:$0xf] }
 0x44b   : > { %5793 = vmatpush.bf16.msra.mxu2 %v6363_v37  ;;  %5762 = vmatmul.bf16.vlgmr.msrb.gmra.mxu3 %v11086_v0  ;;  %v6331_v37 = vor.u32 %v7242_v56, %v6328_v62  ;;  %v6307_v56 = vor.u32 %v7236_v53, %v6304_v16  ;;  %v7330_v62 = vld [vmem:[%s8183_s20 + $0x3f4] sm:$0xf]  ;;  %v7324_v53 = vld [vmem:[%s8183_s20 + $0x3c4] sm:$0xf] }
 0x44c   : > { %5806 = vmatpush.bf16.msra.mxu3 %v6427_v28  ;;  %v6395_v28 = vor.u32 %v7258_v23, %v6392_v18  ;;  %v6680_v23 = vld [vmem:[%s8183_s20 + $0x3f8] sm:$0xf0]  ;;  %v6371_v18 = vor.u32 %v7252_v33, %v6368_v22  ;;  %v7274_v22 = vld [vmem:[%s8183_s20 + $0x234] sm:$0xf] }
 0x44d   : > { %5768 = vmatpush.bf16.msra.mxu0 %v6227_v10  ;;  %v6195_v10 = vor.u32 %v7208_v55, %v6192_v47  ;;  %v7280_v55 = vld [vmem:[%s8183_s20 + $0x264] sm:$0xf]  ;;  %v6480_v47 = vld [vmem:[%s8183_s20 + $0x268] sm:$0xf0] }
 0x44e   : > { %5781 = vmatpush.bf16.msra.mxu1 %v6291_v39  ;;  %v6259_v39 = vor.u32 %v7224_v36, %v6256_v58  ;;  %v7296_v36 = vld [vmem:[%s8183_s20 + $0x2e4] sm:$0xf]  ;;  %v6544_v58 = vld [vmem:[%s8183_s20 + $0x2e8] sm:$0xf0] }
 0x44f   : > { %5794 = vmatpush.bf16.msra.mxu2 %v6355_v31  ;;  %v6323_v31 = vor.u32 %v7240_v41, %v6320_v26  ;;  %v7312_v41 = vld [vmem:[%s8183_s20 + $0x364] sm:$0xf]  ;;  %v6608_v26 = vld [vmem:[%s8183_s20 + $0x368] sm:$0xf0] }
 0x450   : > { %5807 = vmatpush.bf16.msra.mxu3 %v6419_v25  ;;  %v6387_v25 = vor.u32 %v7256_v14, %v6384_v15  ;;  %v7328_v14 = vld [vmem:[%s8183_s20 + $0x3e4] sm:$0xf]  ;;  %v6672_v15 = vld [vmem:[%s8183_s20 + $0x3e8] sm:$0xf0] }
 0x451   : > { %5769 = vmatpush.bf16.msra.mxu0 %v6219_v17  ;;  %v6187_v17 = vor.u32 %v7206_v59, %v6184_v42  ;;  %v7278_v59 = vld [vmem:[%s8183_s20 + $0x254] sm:$0xf]  ;;  %v6472_v42 = vld [vmem:[%s8183_s20 + $0x258] sm:$0xf0] }
 0x452   : > { %5782 = vmatpush.bf16.msra.mxu1 %v6283_v4  ;;  %v7204_v4 = vld [vmem:[%s8183_s20 + $0x4] sm:$0xf] }
 0x453   : > { %5795 = vmatpush.bf16.msra.mxu2 %v6347_v46  ;;  %v6176_v46 = vld [vmem:[%s8183_s20 + $0x8] sm:$0xf0] }
 0x454   : > { %5808 = vmatpush.bf16.msra.mxu3 %v6411_v11  ;;  %v6240_v11 = vld [vmem:[%s8183_s20 + $0x88] sm:$0xf0]  ;;  %v6179_v40 = vor.u32 %v7204_v4, %v6176_v46  ;;  %v6539_v4 = vor.u32 %v7294_v35, %v6536_v2  ;;  %v6603_v46 = vor.u32 %v7310_v8, %v6600_v63  ;;  %v6568_v35 = vld [vmem:[%s8183_s20 + $0x318] sm:$0xf0] }
 0x455   : > { %5770 = vmatpush.bf16.msra.mxu0 %v6211_v49  ;;  %v7282_v49 = vld [vmem:[%s8183_s20 + $0x274] sm:$0xf]  ;;  %v6243_v60 = vor.u32 %v7220_v1, %v6240_v11  ;;  %v6528_v1 = vld [vmem:[%s8183_s20 + $0x2c8] sm:$0xf0]  ;;  %v6632_v2 = vld [vmem:[%s8183_s20 + $0x398] sm:$0xf0] }
 0x456   : > { %5783 = vmatpush.bf16.msra.mxu1 %v6275_v48  ;;  %v6488_v48 = vld [vmem:[%s8183_s20 + $0x278] sm:$0xf0]  ;;  %v6592_v11 = vld [vmem:[%s8183_s20 + $0x348] sm:$0xf0] }
 0x457   : > { %5796 = vmatpush.bf16.msra.mxu2 %v6339_v9  ;;  %v7298_v9 = vld [vmem:[%s8183_s20 + $0x2f4] sm:$0xf] }
 0x458   : > { %5809 = vmatpush.bf16.msra.mxu3 %v6403_v24  ;;  %v6616_v24 = vld [vmem:[%s8183_s20 + $0x378] sm:$0xf0] }
 0x459   : > { %5771 = vmatpush.bf16.msra.mxu0 %v6203_v57  ;;  %v6491_v57 = vor.u32 %v7282_v49, %v6488_v48  ;;  %v6456_v49 = vld [vmem:[%s8183_s20 + $0x238] sm:$0xf0]  ;;  %v7290_v48 = vld [vmem:[%s8183_s20 + $0x2b4] sm:$0xf] }
 0x45a   : > { %5784 = vmatpush.bf16.msra.mxu1 %v6267_v44  ;;  %v6555_v44 = vor.u32 %v7298_v9, %v6552_v29  ;;  %v7306_v29 = vld [vmem:[%s8183_s20 + $0x334] sm:$0xf] }
 0x45b   : > { %5797 = vmatpush.bf16.msra.mxu2 %v6331_v37  ;;  %v6619_v37 = vor.u32 %v7314_v20, %v6616_v24  ;;  %v6584_v20 = vld [vmem:[%s8183_s20 + $0x338] sm:$0xf0]  ;;  %v7322_v24 = vld [vmem:[%s8183_s20 + $0x3b4] sm:$0xf] }
 0x45c   : > { %5810 = vmatpush.bf16.msra.mxu3 %v6395_v28  ;;  %v6683_v28 = vor.u32 %v7330_v62, %v6680_v23  ;;  %v6587_v23 = vor.u32 %v7306_v29, %v6584_v20 }
 0x45d   : > { %5772 = vmatpush.bf16.msra.mxu0 %v6195_v10  ;;  %v6483_v10 = vor.u32 %v7280_v55, %v6480_v47  ;;  %v6512_v55 = vld [vmem:[%s8183_s20 + $0x2a8] sm:$0xf0]  ;;  %v7304_v47 = vld [vmem:[%s8183_s20 + $0x324] sm:$0xf] }
 0x45e   : > { %5785 = vmatpush.bf16.msra.mxu1 %v6259_v39  ;;  %v6547_v39 = vor.u32 %v7296_v36, %v6544_v58  ;;  %v6576_v36 = vld [vmem:[%s8183_s20 + $0x328] sm:$0xf0] }
 0x45f   : > { %5798 = vmatpush.bf16.msra.mxu2 %v6323_v31  ;;  %v6611_v31 = vor.u32 %v7312_v41, %v6608_v26  ;;  %v6640_v58 = vld [vmem:[%s8183_s20 + $0x3a8] sm:$0xf0] }
 0x460   : > { %5811 = vmatpush.bf16.msra.mxu3 %v6387_v25  ;;  %v6675_v25 = vor.u32 %v7328_v14, %v6672_v15  ;;  %v6579_v14 = vor.u32 %v7304_v47, %v6576_v36  ;;  %v7270_v15 = vld [vmem:[%s8183_s20 + $0x214] sm:$0xf] }
 0x461   : > { %5773 = vmatpush.bf16.msra.mxu0 %v6187_v17  ;;  %v6475_v17 = vor.u32 %v7278_v59, %v6472_v42  ;;  %v6504_v59 = vld [vmem:[%s8183_s20 + $0x298] sm:$0xf0]  ;;  %v7302_v42 = vld [vmem:[%s8183_s20 + $0x314] sm:$0xf] }
 0x462   : > { %5786 = vmatpush.bf16.msra.mxu1 %v6251_v50  ;;  %v6464_v50 = vld [vmem:[%s8183_s20 + $0x248] sm:$0xf0] }
 0x463   : > { %5799 = vmatpush.bf16.msra.mxu2 %v6315_v34  ;;  %v7292_v34 = vld [vmem:[%s8183_s20 + $0x2c4] sm:$0xf] }
 0x464   : > { %5812 = vmatpush.bf16.msra.mxu3 %v6379_v54  ;;  %v6531_v16 = vor.u32 %v7292_v34, %v6528_v1  ;;  %v7300_v34 = vld [vmem:[%s8183_s20 + $0x304] sm:$0xf] }
 0x465   : > { %5774 = vmatpush.bf16.msra.mxu0 %v6179_v40  ;;  %v6520_v40 = vld [vmem:[%s8183_s20 + $0x2b8] sm:$0xf0] }
 0x466   : > { %5787 = vmatpush.bf16.msra.mxu1 %v6243_v60  ;;  %v6648_v60 = vld [vmem:[%s8183_s20 + $0x3b8] sm:$0xf0]  ;;  %v6523_v62 = vor.u32 %v7290_v48, %v6520_v40  ;;  %v7378_v48 = vld [vmem:[%s8183_s20 + $0x574] sm:$0xf] }
 0x467   : > { %5800 = vmatpush.bf16.msra.mxu2 %v6307_v56  ;;  %v6459_v56 = vor.u32 %v7274_v22, %v6456_v49  ;;  %v6808_v49 = vld [vmem:[%s8183_s20 + $0x4f8] sm:$0xf0] }
 0x468   : > { %5813 = vmatpush.bf16.msra.mxu3 %v6371_v18  ;;  %5775 = vmatmul.bf16.vlgmr.msra.gmra.mxu0 %v10876_v27  ;;  %v6667_v27 = vor.u32 %v7326_v21, %v6664_v38  ;;  %v7272_v18 = vld [vmem:[%s8183_s20 + $0x224] sm:$0xf]  ;;  %v6432_v38 = vld [vmem:[%s8183_s20 + $0x208] sm:$0xf0] }
 0x469   : > { %5819 = vmatpush.bf16.msrb.mxu0 %v6491_v57  ;;  %5788 = vmatmul.bf16.vlgmr.msra.gmra.mxu1 %v10882_v3  ;;  %v6656_v3 = vld [vmem:[%s8183_s20 + $0x3c8] sm:$0xf0]  ;;  %v7268_v21 = vld [vmem:[%s8183_s20 + $0x204] sm:$0xf] }
 0x46a   : > { %5832 = vmatpush.bf16.msrb.mxu1 %v6555_v44  ;;  %5801 = vmatmul.bf16.vlgmr.msra.gmra.mxu2 %v10874_v51  ;;  %v7276_v51 = vld [vmem:[%s8183_s20 + $0x244] sm:$0xf]  ;;  %v6659_v9 = vor.u32 %v7324_v53, %v6656_v3  ;;  %v6448_v57 = vld [vmem:[%s8183_s20 + $0x228] sm:$0xf0]  ;;  %v7346_v3 = vld [vmem:[%s8183_s20 + $0x474] sm:$0xf]  ;;  %v6435_v22 = vor.u32 %v7268_v21, %v6432_v38 }
 0x46b   : > { %5845 = vmatpush.bf16.msrb.mxu2 %v6619_v37  ;;  %5814 = vmatmul.bf16.vlgmr.msra.gmra.mxu3 %v10880_v61  ;;  %v7308_v61 = vld [vmem:[%s8183_s20 + $0x344] sm:$0xf]  ;;  %v6467_v54 = vor.u32 %v7276_v51, %v6464_v50  ;;  %v6651_v37 = vor.u32 %v7322_v24, %v6648_v60  ;;  %v6451_v41 = vor.u32 %v7272_v18, %v6448_v57  ;;  %v5568_v8 = vpop.f32.mrf.mxu0  ;;  %v6496_v50 = vld [vmem:[%s8183_s20 + $0x288] sm:$0xf0]  ;;  %v7394_v24 = vld [vmem:[%s8183_s20 + $0x5f4] sm:$0xf] }
 0x46c   : > { %5858 = vmatpush.bf16.msrb.mxu3 %v6683_v28  ;;  %v6595_v33 = vor.u32 %v7308_v61, %v6592_v11  ;;  %v7288_v44 = vld [vmem:[%s8183_s20 + $0x2a4] sm:$0xf]  ;;  %v6560_v61 = vld [vmem:[%s8183_s20 + $0x308] sm:$0xf0]  ;;  %v6936_v60 = vld [vmem:[%s8183_s20 + $0x5f8] sm:$0xf0] }
 0x46d   : > { %5820 = vmatpush.bf16.msrb.mxu0 %v6483_v10  ;;  %v7320_v28 = vld [vmem:[%s8183_s20 + $0x3a4] sm:$0xf]  ;;  %v6515_v26 = vor.u32 %v7288_v44, %v6512_v55  ;;  %v6440_v10 = vld [vmem:[%s8183_s20 + $0x218] sm:$0xf0]  ;;  %v6624_v53 = vld [vmem:[%s8183_s20 + $0x388] sm:$0xf0]  ;;  %v6563_v20 = vor.u32 %v7300_v34, %v6560_v61 }
 0x46e   : > { %5833 = vmatpush.bf16.msrb.mxu1 %v6547_v39  ;;  %v7286_v39 = vld [vmem:[%s8183_s20 + $0x294] sm:$0xf]  ;;  %v6443_v63 = vor.u32 %v7270_v15, %v6440_v10  ;;  %v7284_v51 = vld [vmem:[%s8183_s20 + $0x284] sm:$0xf]  ;;  %v6928_v10 = vld [vmem:[%s8183_s20 + $0x5e8] sm:$0xf0] }
 0x46f   : > { %5846 = vmatpush.bf16.msrb.mxu2 %v6611_v31  ;;  %v6643_v31 = vor.u32 %v7320_v28, %v6640_v58  ;;  %v7316_v11 = vld [vmem:[%s8183_s20 + $0x384] sm:$0xf]  ;;  %v6499_v29 = vor.u32 %v7284_v51, %v6496_v50  ;;  %v6939_v28 = vor.u32 %v7394_v24, %v6936_v60  ;;  %v6800_v58 = vld [vmem:[%s8183_s20 + $0x4e8] sm:$0xf0]  ;;  %v7374_v21 = vld [vmem:[%s8183_s20 + $0x554] sm:$0xf] }
 0x470   : > { %5859 = vmatpush.bf16.msrb.mxu3 %v6675_v25  ;;  %v7318_v25 = vld [vmem:[%s8183_s20 + $0x394] sm:$0xf]  ;;  %v7344_v44 = vld [vmem:[%s8183_s20 + $0x464] sm:$0xf]  ;;  %v6856_v38 = vld [vmem:[%s8183_s20 + $0x558] sm:$0xf0] }
 0x471   : > { %5821 = vmatpush.bf16.msrb.mxu0 %v6475_v17  ;;  %v5581_v17 = vpop.f32.mrf.mxu1  ;;  %v6635_v1 = vor.u32 %v7318_v25, %v6632_v2  ;;  %v7360_v55 = vld [vmem:[%s8183_s20 + $0x4e4] sm:$0xf]  ;;  %v7358_v25 = vld [vmem:[%s8183_s20 + $0x4d4] sm:$0xf]  ;;  %v6859_v50 = vor.u32 %v7374_v21, %v6856_v38  ;;  %v6840_v60 = vld [vmem:[%s8183_s20 + $0x538] sm:$0xf0] }
 0x472   : > { %5834 = vmatpush.bf16.msrb.mxu1 %v6539_v4  ;;  %v6507_v4 = vor.u32 %v7286_v39, %v6504_v59  ;;  %v7392_v15 = vld [vmem:[%s8183_s20 + $0x5e4] sm:$0xf]  ;;  %v7370_v24 = vld [vmem:[%s8183_s20 + $0x534] sm:$0xf] }
 0x473   : > { %5847 = vmatpush.bf16.msrb.mxu2 %v6603_v46  ;;  %v6571_v46 = vor.u32 %v7302_v42, %v6568_v35  ;;  %v5570_v36 = vpop.f32.mrf.mxu0  ;;  %v7342_v42 = vld [vmem:[%s8183_s20 + $0x454] sm:$0xf]  ;;  %v6728_v35 = vld [vmem:[%s8183_s20 + $0x458] sm:$0xf0]  ;;  %v7340_v34 = vld [vmem:[%s8183_s20 + $0x444] sm:$0xf] }
 0x474   : > { %5860 = vmatpush.bf16.msrb.mxu3 %v6667_v27  ;;  %v5582_v27 = vadd.f32 %v5581_v17, %v5568_v8  ;;  %v6931_v8 = vor.u32 %v7392_v15, %v6928_v10  ;;  %v7390_v17 = vld [vmem:[%s8183_s20 + $0x5d4] sm:$0xf]  ;;  %v7372_v61 = vld [vmem:[%s8183_s20 + $0x544] sm:$0xf] }
 0x475   : > { %5822 = vmatpush.bf16.msrb.mxu0 %v6467_v54  ;;  %v6744_v54 = vld [vmem:[%s8183_s20 + $0x478] sm:$0xf0]  ;;  %v7384_v10 = vld [vmem:[%s8183_s20 + $0x5a4] sm:$0xf] }
 0x476   : > { %5835 = vmatpush.bf16.msrb.mxu1 %v6531_v16  ;;  %v7362_v16 = vld [vmem:[%s8183_s20 + $0x4f4] sm:$0xf] }
 0x477   : > { %5848 = vmatpush.bf16.msrb.mxu2 %v6595_v33  ;;  %v5594_v33 = vpop.f32.mrf.mxu2  ;;  %v6811_v18 = vor.u32 %v7362_v16, %v6808_v49  ;;  %v6712_v49 = vld [vmem:[%s8183_s20 + $0x438] sm:$0xf0] }
 0x478   : > { %5861 = vmatpush.bf16.msrb.mxu3 %v6659_v9  ;;  %v6872_v9 = vld [vmem:[%s8183_s20 + $0x578] sm:$0xf0]  ;;  %v5595_v40 = vadd.f32 %v5594_v33, %v5582_v27 }
 0x479   : > { %5823 = vmatpush.bf16.msrb.mxu0 %v6459_v56  ;;  %v6627_v56 = vor.u32 %v7316_v11, %v6624_v53  ;;  %v6875_v57 = vor.u32 %v7378_v48, %v6872_v9  ;;  %v6848_v11 = vld [vmem:[%s8183_s20 + $0x548] sm:$0xf0]  ;;  %v7388_v53 = vld [vmem:[%s8183_s20 + $0x5c4] sm:$0xf]  ;;  %v7354_v48 = vld [vmem:[%s8183_s20 + $0x4b4] sm:$0xf] }
 0x47a   : > { %5836 = vmatpush.bf16.msrb.mxu1 %v6523_v62  ;;  %v6747_v62 = vor.u32 %v7346_v3, %v6744_v54  ;;  %v6912_v3 = vld [vmem:[%s8183_s20 + $0x5c8] sm:$0xf0]  ;;  %v6851_v33 = vor.u32 %v7372_v61, %v6848_v11  ;;  %v7364_v11 = vld [vmem:[%s8183_s20 + $0x504] sm:$0xf] }
 0x47b   : > { %5849 = vmatpush.bf16.msrb.mxu2 %v6587_v23  ;;  %v5607_v23 = vpop.f32.mrf.mxu3  ;;  %v6752_v61 = vld [vmem:[%s8183_s20 + $0x488] sm:$0xf0] }
 0x47c   : > { %5862 = vmatpush.bf16.msrb.mxu3 %v6651_v37  ;;  %v6736_v37 = vld [vmem:[%s8183_s20 + $0x468] sm:$0xf0]  ;;  %v5608_v47 = vadd.f32 %v5607_v23, %v5595_v40 }
 0x47d   : > { %5824 = vmatpush.bf16.msrb.mxu0 %v6451_v41  ;;  %v7376_v41 = vld [vmem:[%s8183_s20 + $0x564] sm:$0xf]  ;;  %v6739_v39 = vor.u32 %v7344_v44, %v6736_v37  ;;  %v6843_v44 = vor.u32 %v7370_v24, %v6840_v60 }
 0x47e   : > { %5837 = vmatpush.bf16.msrb.mxu1 %v6515_v26  ;;  %v6864_v26 = vld [vmem:[%s8183_s20 + $0x568] sm:$0xf0]  ;;  %v7336_v37 = vld [vmem:[%s8183_s20 + $0x424] sm:$0xf] }
 0x47f   : > { %5850 = vmatpush.bf16.msrb.mxu2 %v6579_v14  ;;  %v5583_v14 = vpop.f32.mrf.mxu1  ;;  %v6867_v59 = vor.u32 %v7376_v41, %v6864_v26  ;;  %v5596_v2 = vpop.f32.mrf.mxu2  ;;  %v7368_v41 = vld [vmem:[%s8183_s20 + $0x524] sm:$0xf]  ;;  %v6832_v26 = vld [vmem:[%s8183_s20 + $0x528] sm:$0xf0] }
 0x480   : > { %5863 = vmatpush.bf16.msrb.mxu3 %v6643_v31  ;;  %v6803_v31 = vor.u32 %v7360_v55, %v6800_v58  ;;  %v6704_v55 = vld [vmem:[%s8183_s20 + $0x428] sm:$0xf0]  ;;  %v7334_v2 = vld [vmem:[%s8183_s20 + $0x414] sm:$0xf] }
 0x481   : > { %5825 = vmatpush.bf16.msrb.mxu0 %v6443_v63  ;;  %v6792_v63 = vld [vmem:[%s8183_s20 + $0x4d8] sm:$0xf0]  ;;  %v6768_v58 = vld [vmem:[%s8183_s20 + $0x4a8] sm:$0xf0] }
 0x482   : > { %5838 = vmatpush.bf16.msrb.mxu1 %v6507_v4  ;;  %v6920_v4 = vld [vmem:[%s8183_s20 + $0x5d8] sm:$0xf0]  ;;  %v6795_v51 = vor.u32 %v7358_v25, %v6792_v63  ;;  %v6835_v25 = vor.u32 %v7368_v41, %v6832_v26  ;;  %v7350_v63 = vld [vmem:[%s8183_s20 + $0x494] sm:$0xf]  ;;  %v7120_v41 = vld [vmem:[%s8183_s20 + $0x768] sm:$0xf0] }
 0x483   : > { %5851 = vmatpush.bf16.msrb.mxu2 %v6571_v46  ;;  %v6731_v46 = vor.u32 %v7342_v42, %v6728_v35  ;;  %v6923_v27 = vor.u32 %v7390_v17, %v6920_v4  ;;  %v6760_v17 = vld [vmem:[%s8183_s20 + $0x498] sm:$0xf0]  ;;  %v7366_v4 = vld [vmem:[%s8183_s20 + $0x514] sm:$0xf]  ;;  %v7456_v26 = vld [vmem:[%s8183_s20 + $0x7e4] sm:$0xf] }
 0x484   : > { %5864 = vmatpush.bf16.msrb.mxu3 %v6635_v1  ;;  %v6784_v1 = vld [vmem:[%s8183_s20 + $0x4c8] sm:$0xf0] }
 0x485   : > { %5826 = vmatpush.bf16.msrb.mxu0 %v6435_v22  ;;  %v5620_v54 = vpop.f32.mrf.mxu0  ;;  %v7338_v22 = vld [vmem:[%s8183_s20 + $0x434] sm:$0xf] }
 0x486   : > { %5839 = vmatpush.bf16.msrb.mxu1 %v6499_v29  ;;  %v5621_v9 = vadd.f32 %v5620_v54, %v5608_v47  ;;  %v6915_v29 = vor.u32 %v7388_v53, %v6912_v3  ;;  %v7352_v47 = vld [vmem:[%s8183_s20 + $0x4a4] sm:$0xf] }
 0x487   : > { %5852 = vmatpush.bf16.msrb.mxu2 %v6563_v20  ;;  %v5633_v40 = vpop.f32.mrf.mxu1  ;;  %v6776_v20 = vld [vmem:[%s8183_s20 + $0x4b8] sm:$0xf0]  ;;  %v6771_v35 = vor.u32 %v7352_v47, %v6768_v58  ;;  %v7380_v54 = vld [vmem:[%s8183_s20 + $0x584] sm:$0xf] }
 0x488   : > { %5865 = vmatpush.bf16.msrb.mxu3 %v6627_v56  ;;  %5827 = vmatmul.bf16.vlgmr.msrb.gmra.mxu0 %v10930_v5  ;;  %v6720_v5 = vld [vmem:[%s8183_s20 + $0x448] sm:$0xf0]  ;;  %v7386_v56 = vld [vmem:[%s8183_s20 + $0x5b4] sm:$0xf]  ;;  %v5634_v23 = vadd.f32 %v5633_v40, %v5621_v9  ;;  %v7064_v40 = vld [vmem:[%s8183_s20 + $0x6f8] sm:$0xf0] }
 0x489   : > { %5871 = vmatpush.bf16.msra.mxu0 %v6747_v62  ;;  %5840 = vmatmul.bf16.vlgmr.msrb.gmra.mxu1 %v10934_v7  ;;  %v6723_v7 = vor.u32 %v7340_v34, %v6720_v5  ;;  %v6904_v62 = vld [vmem:[%s8183_s20 + $0x5b8] sm:$0xf0]  ;;  %v7332_v34 = vld [vmem:[%s8183_s20 + $0x404] sm:$0xf]  ;;  %v6688_v5 = vld [vmem:[%s8183_s20 + $0x408] sm:$0xf0] }
 0x48a   : > { %5884 = vmatpush.bf16.msra.mxu1 %v6811_v18  ;;  %5853 = vmatmul.bf16.vlgmr.msrb.gmra.mxu2 %v10926_v32  ;;  %v5609_v32 = vpop.f32.mrf.mxu3  ;;  %v6715_v18 = vor.u32 %v7338_v22, %v6712_v49  ;;  %v7410_v22 = vld [vmem:[%s8183_s20 + $0x674] sm:$0xf]  ;;  %v7000_v49 = vld [vmem:[%s8183_s20 + $0x678] sm:$0xf0]  ;;  %v6691_v9 = vor.u32 %v7332_v34, %v6688_v5  ;;  %v7424_v47 = vld [vmem:[%s8183_s20 + $0x6e4] sm:$0xf] }
 0x48b   : > { %5897 = vmatpush.bf16.msra.mxu2 %v6875_v57  ;;  %5866 = vmatmul.bf16.vlgmr.msrb.gmra.mxu3 %v10932_v30  ;;  %v7356_v30 = vld [vmem:[%s8183_s20 + $0x4c4] sm:$0xf]  ;;  %v6779_v57 = vor.u32 %v7354_v48, %v6776_v20  ;;  %v7382_v32 = vld [vmem:[%s8183_s20 + $0x594] sm:$0xf]  ;;  %v7128_v20 = vld [vmem:[%s8183_s20 + $0x778] sm:$0xf0] }
 0x48c   : > { %5910 = vmatpush.bf16.msra.mxu3 %v6939_v28  ;;  %v6787_v16 = vor.u32 %v7356_v30, %v6784_v1  ;;  %v6907_v28 = vor.u32 %v7386_v56, %v6904_v62  ;;  %v6763_v30 = vor.u32 %v7350_v63, %v6760_v17  ;;  %v7348_v1 = vld [vmem:[%s8183_s20 + $0x484] sm:$0xf]  ;;  %v7426_v48 = vld [vmem:[%s8183_s20 + $0x6f4] sm:$0xf]  ;;  %v7192_v62 = vld [vmem:[%s8183_s20 + $0x7f8] sm:$0xf0] }
 0x48d   : > { %5872 = vmatpush.bf16.msra.mxu0 %v6739_v39  ;;  %v5646_v36 = vpop.f32.mrf.mxu2  ;;  %v6896_v39 = vld [vmem:[%s8183_s20 + $0x5a8] sm:$0xf0]  ;;  %v5622_v42 = vpop.f32.mrf.mxu0  ;;  %v6755_v24 = vor.u32 %v7348_v1, %v6752_v61  ;;  %v7458_v56 = vld [vmem:[%s8183_s20 + $0x7f4] sm:$0xf]  ;;  %v7440_v58 = vld [vmem:[%s8183_s20 + $0x764] sm:$0xf] }
 0x48e   : > { %5885 = vmatpush.bf16.msra.mxu1 %v6803_v31  ;;  %v5647_v14 = vadd.f32 %v5646_v36, %v5634_v23  ;;  %v6707_v31 = vor.u32 %v7336_v37, %v6704_v55  ;;  %v6899_v38 = vor.u32 %v7384_v10, %v6896_v39  ;;  %v7408_v37 = vld [vmem:[%s8183_s20 + $0x664] sm:$0xf]  ;;  %v6992_v55 = vld [vmem:[%s8183_s20 + $0x668] sm:$0xf0]  ;;  %v7195_v36 = vor.u32 %v7458_v56, %v7192_v62  ;;  %v6984_v42 = vld [vmem:[%s8183_s20 + $0x658] sm:$0xf0] }
 0x48f   : > { %5898 = vmatpush.bf16.msra.mxu2 %v6867_v59  ;;  %v5635_v21 = vpop.f32.mrf.mxu1  ;;  %v7123_v39 = vor.u32 %v7440_v58, %v7120_v41  ;;  %v7112_v63 = vld [vmem:[%s8183_s20 + $0x758] sm:$0xf0]  ;;  %v7104_v34 = vld [vmem:[%s8183_s20 + $0x748] sm:$0xf0]  ;;  %v7452_v5 = vld [vmem:[%s8183_s20 + $0x7c4] sm:$0xf] }
 0x490   : > { %5911 = vmatpush.bf16.msra.mxu3 %v6931_v8  ;;  %v6696_v8 = vld [vmem:[%s8183_s20 + $0x418] sm:$0xf0]  ;;  %v7454_v21 = vld [vmem:[%s8183_s20 + $0x7d4] sm:$0xf]  ;;  %v7416_v56 = vld [vmem:[%s8183_s20 + $0x6a4] sm:$0xf] }
 0x491   : > { %5873 = vmatpush.bf16.msra.mxu0 %v6731_v46  ;;  %v6824_v46 = vld [vmem:[%s8183_s20 + $0x518] sm:$0xf0] }
 0x492   : > { %5886 = vmatpush.bf16.msra.mxu1 %v6795_v51  ;;  %v5659_v15 = vpop.f32.mrf.mxu3  ;;  %v6888_v51 = vld [vmem:[%s8183_s20 + $0x598] sm:$0xf0] }
 0x493   : > { %5899 = vmatpush.bf16.msra.mxu2 %v6859_v50  ;;  %v11260_v59 = vadd.f32 %v5659_v15, %v5647_v14  ;;  %v6699_v50 = vor.u32 %v7334_v2, %v6696_v8  ;;  %v6891_v3 = vor.u32 %v7382_v32, %v6888_v51  ;;  %v7184_v14 = vld [vmem:[%s8183_s20 + $0x7e8] sm:$0xf0]  ;;  %v6995_v15 = vor.u32 %v7408_v37, %v6992_v55  ;;  %v7048_v2 = vld [vmem:[%s8183_s20 + $0x6d8] sm:$0xf0]  ;;  %v7438_v8 = vld [vmem:[%s8183_s20 + $0x754] sm:$0xf] }
 0x494   : > { %5912 = vmatpush.bf16.msra.mxu3 %v6923_v27  ;;  %v6827_v27 = vor.u32 %v7366_v4, %v6824_v46  ;;  %v7115_v4 = vor.u32 %v7438_v8, %v7112_v63  ;;  %v7404_v46 = vld [vmem:[%s8183_s20 + $0x644] sm:$0xf]  ;;  %v6976_v32 = vld [vmem:[%s8183_s20 + $0x648] sm:$0xf0]  ;;  %v7446_v8 = vld [vmem:[%s8183_s20 + $0x794] sm:$0xf] }
 0x495   : > { %5874 = vmatpush.bf16.msra.mxu0 %v6723_v7  ;;  %v5648_v53 = vpop.f32.mrf.mxu2  ;;  %v6816_v7 = vld [vmem:[%s8183_s20 + $0x508] sm:$0xf0]  ;;  %v6979_v1 = vor.u32 %v7404_v46, %v6976_v32  ;;  %v7144_v63 = vld [vmem:[%s8183_s20 + $0x798] sm:$0xf0]  ;;  %v7412_v46 = vld [vmem:[%s8183_s20 + $0x684] sm:$0xf] }
 0x496   : > { %5887 = vmatpush.bf16.msra.mxu1 %v6787_v16  ;;  %v6880_v16 = vld [vmem:[%s8183_s20 + $0x588] sm:$0xf0]  ;;  %v6819_v60 = vor.u32 %v7364_v11, %v6816_v7  ;;  %v6968_v7 = vld [vmem:[%s8183_s20 + $0x638] sm:$0xf0]  ;;  %v7147_v32 = vor.u32 %v7446_v8, %v7144_v63 }
 0x497   : > { %5900 = vmatpush.bf16.msra.mxu2 %v6851_v33  ;;  %v6883_v23 = vor.u32 %v7380_v54, %v6880_v16  ;;  %v7040_v51 = vld [vmem:[%s8183_s20 + $0x6c8] sm:$0xf0]  ;;  %v7418_v54 = vld [vmem:[%s8183_s20 + $0x6b4] sm:$0xf] }
 0x498   : > { %5913 = vmatpush.bf16.msra.mxu3 %v6915_v29  ;;  %v7442_v29 = vld [vmem:[%s8183_s20 + $0x774] sm:$0xf] }
 0x499   : > { %5875 = vmatpush.bf16.msra.mxu0 %v6715_v18  ;;  %v7003_v18 = vor.u32 %v7410_v22, %v7000_v49  ;;  %v7032_v22 = vld [vmem:[%s8183_s20 + $0x6b8] sm:$0xf0]  ;;  %v7434_v49 = vld [vmem:[%s8183_s20 + $0x734] sm:$0xf] }
 0x49a   : > { %5888 = vmatpush.bf16.msra.mxu1 %v6779_v57  ;;  %v5661_v33 = vpop.f32.mrf.mxu3  ;;  %v7067_v57 = vor.u32 %v7426_v48, %v7064_v40  ;;  %v7450_v48 = vld [vmem:[%s8183_s20 + $0x7b4] sm:$0xf] }
 0x49b   : > { %5901 = vmatpush.bf16.msra.mxu2 %v6843_v44  ;;  %v7131_v44 = vor.u32 %v7442_v29, %v7128_v20  ;;  %v7035_v29 = vor.u32 %v7418_v54, %v7032_v22 }
 0x49c   : > { %5914 = vmatpush.bf16.msra.mxu3 %v6907_v28  ;;  %v7056_v28 = vld [vmem:[%s8183_s20 + $0x6e8] sm:$0xf0] }
 0x49d   : > { %5876 = vmatpush.bf16.msra.mxu0 %v6707_v31  ;;  %v7059_v10 = vor.u32 %v7424_v47, %v7056_v28  ;;  %v7406_v31 = vld [vmem:[%s8183_s20 + $0x654] sm:$0xf]  ;;  %v7448_v47 = vld [vmem:[%s8183_s20 + $0x7a4] sm:$0xf] }
 0x49e   : > { %5889 = vmatpush.bf16.msra.mxu1 %v6771_v35  ;;  %v7422_v35 = vld [vmem:[%s8183_s20 + $0x6d4] sm:$0xf] }
 0x49f   : > { %5902 = vmatpush.bf16.msra.mxu2 %v6835_v25  ;;  %v7187_v25 = vor.u32 %v7456_v26, %v7184_v14  ;;  %v7051_v17 = vor.u32 %v7422_v35, %v7048_v2  ;;  %v7016_v35 = vld [vmem:[%s8183_s20 + $0x698] sm:$0xf0] }
 0x4a0   : > { %5915 = vmatpush.bf16.msra.mxu3 %v6899_v38  ;;  %v7176_v38 = vld [vmem:[%s8183_s20 + $0x7d8] sm:$0xf0] }
 0x4a1   : > { %5877 = vmatpush.bf16.msra.mxu0 %v6699_v50  ;;  %v7436_v50 = vld [vmem:[%s8183_s20 + $0x744] sm:$0xf]  ;;  %v7080_v2 = vld [vmem:[%s8183_s20 + $0x718] sm:$0xf0] }
 0x4a2   : > { %5890 = vmatpush.bf16.msra.mxu1 %v6763_v30  ;;  %v7168_v30 = vld [vmem:[%s8183_s20 + $0x7c8] sm:$0xf0]  ;;  %v7107_v53 = vor.u32 %v7436_v50, %v7104_v34  ;;  %v7444_v34 = vld [vmem:[%s8183_s20 + $0x784] sm:$0xf] }
 0x4a3   : > { %5903 = vmatpush.bf16.msra.mxu2 %v6827_v27  ;;  %v7171_v16 = vor.u32 %v7452_v5, %v7168_v30 }
 0x4a4   : > { %5916 = vmatpush.bf16.msra.mxu3 %v6891_v3  ;;  %v7402_v3 = vld [vmem:[%s8183_s20 + $0x634] sm:$0xf] }
 0x4a5   : > { %5878 = vmatpush.bf16.msra.mxu0 %v6691_v9  ;;  %v7160_v9 = vld [vmem:[%s8183_s20 + $0x7b8] sm:$0xf0]  ;;  %v6971_v40 = vor.u32 %v7402_v3, %v6968_v7 }
 0x4a6   : > { %5891 = vmatpush.bf16.msra.mxu1 %v6755_v24  ;;  %v5685_v61 = vpop.f32.mrf.mxu1  ;;  %v7400_v24 = vld [vmem:[%s8183_s20 + $0x624] sm:$0xf]  ;;  %v7163_v62 = vor.u32 %v7450_v48, %v7160_v9 }
 0x4a7   : > { %5904 = vmatpush.bf16.msra.mxu2 %v6819_v60  ;;  %v6960_v60 = vld [vmem:[%s8183_s20 + $0x628] sm:$0xf0] }
 0x4a8   : > { %5917 = vmatpush.bf16.msra.mxu3 %v6883_v23  ;;  %5879 = vmatmul.bf16.vlgmr.msra.gmra.mxu0 %v10999_v13  ;;  %v6987_v13 = vor.u32 %v7406_v31, %v6984_v42  ;;  %v6963_v58 = vor.u32 %v7400_v24, %v6960_v60  ;;  %v7414_v31 = vld [vmem:[%s8183_s20 + $0x694] sm:$0xf] }
 0x4a9   : > { %5923 = vmatpush.bf16.msrb.mxu0 %v7003_v18  ;;  %5892 = vmatmul.bf16.vlgmr.msra.gmra.mxu1 %v11006_v43  ;;  %v7179_v43 = vor.u32 %v7454_v21, %v7176_v38  ;;  %v7024_v18 = vld [vmem:[%s8183_s20 + $0x6a8] sm:$0xf0]  ;;  %v7019_v38 = vor.u32 %v7414_v31, %v7016_v35 }
 0x4aa   : > { %5936 = vmatpush.bf16.msrb.mxu1 %v7067_v57  ;;  %5905 = vmatmul.bf16.vlgmr.msra.gmra.mxu2 %v11004_v12  ;;  %v7420_v12 = vld [vmem:[%s8183_s20 + $0x6c4] sm:$0xf]  ;;  %v7027_v14 = vor.u32 %v7416_v56, %v7024_v18 }
 0x4ab   : > { %5949 = vmatpush.bf16.msrb.mxu2 %v7131_v44  ;;  %5918 = vmatmul.bf16.vlgmr.msra.gmra.mxu3 %v11010_v52  ;;  %v5672_v52 = vpop.f32.mrf.mxu0  ;;  %v7043_v11 = vor.u32 %v7420_v12, %v7040_v51  ;;  %v7432_v57 = vld [vmem:[%s8183_s20 + $0x724] sm:$0xf]  ;;  %v7088_v44 = vld [vmem:[%s8183_s20 + $0x728] sm:$0xf0] }
 0x4ac   : > { %5962 = vmatpush.bf16.msrb.mxu3 %v7195_v36  ;;  %v5673_v27 = vadd.f32 %v5672_v52, %v11260_v59  ;;  %v7096_v59 = vld [vmem:[%s8183_s20 + $0x738] sm:$0xf0]  ;;  %v7152_v36 = vld [vmem:[%s8183_s20 + $0x7a8] sm:$0xf0] }
 0x4ad   : > { %5924 = vmatpush.bf16.msrb.mxu0 %v6995_v15  ;;  %v7099_v20 = vor.u32 %v7434_v49, %v7096_v59  ;;  %v5698_v23 = vpop.f32.mrf.mxu2  ;;  %v7091_v15 = vor.u32 %v7432_v57, %v7088_v44  ;;  %v7155_v42 = vor.u32 %v7448_v47, %v7152_v36  ;;  %v7008_v12 = vld [vmem:[%s8183_s20 + $0x688] sm:$0xf0] }
 0x4ae   : > { %5937 = vmatpush.bf16.msrb.mxu1 %v7059_v10  ;;  %v5686_v33 = vadd.f32 %v5685_v61, %v5673_v27  ;;  %v5711_v55 = vpop.f32.mrf.mxu3  ;;  %v5687_v41 = vpop.f32.mrf.mxu1  ;;  %v7398_v10 = vld [vmem:[%s8183_s20 + $0x614] sm:$0xf]  ;;  %v7072_v51 = vld [vmem:[%s8183_s20 + $0x708] sm:$0xf0]  ;;  %v7011_v27 = vor.u32 %v7412_v46, %v7008_v12 }
 0x4af   : > { %5950 = vmatpush.bf16.msrb.mxu2 %v7123_v39  ;;  %v6952_v39 = vld [vmem:[%s8183_s20 + $0x618] sm:$0xf0]  ;;  %v7136_v52 = vld [vmem:[%s8183_s20 + $0x788] sm:$0xf0] }
 0x4b0   : > { %5963 = vmatpush.bf16.msrb.mxu3 %v7187_v25  ;;  %v5699_v37 = vadd.f32 %v5698_v23, %v5686_v33  ;;  %v7430_v25 = vld [vmem:[%s8183_s20 + $0x714] sm:$0xf]  ;;  %v6955_v21 = vor.u32 %v7398_v10, %v6952_v39  ;;  %v7139_v61 = vor.u32 %v7444_v34, %v7136_v52 }
 0x4b1   : > { %5925 = vmatpush.bf16.msrb.mxu0 %v6987_v13  ;;  %v7083_v13 = vor.u32 %v7430_v25, %v7080_v2 }
 0x4b2   : > { %5938 = vmatpush.bf16.msrb.mxu1 %v7051_v17  ;;  %v5712_v26 = vadd.f32 %v5711_v55, %v5699_v37  ;;  %v7396_v17 = vld [vmem:[%s8183_s20 + $0x604] sm:$0xf] }
 0x4b3   : > { %5951 = vmatpush.bf16.msrb.mxu2 %v7115_v4  ;;  %v5674_v28 = vpop.f32.mrf.mxu0  ;;  %v6944_v4 = vld [vmem:[%s8183_s20 + $0x608] sm:$0xf0] }
 0x4b4   : > { %5964 = vmatpush.bf16.msrb.mxu3 %v7179_v43  ;;  %v7428_v43 = vld [vmem:[%s8183_s20 + $0x704] sm:$0xf]  ;;  %v6947_v30 = vor.u32 %v7396_v17, %v6944_v4  ;;  %s7924_s20 = sshra.s32 %s6011_s1, 4  ;;  %s7925_s20 = int_to_ptr.hbm [resolvable:$true] %s7924_s20 }
 0x4b5   : > { %5926 = vmatpush.bf16.msrb.mxu0 %v6979_v1  ;;  %v5700_v50 = vpop.f32.mrf.mxu2  ;;  %v7075_v1 = vor.u32 %v7428_v43, %v7072_v51  ;;  %s7926_s21 = scalar_lea.hbm %s7925_s20, 4  ;;  %p7931_p10 = scmp.lt.s32.totalorder %s7925_s20, %s11402_s7 }
 0x4b6   : > { %5939 = vmatpush.bf16.msrb.mxu1 %v7043_v11  ;;  %v5713_v5 = vpop.f32.mrf.mxu3  ;;  %p7927_p4 = scmp.ne.s32.totalorder %s7925_s20, %s7926_s21  ;;  %p7932_p12 = scmp.lt.s32.totalorder %s7930_s10, %s7926_s21 }
 0x4b7   : > { %5952 = vmatpush.bf16.msrb.mxu2 %v7107_v53 }
 0x4b8   : > { %5965 = vmatpush.bf16.msrb.mxu3 %v7171_v16  ;;  %p7928_p8 = pnand %p7927_p4, %p8139_p11  ;;  %p7933_p13 = por %p7932_p12, %p7931_p10 }
 0x4b9   : > { %5927 = vmatpush.bf16.msrb.mxu0 %v6971_v40 }
 0x4ba   : > { %5940 = vmatpush.bf16.msrb.mxu1 %v7035_v29  ;;  %p7929_p9 = pneg %p7928_p8 }
 0x4bb   : > { %5953 = vmatpush.bf16.msrb.mxu2 %v7099_v20 }
 0x4bc   : > { %5966 = vmatpush.bf16.msrb.mxu3 %v7163_v62  ;;  %p7934_p0 = pnand %p7933_p13, %p7929_p9 }
 0x4bd   : > { %5928 = vmatpush.bf16.msrb.mxu0 %v6963_v58 }
 0x4be   : > { %5941 = vmatpush.bf16.msrb.mxu1 %v7027_v14 }
 0x4bf   : > { %5954 = vmatpush.bf16.msrb.mxu2 %v7091_v15 }
 0x4c0   : > { %5967 = vmatpush.bf16.msrb.mxu3 %v7155_v42 }
 0x4c1   : > { %5929 = vmatpush.bf16.msrb.mxu0 %v6955_v21 }
 0x4c2   : > { %5942 = vmatpush.bf16.msrb.mxu1 %v7019_v38 }
 0x4c3   : > { %5955 = vmatpush.bf16.msrb.mxu2 %v7083_v13 }
 0x4c4   : > { %5968 = vmatpush.bf16.msrb.mxu3 %v7147_v32 }
 0x4c5   : > { %5930 = vmatpush.bf16.msrb.mxu0 %v6947_v30  ;;  %v5724_v11 = vpop.f32.mrf.mxu0 }
 0x4c6   : > { %5943 = vmatpush.bf16.msrb.mxu1 %v7011_v27  ;;  %v5725_v53 = vadd.f32 %v5724_v11, %v5712_v26  ;;  %v5737_v3 = vpop.f32.mrf.mxu1 }
 0x4c7   : > { %5956 = vmatpush.bf16.msrb.mxu2 %v7075_v1 }
 0x4c8   : > { %5969 = vmatpush.bf16.msrb.mxu3 %v7139_v61  ;;  %5931 = vmatmul.bf16.vlgmr.msrb.gmra.mxu0 %v11075_v45  ;;  %v5738_v7 = vadd.f32 %v5737_v3, %v5725_v53 }
 0x4c9   : > { %5944 = vmatmul.bf16.vlgmr.msrb.gmra.mxu1 %v11082_v19 }
 0x4ca   : > { %5957 = vmatmul.bf16.vlgmr.msrb.gmra.mxu2 %v11080_v6 }
 0x4cb   : > { %5970 = vmatmul.bf16.vlgmr.msrb.gmra.mxu3 %v11086_v0 }
 0x4cd   : > { %v5750_v54 = vpop.f32.mrf.mxu2  ;;  %v5726_v16 = vpop.f32.mrf.mxu0 }
 0x4ce   : > { %v5751_v45 = vadd.f32 %v5750_v54, %v5738_v7  ;;  %v5763_v19 = vpop.f32.mrf.mxu3  ;;  %v5739_v6 = vpop.f32.mrf.mxu1 }
 0x4d0   : > { %v5764_v0 = vadd.f32 %v5763_v19, %v5751_v45 }
 0x4d5   : > { %v5752_v33 = vpop.f32.mrf.mxu2 }
 0x4d6   : > { %v5765_v22 = vpop.f32.mrf.mxu3 }
 0x4e5   : > { %v5776_v49 = vpop.f32.mrf.mxu0 }
 0x4e6   : > { %v5789_v59 = vpop.f32.mrf.mxu1 }
 0x4e7   : > { %v5790_v48 = vadd.f32 %v5789_v59, %v5776_v49 }
 0x4ed   : > { %v5802_v9 = vpop.f32.mrf.mxu2  ;;  %v5778_v24 = vpop.f32.mrf.mxu0 }
 0x4ee   : > { %v5803_v40 = vadd.f32 %v5802_v9, %v5790_v48  ;;  %v5815_v29 = vpop.f32.mrf.mxu3  ;;  %v5791_v60 = vpop.f32.mrf.mxu1 }
 0x4f0   : > { %v5816_v20 = vadd.f32 %v5815_v29, %v5803_v40 }
 0x4f5   : > { %v5804_v56 = vpop.f32.mrf.mxu2 }
 0x4f6   : > { %v5817_v62 = vpop.f32.mrf.mxu3 }
 0x505   : > { %v5828_v23 = vpop.f32.mrf.mxu0 }
 0x506   : > { %v5841_v18 = vpop.f32.mrf.mxu1  ;;  %v5829_v41 = vadd.f32 %v5828_v23, %v5816_v20 }
 0x508   : > { %v5842_v10 = vadd.f32 %v5841_v18, %v5829_v41 }
 0x50d   : > { %v5854_v57 = vpop.f32.mrf.mxu2  ;;  %v5830_v37 = vpop.f32.mrf.mxu0 }
 0x50e   : > { %v5867_v44 = vpop.f32.mrf.mxu3  ;;  %v5843_v55 = vpop.f32.mrf.mxu1  ;;  %v5855_v31 = vadd.f32 %v5854_v57, %v5842_v10 }
 0x510   : > { %v5868_v25 = vadd.f32 %v5867_v44, %v5855_v31 }
 0x515   : > { %v5856_v47 = vpop.f32.mrf.mxu2 }
 0x516   : > { %v5869_v36 = vpop.f32.mrf.mxu3 }
 0x525   : > { %v5880_v28 = vpop.f32.mrf.mxu0 }
 0x526   : > { %v5893_v58 = vpop.f32.mrf.mxu1  ;;  %v5881_v2 = vadd.f32 %v5880_v28, %v5868_v25 }
 0x528   : > { %v5894_v8 = vadd.f32 %v5893_v58, %v5881_v2 }
 0x52d   : > { %v5906_v26 = vpop.f32.mrf.mxu2  ;;  %v5882_v15 = vpop.f32.mrf.mxu0 }
 0x52e   : > { %v5919_v14 = vpop.f32.mrf.mxu3  ;;  %v5895_v39 = vpop.f32.mrf.mxu1  ;;  %v5907_v63 = vadd.f32 %v5906_v26, %v5894_v8 }
 0x530   : > { %v5920_v21 = vadd.f32 %v5919_v14, %v5907_v63 }
 0x535   : > { %v5908_v42 = vpop.f32.mrf.mxu2 }
 0x536   : > { %v5921_v35 = vpop.f32.mrf.mxu3 }
 0x545   : > { %v5932_v38 = vpop.f32.mrf.mxu0 }
 0x546   : > { %v5945_v13 = vpop.f32.mrf.mxu1  ;;  %v5933_v17 = vadd.f32 %v5932_v38, %v5920_v21 }
 0x548   : > { %v5946_v4 = vadd.f32 %v5945_v13, %v5933_v17 }
 0x54d   : > { %v5958_v46 = vpop.f32.mrf.mxu2  ;;  %v5934_v43 = vpop.f32.mrf.mxu0 }
 0x54e   : > { %v5959_v32 = vadd.f32 %v5958_v46, %v5946_v4  ;;  %v5971_v12 = vpop.f32.mrf.mxu3  ;;  %v5947_v51 = vpop.f32.mrf.mxu1 }
 0x550   : > { %v5972_v50 = vadd.f32 %v5971_v12, %v5959_v32 }
 0x552   : > { %v5977_v34 = vrot.slane %v5972_v50, 6 }
 0x554   : > { %v5979_v52 = vsel %vm5978_vm13, %v5764_v0, %v5977_v34 }
 0x555   : > { %v5960_v5 = vpop.f32.mrf.mxu2  ;;  %5981 = vst [vmem:[%s8190_s23] sm:$0xf] %v5979_v52 }
 0x556   : > { %v5973_v30 = vpop.f32.mrf.mxu3 }
 0x557   : > { %7937 = shalt.err (!%p7934_p0)
}
 0x558   : > { %7485 = dma.vmem_to_hbm [thread:$0]  (%p8139_p11), %s6009_s22, 64, %s6011_s1, %s5983_s12  }
 0x559   : > { %p12170_p3 = pmov %p12169_p2 }
 0x55a   : > { %p12171_p5 = pmov %p12169_p2 }
 0x55b   : > { %7971 = dma.done.wait (%p12170_p3), [#allocation5], 512  }
 0x55c   : > { %7973 = vsyncadd (%p12171_p5), [#allocation5], 4294966784 }
 0x55d PF: > { %s6027_s0 = sand.u32 1, %s7980_s24   ;;  %p12172_p7 = scmp.ge.s32.totalorder %s7992_s27, 2 }
 0x55e   : > { %s6028_s23 = scalar_lea.sflag [#allocation16], %s6027_s0 }
 0x55f   : > { %p7510_p1 = pnand %p12172_p7, %p8080_p6 }
 0x561   : > { %p7511_p2 = pneg %p7510_p1 }
 0x563   : > { %7975 = dma.done.wait (%p7511_p2), %s6028_s23, 64  }
 0x564   : > { %7977 = vsyncadd (%p7511_p2), %s6028_s23, 4294967232  ;;  %p25_p11 = scmp.ge.s32.totalorder %s8123_s29, 4   ;;  %s12173_s24 = smov %s7984_s25 }
 0x565   : > { %s12174_s25 = smov %s7988_s26  ;;  %s12175_s26 = smov %s8135_s13 }
 0x566   : > { %s12176_s27 = smov %s8123_s29  ;;  %27 = sbr.rel (!%p25_p11) target bundleno = 12 (0xc), region = 132 }
 0x56b   :  { %6034 = vsyncpa [#allocation4], 1 }
 0x56c   :  { %6036 = vsyncpa [#allocation4 + $0x1], 1 }
 0x56d   :  { %6037 = vsyncpa [#allocation7], 1 }
 0x56e   :  { %6038 = vsyncpa [#allocation10], 1 }
 0x56f   :  { %6039 = vsyncpa [#allocation13], 1 }
 0x570   :  { %6041 = vsyncpa [#allocation13 + $0x1], 1 }
 0x571   :  { %6042 = vsyncpa [#allocation5], 1 }
 0x572   :  { %6044 = vsyncpa [#allocation5 + $0x1], 1 }
 0x573   :  { %6045 = vsyncpa [#allocation16], 1 }
 0x574   :  { %6047 = vsyncpa [#allocation16 + $0x1], 1 }

</bundles_post_ra>
